<compile_context>
chip_gen: v5e
topology: v5e:2x2
jax: 0.10.0
libtpu: 0.0.40
codegen_flags: <defaults>
</compile_context>

<pallas_src>
import functools

import jax
import jax.numpy as jnp
from jax.experimental import pallas as pl
from jax.experimental.pallas import tpu as pltpu


def fused_kernel(x_ref, s_ref, w_ref, g_ref, b_ref, r_ref, o_ref):
    # x_ref : (Cin, P)   flattened input, channel-major, f32
    # s_ref : (Cin, 1)   SE scale, lane-broadcast over P, f32
    # w_ref : (Tc,  Cin) 1x1-conv weight block, bf16 (torch OIHW order kept)
    # g_ref : (Tc, 1)    batchnorm gamma, f32
    # b_ref : (Tc, 1)    batchnorm beta, f32
    # r_ref : (Tc, P)    residual block, f32
    # o_ref : (Tc, P)    output block, f32
    #
    # SE scale on the VPU, then cast only the activations to bf16 so the MXU
    # runs a single-pass bf16 x bf16 matmul with f32 accumulation.
    xs = (x_ref[...] * s_ref[...]).astype(jnp.bfloat16)              # (Cin, P)
    y = jnp.dot(w_ref[...], xs, preferred_element_type=jnp.float32)  # (Tc, P) f32

    # Training-mode BatchNorm, single pass (f32): biased batch variance.
    p = y.shape[1]
    inv_p = jnp.float32(1.0 / p)
    mean = jnp.sum(y, axis=1, keepdims=True) * inv_p
    mean_sq = jnp.sum(y * y, axis=1, keepdims=True) * inv_p
    var = mean_sq - mean * mean
    inv_std = jax.lax.rsqrt(var + jnp.float32(1e-5))

    # Fold the affine into per-channel scale/shift -> one fused epilogue pass.
    scale = g_ref[...] * inv_std
    shift = b_ref[...] - scale * mean
    o_ref[...] = scale * y + shift + r_ref[...]


def _tensorcores_per_chip() -> int:
    """Best-effort TensorCores-per-chip (v7x: 2, v5e/v6e: 1)."""
    try:
        kind = jax.devices()[0].device_kind.lower()
    except Exception:
        return 1
    return 2 if ("v7" in kind or "7x" in kind) else 1


def fused_mul_conv_bn_add(x522, x527, x516, w_co_ci, gamma, beta, *, n_blk=1):
    """x522: (1, Cin, H, W) f32, x527: (1, Cin, 1, 1) f32, x516: (1, Cout, H, W) f32,
    w_co_ci: (Cout, Cin) conv weight (bf16), gamma/beta: (Cout,) f32."""
    N, Cin, H, W = x522.shape
    Cout = w_co_ci.shape[0]
    assert N == 1, "kernel assumes N == 1 (matches the reference module)"
    P = N * H * W

    assert Cout % n_blk == 0
    tc = Cout // n_blk
    # Tile-alignment guards for split blocks (full-array blocks are exempt).
    if n_blk > 1:
        assert tc % 16 == 0, "per-core bf16 weight block must be 16-row aligned"

    # Channel-major layout: every reshape below is a pure bitcast (zero-copy).
    x2d = x522.reshape(Cin, P)
    s2d = x527.reshape(Cin, 1)
    r2d = x516.reshape(Cout, P)
    g2d = gamma.reshape(Cout, 1)
    b2d = beta.reshape(Cout, 1)

    # Real cross-core sharding only when we actually split (v7x); a single
    # block needs no parallel semantics at all.
    if n_blk > 1:
        dim_sem = (pltpu.CORE_PARALLEL,)
    else:
        dim_sem = ("arbitrary",)

    w_bytes = int(w_co_ci.size) * int(jnp.dtype(w_co_ci.dtype).itemsize)
    f32_bytes = 4 * int(x2d.size + s2d.size + g2d.size + b2d.size + r2d.size + Cout * P)

    out2d = pl.pallas_call(
        fused_kernel,
        out_shape=jax.ShapeDtypeStruct((Cout, P), jnp.float32),
        grid=(n_blk,),
        in_specs=[
            pl.BlockSpec((Cin, P), lambda i: (0, 0)),    # x      (shared across blocks)
            pl.BlockSpec((Cin, 1), lambda i: (0, 0)),    # scale  (shared)
            pl.BlockSpec((tc, Cin), lambda i: (i, 0)),   # weight (split on Cout)
            pl.BlockSpec((tc, 1), lambda i: (i, 0)),     # gamma
            pl.BlockSpec((tc, 1), lambda i: (i, 0)),     # beta
            pl.BlockSpec((tc, P), lambda i: (i, 0)),     # residual
        ],
        out_specs=pl.BlockSpec((tc, P), lambda i: (i, 0)),
        compiler_params=pltpu.CompilerParams(dimension_semantics=dim_sem),
        cost_estimate=pl.CostEstimate(
            flops=2 * P * Cin * Cout,
            transcendentals=Cout,
            bytes_accessed=f32_bytes + w_bytes),
    )(x2d, s2d, w_co_ci, g2d, b2d, r2d)

    # (Cout, P) -> (1, Cout, H, W): zero-copy reshape.
    return out2d.reshape(N, Cout, H, W)


def reference(x522, x527, x516, w_co_ci_f32, gamma, beta, *, bf16_mxu_inputs=False):
    """Pure-JAX reference mirroring the PyTorch module (training-mode BN).

    With bf16_mxu_inputs=True the scaled activations are rounded to bf16
    before the matmul, matching the kernel's MXU input precision exactly."""
    x528 = x522 * x527
    if bf16_mxu_inputs:
        x528 = x528.astype(jnp.bfloat16).astype(jnp.float32)
    x529 = jnp.einsum("nchw,oc->nohw", x528, w_co_ci_f32,
                      precision=jax.lax.Precision.HIGHEST)
    mean = jnp.mean(x529, axis=(0, 2, 3), keepdims=True)
    var = jnp.mean((x529 - mean) ** 2, axis=(0, 2, 3), keepdims=True)
    xhat = (x529 - mean) * jax.lax.rsqrt(var + 1e-5)
    x530 = xhat * gamma.reshape(1, -1, 1, 1) + beta.reshape(1, -1, 1, 1)
    return x530 + x516


if __name__ == "__main__":
    # Shapes implied by the module: Conv2d(1824 -> 304, 1x1) on 7x7 maps, N=1.
    N, Cin, Cout, H, W = 1, 1824, 304, 7, 7

    key = jax.random.PRNGKey(0)
    k1, k2, k3, k4, k5, k6 = jax.random.split(key, 6)

    x522 = jax.random.normal(k1, (N, Cin, H, W), dtype=jnp.float32)
    x527 = jax.random.normal(k2, (N, Cin, 1, 1), dtype=jnp.float32)
    x516 = jax.random.normal(k3, (N, Cout, H, W), dtype=jnp.float32)

    # Deterministic synthetic parameters (module weights are random anyway).
    w_oihw = jax.random.normal(k4, (Cout, Cin, 1, 1), dtype=jnp.float32) * 0.02
    gamma = 1.0 + 0.1 * jax.random.normal(k5, (Cout,), dtype=jnp.float32)
    beta = 0.1 * jax.random.normal(k6, (Cout,), dtype=jnp.float32)

    # Parameter prep done ONCE, outside the hot path: (Cout, Cin, 1, 1) ->
    # (Cout, Cin) stored in bf16 (halves the dominant HBM stream; the kernel
    # accumulates in f32 on the MXU).
    # TODO(synk): on v7x an fp8 (e4m3) weight would halve this stream again
    # if the accuracy budget allows; bf16 kept as the portable default.
    w_param = w_oihw.reshape(Cout, Cin).astype(jnp.bfloat16)

    # Generation-aware Cout split (see header comment): 1 on v5e/v6e; 2 on
    # v7x only when the per-core blocks stay tile-aligned (Cout % 32 == 0),
    # which 304 does not satisfy -> stays 1 here.
    n_blk = 2 if (_tensorcores_per_chip() == 2 and Cout % 32 == 0) else 1

    fused = jax.jit(functools.partial(fused_mul_conv_bn_add, n_blk=n_blk))
    out = jax.block_until_ready(fused(x522, x527, x516, w_param, gamma, beta))
    assert out.shape == (N, Cout, H, W)

    # 1) Tight check against a reference using the exact deployed numerics
    #    (bf16 weight + bf16 MXU activations, f32 accumulation).
    ref_matched = reference(x522, x527, x516, w_param.astype(jnp.float32),
                            gamma, beta, bf16_mxu_inputs=True)
    ref_matched = jax.block_until_ready(ref_matched)
    err_m = float(jnp.max(jnp.abs(out - ref_matched)))
    assert jnp.allclose(out, ref_matched, atol=2e-3, rtol=2e-3), err_m

    # 2) Looser check against the original all-f32 module numerics, so the
    #    test also bounds the bf16 weight/activation rounding error.
    ref_f32 = reference(x522, x527, x516, w_oihw.reshape(Cout, Cin),
                        gamma, beta, bf16_mxu_inputs=False)
    ref_f32 = jax.block_until_ready(ref_f32)
    err_f = float(jnp.max(jnp.abs(out - ref_f32)))
    assert jnp.allclose(out, ref_f32, atol=5e-2, rtol=5e-2), err_f

    print("KERNEL_OK")
</pallas_src>

<mosaic_0001>
module attributes {stable_mosaic.version = 11 : i64} {
  func.func @fused_kernel(%arg0: i32, %arg1: memref<1824x49xf32, #tpu.memory_space<vmem>>, %arg2: memref<1824x1xf32, #tpu.memory_space<vmem>>, %arg3: memref<304x1824xbf16, #tpu.memory_space<vmem>>, %arg4: memref<304x1xf32, #tpu.memory_space<vmem>>, %arg5: memref<304x1xf32, #tpu.memory_space<vmem>>, %arg6: memref<304x49xf32, #tpu.memory_space<vmem>>, %arg7: memref<304x49xf32, #tpu.memory_space<vmem>>) attributes {dimension_semantics = [#tpu.dimension_semantics<arbitrary>], iteration_bounds = array<i64: 1>, scalar_prefetch = 0 : i64, scratch_operands = 0 : i64, tpu.core_type = #tpu.core_type<tc>, window_params = [{pipeline_mode = #tpu.pipeline_mode<synchronous>, transform_indices = @transform_0, window_bounds = array<i64: 1824, 49>}, {pipeline_mode = #tpu.pipeline_mode<synchronous>, transform_indices = @transform_1, window_bounds = array<i64: 1824, 1>}, {transform_indices = @transform_2, window_bounds = array<i64: 304, 1824>}, {transform_indices = @transform_3, window_bounds = array<i64: 304, 1>}, {transform_indices = @transform_4, window_bounds = array<i64: 304, 1>}, {transform_indices = @transform_5, window_bounds = array<i64: 304, 49>}, {transform_indices = @transform_6, window_bounds = array<i64: 304, 49>}]} {
    %c0 = arith.constant 0 : index
    %c0_0 = arith.constant 0 : index
    %0 = vector.load %arg1[%c0, %c0_0] : memref<1824x49xf32, #tpu.memory_space<vmem>>, vector<1824x49xf32>
    %c0_1 = arith.constant 0 : index
    %c0_2 = arith.constant 0 : index
    %1 = vector.load %arg2[%c0_1, %c0_2] : memref<1824x1xf32, #tpu.memory_space<vmem>>, vector<1824x1xf32>
    %2 = vector.broadcast %1 : vector<1824x1xf32> to vector<1824x49xf32>
    %3 = arith.mulf %0, %2 : vector<1824x49xf32>
    %4 = arith.truncf %3 : vector<1824x49xf32> to vector<1824x49xbf16>
    %c0_3 = arith.constant 0 : index
    %c0_4 = arith.constant 0 : index
    %5 = vector.load %arg3[%c0_3, %c0_4] : memref<304x1824xbf16, #tpu.memory_space<vmem>>, vector<304x1824xbf16>
    %cst = arith.constant dense<0.000000e+00> : vector<304x49xf32>
    %6 = tpu.matmul %5, %4, %cst {dimension_numbers = #tpu.dot_dimension_numbers<[1], [0], [0], [1], [0, 0, 1, 1], [], []>} : vector<304x1824xbf16>, vector<1824x49xbf16>, vector<304x49xf32> -> vector<304x49xf32>
    %cst_5 = arith.constant dense<0.000000e+00> : vector<304xf32>
    %7 = vector.multi_reduction <add>, %6, %cst_5 [1] : vector<304x49xf32> to vector<304xf32>
    %8 = vector.shape_cast %7 : vector<304xf32> to vector<304x1xf32>
    %cst_6 = arith.constant 0.0204081628 : f32
    %9 = vector.broadcast %cst_6 : f32 to vector<304x1xf32>
    %10 = arith.mulf %8, %9 : vector<304x1xf32>
    %11 = arith.mulf %6, %6 : vector<304x49xf32>
    %cst_7 = arith.constant dense<0.000000e+00> : vector<304xf32>
    %12 = vector.multi_reduction <add>, %11, %cst_7 [1] : vector<304x49xf32> to vector<304xf32>
    %13 = vector.shape_cast %12 : vector<304xf32> to vector<304x1xf32>
    %cst_8 = arith.constant 0.0204081628 : f32
    %14 = vector.broadcast %cst_8 : f32 to vector<304x1xf32>
    %15 = arith.mulf %13, %14 : vector<304x1xf32>
    %16 = arith.mulf %10, %10 : vector<304x1xf32>
    %17 = arith.subf %15, %16 : vector<304x1xf32>
    %cst_9 = arith.constant 9.99999974E-6 : f32
    %18 = vector.broadcast %cst_9 : f32 to vector<304x1xf32>
    %19 = arith.addf %17, %18 : vector<304x1xf32>
    %20 = math.rsqrt %19 : vector<304x1xf32>
    %c0_10 = arith.constant 0 : index
    %c0_11 = arith.constant 0 : index
    %21 = vector.load %arg4[%c0_10, %c0_11] : memref<304x1xf32, #tpu.memory_space<vmem>>, vector<304x1xf32>
    %22 = arith.mulf %21, %20 : vector<304x1xf32>
    %c0_12 = arith.constant 0 : index
    %c0_13 = arith.constant 0 : index
    %23 = vector.load %arg5[%c0_12, %c0_13] : memref<304x1xf32, #tpu.memory_space<vmem>>, vector<304x1xf32>
    %24 = arith.mulf %22, %10 : vector<304x1xf32>
    %25 = arith.subf %23, %24 : vector<304x1xf32>
    %26 = vector.broadcast %22 : vector<304x1xf32> to vector<304x49xf32>
    %27 = arith.mulf %26, %6 : vector<304x49xf32>
    %28 = vector.broadcast %25 : vector<304x1xf32> to vector<304x49xf32>
    %29 = arith.addf %27, %28 : vector<304x49xf32>
    %c0_14 = arith.constant 0 : index
    %c0_15 = arith.constant 0 : index
    %30 = vector.load %arg6[%c0_14, %c0_15] : memref<304x49xf32, #tpu.memory_space<vmem>>, vector<304x49xf32>
    %31 = arith.addf %29, %30 : vector<304x49xf32>
    %c0_16 = arith.constant 0 : index
    %c0_17 = arith.constant 0 : index
    %32 = vector.load %arg7[%c0_16, %c0_17] : memref<304x49xf32, #tpu.memory_space<vmem>>, vector<304x49xf32>
    tpu.vector_store %arg7[%c0_16, %c0_17], %31 {strides = array<i32>} : memref<304x49xf32, #tpu.memory_space<vmem>>, vector<304x49xf32>,
    return
  }
  func.func @transform_0(%arg0: i32) -> (i32, i32) {
    %c0_i32 = arith.constant 0 : i32
    %c0_i32_0 = arith.constant 0 : i32
    %c0_i32_1 = arith.constant 0 : i32
    return %c0_i32, %c0_i32_0 : i32, i32
  }
  func.func @transform_1(%arg0: i32) -> (i32, i32) {
    %c0_i32 = arith.constant 0 : i32
    %c0_i32_0 = arith.constant 0 : i32
    %c0_i32_1 = arith.constant 0 : i32
    return %c0_i32, %c0_i32_0 : i32, i32
  }
  func.func @transform_2(%arg0: i32) -> (i32, i32) {
    %c0_i32 = arith.constant 0 : i32
    %c0_i32_0 = arith.constant 0 : i32
    return %arg0, %c0_i32 : i32, i32
  }
  func.func @transform_3(%arg0: i32) -> (i32, i32) {
    %c0_i32 = arith.constant 0 : i32
    %c0_i32_0 = arith.constant 0 : i32
    return %arg0, %c0_i32 : i32, i32
  }
  func.func @transform_4(%arg0: i32) -> (i32, i32) {
    %c0_i32 = arith.constant 0 : i32
    %c0_i32_0 = arith.constant 0 : i32
    return %arg0, %c0_i32 : i32, i32
  }
  func.func @transform_5(%arg0: i32) -> (i32, i32) {
    %c0_i32 = arith.constant 0 : i32
    %c0_i32_0 = arith.constant 0 : i32
    return %arg0, %c0_i32 : i32, i32
  }
  func.func @transform_6(%arg0: i32) -> (i32, i32) {
    %c0_i32 = arith.constant 0 : i32
    %c0_i32_0 = arith.constant 0 : i32
    return %arg0, %c0_i32 : i32, i32
  }
}

</mosaic_0001>

<bundles_post_ra>
// kernel: fused_mul_conv_bn_add.1
= control target key start
LH: loop header
LB: loop body
LE: loop exit
PB: predicated region body
PF: predicated region fallthrough
CT: control target
= control target key end

     0   :  { %v8458_v0 = vmov 0   ;;  %vm3691_vm0 = vcmask 261120   ;;  %vm5309_vm1 = vcmask 400384   ;;  %s14787_s1 = inlined_call_operand.vmem [shape: f32[1824,1], index: 1, kind: input, shape index: {}]   ;;  %s14788_s0 = inlined_call_operand.vmem [shape: f32[1824,49], index: 0, kind: input, shape index: {}]   ;;  %s14789_s2 = inlined_call_operand.vmem [shape: bf16[304,1824], index: 2, kind: input, shape index: {}]   ;;  %s14790_s3 = inlined_call_operand.vmem [shape: f32[304,1], index: 3, kind: input, shape index: {}]   ;;  %s14791_s4 = inlined_call_operand.vmem [shape: f32[304,1], index: 4, kind: input, shape index: {}]   ;;  %s14792_s5 = inlined_call_operand.vmem [shape: f32[304,49], index: 5, kind: input, shape index: {}]   ;;  %s14793_s6 = inlined_call_operand.vmem [shape: f32[304,49], index: 6, kind: output, shape index: {}]  }
   0x1   :  { %8381 = vset.pattern.permute.xlu2 %v8458_v0  ;;  %8380 = vset.pattern.permute.xlu1 %v8458_v0  ;;  %v256_v1 = vld [vmem:[%s14787_s1 + $0x20] sm:$0xff]  ;;  %v254_v2 = vld [vmem:[%s14787_s1 + $0x10] sm:$0xff]  ;;  %v257_v4 = vld [vmem:[%s14787_s1 + $0x28] sm:$0xff] }
   0x2   :  { %v252_v3 = vld [vmem:[%s14787_s1] sm:$0xff]  ;;  %8379 = vset.pattern.permute.xlu0 %v8458_v0  ;;  %502 = vperm.xlu2 %8381, %v256_v1   ;;  %v255_v5 = vld [vmem:[%s14787_s1 + $0x18] sm:$0xff]  ;;  %v253_v6 = vld [vmem:[%s14787_s1 + $0x8] sm:$0xff] }
   0x3   :  { %492 = vperm.xlu1 %8380, %v254_v2   ;;  %482 = vperm.xlu0 %8379, %v252_v3   ;;  %v260_v7 = vld [vmem:[%s14787_s1 + $0x40] sm:$0xff]  ;;  %v259_v8 = vld [vmem:[%s14787_s1 + $0x38] sm:$0xff]  ;;  %v258_v9 = vld [vmem:[%s14787_s1 + $0x30] sm:$0xff] }
   0x4   :  { %v263_v10 = vld [vmem:[%s14787_s1 + $0x58] sm:$0xff]  ;;  %v262_v11 = vld [vmem:[%s14787_s1 + $0x50] sm:$0xff]  ;;  %v261_v12 = vld [vmem:[%s14787_s1 + $0x48] sm:$0xff] }
   0x5   :  { %v266_v13 = vld [vmem:[%s14787_s1 + $0x70] sm:$0xff]  ;;  %v265_v14 = vld [vmem:[%s14787_s1 + $0x68] sm:$0xff]  ;;  %v264_v15 = vld [vmem:[%s14787_s1 + $0x60] sm:$0xff] }
   0x6   :  { %v269_v16 = vld [vmem:[%s14787_s1 + $0x88] sm:$0xff]  ;;  %v268_v17 = vld [vmem:[%s14787_s1 + $0x80] sm:$0xff]  ;;  %v267_v18 = vld [vmem:[%s14787_s1 + $0x78] sm:$0xff] }
   0x7   :  { %v272_v19 = vld [vmem:[%s14787_s1 + $0xa0] sm:$0xff]  ;;  %v271_v20 = vld [vmem:[%s14787_s1 + $0x98] sm:$0xff]  ;;  %v270_v21 = vld [vmem:[%s14787_s1 + $0x90] sm:$0xff] }
   0x8   :  { %v275_v22 = vld [vmem:[%s14787_s1 + $0xb8] sm:$0xff]  ;;  %v274_v23 = vld [vmem:[%s14787_s1 + $0xb0] sm:$0xff]  ;;  %v273_v24 = vld [vmem:[%s14787_s1 + $0xa8] sm:$0xff] }
   0x9   :  { %v278_v25 = vld [vmem:[%s14787_s1 + $0xd0] sm:$0xff]  ;;  %v277_v26 = vld [vmem:[%s14787_s1 + $0xc8] sm:$0xff]  ;;  %v276_v27 = vld [vmem:[%s14787_s1 + $0xc0] sm:$0xff] }
   0xa   :  { %507 = vperm.xlu2 %8381, %v257_v4   ;;  %v281_v28 = vld [vmem:[%s14787_s1 + $0xe8] sm:$0xff]  ;;  %v280_v29 = vld [vmem:[%s14787_s1 + $0xe0] sm:$0xff]  ;;  %v279_v30 = vld [vmem:[%s14787_s1 + $0xd8] sm:$0xff] }
   0xb   :  { %497 = vperm.xlu1 %8380, %v255_v5   ;;  %487 = vperm.xlu0 %8379, %v253_v6   ;;  %v284_v31 = vld [vmem:[%s14787_s1 + $0x100] sm:$0xff]  ;;  %v283_v32 = vld [vmem:[%s14787_s1 + $0xf8] sm:$0xff]  ;;  %v282_v33 = vld [vmem:[%s14787_s1 + $0xf0] sm:$0xff] }
   0xc   :  { %v287_v34 = vld [vmem:[%s14787_s1 + $0x118] sm:$0xff]  ;;  %v286_v35 = vld [vmem:[%s14787_s1 + $0x110] sm:$0xff]  ;;  %v285_v36 = vld [vmem:[%s14787_s1 + $0x108] sm:$0xff] }
   0xd   :  { %v290_v38 = vld [vmem:[%s14787_s1 + $0x130] sm:$0xff]  ;;  %v289_v39 = vld [vmem:[%s14787_s1 + $0x128] sm:$0xff]  ;;  %v288_v40 = vld [vmem:[%s14787_s1 + $0x120] sm:$0xff] }
   0xe   :  { %v293_v42 = vld [vmem:[%s14787_s1 + $0x148] sm:$0xff]  ;;  %v292_v43 = vld [vmem:[%s14787_s1 + $0x140] sm:$0xff]  ;;  %v291_v44 = vld [vmem:[%s14787_s1 + $0x138] sm:$0xff] }
   0xf   :  { %v296_v46 = vld [vmem:[%s14787_s1 + $0x160] sm:$0xff]  ;;  %v295_v47 = vld [vmem:[%s14787_s1 + $0x158] sm:$0xff]  ;;  %v294_v48 = vld [vmem:[%s14787_s1 + $0x150] sm:$0xff] }
  0x10   :  { %v299_v52 = vld [vmem:[%s14787_s1 + $0x178] sm:$0xff]  ;;  %v298_v53 = vld [vmem:[%s14787_s1 + $0x170] sm:$0xff]  ;;  %v297_v54 = vld [vmem:[%s14787_s1 + $0x168] sm:$0xff] }
  0x11   :  { %v302_v58 = vld [vmem:[%s14787_s1 + $0x190] sm:$0xff]  ;;  %v301_v59 = vld [vmem:[%s14787_s1 + $0x188] sm:$0xff]  ;;  %v300_v60 = vld [vmem:[%s14787_s1 + $0x180] sm:$0xff] }
  0x12   :  { %522 = vperm.xlu2 %8381, %v260_v7   ;;  %v305_v0 = vld [vmem:[%s14787_s1 + $0x1a8] sm:$0xff]  ;;  %v304_v1 = vld [vmem:[%s14787_s1 + $0x1a0] sm:$0xff]  ;;  %v303_v2 = vld [vmem:[%s14787_s1 + $0x198] sm:$0xff] }
  0x13   :  { %517 = vperm.xlu1 %8380, %v259_v8   ;;  %512 = vperm.xlu0 %8379, %v258_v9   ;;  %v308_v6 = vld [vmem:[%s14787_s1 + $0x1c0] sm:$0xff]  ;;  %v307_v7 = vld [vmem:[%s14787_s1 + $0x1b8] sm:$0xff]  ;;  %v306_v8 = vld [vmem:[%s14787_s1 + $0x1b0] sm:$0xff] }
  0x1a   :  { %537 = vperm.xlu2 %8381, %v263_v10  }
  0x1b   :  { %532 = vperm.xlu1 %8380, %v262_v11   ;;  %527 = vperm.xlu0 %8379, %v261_v12   ;;  %v311_v12 = vld [vmem:[%s14787_s1 + $0x1d8] sm:$0xff] }
  0x22   :  { %552 = vperm.xlu2 %8381, %v266_v13   ;;  %v310_v13 = vld [vmem:[%s14787_s1 + $0x1d0] sm:$0xff] }
  0x23   :  { %547 = vperm.xlu1 %8380, %v265_v14   ;;  %542 = vperm.xlu0 %8379, %v264_v15   ;;  %v309_v14 = vld [vmem:[%s14787_s1 + $0x1c8] sm:$0xff]  ;;  %v38_v15 = vld [vmem:[%s14788_s0 + $0x70] sm:$0xff] }
  0x2a   :  { %567 = vperm.xlu2 %8381, %v269_v16   ;;  %v39_v16 = vld [vmem:[%s14788_s0 + $0x78] sm:$0xff] }
  0x2b   :  { %562 = vperm.xlu1 %8380, %v268_v17   ;;  %557 = vperm.xlu0 %8379, %v267_v18   ;;  %v37_v18 = vld [vmem:[%s14788_s0 + $0x68] sm:$0xff] }
  0x32   :  { %582 = vperm.xlu2 %8381, %v272_v19   ;;  %v36_v19 = vld [vmem:[%s14788_s0 + $0x60] sm:$0xff] }
  0x33   :  { %577 = vperm.xlu1 %8380, %v271_v20   ;;  %572 = vperm.xlu0 %8379, %v270_v21  }
  0x3a   :  { %597 = vperm.xlu2 %8381, %v275_v22  }
  0x3b   :  { %592 = vperm.xlu1 %8380, %v274_v23   ;;  %587 = vperm.xlu0 %8379, %v273_v24  }
  0x42   :  { %612 = vperm.xlu2 %8381, %v278_v25  }
  0x43   :  { %607 = vperm.xlu1 %8380, %v277_v26   ;;  %602 = vperm.xlu0 %8379, %v276_v27   ;;  %v314_v27 = vld [vmem:[%s14787_s1 + $0x1f0] sm:$0xff] }
  0x4a   :  { %627 = vperm.xlu2 %8381, %v281_v28   ;;  %v313_v28 = vld [vmem:[%s14787_s1 + $0x1e8] sm:$0xff] }
  0x4b   :  { %622 = vperm.xlu1 %8380, %v280_v29   ;;  %617 = vperm.xlu0 %8379, %v279_v30   ;;  %v34_v29 = vld [vmem:[%s14788_s0 + $0x50] sm:$0xff]  ;;  %v312_v30 = vld [vmem:[%s14787_s1 + $0x1e0] sm:$0xff] }
  0x52   :  { %642 = vperm.xlu2 %8381, %v284_v31   ;;  %v35_v31 = vld [vmem:[%s14788_s0 + $0x58] sm:$0xff] }
  0x53   :  { %637 = vperm.xlu1 %8380, %v283_v32   ;;  %632 = vperm.xlu0 %8379, %v282_v33  }
  0x5a   :  { %657 = vperm.xlu2 %8381, %v287_v34  }
  0x5b   :  { %652 = vperm.xlu1 %8380, %v286_v35   ;;  %647 = vperm.xlu0 %8379, %v285_v36   ;;  %v33_v35 = vld [vmem:[%s14788_s0 + $0x48] sm:$0xff] }
  0x5c   :  { %v8602_v37 = vpop.permute.xlu2 %502 }
  0x62   :  { %672 = vperm.xlu2 %8381, %v290_v38  }
  0x63   :  { %667 = vperm.xlu1 %8380, %v289_v39   ;;  %662 = vperm.xlu0 %8379, %v288_v40   ;;  %v32_v40 = vld [vmem:[%s14788_s0 + $0x40] sm:$0xff] }
  0x64   :  { %v8613_v41 = vpop.permute.xlu2 %507 }
  0x6a   :  { %687 = vperm.xlu2 %8381, %v293_v42  }
  0x6b   :  { %682 = vperm.xlu1 %8380, %v292_v43   ;;  %677 = vperm.xlu0 %8379, %v291_v44   ;;  %v317_v44 = vld [vmem:[%s14787_s1 + $0x208] sm:$0xff] }
  0x6c   :  { %v8624_v45 = vpop.permute.xlu2 %522 }
  0x72   :  { %702 = vperm.xlu2 %8381, %v296_v46   ;;  %v316_v46 = vld [vmem:[%s14787_s1 + $0x200] sm:$0xff] }
  0x73   :  { %697 = vperm.xlu1 %8380, %v295_v47   ;;  %692 = vperm.xlu0 %8379, %v294_v48   ;;  %v31_v47 = vld [vmem:[%s14788_s0 + $0x38] sm:$0xff]  ;;  %v30_v48 = vld [vmem:[%s14788_s0 + $0x30] sm:$0xff] }
  0x74   :  { %v8635_v49 = vpop.permute.xlu2 %537 }
  0x75   :  { %v8637_v50 = vpop.permute.xlu1 %492  ;;  %v8639_v51 = vpop.permute.xlu0 %482  ;;  %v1631_v39 = vmul.f32 %v8635_v49, %v35_v31  ;;  %v315_v49 = vld [vmem:[%s14787_s1 + $0x1f8] sm:$0xff]  ;;  %v324_v31 = vld [vmem:[%s14787_s1 + $0x240] sm:$0xff] }
  0x7a   :  { %717 = vperm.xlu2 %8381, %v299_v52   ;;  %v1628_v52 = vmul.f32 %v8624_v45, %v32_v40  ;;  %v29_v45 = vld [vmem:[%s14788_s0 + $0x28] sm:$0xff] }
  0x7b   :  { %712 = vperm.xlu1 %8380, %v298_v53   ;;  %707 = vperm.xlu0 %8379, %v297_v54  }
  0x7c   :  { %v553_v55 = vpop.permute.xlu2 %552 }
  0x7d   :  { %v8650_v56 = vpop.permute.xlu1 %497  ;;  %v8652_v57 = vpop.permute.xlu0 %487  ;;  %v1634_v22 = vmul.f32 %v553_v55, %v38_v15 }
  0x82   :  { %732 = vperm.xlu2 %8381, %v302_v58  }
  0x83   :  { %727 = vperm.xlu1 %8380, %v301_v59   ;;  %722 = vperm.xlu0 %8379, %v300_v60   ;;  %v28_v59 = vld [vmem:[%s14788_s0 + $0x20] sm:$0xff] }
  0x84   :  { %v8663_v61 = vpop.permute.xlu2 %567 }
  0x85   :  { %v8665_v62 = vpop.permute.xlu1 %517  ;;  %v8667_v63 = vpop.permute.xlu0 %512 }
  0x86   :  { %v1627_v53 = vmul.f32 %v8665_v62, %v31_v47  ;;  %v1626_v54 = vmul.f32 %v8667_v63, %v30_v48  ;;  %v1624_v62 = vmul.f32 %v8602_v37, %v28_v59  ;;  %v1625_v63 = vmul.f32 %v8613_v41, %v29_v45  ;;  %v26_v37 = vld [vmem:[%s14788_s0 + $0x10] sm:$0xff] }
  0x87   :  { %v8091_v45 = vld [vmem:[%s14789_s2 + $0xb0] sm:$0xf0] }
  0x8a   :  { %747 = vperm.xlu2 %8381, %v305_v0  }
  0x8b   :  { %742 = vperm.xlu1 %8380, %v304_v1   ;;  %737 = vperm.xlu0 %8379, %v303_v2   ;;  %v1851_v1 = vpack.c.bf16 %v1627_v53, %v1626_v54  ;;  %v320_v2 = vld [vmem:[%s14787_s1 + $0x220] sm:$0xff]  ;;  %v51_v53 = vld [vmem:[%s14788_s0 + $0xd8] sm:$0xff] }
  0x8c   :  { %v8678_v3 = vpop.permute.xlu2 %582  ;;  %v327_v54 = vld [vmem:[%s14787_s1 + $0x258] sm:$0xff] }
  0x8d   :  { %v533_v4 = vpop.permute.xlu1 %532  ;;  %v528_v5 = vpop.permute.xlu0 %527 }
  0x8e   :  { %v1630_v32 = vmul.f32 %v533_v4, %v34_v29  ;;  %v1629_v42 = vmul.f32 %v528_v5, %v33_v35  ;;  %v319_v4 = vld [vmem:[%s14787_s1 + $0x218] sm:$0xff]  ;;  %v326_v29 = vld [vmem:[%s14787_s1 + $0x250] sm:$0xff] }
  0x8f   :  { %v27_v5 = vld [vmem:[%s14788_s0 + $0x18] sm:$0xff] }
  0x90   :  { %v1853_v43 = vpack.c.bf16 %v1631_v39, %v1630_v32  ;;  %v1852_v58 = vpack.c.bf16 %v1629_v42, %v1628_v52  ;;  %v1623_v41 = vmul.f32 %v8650_v56, %v27_v5  ;;  %v24_v56 = vld [vmem:[%s14788_s0] sm:$0xff]  ;;  %v55_v32 = vld [vmem:[%s14788_s0 + $0xf8] sm:$0xff]  ;;  %v49_v5 = vld [vmem:[%s14788_s0 + $0xc8] sm:$0xff] }
  0x91   :  { %v52_v39 = vld [vmem:[%s14788_s0 + $0xe0] sm:$0xff] }
  0x92   :  { %762 = vperm.xlu2 %8381, %v308_v6   ;;  %v318_v6 = vld [vmem:[%s14787_s1 + $0x210] sm:$0xff]  ;;  %v328_v52 = vld [vmem:[%s14787_s1 + $0x260] sm:$0xff] }
  0x93   :  { %757 = vperm.xlu1 %8380, %v307_v7   ;;  %752 = vperm.xlu0 %8379, %v306_v8   ;;  %v1850_v8 = vpack.c.bf16 %v1625_v63, %v1624_v62  ;;  %v7872_v62 = vld [vmem:[%s14789_s2 + $0x780] sm:$0xf]  ;;  %v8316_v63 = vld [vmem:[%s14789_s2 + $0x7b8] sm:$0xf0] }
  0x94   :  { %v8689_v9 = vpop.permute.xlu2 %597 }
  0x95   :  { %v548_v10 = vpop.permute.xlu1 %547  ;;  %v543_v11 = vpop.permute.xlu0 %542 }
  0x96   :  { %v1633_v24 = vmul.f32 %v548_v10, %v37_v18  ;;  %v1632_v25 = vmul.f32 %v543_v11, %v36_v19  ;;  %v25_v10 = vld [vmem:[%s14788_s0 + $0x8] sm:$0xff]  ;;  %v322_v18 = vld [vmem:[%s14787_s1 + $0x230] sm:$0xff]  ;;  %v6912_v19 = vld [vmem:[%s14789_s2] sm:$0xf] }
  0x98   :  { %v1854_v34 = vpack.c.bf16 %v1633_v24, %v1632_v25 }
  0x9a   :  { %777 = vperm.xlu2 %8381, %v311_v12  }
  0x9b   :  { %772 = vperm.xlu1 %8380, %v310_v13   ;;  %767 = vperm.xlu0 %8379, %v309_v14   ;;  %v1622_v13 = vmul.f32 %v8637_v50, %v26_v37  ;;  %v1621_v14 = vmul.f32 %v8652_v57, %v25_v10  ;;  %v321_v50 = vld [vmem:[%s14787_s1 + $0x228] sm:$0xff]  ;;  %v8076_v57 = vld [vmem:[%s14789_s2 + $0x38] sm:$0xf0]  ;;  %v7873_v10 = vor.u32 %v8316_v63, %v7872_v62 }
  0x9c   :  { %v8706_v17 = vpop.permute.xlu2 %612 }
  0x9d   :  { %v8714_v20 = vpop.permute.xlu1 %562  ;;  %v558_v21 = vpop.permute.xlu0 %557  ;;  %v1849_v15 = vpack.c.bf16 %v1623_v41, %v1622_v13 }
  0x9e   :  { %v1635_v23 = vmul.f32 %v558_v21, %v39_v16  ;;  %v323_v16 = vld [vmem:[%s14787_s1 + $0x238] sm:$0xff]  ;;  %v1620_v21 = vmul.f32 %v8639_v51, %v24_v56 }
  0xa0   :  { %v1855_v26 = vpack.c.bf16 %v1635_v23, %v1634_v22  ;;  %v7812_v22 = vld [vmem:[%s14789_s2 + $0x708] sm:$0xf]  ;;  %v8301_v23 = vld [vmem:[%s14789_s2 + $0x740] sm:$0xf0]  ;;  %v1848_v51 = vpack.c.bf16 %v1621_v14, %v1620_v21 }
  0xa2   :  { %3749 = vmatpush.bf16.msra.mxu0 %v1855_v26  ;;  %8354 = vmatpush.bf16.msra.mxu3 %v1855_v26 }
  0xa3   :  { %792 = vperm.xlu2 %8381, %v314_v27   ;;  %787 = vperm.xlu1 %8380, %v313_v28   ;;  %v6913_v27 = vor.u32 %v8076_v57, %v6912_v19  ;;  %v7813_v28 = vor.u32 %v8301_v23, %v7812_v22  ;;  %v45_v57 = vld [vmem:[%s14788_s0 + $0xa8] sm:$0xff] }
  0xa4   :  { %782 = vperm.xlu0 %8379, %v312_v30   ;;  %v8731_v33 = vpop.permute.xlu2 %627  ;;  %v325_v30 = vld [vmem:[%s14787_s1 + $0x248] sm:$0xff] }
  0xa5   :  { %v8736_v36 = vpop.permute.xlu1 %577  ;;  %v8738_v38 = vpop.permute.xlu0 %572 }
  0xa6   :  { %3750 = vmatpush.bf16.msra.mxu0 %v1854_v34  ;;  %8355 = vmatpush.bf16.msra.mxu3 %v1854_v34  ;;  %v54_v34 = vld [vmem:[%s14788_s0 + $0xf0] sm:$0xff] }
  0xaa   :  { %3751 = vmatpush.bf16.msra.mxu0 %v1853_v43  ;;  %8356 = vmatpush.bf16.msra.mxu3 %v1853_v43 }
  0xab   :  { %807 = vperm.xlu2 %8381, %v317_v44   ;;  %802 = vperm.xlu1 %8380, %v316_v46   ;;  %v53_v46 = vld [vmem:[%s14788_s0 + $0xe8] sm:$0xff] }
  0xac   :  { %797 = vperm.xlu0 %8379, %v315_v49   ;;  %v8762_v55 = vpop.permute.xlu2 %642  ;;  %v329_v49 = vld [vmem:[%s14787_s1 + $0x268] sm:$0xff]  ;;  %v1649_v59 = vmul.f32 %v8731_v33, %v53_v46 }
  0xad   :  { %v8770_v60 = vpop.permute.xlu1 %592  ;;  %v8772_v0 = vpop.permute.xlu0 %587 }
  0xae   :  { %3752 = vmatpush.bf16.msra.mxu0 %v1852_v58  ;;  %8357 = vmatpush.bf16.msra.mxu3 %v1852_v58  ;;  %v6972_v58 = vld [vmem:[%s14789_s2 + $0x78] sm:$0xf] }
  0xb2   :  { %3753 = vmatpush.bf16.msra.mxu0 %v1851_v1  ;;  %8358 = vmatpush.bf16.msra.mxu3 %v1851_v1  ;;  %v50_v1 = vld [vmem:[%s14788_s0 + $0xd0] sm:$0xff] }
  0xb3   :  { %822 = vperm.xlu2 %8381, %v320_v2   ;;  %817 = vperm.xlu1 %8380, %v319_v4   ;;  %v1646_v13 = vmul.f32 %v8706_v17, %v50_v1  ;;  %v330_v17 = vld [vmem:[%s14787_s1 + $0x270] sm:$0xff] }
  0xb4   :  { %812 = vperm.xlu0 %8379, %v318_v6   ;;  %v8792_v7 = vpop.permute.xlu2 %657  ;;  %v48_v6 = vld [vmem:[%s14788_s0 + $0xc0] sm:$0xff] }
  0xb5   :  { %v8797_v11 = vpop.permute.xlu1 %607  ;;  %v8799_v12 = vpop.permute.xlu0 %602 }
  0xb6   :  { %3754 = vmatpush.bf16.msra.mxu0 %v1850_v8  ;;  %8359 = vmatpush.bf16.msra.mxu3 %v1850_v8  ;;  %v6973_v8 = vor.u32 %v8091_v45, %v6972_v58  ;;  %v1645_v56 = vmul.f32 %v8797_v11, %v49_v5  ;;  %v1644_v14 = vmul.f32 %v8799_v12, %v48_v6  ;;  %v47_v11 = vld [vmem:[%s14788_s0 + $0xb8] sm:$0xff]  ;;  %v336_v58 = vld [vmem:[%s14787_s1 + $0x2a0] sm:$0xff] }
  0xb7   :  { %v6914_v45 = vld [vmem:[%s14789_s2 + $0x3c] sm:$0xf0]  ;;  %v339_v6 = vld [vmem:[%s14787_s1 + $0x2b8] sm:$0xff] }
  0xb8   :  { %v1860_v21 = vpack.c.bf16 %v1645_v56, %v1644_v14  ;;  %v340_v5 = vld [vmem:[%s14787_s1 + $0x2c0] sm:$0xff]  ;;  %v8346_v56 = vld [vmem:[%s14789_s2 + $0x8a8] sm:$0xf0]  ;;  %v71_v14 = vld [vmem:[%s14788_s0 + $0x178] sm:$0xff] }
  0xba   :  { %3755 = vmatpush.bf16.msra.mxu0 %v1849_v15  ;;  %8360 = vmatpush.bf16.msra.mxu3 %v1849_v15 }
  0xbb   :  { %837 = vperm.xlu2 %8381, %v323_v16   ;;  %832 = vperm.xlu1 %8380, %v322_v18   ;;  %v332_v16 = vld [vmem:[%s14787_s1 + $0x280] sm:$0xff]  ;;  %v331_v18 = vld [vmem:[%s14787_s1 + $0x278] sm:$0xff] }
  0xbc   :  { %827 = vperm.xlu0 %8379, %v321_v50   ;;  %v8828_v24 = vpop.permute.xlu2 %672  ;;  %v46_v50 = vld [vmem:[%s14788_s0 + $0xb0] sm:$0xff] }
  0xbd   :  { %v623_v25 = vpop.permute.xlu1 %622  ;;  %v618_v26 = vpop.permute.xlu0 %617  ;;  %v1642_v12 = vmul.f32 %v8770_v60, %v46_v50  ;;  %v44_v60 = vld [vmem:[%s14788_s0 + $0xa0] sm:$0xff] }
  0xbe   :  { %3756 = vmatpush.bf16.msra.mxu0 %v1848_v51  ;;  %8361 = vmatpush.bf16.msra.mxu3 %v1848_v51  ;;  %v1648_v47 = vmul.f32 %v623_v25, %v52_v39  ;;  %v1647_v33 = vmul.f32 %v618_v26, %v51_v53  ;;  %v1643_v51 = vmul.f32 %v8689_v9, %v47_v11  ;;  %v43_v25 = vld [vmem:[%s14788_s0 + $0x98] sm:$0xff]  ;;  %v334_v9 = vld [vmem:[%s14787_s1 + $0x290] sm:$0xff] }
  0xbf   :  { %v1641_v26 = vmul.f32 %v8772_v0, %v45_v57  ;;  %v7032_v0 = vld [vmem:[%s14789_s2 + $0xf0] sm:$0xf]  ;;  %v8331_v39 = vld [vmem:[%s14789_s2 + $0x830] sm:$0xf0] }
  0xc0   :  { %v1862_v4 = vpack.c.bf16 %v1649_v59, %v1648_v47  ;;  %v1861_v15 = vpack.c.bf16 %v1647_v33, %v1646_v13  ;;  %v338_v53 = vld [vmem:[%s14787_s1 + $0x2b0] sm:$0xff] }
  0xc1   :  { %3757 = vmatmul.bf16.vlgmr.msra.gmra.mxu0 %v6913_v27  ;;  %3832 = vmatmul.bf16.vlgmr.msra.gmra.mxu3 %v7813_v28  ;;  %v1859_v27 = vpack.c.bf16 %v1643_v51, %v1642_v12  ;;  %v335_v28 = vld [vmem:[%s14787_s1 + $0x298] sm:$0xff]  ;;  %v7992_v13 = vld [vmem:[%s14789_s2 + $0x870] sm:$0xf]  ;;  %v68_v51 = vld [vmem:[%s14788_s0 + $0x160] sm:$0xff] }
  0xc2   :  { %v7993_v12 = vor.u32 %v8346_v56, %v7992_v13 }
  0xc3   :  { %852 = vperm.xlu2 %8381, %v326_v29   ;;  %847 = vperm.xlu1 %8380, %v325_v30   ;;  %v42_v29 = vld [vmem:[%s14788_s0 + $0x90] sm:$0xff]  ;;  %v333_v30 = vld [vmem:[%s14787_s1 + $0x288] sm:$0xff] }
  0xc4   :  { %842 = vperm.xlu0 %8379, %v324_v31   ;;  %v8845_v35 = vpop.permute.xlu2 %687  ;;  %v1640_v31 = vmul.f32 %v8678_v3, %v44_v60  ;;  %v1638_v3 = vmul.f32 %v8738_v38, %v42_v29 }
  0xc5   :  { %v638_v40 = vpop.permute.xlu1 %637  ;;  %v633_v42 = vpop.permute.xlu0 %632 }
  0xc6   :  { %v1651_v43 = vmul.f32 %v638_v40, %v55_v32  ;;  %v1650_v44 = vmul.f32 %v633_v42, %v54_v34  ;;  %v8106_v32 = vld [vmem:[%s14789_s2 + $0x128] sm:$0xf0]  ;;  %v7932_v34 = vld [vmem:[%s14789_s2 + $0x7f8] sm:$0xf]  ;;  %v1639_v40 = vmul.f32 %v8736_v36, %v43_v25 }
  0xc7   :  { %v41_v36 = vld [vmem:[%s14788_s0 + $0x88] sm:$0xff] }
  0xc8   :  { %v1863_v48 = vpack.c.bf16 %v1651_v43, %v1650_v44  ;;  %v1858_v43 = vpack.c.bf16 %v1641_v26, %v1640_v31  ;;  %v40_v44 = vld [vmem:[%s14788_s0 + $0x80] sm:$0xff]  ;;  %v1637_v59 = vmul.f32 %v8663_v61, %v41_v36  ;;  %v341_v61 = vld [vmem:[%s14787_s1 + $0x2c8] sm:$0xff]  ;;  %v347_v36 = vld [vmem:[%s14787_s1 + $0x2f8] sm:$0xff] }
  0xc9   :  { %v1636_v38 = vmul.f32 %v8714_v20, %v40_v44  ;;  %v8069_v20 = vld [vmem:[%s14789_s2 + $0x4] sm:$0xf]  ;;  %v65_v44 = vld [vmem:[%s14788_s0 + $0x148] sm:$0xff] }
  0xca   :  { %3853 = vmatpush.bf16.msra.mxu1 %v1863_v48  ;;  %8362 = vmatpush.bf16.msrb.mxu3 %v1863_v48  ;;  %v7033_v48 = vor.u32 %v8106_v32, %v7032_v0  ;;  %v344_v26 = vld [vmem:[%s14787_s1 + $0x2e0] sm:$0xff]  ;;  %v6974_v0 = vld [vmem:[%s14789_s2 + $0xb4] sm:$0xf0] }
  0xcb   :  { %867 = vperm.xlu2 %8381, %v329_v49   ;;  %862 = vperm.xlu1 %8380, %v328_v52   ;;  %v7933_v49 = vor.u32 %v8331_v39, %v7932_v34  ;;  %v1857_v52 = vpack.c.bf16 %v1639_v40, %v1638_v3  ;;  %v1856_v63 = vpack.c.bf16 %v1637_v59, %v1636_v38  ;;  %v346_v38 = vld [vmem:[%s14787_s1 + $0x2f0] sm:$0xff]  ;;  %v8294_v59 = vld [vmem:[%s14789_s2 + $0x70c] sm:$0xf] }
  0xcc   :  { %857 = vperm.xlu0 %8379, %v327_v54   ;;  %v8881_v2 = vpop.permute.xlu2 %702  ;;  %v337_v54 = vld [vmem:[%s14787_s1 + $0x2a8] sm:$0xff] }
  0xcd   :  { %v8889_v37 = vpop.permute.xlu1 %652  ;;  %v8891_v41 = vpop.permute.xlu0 %647  ;;  %v1664_v29 = vmul.f32 %v8881_v2, %v68_v51  ;;  %v64_v2 = vld [vmem:[%s14788_s0 + $0x140] sm:$0xff] }
  0xce   :  { %3854 = vmatpush.bf16.msra.mxu1 %v1862_v4  ;;  %8363 = vmatpush.bf16.msrb.mxu3 %v1862_v4  ;;  %v6917_v4 = vor.u32 %v8069_v20, %v6914_v45  ;;  %v7814_v20 = vld [vmem:[%s14789_s2 + $0x744] sm:$0xf0]  ;;  %v62_v45 = vld [vmem:[%s14788_s0 + $0x130] sm:$0xff] }
  0xd1   :  { %3762 = vmatmul.bf16.gmra.mxu0 %v6973_v8  ;;  %3837 = vmatmul.bf16.gmra.mxu3 %v7873_v10  ;;  %v7092_v8 = vld [vmem:[%s14789_s2 + $0x168] sm:$0xf]  ;;  %v8121_v10 = vld [vmem:[%s14789_s2 + $0x1a0] sm:$0xf0] }
  0xd2   :  { %3855 = vmatpush.bf16.msra.mxu1 %v1861_v15  ;;  %8364 = vmatpush.bf16.msrb.mxu3 %v1861_v15  ;;  %v70_v15 = vld [vmem:[%s14788_s0 + $0x170] sm:$0xff]  ;;  %v7093_v11 = vor.u32 %v8121_v10, %v7092_v8  ;;  %v1658_v8 = vmul.f32 %v8828_v24, %v62_v45  ;;  %v359_v45 = vld [vmem:[%s14787_s1 + $0x358] sm:$0xff] }
  0xd3   :  { %882 = vperm.xlu2 %8381, %v332_v16   ;;  %877 = vperm.xlu1 %8380, %v331_v18   ;;  %v58_v24 = vld [vmem:[%s14788_s0 + $0x110] sm:$0xff] }
  0xd4   :  { %872 = vperm.xlu0 %8379, %v330_v17   ;;  %v8912_v19 = vpop.permute.xlu2 %717  ;;  %v69_v17 = vld [vmem:[%s14788_s0 + $0x168] sm:$0xff] }
  0xd5   :  { %v8917_v22 = vpop.permute.xlu1 %667  ;;  %v8919_v23 = vpop.permute.xlu0 %662 }
  0xd6   :  { %3856 = vmatpush.bf16.msra.mxu1 %v1860_v21  ;;  %8365 = vmatpush.bf16.msrb.mxu3 %v1860_v21  ;;  %v1667_v21 = vmul.f32 %v8912_v19, %v71_v14  ;;  %v66_v19 = vld [vmem:[%s14788_s0 + $0x150] sm:$0xff] }
  0xd7   :  { %v350_v14 = vld [vmem:[%s14787_s1 + $0x310] sm:$0xff] }
  0xda   :  { %3857 = vmatpush.bf16.msra.mxu1 %v1859_v27  ;;  %8366 = vmatpush.bf16.msrb.mxu3 %v1859_v27  ;;  %v343_v27 = vld [vmem:[%s14787_s1 + $0x2d8] sm:$0xff] }
  0xdb   :  { %897 = vperm.xlu2 %8381, %v335_v28   ;;  %892 = vperm.xlu1 %8380, %v334_v9   ;;  %v67_v28 = vld [vmem:[%s14788_s0 + $0x158] sm:$0xff]  ;;  %v342_v9 = vld [vmem:[%s14787_s1 + $0x2d0] sm:$0xff] }
  0xdc   :  { %887 = vperm.xlu0 %8379, %v333_v30   ;;  %v8956_v42 = vpop.permute.xlu2 %732  ;;  %v8084_v30 = vld [vmem:[%s14789_s2 + $0x7c] sm:$0xf] }
  0xdd   :  { %v8961_v46 = vpop.permute.xlu1 %682  ;;  %v8963_v47 = vpop.permute.xlu0 %677 }
  0xde   :  { %3858 = vmatpush.bf16.msra.mxu1 %v1858_v43  ;;  %8367 = vmatpush.bf16.msrb.mxu3 %v1858_v43  ;;  %v6977_v43 = vor.u32 %v8084_v30, %v6974_v0  ;;  %v8309_v30 = vld [vmem:[%s14789_s2 + $0x784] sm:$0xf]  ;;  %v7874_v0 = vld [vmem:[%s14789_s2 + $0x7bc] sm:$0xf0] }
  0xe1   :  { %3767 = vmatmul.bf16.gmra.mxu0 %v7033_v48  ;;  %3842 = vmatmul.bf16.gmra.mxu3 %v7933_v49  ;;  %v1660_v48 = vmul.f32 %v8961_v46, %v64_v2  ;;  %v7152_v46 = vld [vmem:[%s14789_s2 + $0x1e0] sm:$0xf] }
  0xe2   :  { %3859 = vmatpush.bf16.msra.mxu1 %v1857_v52  ;;  %8368 = vmatpush.bf16.msrb.mxu3 %v1857_v52  ;;  %v63_v52 = vld [vmem:[%s14788_s0 + $0x138] sm:$0xff] }
  0xe3   :  { %912 = vperm.xlu2 %8381, %v338_v53   ;;  %907 = vperm.xlu1 %8380, %v337_v54   ;;  %v345_v53 = vld [vmem:[%s14787_s1 + $0x2e8] sm:$0xff]  ;;  %v1661_v54 = vmul.f32 %v8845_v35, %v65_v44  ;;  %v1659_v35 = vmul.f32 %v8963_v47, %v63_v52  ;;  %v7877_v44 = vor.u32 %v8309_v30, %v7874_v0  ;;  %v354_v52 = vld [vmem:[%s14787_s1 + $0x330] sm:$0xff] }
  0xe4   :  { %902 = vperm.xlu0 %8379, %v336_v58   ;;  %v8985_v62 = vpop.permute.xlu2 %747  ;;  %v8136_v58 = vld [vmem:[%s14789_s2 + $0x218] sm:$0xf0] }
  0xe5   :  { %v698_v1 = vpop.permute.xlu1 %697  ;;  %v693_v33 = vpop.permute.xlu0 %692  ;;  %v1867_v56 = vpack.c.bf16 %v1659_v35, %v1658_v8  ;;  %v358_v35 = vld [vmem:[%s14787_s1 + $0x350] sm:$0xff]  ;;  %v6980_v8 = vld [vmem:[%s14789_s2 + $0x80] sm:$0xf] }
  0xe6   :  { %3860 = vmatpush.bf16.msra.mxu1 %v1856_v63  ;;  %8369 = vmatpush.bf16.msrb.mxu3 %v1856_v63  ;;  %v1663_v31 = vmul.f32 %v698_v1, %v67_v28  ;;  %v1662_v32 = vmul.f32 %v693_v33, %v66_v19  ;;  %v1868_v63 = vpack.c.bf16 %v1661_v54, %v1660_v48  ;;  %v61_v1 = vld [vmem:[%s14788_s0 + $0x128] sm:$0xff]  ;;  %v60_v33 = vld [vmem:[%s14788_s0 + $0x120] sm:$0xff] }
  0xe7   :  { %v1657_v47 = vmul.f32 %v8917_v22, %v61_v1  ;;  %v1656_v13 = vmul.f32 %v8919_v23, %v60_v33  ;;  %v348_v22 = vld [vmem:[%s14787_s1 + $0x300] sm:$0xff]  ;;  %v8099_v23 = vld [vmem:[%s14789_s2 + $0xf4] sm:$0xf]  ;;  %v353_v28 = vld [vmem:[%s14787_s1 + $0x328] sm:$0xff] }
  0xe8   :  { %v1869_v49 = vpack.c.bf16 %v1663_v31, %v1662_v32  ;;  %v352_v19 = vld [vmem:[%s14787_s1 + $0x320] sm:$0xff]  ;;  %v7272_v1 = vld [vmem:[%s14789_s2 + $0x2d0] sm:$0xf]  ;;  %v8166_v33 = vld [vmem:[%s14789_s2 + $0x308] sm:$0xf0] }
  0xe9   :  { %3861 = vmatmul.bf16.vlgmr.msra.gmra.mxu1 %v6917_v4  ;;  %v8077_v31 = vld [vmem:[%s14789_s2 + $0x40] sm:$0xf0] }
  0xeb   :  { %927 = vperm.xlu2 %8381, %v341_v61   ;;  %922 = vperm.xlu1 %8380, %v340_v5   ;;  %v7153_v5 = vor.u32 %v8136_v58, %v7152_v46  ;;  %v7094_v46 = vld [vmem:[%s14789_s2 + $0x1a4] sm:$0xf0] }
  0xec   :  { %917 = vperm.xlu0 %8379, %v339_v6   ;;  %v9014_v16 = vpop.permute.xlu2 %762  ;;  %v7817_v6 = vor.u32 %v8294_v59, %v7814_v20 }
  0xed   :  { %v713_v18 = vpop.permute.xlu1 %712  ;;  %v708_v50 = vpop.permute.xlu0 %707 }
  0xee   :  { %v1666_v57 = vmul.f32 %v713_v18, %v70_v15  ;;  %v1665_v60 = vmul.f32 %v708_v50, %v69_v17  ;;  %v349_v15 = vld [vmem:[%s14787_s1 + $0x308] sm:$0xff]  ;;  %v7034_v18 = vld [vmem:[%s14789_s2 + $0x12c] sm:$0xf0]  ;;  %v59_v50 = vld [vmem:[%s14788_s0 + $0x118] sm:$0xff]  ;;  %v1654_v17 = vmul.f32 %v8889_v37, %v58_v24  ;;  %v7273_v24 = vor.u32 %v8166_v33, %v7272_v1 }
  0xef   :  { %v7037_v51 = vor.u32 %v8099_v23, %v7034_v18  ;;  %v56_v37 = vld [vmem:[%s14788_s0 + $0x100] sm:$0xff]  ;;  %v85_v23 = vld [vmem:[%s14788_s0 + $0x1e8] sm:$0xff] }
  0xf0   :  { %v1871_v25 = vpack.c.bf16 %v1667_v21, %v1666_v57  ;;  %v1870_v39 = vpack.c.bf16 %v1665_v60, %v1664_v29  ;;  %v1655_v60 = vmul.f32 %v8792_v7, %v59_v50  ;;  %v351_v7 = vld [vmem:[%s14787_s1 + $0x318] sm:$0xff]  ;;  %v8151_v29 = vld [vmem:[%s14789_s2 + $0x290] sm:$0xf0]  ;;  %v84_v18 = vld [vmem:[%s14788_s0 + $0x1e0] sm:$0xff] }
  0xf1   :  { %3772 = vmatmul.bf16.gmra.mxu0 %v7093_v11  ;;  %3847 = vmatmul.bf16.gmra.mxu3 %v7993_v12  ;;  %v1866_v11 = vpack.c.bf16 %v1657_v47, %v1656_v13  ;;  %v57_v12 = vld [vmem:[%s14788_s0 + $0x108] sm:$0xff]  ;;  %v8092_v47 = vld [vmem:[%s14789_s2 + $0xb8] sm:$0xf0]  ;;  %v86_v13 = vld [vmem:[%s14788_s0 + $0x1f0] sm:$0xff] }
  0xf2   :  { %3957 = vmatpush.bf16.msra.mxu2 %v1871_v25  ;;  %8370 = vmatpush.bf16.msra.mxu3 %v1871_v25 }
  0xf3   :  { %942 = vperm.xlu2 %8381, %v344_v26   ;;  %937 = vperm.xlu1 %8380, %v343_v27   ;;  %v1653_v26 = vmul.f32 %v8891_v41, %v57_v12  ;;  %v1865_v27 = vpack.c.bf16 %v1655_v60, %v1654_v17  ;;  %v1652_v41 = vmul.f32 %v8762_v55, %v56_v37  ;;  %v6920_v55 = vld [vmem:[%s14789_s2 + $0x8] sm:$0xf] }
  0xf4   :  { %932 = vperm.xlu0 %8379, %v342_v9   ;;  %v9045_v34 = vpop.permute.xlu2 %777  ;;  %v7212_v9 = vld [vmem:[%s14789_s2 + $0x258] sm:$0xf]  ;;  %v6981_v17 = vor.u32 %v8092_v47, %v6980_v8  ;;  %v76_v47 = vld [vmem:[%s14788_s0 + $0x1a0] sm:$0xff] }
  0xf5   :  { %v9050_v40 = vpop.permute.xlu1 %727  ;;  %v9052_v3 = vpop.permute.xlu0 %722  ;;  %v1864_v32 = vpack.c.bf16 %v1653_v26, %v1652_v41 }
  0xf6   :  { %3958 = vmatpush.bf16.msra.mxu2 %v1870_v39  ;;  %8371 = vmatpush.bf16.msra.mxu3 %v1870_v39 }
  0xf9   :  { %3866 = vmatmul.bf16.gmra.mxu1 %v6977_v43  ;;  %v7213_v43 = vor.u32 %v8151_v29, %v7212_v9  ;;  %v83_v9 = vld [vmem:[%s14788_s0 + $0x1d8] sm:$0xff] }
  0xfa   :  { %3959 = vmatpush.bf16.msra.mxu2 %v1869_v49  ;;  %8372 = vmatpush.bf16.msra.mxu3 %v1869_v49  ;;  %v6921_v49 = vor.u32 %v8077_v31, %v6920_v55  ;;  %v81_v31 = vld [vmem:[%s14788_s0 + $0x1c8] sm:$0xff] }
  0xfb   :  { %957 = vperm.xlu2 %8381, %v347_v36   ;;  %952 = vperm.xlu1 %8380, %v346_v38   ;;  %v356_v36 = vld [vmem:[%s14787_s1 + $0x340] sm:$0xff]  ;;  %v355_v38 = vld [vmem:[%s14787_s1 + $0x338] sm:$0xff] }
  0xfc   :  { %947 = vperm.xlu0 %8379, %v345_v53   ;;  %v8114_v53 = vld [vmem:[%s14789_s2 + $0x16c] sm:$0xf] }
  0xfd   :  { %v9093_v4 = vpop.permute.xlu2 %792  ;;  %v9095_v61 = vpop.permute.xlu1 %742  ;;  %v7097_v59 = vor.u32 %v8114_v53, %v7094_v46  ;;  %v363_v53 = vld [vmem:[%s14787_s1 + $0x378] sm:$0xff]  ;;  %v7332_v46 = vld [vmem:[%s14789_s2 + $0x348] sm:$0xf] }
  0xfe   :  { %v9098_v10 = vpop.permute.xlu0 %737  ;;  %3960 = vmatpush.bf16.msra.mxu2 %v1868_v63  ;;  %8373 = vmatpush.bf16.msra.mxu3 %v1868_v63  ;;  %v357_v63 = vld [vmem:[%s14787_s1 + $0x348] sm:$0xff] }
 0x101   :  { %3777 = vmatmul.bf16.gmra.mxu0 %v7153_v5  ;;  %3936 = vmatmul.bf16.vlgmr.msrb.gmra.mxu3 %v7817_v6  ;;  %v8324_v5 = vld [vmem:[%s14789_s2 + $0x7fc] sm:$0xf]  ;;  %v7934_v6 = vld [vmem:[%s14789_s2 + $0x834] sm:$0xf0] }
 0x102   :  { %3961 = vmatpush.bf16.msra.mxu2 %v1867_v56  ;;  %8374 = vmatpush.bf16.msra.mxu3 %v1867_v56  ;;  %v87_v56 = vld [vmem:[%s14788_s0 + $0x1f8] sm:$0xff] }
 0x103   :  { %972 = vperm.xlu2 %8381, %v350_v14   ;;  %967 = vperm.xlu1 %8380, %v349_v15  }
 0x104   :  { %962 = vperm.xlu0 %8379, %v348_v22   ;;  %v7937_v22 = vor.u32 %v8324_v5, %v7934_v6 }
 0x105   :  { %v9127_v21 = vpop.permute.xlu2 %807  ;;  %v9129_v57 = vpop.permute.xlu1 %757 }
 0x106   :  { %v9132_v25 = vpop.permute.xlu0 %752  ;;  %3962 = vmatpush.bf16.msra.mxu2 %v1866_v11  ;;  %8375 = vmatpush.bf16.msra.mxu3 %v1866_v11  ;;  %v1682_v11 = vmul.f32 %v9093_v4, %v86_v13  ;;  %v82_v4 = vld [vmem:[%s14788_s0 + $0x1d0] sm:$0xff] }
 0x109   :  { %3871 = vmatmul.bf16.gmra.mxu1 %v7037_v51  ;;  %v362_v51 = vld [vmem:[%s14787_s1 + $0x370] sm:$0xff] }
 0x10a   :  { %3963 = vmatpush.bf16.msra.mxu2 %v1865_v27  ;;  %8376 = vmatpush.bf16.msra.mxu3 %v1865_v27  ;;  %v361_v27 = vld [vmem:[%s14787_s1 + $0x368] sm:$0xff] }
 0x10b   :  { %987 = vperm.xlu2 %8381, %v353_v28   ;;  %982 = vperm.xlu1 %8380, %v352_v19   ;;  %v360_v28 = vld [vmem:[%s14787_s1 + $0x360] sm:$0xff] }
 0x10c   :  { %977 = vperm.xlu0 %8379, %v351_v7   ;;  %v8129_v19 = vld [vmem:[%s14789_s2 + $0x1e4] sm:$0xf]  ;;  %v7154_v7 = vld [vmem:[%s14789_s2 + $0x21c] sm:$0xf0] }
 0x10d   :  { %v9166_v39 = vpop.permute.xlu2 %822  ;;  %v9168_v2 = vpop.permute.xlu1 %772  ;;  %v7157_v55 = vor.u32 %v8129_v19, %v7154_v7 }
 0x10e   :  { %v9170_v48 = vpop.permute.xlu0 %767  ;;  %3964 = vmatpush.bf16.msra.mxu2 %v1864_v32  ;;  %8377 = vmatpush.bf16.msra.mxu3 %v1864_v32  ;;  %v1678_v41 = vmul.f32 %v9168_v2, %v82_v4  ;;  %v79_v2 = vld [vmem:[%s14788_s0 + $0x1b8] sm:$0xff] }
 0x111   :  { %3782 = vmatmul.bf16.gmra.mxu0 %v7213_v43  ;;  %3941 = vmatmul.bf16.gmra.mxu3 %v7877_v44  ;;  %v80_v43 = vld [vmem:[%s14788_s0 + $0x1c0] sm:$0xff]  ;;  %v1679_v44 = vmul.f32 %v9045_v34, %v83_v9 }
 0x112   :  { %3965 = vmatmul.bf16.vlgmr.msra.gmra.mxu2 %v6921_v49  ;;  %v78_v49 = vld [vmem:[%s14788_s0 + $0x1b0] sm:$0xff]  ;;  %v364_v34 = vld [vmem:[%s14787_s1 + $0x380] sm:$0xff] }
 0x113   :  { %1002 = vperm.xlu2 %8381, %v356_v36   ;;  %997 = vperm.xlu1 %8380, %v355_v38   ;;  %v365_v36 = vld [vmem:[%s14787_s1 + $0x388] sm:$0xff]  ;;  %v1877_v38 = vpack.c.bf16 %v1679_v44, %v1678_v41  ;;  %v1674_v1 = vmul.f32 %v9132_v25, %v78_v49  ;;  %v368_v25 = vld [vmem:[%s14787_s1 + $0x3a0] sm:$0xff] }
 0x114   :  { %992 = vperm.xlu0 %8379, %v354_v52   ;;  %v1677_v52 = vmul.f32 %v9170_v48, %v81_v31  ;;  %v8339_v48 = vld [vmem:[%s14789_s2 + $0x874] sm:$0xf]  ;;  %v8302_v31 = vld [vmem:[%s14789_s2 + $0x748] sm:$0xf0] }
 0x115   :  { %v9187_v54 = vpop.permute.xlu2 %837  ;;  %v788_v58 = vpop.permute.xlu1 %787  ;;  %v8122_v44 = vld [vmem:[%s14789_s2 + $0x1a8] sm:$0xf0] }
 0x116   :  { %v783_v20 = vpop.permute.xlu0 %782  ;;  %v1681_v60 = vmul.f32 %v788_v58, %v85_v23  ;;  %v8181_v58 = vld [vmem:[%s14789_s2 + $0x380] sm:$0xf0]  ;;  %v367_v23 = vld [vmem:[%s14787_s1 + $0x398] sm:$0xff] }
 0x117   :  { %v1680_v37 = vmul.f32 %v783_v20, %v84_v18  ;;  %v1676_v20 = vmul.f32 %v9014_v16, %v80_v43  ;;  %v7333_v6 = vor.u32 %v8181_v58, %v7332_v46  ;;  %v366_v18 = vld [vmem:[%s14787_s1 + $0x390] sm:$0xff] }
 0x118   :  { %v7100_v43 = vld [vmem:[%s14789_s2 + $0x170] sm:$0xf] }
 0x119   :  { %3876 = vmatmul.bf16.gmra.mxu1 %v7097_v59  ;;  %v1878_v29 = vpack.c.bf16 %v1681_v60, %v1680_v37  ;;  %v7994_v59 = vld [vmem:[%s14789_s2 + $0x8ac] sm:$0xf0]  ;;  %v1876_v33 = vpack.c.bf16 %v1677_v52, %v1676_v20  ;;  %v7101_v46 = vor.u32 %v8122_v44, %v7100_v43  ;;  %v8159_v20 = vld [vmem:[%s14789_s2 + $0x2d4] sm:$0xf] }
 0x11a   :  { %v7997_v8 = vor.u32 %v8339_v48, %v7994_v59  ;;  %v374_v58 = vld [vmem:[%s14787_s1 + $0x3d0] sm:$0xff]  ;;  %v373_v48 = vld [vmem:[%s14787_s1 + $0x3c8] sm:$0xff]  ;;  %v372_v59 = vld [vmem:[%s14787_s1 + $0x3c0] sm:$0xff] }
 0x11b   :  { %1017 = vperm.xlu2 %8381, %v359_v45   ;;  %1012 = vperm.xlu1 %8380, %v358_v35   ;;  %v7040_v45 = vld [vmem:[%s14789_s2 + $0xf8] sm:$0xf]  ;;  %v8107_v35 = vld [vmem:[%s14789_s2 + $0x130] sm:$0xf0] }
 0x11c   :  { %1007 = vperm.xlu0 %8379, %v357_v63   ;;  %v1675_v63 = vmul.f32 %v9129_v57, %v79_v2  ;;  %v77_v57 = vld [vmem:[%s14788_s0 + $0x1a8] sm:$0xff] }
 0x11d   :  { %v9222_v14 = vpop.permute.xlu2 %852  ;;  %v9224_v15 = vpop.permute.xlu1 %802 }
 0x11e   :  { %v798_v50 = vpop.permute.xlu0 %797 }
 0x11f   :  { %v1683_v12 = vmul.f32 %v798_v50, %v87_v56  ;;  %v7041_v56 = vor.u32 %v8107_v35, %v7040_v45  ;;  %v75_v50 = vld [vmem:[%s14788_s0 + $0x198] sm:$0xff]  ;;  %v7274_v45 = vld [vmem:[%s14789_s2 + $0x30c] sm:$0xf0] }
 0x120   :  { %v1671_v60 = vmul.f32 %v9098_v10, %v75_v50  ;;  %v371_v10 = vld [vmem:[%s14787_s1 + $0x3b8] sm:$0xff] }
 0x121   :  { %v1879_v26 = vpack.c.bf16 %v1683_v12, %v1682_v11  ;;  %3787 = vmatmul.bf16.gmra.mxu0 %v7273_v24  ;;  %3946 = vmatmul.bf16.gmra.mxu3 %v7937_v22  ;;  %v1672_v24 = vmul.f32 %v9095_v61, %v76_v47  ;;  %v1875_v22 = vpack.c.bf16 %v1675_v63, %v1674_v1  ;;  %v8144_v61 = vld [vmem:[%s14789_s2 + $0x25c] sm:$0xf]  ;;  %v74_v12 = vld [vmem:[%s14788_s0 + $0x190] sm:$0xff]  ;;  %v100_v47 = vld [vmem:[%s14788_s0 + $0x260] sm:$0xff] }
 0x122   :  { %3970 = vmatmul.bf16.gmra.mxu2 %v6981_v17  ;;  %v7214_v17 = vld [vmem:[%s14789_s2 + $0x294] sm:$0xf0]  ;;  %v1673_v11 = vmul.f32 %v8985_v62, %v77_v57  ;;  %v73_v62 = vld [vmem:[%s14788_s0 + $0x188] sm:$0xff]  ;;  %v1670_v19 = vmul.f32 %v8956_v42, %v74_v12  ;;  %v7392_v42 = vld [vmem:[%s14789_s2 + $0x3c0] sm:$0xf] }
 0x123   :  { %4061 = vmatpush.bf16.msrb.mxu3 %v1879_v26  ;;  %1032 = vperm.xlu2 %8381, %v362_v51   ;;  %v1669_v7 = vmul.f32 %v9050_v40, %v73_v62  ;;  %v8196_v40 = vld [vmem:[%s14789_s2 + $0x3f8] sm:$0xf0]  ;;  %v102_v1 = vld [vmem:[%s14788_s0 + $0x270] sm:$0xff]  ;;  %v7452_v12 = vld [vmem:[%s14789_s2 + $0x438] sm:$0xf] }
 0x124   :  { %1027 = vperm.xlu1 %8380, %v361_v27   ;;  %1022 = vperm.xlu0 %8379, %v360_v28   ;;  %v1874_v51 = vpack.c.bf16 %v1673_v11, %v1672_v24  ;;  %v7217_v27 = vor.u32 %v8144_v61, %v7214_v17  ;;  %v72_v28 = vld [vmem:[%s14788_s0 + $0x180] sm:$0xff]  ;;  %v1873_v41 = vpack.c.bf16 %v1671_v60, %v1670_v19  ;;  %v103_v35 = vld [vmem:[%s14788_s0 + $0x278] sm:$0xff]  ;;  %v7880_v60 = vld [vmem:[%s14789_s2 + $0x788] sm:$0xf] }
 0x125   :  { %v9255_v30 = vpop.permute.xlu2 %867  ;;  %v9257_v0 = vpop.permute.xlu1 %817  ;;  %v1668_v9 = vmul.f32 %v9052_v3, %v72_v28  ;;  %v7820_v3 = vld [vmem:[%s14789_s2 + $0x710] sm:$0xf]  ;;  %v376_v17 = vld [vmem:[%s14787_s1 + $0x3e0] sm:$0xff]  ;;  %v375_v11 = vld [vmem:[%s14787_s1 + $0x3d8] sm:$0xff] }
 0x126   :  { %v9262_v32 = vpop.permute.xlu0 %812  ;;  %v7821_v52 = vor.u32 %v8302_v31, %v7820_v3  ;;  %v7160_v28 = vld [vmem:[%s14789_s2 + $0x1e8] sm:$0xf]  ;;  %v8137_v19 = vld [vmem:[%s14789_s2 + $0x220] sm:$0xf0] }
 0x127   :  { %4062 = vmatpush.bf16.msrb.mxu3 %v1878_v29  ;;  %v370_v29 = vld [vmem:[%s14787_s1 + $0x3b0] sm:$0xff]  ;;  %v1872_v2 = vpack.c.bf16 %v1669_v7, %v1668_v9  ;;  %v96_v3 = vld [vmem:[%s14788_s0 + $0x240] sm:$0xff]  ;;  %v7161_v44 = vor.u32 %v8137_v19, %v7160_v28 }
 0x129   :  { %3881 = vmatmul.bf16.gmra.mxu1 %v7157_v55  ;;  %v369_v55 = vld [vmem:[%s14787_s1 + $0x3a8] sm:$0xff] }
 0x12b   :  { %4063 = vmatpush.bf16.msrb.mxu3 %v1877_v38  ;;  %1047 = vperm.xlu2 %8381, %v365_v36   ;;  %v7393_v38 = vor.u32 %v8196_v40, %v7392_v42  ;;  %v97_v40 = vld [vmem:[%s14788_s0 + $0x248] sm:$0xff] }
 0x12c   :  { %1042 = vperm.xlu1 %8380, %v364_v34   ;;  %1037 = vperm.xlu0 %8379, %v363_v53  }
 0x12d   :  { %v9305_v5 = vpop.permute.xlu2 %882  ;;  %v9307_v16 = vpop.permute.xlu1 %832 }
 0x12e   :  { %v9312_v13 = vpop.permute.xlu0 %827 }
 0x12f   :  { %4064 = vmatpush.bf16.msrb.mxu3 %v1876_v33 }
 0x131   :  { %3792 = vmatmul.bf16.gmra.mxu0 %v7333_v6  ;;  %3951 = vmatmul.bf16.gmra.mxu3 %v7997_v8  ;;  %v7277_v8 = vor.u32 %v8159_v20, %v7274_v45 }
 0x132   :  { %3975 = vmatmul.bf16.gmra.mxu2 %v7041_v56 }
 0x133   :  { %4065 = vmatpush.bf16.msrb.mxu3 %v1875_v22  ;;  %1062 = vperm.xlu2 %8381, %v368_v25   ;;  %v101_v22 = vld [vmem:[%s14788_s0 + $0x268] sm:$0xff] }
 0x134   :  { %1057 = vperm.xlu1 %8380, %v367_v23   ;;  %1052 = vperm.xlu0 %8379, %v366_v18   ;;  %v99_v23 = vld [vmem:[%s14788_s0 + $0x258] sm:$0xff]  ;;  %v377_v18 = vld [vmem:[%s14787_s1 + $0x3e8] sm:$0xff]  ;;  %v1697_v62 = vmul.f32 %v9255_v30, %v101_v22  ;;  %v90_v22 = vld [vmem:[%s14788_s0 + $0x210] sm:$0xff] }
 0x135   :  { %v9341_v37 = vpop.permute.xlu2 %897  ;;  %v9343_v26 = vpop.permute.xlu1 %847  ;;  %v1686_v19 = vmul.f32 %v9262_v32, %v90_v22  ;;  %v89_v32 = vld [vmem:[%s14788_s0 + $0x208] sm:$0xff]  ;;  %v8241_v22 = vld [vmem:[%s14789_s2 + $0x560] sm:$0xf0] }
 0x136   :  { %v9351_v4 = vpop.permute.xlu0 %842 }
 0x137   :  { %4066 = vmatpush.bf16.msrb.mxu3 %v1874_v51  ;;  %v8211_v51 = vld [vmem:[%s14789_s2 + $0x470] sm:$0xf0] }
 0x139   :  { %3886 = vmatmul.bf16.gmra.mxu1 %v7217_v27  ;;  %v8317_v27 = vld [vmem:[%s14789_s2 + $0x7c0] sm:$0xf0] }
 0x13a   :  { %v7881_v42 = vor.u32 %v8317_v27, %v7880_v60  ;;  %v7220_v60 = vld [vmem:[%s14789_s2 + $0x260] sm:$0xf]  ;;  %v8152_v27 = vld [vmem:[%s14789_s2 + $0x298] sm:$0xf0] }
 0x13b   :  { %4067 = vmatpush.bf16.msrb.mxu3 %v1873_v41  ;;  %1077 = vperm.xlu2 %8381, %v371_v10   ;;  %v98_v10 = vld [vmem:[%s14788_s0 + $0x250] sm:$0xff] }
 0x13c   :  { %1072 = vperm.xlu1 %8380, %v370_v29   ;;  %1067 = vperm.xlu0 %8379, %v369_v55   ;;  %v7453_v55 = vor.u32 %v8211_v51, %v7452_v12  ;;  %v8332_v12 = vld [vmem:[%s14789_s2 + $0x838] sm:$0xf0] }
 0x13d   :  { %v9383_v49 = vpop.permute.xlu2 %912  ;;  %v863_v36 = vpop.permute.xlu1 %862 }
 0x13e   :  { %v858_v34 = vpop.permute.xlu0 %857  ;;  %v9385_v53 = vpop.f32.mrf.mxu0  ;;  %v1696_v50 = vmul.f32 %v863_v36, %v100_v47  ;;  %v380_v36 = vld [vmem:[%s14787_s1 + $0x400] sm:$0xff] }
 0x13f   :  { %4068 = vmatpush.bf16.msrb.mxu3 %v1872_v2  ;;  %v1695_v9 = vmul.f32 %v858_v34, %v99_v23  ;;  %v1694_v2 = vmul.f32 %v9222_v14, %v98_v10  ;;  %v378_v14 = vld [vmem:[%s14787_s1 + $0x3f0] sm:$0xff]  ;;  %v383_v23 = vld [vmem:[%s14787_s1 + $0x418] sm:$0xff] }
 0x140   :  { %v1886_v29 = vpack.c.bf16 %v1697_v62, %v1696_v50 }
 0x141   :  { %3797 = vmatmul.bf16.gmra.mxu0 %v7393_v38  ;;  %4040 = vmatmul.bf16.vlgmr.msra.gmra.mxu3 %v7821_v52  ;;  %v1693_v38 = vmul.f32 %v9343_v26, %v97_v40  ;;  %v1692_v52 = vmul.f32 %v9351_v4, %v96_v3  ;;  %v1885_v34 = vpack.c.bf16 %v1695_v9, %v1694_v2  ;;  %v8174_v26 = vld [vmem:[%s14789_s2 + $0x34c] sm:$0xf]  ;;  %v7334_v4 = vld [vmem:[%s14789_s2 + $0x384] sm:$0xf0] }
 0x142   :  { %3980 = vmatmul.bf16.gmra.mxu2 %v7101_v46  ;;  %v379_v46 = vld [vmem:[%s14787_s1 + $0x3f8] sm:$0xff]  ;;  %v7221_v3 = vor.u32 %v8152_v27, %v7220_v60 }
 0x143   :  { %1092 = vperm.xlu2 %8381, %v374_v58   ;;  %v94_v58 = vld [vmem:[%s14788_s0 + $0x230] sm:$0xff] }
 0x144   :  { %1087 = vperm.xlu1 %8380, %v373_v48   ;;  %1082 = vperm.xlu0 %8379, %v372_v59   ;;  %v9405_v63 = vpop.f32.mrf.mxu3  ;;  %v95_v48 = vld [vmem:[%s14788_s0 + $0x238] sm:$0xff]  ;;  %v1690_v20 = vmul.f32 %v9307_v16, %v94_v58 }
 0x145   :  { %v9410_v33 = vpop.permute.xlu2 %927  ;;  %v878_v6 = vpop.permute.xlu1 %877  ;;  %v1691_v16 = vmul.f32 %v9187_v54, %v95_v48  ;;  %v382_v54 = vld [vmem:[%s14787_s1 + $0x410] sm:$0xff] }
 0x146   :  { %v1699_v56 = vmul.f32 %v878_v6, %v103_v35  ;;  %v873_v57 = vpop.permute.xlu0 %872  ;;  %v9415_v25 = vpop.f32.mrf.mxu0  ;;  %v7337_v6 = vor.u32 %v8174_v26, %v7334_v4 }
 0x147   :  { %v1698_v24 = vmul.f32 %v873_v57, %v102_v1  ;;  %v1884_v1 = vpack.c.bf16 %v1693_v38, %v1692_v52  ;;  %v92_v57 = vld [vmem:[%s14788_s0 + $0x220] sm:$0xff]  ;;  %v1883_v50 = vpack.c.bf16 %v1691_v16, %v1690_v20  ;;  %v385_v38 = vld [vmem:[%s14787_s1 + $0x428] sm:$0xff] }
 0x148   :  { %v1688_v51 = vmul.f32 %v9166_v39, %v92_v57  ;;  %v384_v52 = vld [vmem:[%s14787_s1 + $0x420] sm:$0xff]  ;;  %v119_v57 = vld [vmem:[%s14788_s0 + $0x2f8] sm:$0xff] }
 0x149   :  { %3891 = vmatmul.bf16.gmra.mxu1 %v7277_v8  ;;  %v1887_v61 = vpack.c.bf16 %v1699_v56, %v1698_v24  ;;  %v93_v8 = vld [vmem:[%s14788_s0 + $0x228] sm:$0xff]  ;;  %v91_v24 = vld [vmem:[%s14788_s0 + $0x218] sm:$0xff]  ;;  %v388_v16 = vld [vmem:[%s14787_s1 + $0x440] sm:$0xff] }
 0x14a   :  { %v1687_v62 = vmul.f32 %v9257_v0, %v91_v24  ;;  %v387_v24 = vld [vmem:[%s14787_s1 + $0x438] sm:$0xff] }
 0x14b   :  { %4165 = vmatpush.bf16.msrb.mxu0 %v1887_v61  ;;  %1107 = vperm.xlu2 %8381, %v377_v18   ;;  %v1689_v18 = vmul.f32 %v9312_v13, %v93_v8  ;;  %v381_v61 = vld [vmem:[%s14787_s1 + $0x408] sm:$0xff]  ;;  %v7940_v13 = vld [vmem:[%s14789_s2 + $0x800] sm:$0xf] }
 0x14c   :  { %1102 = vperm.xlu1 %8380, %v376_v17   ;;  %1097 = vperm.xlu0 %8379, %v375_v11   ;;  %v9454_v7 = vpop.f32.mrf.mxu3  ;;  %v7512_v17 = vld [vmem:[%s14789_s2 + $0x4b0] sm:$0xf]  ;;  %v8226_v11 = vld [vmem:[%s14789_s2 + $0x4e8] sm:$0xf0] }
 0x14d   :  { %v9456_v30 = vpop.permute.xlu2 %942  ;;  %v9458_v41 = vpop.permute.xlu1 %892  ;;  %v1882_v9 = vpack.c.bf16 %v1689_v18, %v1688_v51  ;;  %v8347_v18 = vld [vmem:[%s14789_s2 + $0x8b0] sm:$0xf0] }
 0x14e   :  { %v9466_v31 = vpop.permute.xlu0 %887  ;;  %v9468_v43 = vpop.f32.mrf.mxu0 }
 0x14f   :  { %4166 = vmatpush.bf16.msrb.mxu0 %v1886_v29  ;;  %v7513_v29 = vor.u32 %v8226_v11, %v7512_v17 }
 0x151   :  { %3802 = vmatmul.bf16.gmra.mxu0 %v7453_v55  ;;  %4045 = vmatmul.bf16.gmra.mxu3 %v7881_v42  ;;  %v7941_v55 = vor.u32 %v8332_v12, %v7940_v13  ;;  %v88_v42 = vld [vmem:[%s14788_s0 + $0x200] sm:$0xff]  ;;  %v117_v12 = vld [vmem:[%s14788_s0 + $0x2e8] sm:$0xff] }
 0x152   :  { %3985 = vmatmul.bf16.gmra.mxu2 %v7161_v44  ;;  %v386_v44 = vld [vmem:[%s14787_s1 + $0x430] sm:$0xff]  ;;  %v1684_v2 = vmul.f32 %v9224_v15, %v88_v42  ;;  %v7394_v15 = vld [vmem:[%s14789_s2 + $0x3fc] sm:$0xf0] }
 0x153   :  { %4167 = vmatpush.bf16.msrb.mxu0 %v1885_v34  ;;  %1122 = vperm.xlu2 %8381, %v380_v36   ;;  %v1881_v36 = vpack.c.bf16 %v1687_v62, %v1686_v19  ;;  %v8189_v34 = vld [vmem:[%s14789_s2 + $0x3c4] sm:$0xf] }
 0x154   :  { %1117 = vperm.xlu1 %8380, %v379_v46   ;;  %1112 = vperm.xlu0 %8379, %v378_v14   ;;  %v9494_v59 = vpop.f32.mrf.mxu3  ;;  %v1685_v46 = vmul.f32 %v9127_v21, %v89_v32  ;;  %v7397_v48 = vor.u32 %v8189_v34, %v7394_v15  ;;  %v389_v21 = vld [vmem:[%s14787_s1 + $0x448] sm:$0xff]  ;;  %v8204_v34 = vld [vmem:[%s14789_s2 + $0x43c] sm:$0xf]  ;;  %v7454_v15 = vld [vmem:[%s14789_s2 + $0x474] sm:$0xf0] }
 0x155   :  { %v9497_v45 = vpop.permute.xlu2 %957  ;;  %v9499_v35 = vpop.permute.xlu1 %907 }
 0x156   :  { %v9504_v47 = vpop.permute.xlu0 %902  ;;  %v9506_v56 = vpop.f32.mrf.mxu0  ;;  %v1880_v4 = vpack.c.bf16 %v1685_v46, %v1684_v2  ;;  %v1715_v27 = vmul.f32 %v9497_v45, %v119_v57  ;;  %v392_v45 = vld [vmem:[%s14787_s1 + $0x460] sm:$0xff] }
 0x157   :  { %4168 = vmatpush.bf16.msrb.mxu0 %v1884_v1 }
 0x159   :  { %3896 = vmatmul.bf16.gmra.mxu1 %v7337_v6 }
 0x15b   :  { %4169 = vmatpush.bf16.msrb.mxu0 %v1883_v50  ;;  %1137 = vperm.xlu2 %8381, %v383_v23   ;;  %v8000_v23 = vld [vmem:[%s14789_s2 + $0x878] sm:$0xf]  ;;  %v118_v50 = vld [vmem:[%s14788_s0 + $0x2f0] sm:$0xff] }
 0x15c   :  { %1132 = vperm.xlu1 %8380, %v382_v54   ;;  %1127 = vperm.xlu0 %8379, %v381_v61   ;;  %v9548_v28 = vpop.f32.mrf.mxu3  ;;  %v7280_v54 = vld [vmem:[%s14789_s2 + $0x2d8] sm:$0xf]  ;;  %v8167_v61 = vld [vmem:[%s14789_s2 + $0x310] sm:$0xf0]  ;;  %v8001_v60 = vor.u32 %v8347_v18, %v8000_v23 }
 0x15d   :  { %v9551_v10 = vpop.permute.xlu2 %972  ;;  %v9553_v39 = vpop.permute.xlu1 %922  ;;  %v111_v23 = vld [vmem:[%s14788_s0 + $0x2b8] sm:$0xff] }
 0x15e   :  { %v9558_v40 = vpop.permute.xlu0 %917  ;;  %v9560_v0 = vpop.f32.mrf.mxu0 }
 0x15f   :  { %4170 = vmatpush.bf16.msrb.mxu0 %v1882_v9 }
 0x161   :  { %3807 = vmatmul.bf16.gmra.mxu0 %v7513_v29  ;;  %4050 = vmatmul.bf16.gmra.mxu3 %v7941_v55  ;;  %v7281_v29 = vor.u32 %v8167_v61, %v7280_v54  ;;  %v116_v55 = vld [vmem:[%s14788_s0 + $0x2e0] sm:$0xff]  ;;  %v395_v54 = vld [vmem:[%s14787_s1 + $0x478] sm:$0xff]  ;;  %v394_v61 = vld [vmem:[%s14787_s1 + $0x470] sm:$0xff] }
 0x162   :  { %3990 = vmatmul.bf16.gmra.mxu2 %v7221_v3  ;;  %v115_v3 = vld [vmem:[%s14788_s0 + $0x2d8] sm:$0xff] }
 0x163   :  { %4171 = vmatpush.bf16.msrb.mxu0 %v1881_v36  ;;  %1152 = vperm.xlu2 %8381, %v386_v44   ;;  %v114_v36 = vld [vmem:[%s14788_s0 + $0x2d0] sm:$0xff] }
 0x164   :  { %1147 = vperm.xlu1 %8380, %v385_v38   ;;  %1142 = vperm.xlu0 %8379, %v384_v52   ;;  %v9582_v14 = vpop.f32.mrf.mxu3  ;;  %v391_v38 = vld [vmem:[%s14787_s1 + $0x458] sm:$0xff]  ;;  %v1712_v52 = vmul.f32 %v9456_v30, %v116_v55  ;;  %v112_v30 = vld [vmem:[%s14788_s0 + $0x2c0] sm:$0xff] }
 0x165   :  { %v9584_v58 = vpop.permute.xlu2 %987  ;;  %v938_v26 = vpop.permute.xlu1 %937 }
 0x166   :  { %v933_v20 = vpop.permute.xlu0 %932  ;;  %v9586_v1 = vpop.f32.mrf.mxu0  ;;  %v1711_v46 = vmul.f32 %v938_v26, %v115_v3  ;;  %v113_v26 = vld [vmem:[%s14788_s0 + $0x2c8] sm:$0xff]  ;;  %v108_v3 = vld [vmem:[%s14788_s0 + $0x2a0] sm:$0xff] }
 0x167   :  { %v3862_v6 = vpop.f32.mrf.mxu1  ;;  %4172 = vmatpush.bf16.msrb.mxu0 %v1880_v4  ;;  %v1710_v4 = vmul.f32 %v933_v20, %v114_v36 }
 0x168   :  { %v9589_v8 = vadd.f32 %v3862_v6, %v9385_v53  ;;  %v7572_v53 = vld [vmem:[%s14789_s2 + $0x528] sm:$0xf] }
 0x169   :  { %3901 = vmatmul.bf16.gmra.mxu1 %v7397_v48  ;;  %v7573_v51 = vor.u32 %v8241_v22, %v7572_v53  ;;  %v1708_v22 = vmul.f32 %v9553_v39, %v112_v30  ;;  %v393_v39 = vld [vmem:[%s14787_s1 + $0x468] sm:$0xff]  ;;  %v398_v30 = vld [vmem:[%s14787_s1 + $0x490] sm:$0xff] }
 0x16b   :  { %1167 = vperm.xlu2 %8381, %v389_v21  }
 0x16c   :  { %1162 = vperm.xlu1 %8380, %v388_v16   ;;  %1157 = vperm.xlu0 %8379, %v387_v24   ;;  %v9624_v17 = vpop.f32.mrf.mxu3  ;;  %v7457_v16 = vor.u32 %v8204_v34, %v7454_v15 }
 0x16d   :  { %v9626_v11 = vpop.permute.xlu2 %1002  ;;  %v953_v13 = vpop.permute.xlu1 %952 }
 0x16e   :  { %v1714_v62 = vmul.f32 %v953_v13, %v118_v50  ;;  %v948_v19 = vpop.permute.xlu0 %947  ;;  %v9632_v9 = vpop.f32.mrf.mxu0  ;;  %v1893_v50 = vpack.c.bf16 %v1711_v46, %v1710_v4  ;;  %v7632_v13 = vld [vmem:[%s14789_s2 + $0x5a0] sm:$0xf]  ;;  %v1704_v46 = vmul.f32 %v9504_v47, %v108_v3 }
 0x16f   :  { %v3864_v42 = vpop.f32.mrf.mxu1  ;;  %v1713_v32 = vmul.f32 %v948_v19, %v117_v12  ;;  %v8256_v12 = vld [vmem:[%s14789_s2 + $0x5d8] sm:$0xf0]  ;;  %v1707_v19 = vmul.f32 %v9558_v40, %v111_v23  ;;  %v396_v47 = vld [vmem:[%s14787_s1 + $0x480] sm:$0xff] }
 0x170   :  { %v9641_v44 = vadd.f32 %v3864_v42, %v9415_v25  ;;  %v1895_v2 = vpack.c.bf16 %v1715_v27, %v1714_v62  ;;  %v390_v25 = vld [vmem:[%s14787_s1 + $0x450] sm:$0xff]  ;;  %v8182_v62 = vld [vmem:[%s14789_s2 + $0x388] sm:$0xf0]  ;;  %v6982_v3 = vld [vmem:[%s14789_s2 + $0xbc] sm:$0xf0] }
 0x171   :  { %3812 = vmatmul.bf16.gmra.mxu0 %v7573_v51  ;;  %4055 = vmatmul.bf16.gmra.mxu3 %v8001_v60  ;;  %v1894_v6 = vpack.c.bf16 %v1713_v32, %v1712_v52  ;;  %v8070_v51 = vld [vmem:[%s14789_s2 + $0xc] sm:$0xf]  ;;  %v6922_v60 = vld [vmem:[%s14789_s2 + $0x44] sm:$0xf0]  ;;  %v110_v27 = vld [vmem:[%s14788_s0 + $0x2b0] sm:$0xff] }
 0x172   :  { %3995 = vmatmul.bf16.gmra.mxu2 %v7281_v29  ;;  %4269 = vmatpush.bf16.msrb.mxu1 %v1895_v2  ;;  %v109_v42 = vld [vmem:[%s14788_s0 + $0x2a8] sm:$0xff]  ;;  %v6925_v36 = vor.u32 %v8070_v51, %v6922_v60  ;;  %v1706_v40 = vmul.f32 %v9383_v49, %v110_v27  ;;  %v106_v49 = vld [vmem:[%s14788_s0 + $0x290] sm:$0xff]  ;;  %v104_v51 = vld [vmem:[%s14788_s0 + $0x280] sm:$0xff] }
 0x173   :  { %1182 = vperm.xlu2 %8381, %v392_v45   ;;  %v7633_v45 = vor.u32 %v8256_v12, %v7632_v13  ;;  %v1705_v15 = vmul.f32 %v9499_v35, %v109_v42  ;;  %v397_v35 = vld [vmem:[%s14787_s1 + $0x488] sm:$0xff]  ;;  %v8085_v42 = vld [vmem:[%s14789_s2 + $0x84] sm:$0xf] }
 0x174   :  { %1177 = vperm.xlu1 %8380, %v391_v38   ;;  %1172 = vperm.xlu0 %8379, %v390_v25   ;;  %v9662_v48 = vpop.f32.mrf.mxu3 }
 0x175   :  { %v9667_v21 = vpop.permute.xlu2 %1017  ;;  %v9669_v57 = vpop.permute.xlu1 %967  ;;  %v1890_v23 = vpack.c.bf16 %v1705_v15, %v1704_v46 }
 0x176   :  { %v9671_v24 = vpop.permute.xlu0 %962  ;;  %v9673_v53 = vpop.f32.mrf.mxu0  ;;  %4270 = vmatpush.bf16.msrb.mxu1 %v1894_v6  ;;  %v1891_v6 = vpack.c.bf16 %v1707_v19, %v1706_v40  ;;  %v399_v19 = vld [vmem:[%s14787_s1 + $0x498] sm:$0xff] }
 0x177   :  { %v3867_v20 = vpop.f32.mrf.mxu1 }
 0x178   :  { %v9683_v18 = vadd.f32 %v3867_v20, %v9468_v43  ;;  %v1709_v43 = vmul.f32 %v9410_v33, %v113_v26  ;;  %v7340_v33 = vld [vmem:[%s14789_s2 + $0x350] sm:$0xf]  ;;  %v107_v26 = vld [vmem:[%s14788_s0 + $0x298] sm:$0xff]  ;;  %v1702_v20 = vmul.f32 %v9458_v41, %v106_v49 }
 0x179   :  { %3906 = vmatmul.bf16.gmra.mxu1 %v7457_v16  ;;  %v7341_v52 = vor.u32 %v8182_v62, %v7340_v33  ;;  %v7514_v16 = vld [vmem:[%s14789_s2 + $0x4ec] sm:$0xf0]  ;;  %v400_v62 = vld [vmem:[%s14787_s1 + $0x4a0] sm:$0xff] }
 0x17a   :  { %4271 = vmatpush.bf16.msrb.mxu1 %v1893_v50  ;;  %v1892_v55 = vpack.c.bf16 %v1709_v43, %v1708_v22  ;;  %v105_v50 = vld [vmem:[%s14788_s0 + $0x288] sm:$0xff]  ;;  %v1703_v43 = vmul.f32 %v9341_v37, %v107_v26  ;;  %v402_v26 = vld [vmem:[%s14787_s1 + $0x4b0] sm:$0xff] }
 0x17b   :  { %1197 = vperm.xlu2 %8381, %v395_v54   ;;  %v401_v37 = vld [vmem:[%s14787_s1 + $0x4a8] sm:$0xff] }
 0x17c   :  { %1192 = vperm.xlu1 %8380, %v394_v61   ;;  %1187 = vperm.xlu0 %8379, %v393_v39   ;;  %v9717_v29 = vpop.f32.mrf.mxu3  ;;  %v1889_v33 = vpack.c.bf16 %v1703_v43, %v1702_v20  ;;  %v7574_v20 = vld [vmem:[%s14789_s2 + $0x564] sm:$0xf0] }
 0x17d   :  { %v9725_v32 = vpop.permute.xlu2 %1032  ;;  %v9727_v2 = vpop.permute.xlu1 %982 }
 0x17e   :  { %v9730_v38 = vpop.permute.xlu0 %977  ;;  %v9732_v25 = vpop.f32.mrf.mxu0  ;;  %4272 = vmatpush.bf16.msrb.mxu1 %v1892_v55  ;;  %v8271_v55 = vld [vmem:[%s14789_s2 + $0x650] sm:$0xf0] }
 0x17f   :  { %v3869_v34 = vpop.f32.mrf.mxu1 }
 0x180   :  { %v9737_v4 = vadd.f32 %v3869_v34, %v9506_v56  ;;  %v8219_v56 = vld [vmem:[%s14789_s2 + $0x4b4] sm:$0xf] }
 0x181   :  { %3817 = vmatmul.bf16.gmra.mxu0 %v7633_v45  ;;  %4069 = vmatmul.bf16.vlgmr.msrb.gmra.mxu3 %v6925_v36  ;;  %v7517_v13 = vor.u32 %v8219_v56, %v7514_v16  ;;  %v7400_v45 = vld [vmem:[%s14789_s2 + $0x3c8] sm:$0xf]  ;;  %v403_v16 = vld [vmem:[%s14787_s1 + $0x4b8] sm:$0xff] }
 0x182   :  { %4000 = vmatmul.bf16.gmra.mxu2 %v7341_v52  ;;  %4273 = vmatpush.bf16.msrb.mxu1 %v1891_v6  ;;  %v6985_v6 = vor.u32 %v8085_v42, %v6982_v3  ;;  %v7460_v42 = vld [vmem:[%s14789_s2 + $0x440] sm:$0xf]  ;;  %v8212_v3 = vld [vmem:[%s14789_s2 + $0x478] sm:$0xf0] }
 0x183   :  { %1212 = vperm.xlu2 %8381, %v398_v30  }
 0x184   :  { %1207 = vperm.xlu1 %8380, %v397_v35   ;;  %1202 = vperm.xlu0 %8379, %v396_v47   ;;  %v3937_v22 = vpop.f32.mrf.mxu3 }
 0x185   :  { %v9765_v54 = vadd.f32 %v3937_v22, %v9405_v63  ;;  %v9767_v61 = vpop.permute.xlu2 %1047  ;;  %v9769_v39 = vpop.permute.xlu1 %997  ;;  %v1701_v63 = vmul.f32 %v9466_v31, %v105_v50  ;;  %v7692_v31 = vld [vmem:[%s14789_s2 + $0x618] sm:$0xf] }
 0x186   :  { %v9772_v12 = vpop.permute.xlu0 %992  ;;  %v9774_v41 = vpop.f32.mrf.mxu0  ;;  %4274 = vmatpush.bf16.msrb.mxu1 %v1890_v23  ;;  %v7693_v46 = vor.u32 %v8271_v55, %v7692_v31  ;;  %v7752_v31 = vld [vmem:[%s14789_s2 + $0x690] sm:$0xf]  ;;  %v7042_v55 = vld [vmem:[%s14789_s2 + $0x134] sm:$0xf0] }
 0x187   :  { %v3872_v60 = vpop.f32.mrf.mxu1 }
 0x188   :  { %v9781_v27 = vadd.f32 %v3872_v60, %v9560_v0  ;;  %v1700_v0 = vmul.f32 %v9305_v5, %v104_v51  ;;  %v8197_v5 = vld [vmem:[%s14789_s2 + $0x400] sm:$0xf0] }
 0x189   :  { %3911 = vmatmul.bf16.gmra.mxu1 %v7517_v13  ;;  %v7401_v35 = vor.u32 %v8197_v5, %v7400_v45  ;;  %v134_v45 = vld [vmem:[%s14788_s0 + $0x370] sm:$0xff] }
 0x18a   :  { %4275 = vmatpush.bf16.msrb.mxu1 %v1889_v33  ;;  %v1888_v40 = vpack.c.bf16 %v1701_v63, %v1700_v0  ;;  %v8100_v0 = vld [vmem:[%s14789_s2 + $0xfc] sm:$0xf] }
 0x18b   :  { %1227 = vperm.xlu2 %8381, %v401_v37  }
 0x18c   :  { %1222 = vperm.xlu1 %8380, %v400_v62   ;;  %1217 = vperm.xlu0 %8379, %v399_v19   ;;  %v3939_v36 = vpop.f32.mrf.mxu3  ;;  %v406_v19 = vld [vmem:[%s14787_s1 + $0x4d0] sm:$0xff] }
 0x18d   :  { %v9812_v52 = vadd.f32 %v3939_v36, %v9454_v7  ;;  %v9814_v34 = vpop.permute.xlu2 %1062  ;;  %v9816_v15 = vpop.permute.xlu1 %1012  ;;  %v404_v7 = vld [vmem:[%s14787_s1 + $0x4c0] sm:$0xff]  ;;  %v135_v36 = vld [vmem:[%s14788_s0 + $0x378] sm:$0xff] }
 0x18e   :  { %v9818_v30 = vpop.permute.xlu0 %1007  ;;  %v9820_v49 = vpop.f32.mrf.mxu0  ;;  %4276 = vmatpush.bf16.msrb.mxu1 %v1888_v40 }
 0x18f   :  { %v3874_v47 = vpop.f32.mrf.mxu1 }
 0x190   :  { %v9823_v56 = vadd.f32 %v3874_v47, %v9586_v1  ;;  %v8234_v1 = vld [vmem:[%s14789_s2 + $0x52c] sm:$0xf]  ;;  %v7045_v47 = vor.u32 %v8100_v0, %v7042_v55  ;;  %v131_v0 = vld [vmem:[%s14788_s0 + $0x358] sm:$0xff] }
 0x191   :  { %3822 = vmatmul.bf16.gmra.mxu0 %v7693_v46  ;;  %4074 = vmatmul.bf16.gmra.mxu3 %v6985_v6  ;;  %v7577_v43 = vor.u32 %v8234_v1, %v7574_v20  ;;  %v7461_v20 = vor.u32 %v8212_v3, %v7460_v42 }
 0x192   :  { %4005 = vmatmul.bf16.gmra.mxu2 %v7401_v35 }
 0x193   :  { %1242 = vperm.xlu2 %8381, %v404_v7   ;;  %v133_v7 = vld [vmem:[%s14788_s0 + $0x368] sm:$0xff] }
 0x194   :  { %1237 = vperm.xlu1 %8380, %v403_v16   ;;  %1232 = vperm.xlu0 %8379, %v402_v26   ;;  %v3942_v22 = vpop.f32.mrf.mxu3  ;;  %v132_v16 = vld [vmem:[%s14788_s0 + $0x360] sm:$0xff] }
 0x195   :  { %v9841_v23 = vadd.f32 %v3942_v22, %v9494_v59  ;;  %v3966_v50 = vpop.f32.mrf.mxu2  ;;  %v9843_v13 = vpop.permute.xlu2 %1077  ;;  %v407_v59 = vld [vmem:[%s14787_s1 + $0x4d8] sm:$0xff]  ;;  %v1730_v22 = vmul.f32 %v9725_v32, %v134_v45  ;;  %v409_v32 = vld [vmem:[%s14787_s1 + $0x4e8] sm:$0xff] }
 0x196   :  { %v9846_v51 = vadd.f32 %v3966_v50, %v9589_v8  ;;  %v1028_v60 = vpop.permute.xlu1 %1027  ;;  %v1023_v63 = vpop.permute.xlu0 %1022  ;;  %v405_v8 = vld [vmem:[%s14787_s1 + $0x4c8] sm:$0xff] }
 0x197   :  { %v9848_v33 = vpop.f32.mrf.mxu0  ;;  %v3877_v37 = vpop.f32.mrf.mxu1 }
 0x198   :  { %v9851_v62 = vadd.f32 %v3877_v37, %v9632_v9  ;;  %v8286_v9 = vld [vmem:[%s14789_s2 + $0x6c8] sm:$0xf0] }
 0x199   :  { %3916 = vmatmul.bf16.gmra.mxu1 %v7577_v43  ;;  %v7753_v35 = vor.u32 %v8286_v9, %v7752_v31  ;;  %v408_v9 = vld [vmem:[%s14787_s1 + $0x4e0] sm:$0xff] }
 0x19b   :  { %1257 = vperm.xlu2 %8381, %v407_v59  }
 0x19c   :  { %1252 = vperm.xlu1 %8380, %v406_v19   ;;  %1247 = vperm.xlu0 %8379, %v405_v8   ;;  %v3944_v5 = vpop.f32.mrf.mxu3  ;;  %v410_v19 = vld [vmem:[%s14787_s1 + $0x4f0] sm:$0xff]  ;;  %v1729_v8 = vmul.f32 %v1028_v60, %v133_v7  ;;  %v8249_v60 = vld [vmem:[%s14789_s2 + $0x5a4] sm:$0xf] }
 0x19d   :  { %v9887_v40 = vadd.f32 %v3944_v5, %v9548_v28  ;;  %v3968_v46 = vpop.f32.mrf.mxu2  ;;  %v9889_v6 = vpop.permute.xlu2 %1092 }
 0x19e   :  { %v9898_v26 = vadd.f32 %v3968_v46, %v9641_v44  ;;  %v9900_v1 = vpop.permute.xlu1 %1042  ;;  %v1038_v28 = vpop.permute.xlu0 %1037  ;;  %v1728_v44 = vmul.f32 %v1023_v63, %v132_v16  ;;  %v7634_v63 = vld [vmem:[%s14789_s2 + $0x5dc] sm:$0xf0] }
 0x19f   :  { %v1731_v50 = vmul.f32 %v1038_v28, %v135_v36  ;;  %v9903_v43 = vpop.f32.mrf.mxu0  ;;  %v3879_v37 = vpop.f32.mrf.mxu1  ;;  %v7637_v46 = vor.u32 %v8249_v60, %v7634_v63  ;;  %v8227_v60 = vld [vmem:[%s14789_s2 + $0x4f0] sm:$0xf0] }
 0x1a0   :  { %v9906_v59 = vadd.f32 %v3879_v37, %v9673_v53  ;;  %v130_v53 = vld [vmem:[%s14788_s0 + $0x350] sm:$0xff]  ;;  %v1902_v36 = vpack.c.bf16 %v1729_v8, %v1728_v44  ;;  %v413_v37 = vld [vmem:[%s14787_s1 + $0x508] sm:$0xff]  ;;  %v412_v8 = vld [vmem:[%s14787_s1 + $0x500] sm:$0xff] }
 0x1a1   :  { %3827 = vmatmul.bf16.gmra.mxu0 %v7753_v35  ;;  %4079 = vmatmul.bf16.gmra.mxu3 %v7045_v47  ;;  %v1903_v31 = vpack.c.bf16 %v1731_v50, %v1730_v22  ;;  %v1726_v42 = vmul.f32 %v9816_v15, %v130_v53  ;;  %v129_v35 = vld [vmem:[%s14788_s0 + $0x348] sm:$0xff]  ;;  %v1727_v15 = vmul.f32 %v9667_v21, %v131_v0  ;;  %v127_v22 = vld [vmem:[%s14788_s0 + $0x338] sm:$0xff] }
 0x1a2   :  { %4010 = vmatmul.bf16.gmra.mxu2 %v7461_v20  ;;  %v1725_v21 = vmul.f32 %v9818_v30, %v129_v35  ;;  %v411_v44 = vld [vmem:[%s14787_s1 + $0x4f8] sm:$0xff]  ;;  %v6928_v30 = vld [vmem:[%s14789_s2 + $0x10] sm:$0xf]  ;;  %v1723_v63 = vmul.f32 %v9769_v39, %v127_v22 }
 0x1a3   :  { %4373 = vmatpush.bf16.msrb.mxu2 %v1903_v31  ;;  %1272 = vperm.xlu2 %8381, %v410_v19   ;;  %v1901_v19 = vpack.c.bf16 %v1727_v15, %v1726_v42  ;;  %v7102_v31 = vld [vmem:[%s14789_s2 + $0x1ac] sm:$0xf0]  ;;  %v7520_v53 = vld [vmem:[%s14789_s2 + $0x4b8] sm:$0xf] }
 0x1a4   :  { %1267 = vperm.xlu1 %8380, %v409_v32   ;;  %1262 = vperm.xlu0 %8379, %v408_v9   ;;  %v3947_v55 = vpop.f32.mrf.mxu3  ;;  %v8078_v32 = vld [vmem:[%s14789_s2 + $0x48] sm:$0xf0] }
 0x1a5   :  { %v9931_v3 = vadd.f32 %v3947_v55, %v9582_v14  ;;  %v3971_v45 = vpop.f32.mrf.mxu2  ;;  %v9933_v5 = vpop.permute.xlu2 %1107  ;;  %v128_v14 = vld [vmem:[%s14788_s0 + $0x340] sm:$0xff]  ;;  %v6929_v35 = vor.u32 %v8078_v32, %v6928_v30  ;;  %v122_v30 = vld [vmem:[%s14788_s0 + $0x310] sm:$0xff] }
 0x1a6   :  { %v9939_v47 = vadd.f32 %v3971_v45, %v9683_v18  ;;  %v9941_v7 = vpop.permute.xlu1 %1057  ;;  %v9943_v16 = vpop.permute.xlu0 %1052  ;;  %v126_v18 = vld [vmem:[%s14788_s0 + $0x330] sm:$0xff]  ;;  %v1724_v9 = vmul.f32 %v9626_v11, %v128_v14  ;;  %v124_v14 = vld [vmem:[%s14788_s0 + $0x320] sm:$0xff] }
 0x1a7   :  { %v9949_v28 = vpop.f32.mrf.mxu0  ;;  %v3882_v20 = vpop.f32.mrf.mxu1  ;;  %4374 = vmatpush.bf16.msrb.mxu2 %v1902_v36  ;;  %v1722_v0 = vmul.f32 %v9772_v12, %v126_v18  ;;  %v125_v18 = vld [vmem:[%s14788_s0 + $0x328] sm:$0xff] }
 0x1a8   :  { %v9958_v50 = vadd.f32 %v3882_v20, %v9732_v25  ;;  %v8115_v25 = vld [vmem:[%s14789_s2 + $0x174] sm:$0xf]  ;;  %v1900_v36 = vpack.c.bf16 %v1725_v21, %v1724_v9  ;;  %v7521_v20 = vor.u32 %v8227_v60, %v7520_v53  ;;  %v1720_v21 = vmul.f32 %v9727_v2, %v124_v14  ;;  %v8264_v2 = vld [vmem:[%s14789_s2 + $0x61c] sm:$0xf] }
 0x1a9   :  { %3921 = vmatmul.bf16.gmra.mxu1 %v7637_v46  ;;  %v7105_v46 = vor.u32 %v8115_v25, %v7102_v31  ;;  %v7694_v25 = vld [vmem:[%s14789_s2 + $0x654] sm:$0xf0]  ;;  %v1721_v31 = vmul.f32 %v9584_v58, %v125_v18  ;;  %v121_v58 = vld [vmem:[%s14788_s0 + $0x308] sm:$0xff] }
 0x1ab   :  { %4375 = vmatpush.bf16.msrb.mxu2 %v1901_v19  ;;  %1287 = vperm.xlu2 %8381, %v413_v37   ;;  %v1899_v19 = vpack.c.bf16 %v1723_v63, %v1722_v0  ;;  %v1898_v0 = vpack.c.bf16 %v1721_v31, %v1720_v21  ;;  %v417_v21 = vld [vmem:[%s14787_s1 + $0x528] sm:$0xff] }
 0x1ac   :  { %1282 = vperm.xlu1 %8380, %v412_v8   ;;  %1277 = vperm.xlu0 %8379, %v411_v44   ;;  %v3949_v55 = vpop.f32.mrf.mxu3  ;;  %v415_v8 = vld [vmem:[%s14787_s1 + $0x518] sm:$0xff]  ;;  %v414_v44 = vld [vmem:[%s14787_s1 + $0x510] sm:$0xff] }
 0x1ad   :  { %v9992_v42 = vadd.f32 %v3949_v55, %v9624_v17  ;;  %v3973_v11 = vpop.f32.mrf.mxu2  ;;  %v9994_v45 = vpop.permute.xlu2 %1122  ;;  %v7697_v55 = vor.u32 %v8264_v2, %v7694_v25 }
 0x1ae   :  { %v10000_v39 = vadd.f32 %v3973_v11, %v9737_v4  ;;  %v10002_v12 = vpop.permute.xlu1 %1072  ;;  %v10004_v15 = vpop.permute.xlu0 %1067  ;;  %v416_v4 = vld [vmem:[%s14787_s1 + $0x520] sm:$0xff] }
 0x1af   :  { %v10006_v17 = vpop.f32.mrf.mxu0  ;;  %v3884_v22 = vpop.f32.mrf.mxu1  ;;  %4376 = vmatpush.bf16.msrb.mxu2 %v1900_v36  ;;  %v120_v11 = vld [vmem:[%s14788_s0 + $0x300] sm:$0xff] }
 0x1b0   :  { %v10012_v37 = vadd.f32 %v3884_v22, %v9774_v41  ;;  %v123_v41 = vld [vmem:[%s14788_s0 + $0x318] sm:$0xff]  ;;  %v1716_v18 = vmul.f32 %v9671_v24, %v120_v11  ;;  %v6988_v24 = vld [vmem:[%s14789_s2 + $0x88] sm:$0xf] }
 0x1b1   :  { %4084 = vmatmul.bf16.gmra.mxu3 %v7105_v46  ;;  %4173 = vmatmul.bf16.vlgmr.msrb.gmra.mxu0 %v6929_v35  ;;  %v1719_v9 = vmul.f32 %v9730_v38, %v123_v41  ;;  %v1718_v46 = vmul.f32 %v9551_v10, %v122_v30  ;;  %v419_v22 = vld [vmem:[%s14787_s1 + $0x538] sm:$0xff]  ;;  %v418_v10 = vld [vmem:[%s14787_s1 + $0x530] sm:$0xff] }
 0x1b2   :  { %4015 = vmatmul.bf16.gmra.mxu2 %v7521_v20 }
 0x1b3   :  { %4377 = vmatpush.bf16.msrb.mxu2 %v1899_v19  ;;  %1302 = vperm.xlu2 %8381, %v416_v4   ;;  %v1897_v4 = vpack.c.bf16 %v1719_v9, %v1718_v46  ;;  %v8093_v19 = vld [vmem:[%s14789_s2 + $0xc0] sm:$0xf0] }
 0x1b4   :  { %1297 = vperm.xlu1 %8380, %v415_v8   ;;  %1292 = vperm.xlu0 %8379, %v414_v44   ;;  %v3952_v32 = vpop.f32.mrf.mxu3  ;;  %v7580_v8 = vld [vmem:[%s14789_s2 + $0x530] sm:$0xf]  ;;  %v8242_v44 = vld [vmem:[%s14789_s2 + $0x568] sm:$0xf0]  ;;  %v6989_v9 = vor.u32 %v8093_v19, %v6988_v24  ;;  %v148_v19 = vld [vmem:[%s14788_s0 + $0x3e0] sm:$0xff] }
 0x1b5   :  { %v10039_v53 = vadd.f32 %v3952_v32, %v9662_v48  ;;  %v3976_v60 = vpop.f32.mrf.mxu2  ;;  %v10041_v63 = vpop.permute.xlu2 %1137 }
 0x1b6   :  { %v10050_v36 = vadd.f32 %v3976_v60, %v9781_v27  ;;  %v10052_v38 = vpop.permute.xlu1 %1087  ;;  %v10054_v48 = vpop.permute.xlu0 %1082  ;;  %v1717_v27 = vmul.f32 %v9669_v57, %v121_v58  ;;  %v7162_v57 = vld [vmem:[%s14789_s2 + $0x224] sm:$0xf0]  ;;  %v7581_v58 = vor.u32 %v8242_v44, %v7580_v8 }
 0x1b7   :  { %v10057_v35 = vpop.f32.mrf.mxu0  ;;  %v3887_v14 = vpop.f32.mrf.mxu1  ;;  %4378 = vmatpush.bf16.msrb.mxu2 %v1898_v0 }
 0x1b8   :  { %v10060_v20 = vadd.f32 %v3887_v14, %v9820_v49  ;;  %v8130_v49 = vld [vmem:[%s14789_s2 + $0x1ec] sm:$0xf]  ;;  %v1896_v30 = vpack.c.bf16 %v1717_v27, %v1716_v18  ;;  %v7754_v27 = vld [vmem:[%s14789_s2 + $0x6cc] sm:$0xf0] }
 0x1b9   :  { %3926 = vmatmul.bf16.gmra.mxu1 %v7697_v55  ;;  %v7165_v32 = vor.u32 %v8130_v49, %v7162_v57 }
 0x1bb   :  { %4379 = vmatpush.bf16.msrb.mxu2 %v1897_v4  ;;  %1317 = vperm.xlu2 %8381, %v419_v22   ;;  %v420_v22 = vld [vmem:[%s14787_s1 + $0x540] sm:$0xff]  ;;  %v151_v4 = vld [vmem:[%s14788_s0 + $0x3f8] sm:$0xff] }
 0x1bc   :  { %1312 = vperm.xlu1 %8380, %v418_v10   ;;  %1307 = vperm.xlu0 %8379, %v417_v21   ;;  %v3954_v41 = vpop.f32.mrf.mxu3  ;;  %v150_v10 = vld [vmem:[%s14788_s0 + $0x3f0] sm:$0xff] }
 0x1bd   :  { %v10092_v2 = vadd.f32 %v3954_v41, %v9717_v29  ;;  %v3978_v25 = vpop.f32.mrf.mxu2  ;;  %v10094_v31 = vpop.permute.xlu2 %1152  ;;  %v422_v29 = vld [vmem:[%s14787_s1 + $0x550] sm:$0xff] }
 0x1be   :  { %v10097_v60 = vadd.f32 %v3978_v25, %v9823_v56  ;;  %v1103_v0 = vpop.permute.xlu1 %1102  ;;  %v1098_v55 = vpop.permute.xlu0 %1097  ;;  %v421_v56 = vld [vmem:[%s14787_s1 + $0x548] sm:$0xff] }
 0x1bf   :  { %v10099_v11 = vpop.f32.mrf.mxu0  ;;  %v3889_v46 = vpop.f32.mrf.mxu1  ;;  %4380 = vmatpush.bf16.msrb.mxu2 %v1896_v30 }
 0x1c0   :  { %v10102_v14 = vadd.f32 %v3889_v46, %v9848_v33  ;;  %v8279_v33 = vld [vmem:[%s14789_s2 + $0x694] sm:$0xf]  ;;  %v425_v46 = vld [vmem:[%s14787_s1 + $0x568] sm:$0xff] }
 0x1c1   :  { %4089 = vmatmul.bf16.gmra.mxu3 %v7165_v32  ;;  %4178 = vmatmul.bf16.gmra.mxu0 %v6989_v9  ;;  %v7757_v24 = vor.u32 %v8279_v33, %v7754_v27  ;;  %v7222_v33 = vld [vmem:[%s14789_s2 + $0x29c] sm:$0xf0]  ;;  %v147_v27 = vld [vmem:[%s14788_s0 + $0x3d8] sm:$0xff] }
 0x1c2   :  { %4020 = vmatmul.bf16.gmra.mxu2 %v7581_v58 }
 0x1c3   :  { %1332 = vperm.xlu2 %8381, %v422_v29   ;;  %v1744_v29 = vmul.f32 %v1103_v0, %v148_v19  ;;  %v7048_v0 = vld [vmem:[%s14789_s2 + $0x100] sm:$0xf] }
 0x1c4   :  { %1327 = vperm.xlu1 %8380, %v421_v56   ;;  %1322 = vperm.xlu0 %8379, %v420_v22   ;;  %v4041_v18 = vpop.f32.mrf.mxu3  ;;  %v423_v22 = vld [vmem:[%s14787_s1 + $0x558] sm:$0xff] }
 0x1c5   :  { %v3981_v21 = vpop.f32.mrf.mxu2  ;;  %v10126_v49 = vadd.f32 %v4041_v18, %v9765_v54  ;;  %v10128_v57 = vpop.permute.xlu2 %1167  ;;  %v149_v54 = vld [vmem:[%s14788_s0 + $0x3e8] sm:$0xff]  ;;  %v8108_v18 = vld [vmem:[%s14789_s2 + $0x138] sm:$0xf0] }
 0x1c6   :  { %v10134_v8 = vadd.f32 %v3981_v21, %v9851_v62  ;;  %v1118_v44 = vpop.permute.xlu1 %1117  ;;  %v1113_v41 = vpop.permute.xlu0 %1112  ;;  %v424_v62 = vld [vmem:[%s14787_s1 + $0x560] sm:$0xff] }
 0x1c7   :  { %14819 = vst [vmem:[#allocation2_spill] sm:$0xff] %v10126_v49  ;;  %v1747_v25 = vmul.f32 %v1118_v44, %v151_v4  ;;  %v1746_v30 = vmul.f32 %v1113_v41, %v150_v10  ;;  %v10136_v32 = vpop.f32.mrf.mxu0  ;;  %v3892_v9 = vpop.f32.mrf.mxu1  ;;  %v1745_v4 = vmul.f32 %v9933_v5, %v149_v54  ;;  %v7640_v10 = vld [vmem:[%s14789_s2 + $0x5a8] sm:$0xf]  ;;  %v8257_v21 = vld [vmem:[%s14789_s2 + $0x5e0] sm:$0xf0]  ;;  %v1743_v5 = vmul.f32 %v1098_v55, %v147_v27 }
 0x1c8   :  { %v10142_v58 = vadd.f32 %v3892_v9, %v9903_v43  ;;  %v8145_v43 = vld [vmem:[%s14789_s2 + $0x264] sm:$0xf]  ;;  %v7049_v54 = vor.u32 %v8108_v18, %v7048_v0 }
 0x1c9   :  { %v1911_v56 = vpack.c.bf16 %v1747_v25, %v1746_v30  ;;  %3931 = vmatmul.bf16.gmra.mxu1 %v7757_v24  ;;  %v146_v24 = vld [vmem:[%s14788_s0 + $0x3d0] sm:$0xff]  ;;  %v7225_v44 = vor.u32 %v8145_v43, %v7222_v33  ;;  %v1910_v41 = vpack.c.bf16 %v1745_v4, %v1744_v29  ;;  %v428_v0 = vld [vmem:[%s14787_s1 + $0x580] sm:$0xff] }
 0x1cb   :  { %4477 = vmatpush.bf16.msra.mxu3 %v1911_v56  ;;  %1347 = vperm.xlu2 %8381, %v425_v46   ;;  %v145_v46 = vld [vmem:[%s14788_s0 + $0x3c8] sm:$0xff] }
 0x1cc   :  { %1342 = vperm.xlu1 %8380, %v424_v62   ;;  %1337 = vperm.xlu0 %8379, %v423_v22   ;;  %v4043_v19 = vpop.f32.mrf.mxu3  ;;  %v144_v62 = vld [vmem:[%s14788_s0 + $0x3c0] sm:$0xff]  ;;  %v1742_v22 = vmul.f32 %v9889_v6, %v146_v24  ;;  %v427_v6 = vld [vmem:[%s14787_s1 + $0x578] sm:$0xff] }
 0x1cd   :  { %v3983_v25 = vpop.f32.mrf.mxu2  ;;  %v10179_v30 = vadd.f32 %v4043_v19, %v9812_v52  ;;  %v10181_v9 = vpop.permute.xlu2 %1182  ;;  %v7641_v52 = vor.u32 %v8257_v21, %v7640_v10  ;;  %v1740_v18 = vmul.f32 %v10054_v48, %v144_v62  ;;  %v142_v10 = vld [vmem:[%s14788_s0 + $0x3b0] sm:$0xff]  ;;  %v143_v21 = vld [vmem:[%s14788_s0 + $0x3b8] sm:$0xff] }
 0x1ce   :  { %v10190_v56 = vadd.f32 %v3983_v25, %v9906_v59  ;;  %v10192_v29 = vpop.permute.xlu1 %1132  ;;  %v10194_v55 = vpop.permute.xlu0 %1127  ;;  %v1741_v59 = vmul.f32 %v10052_v38, %v145_v46  ;;  %v1909_v4 = vpack.c.bf16 %v1743_v5, %v1742_v22  ;;  %v8071_v38 = vld [vmem:[%s14789_s2 + $0x14] sm:$0xf]  ;;  %v6930_v48 = vld [vmem:[%s14789_s2 + $0x4c] sm:$0xf0]  ;;  %v1738_v19 = vmul.f32 %v10002_v12, %v142_v10  ;;  %v141_v46 = vld [vmem:[%s14788_s0 + $0x3a8] sm:$0xff] }
 0x1cf   :  { %14820 = vst [vmem:[#allocation3_spill] sm:$0xff] %v10179_v30  ;;  %v10197_v43 = vpop.f32.mrf.mxu0  ;;  %v3894_v33 = vpop.f32.mrf.mxu1  ;;  %4478 = vmatpush.bf16.msra.mxu3 %v1910_v41  ;;  %v140_v12 = vld [vmem:[%s14788_s0 + $0x3a0] sm:$0xff]  ;;  %v429_v10 = vld [vmem:[%s14787_s1 + $0x588] sm:$0xff] }
 0x1d0   :  { %v10200_v27 = vadd.f32 %v3894_v33, %v9949_v28  ;;  %v426_v28 = vld [vmem:[%s14787_s1 + $0x570] sm:$0xff] }
 0x1d1   :  { %4094 = vmatmul.bf16.gmra.mxu3 %v7225_v44  ;;  %4183 = vmatmul.bf16.gmra.mxu0 %v7049_v54  ;;  %v1908_v44 = vpack.c.bf16 %v1741_v59, %v1740_v18  ;;  %v6933_v54 = vor.u32 %v8071_v38, %v6930_v48  ;;  %v139_v59 = vld [vmem:[%s14788_s0 + $0x398] sm:$0xff]  ;;  %v8123_v48 = vld [vmem:[%s14789_s2 + $0x1b0] sm:$0xf0] }
 0x1d2   :  { %4025 = vmatmul.bf16.gmra.mxu2 %v7641_v52  ;;  %v7282_v38 = vld [vmem:[%s14789_s2 + $0x314] sm:$0xf0] }
 0x1d3   :  { %4479 = vmatpush.bf16.msra.mxu3 %v1909_v4  ;;  %1362 = vperm.xlu2 %8381, %v428_v0   ;;  %v431_v4 = vld [vmem:[%s14787_s1 + $0x598] sm:$0xff] }
 0x1d4   :  { %1357 = vperm.xlu1 %8380, %v427_v6   ;;  %1352 = vperm.xlu0 %8379, %v426_v28   ;;  %v4046_v24 = vpop.f32.mrf.mxu3  ;;  %v1737_v6 = vmul.f32 %v10004_v15, %v141_v46  ;;  %v430_v28 = vld [vmem:[%s14787_s1 + $0x590] sm:$0xff]  ;;  %v7108_v15 = vld [vmem:[%s14789_s2 + $0x178] sm:$0xf] }
 0x1d5   :  { %v3986_v41 = vpop.f32.mrf.mxu2  ;;  %v10227_v5 = vadd.f32 %v4046_v24, %v9841_v23  ;;  %v10229_v25 = vpop.permute.xlu2 %1197  ;;  %v1739_v23 = vmul.f32 %v9843_v13, %v143_v21  ;;  %v1736_v21 = vmul.f32 %v9814_v34, %v140_v12  ;;  %v7700_v24 = vld [vmem:[%s14789_s2 + $0x620] sm:$0xf] }
 0x1d6   :  { %v10235_v62 = vadd.f32 %v3986_v41, %v9958_v50  ;;  %v10237_v52 = vpop.permute.xlu1 %1147  ;;  %v10239_v22 = vpop.permute.xlu0 %1142  ;;  %v138_v50 = vld [vmem:[%s14788_s0 + $0x390] sm:$0xff] }
 0x1d7   :  { %14821 = vst [vmem:[#allocation4_spill] sm:$0xff] %v10227_v5  ;;  %v10245_v33 = vpop.f32.mrf.mxu0  ;;  %v3897_v0 = vpop.f32.mrf.mxu1  ;;  %4480 = vmatpush.bf16.msra.mxu3 %v1908_v44  ;;  %v1907_v13 = vpack.c.bf16 %v1739_v23, %v1738_v19  ;;  %v8272_v19 = vld [vmem:[%s14789_s2 + $0x658] sm:$0xf0]  ;;  %v1735_v44 = vmul.f32 %v9941_v7, %v139_v59  ;;  %v1734_v41 = vmul.f32 %v9943_v16, %v138_v50 }
 0x1d8   :  { %v10254_v18 = vadd.f32 %v3897_v0, %v10006_v17  ;;  %v8160_v17 = vld [vmem:[%s14789_s2 + $0x2dc] sm:$0xf]  ;;  %v1906_v46 = vpack.c.bf16 %v1737_v6, %v1736_v21  ;;  %v7701_v50 = vor.u32 %v8272_v19, %v7700_v24 }
 0x1d9   :  { %4277 = vmatmul.bf16.vlgmr.msrb.gmra.mxu1 %v6933_v54  ;;  %v7285_v0 = vor.u32 %v8160_v17, %v7282_v38  ;;  %v1905_v38 = vpack.c.bf16 %v1735_v44, %v1734_v41 }
 0x1db   :  { %4481 = vmatpush.bf16.msra.mxu3 %v1907_v13  ;;  %1377 = vperm.xlu2 %8381, %v431_v4   ;;  %v7109_v4 = vor.u32 %v8123_v48, %v7108_v15  ;;  %v136_v13 = vld [vmem:[%s14788_s0 + $0x380] sm:$0xff]  ;;  %v433_v15 = vld [vmem:[%s14787_s1 + $0x5a8] sm:$0xff] }
 0x1dc   :  { %1372 = vperm.xlu1 %8380, %v430_v28   ;;  %1367 = vperm.xlu0 %8379, %v429_v10   ;;  %v4048_v54 = vpop.f32.mrf.mxu3  ;;  %v137_v28 = vld [vmem:[%s14788_s0 + $0x388] sm:$0xff]  ;;  %v1732_v17 = vmul.f32 %v9900_v1, %v136_v13  ;;  %v432_v48 = vld [vmem:[%s14787_s1 + $0x5a0] sm:$0xff] }
 0x1dd   :  { %v3988_v23 = vpop.f32.mrf.mxu2  ;;  %v10288_v34 = vadd.f32 %v4048_v54, %v9887_v40  ;;  %v10290_v12 = vpop.permute.xlu2 %1212  ;;  %v6990_v1 = vld [vmem:[%s14789_s2 + $0xc4] sm:$0xf0]  ;;  %v1733_v21 = vmul.f32 %v9767_v61, %v137_v28  ;;  %v8175_v28 = vld [vmem:[%s14789_s2 + $0x354] sm:$0xf] }
 0x1de   :  { %v10296_v7 = vadd.f32 %v3988_v23, %v10012_v37  ;;  %v10298_v16 = vpop.permute.xlu1 %1162  ;;  %v10300_v59 = vpop.permute.xlu0 %1157  ;;  %v434_v37 = vld [vmem:[%s14787_s1 + $0x5b0] sm:$0xff] }
 0x1df   :  { %14822 = vst [vmem:[#allocation5_spill] sm:$0xff] %v10288_v34  ;;  %v10302_v6 = vpop.f32.mrf.mxu0  ;;  %v3899_v40 = vpop.f32.mrf.mxu1  ;;  %4482 = vmatpush.bf16.msra.mxu3 %v1906_v46  ;;  %v1904_v19 = vpack.c.bf16 %v1733_v21, %v1732_v17  ;;  %v8138_v17 = vld [vmem:[%s14789_s2 + $0x228] sm:$0xf0] }
 0x1e0   :  { %v10308_v10 = vadd.f32 %v3899_v40, %v10057_v35  ;;  %v8086_v35 = vld [vmem:[%s14789_s2 + $0x8c] sm:$0xf]  ;;  %v436_v40 = vld [vmem:[%s14787_s1 + $0x5c0] sm:$0xff] }
 0x1e1   :  { %4099 = vmatmul.bf16.gmra.mxu3 %v7285_v0  ;;  %4188 = vmatmul.bf16.gmra.mxu0 %v7109_v4  ;;  %v6993_v46 = vor.u32 %v8086_v35, %v6990_v1  ;;  %v166_v1 = vld [vmem:[%s14788_s0 + $0x470] sm:$0xff] }
 0x1e2   :  { %4030 = vmatmul.bf16.gmra.mxu2 %v7701_v50 }
 0x1e3   :  { %4483 = vmatpush.bf16.msra.mxu3 %v1905_v38  ;;  %1392 = vperm.xlu2 %8381, %v434_v37   ;;  %v7168_v37 = vld [vmem:[%s14789_s2 + $0x1f0] sm:$0xf]  ;;  %v7760_v38 = vld [vmem:[%s14789_s2 + $0x698] sm:$0xf] }
 0x1e4   :  { %1387 = vperm.xlu1 %8380, %v433_v15   ;;  %1382 = vperm.xlu0 %8379, %v432_v48   ;;  %v4051_v24 = vpop.f32.mrf.mxu3  ;;  %v8287_v15 = vld [vmem:[%s14789_s2 + $0x6d0] sm:$0xf0]  ;;  %v167_v48 = vld [vmem:[%s14788_s0 + $0x478] sm:$0xff] }
 0x1e5   :  { %v3991_v44 = vpop.f32.mrf.mxu2  ;;  %v10328_v41 = vadd.f32 %v4051_v24, %v9931_v3  ;;  %v10330_v54 = vpop.permute.xlu2 %1227  ;;  %v437_v3 = vld [vmem:[%s14787_s1 + $0x5c8] sm:$0xff]  ;;  %v1763_v34 = vmul.f32 %v10229_v25, %v167_v48  ;;  %v163_v48 = vld [vmem:[%s14788_s0 + $0x458] sm:$0xff] }
 0x1e6   :  { %v10333_v23 = vadd.f32 %v3991_v44, %v10060_v20  ;;  %v1178_v0 = vpop.permute.xlu1 %1177  ;;  %v1173_v4 = vpop.permute.xlu0 %1172  ;;  %v435_v20 = vld [vmem:[%s14787_s1 + $0x5b8] sm:$0xff] }
 0x1e7   :  { %14823 = vst [vmem:[#allocation6_spill] sm:$0xff] %v10328_v41  ;;  %v10335_v13 = vpop.f32.mrf.mxu0  ;;  %v3902_v61 = vpop.f32.mrf.mxu1  ;;  %4484 = vmatpush.bf16.msra.mxu3 %v1904_v19 }
 0x1e8   :  { %v10338_v50 = vadd.f32 %v3902_v61, %v10099_v11  ;;  %v7342_v11 = vld [vmem:[%s14789_s2 + $0x38c] sm:$0xf0] }
 0x1e9   :  { %4282 = vmatmul.bf16.gmra.mxu1 %v6993_v46  ;;  %v7345_v44 = vor.u32 %v8175_v28, %v7342_v11  ;;  %v7169_v46 = vor.u32 %v8138_v17, %v7168_v37  ;;  %v164_v28 = vld [vmem:[%s14788_s0 + $0x460] sm:$0xff]  ;;  %v439_v37 = vld [vmem:[%s14787_s1 + $0x5d8] sm:$0xff] }
 0x1ea   :  { %v440_v11 = vld [vmem:[%s14787_s1 + $0x5e0] sm:$0xff] }
 0x1eb   :  { %1407 = vperm.xlu2 %8381, %v437_v3  }
 0x1ec   :  { %1402 = vperm.xlu1 %8380, %v436_v40   ;;  %1397 = vperm.xlu0 %8379, %v435_v20   ;;  %v4053_v35 = vpop.f32.mrf.mxu3  ;;  %v165_v40 = vld [vmem:[%s14788_s0 + $0x468] sm:$0xff]  ;;  %v7761_v20 = vor.u32 %v8287_v15, %v7760_v38  ;;  %v438_v38 = vld [vmem:[%s14787_s1 + $0x5d0] sm:$0xff]  ;;  %v7050_v15 = vld [vmem:[%s14789_s2 + $0x13c] sm:$0xf0] }
 0x1ed   :  { %v3993_v21 = vpop.f32.mrf.mxu2  ;;  %v10374_v24 = vadd.f32 %v4053_v35, %v9992_v42  ;;  %v10376_v19 = vpop.permute.xlu2 %1242 }
 0x1ee   :  { %v10379_v61 = vadd.f32 %v3993_v21, %v10102_v14  ;;  %v1193_v3 = vpop.permute.xlu1 %1192  ;;  %v1188_v41 = vpop.permute.xlu0 %1187 }
 0x1ef   :  { %14824 = vst [vmem:[#allocation7_spill] sm:$0xff] %v10374_v24  ;;  %v1762_v5 = vmul.f32 %v1193_v3, %v166_v1  ;;  %v10385_v30 = vpop.f32.mrf.mxu0  ;;  %v3904_v42 = vpop.f32.mrf.mxu1  ;;  %v1761_v17 = vmul.f32 %v1188_v41, %v165_v40  ;;  %v1759_v1 = vmul.f32 %v1178_v0, %v163_v48  ;;  %v8153_v48 = vld [vmem:[%s14789_s2 + $0x2a0] sm:$0xf0]  ;;  %v181_v24 = vld [vmem:[%s14788_s0 + $0x4e8] sm:$0xff] }
 0x1f0   :  { %v10391_v14 = vadd.f32 %v3904_v42, %v10136_v32  ;;  %v8101_v32 = vld [vmem:[%s14789_s2 + $0x104] sm:$0xf] }
 0x1f1   :  { %v1919_v25 = vpack.c.bf16 %v1763_v34, %v1762_v5  ;;  %4104 = vmatmul.bf16.gmra.mxu3 %v7345_v44  ;;  %4193 = vmatmul.bf16.gmra.mxu0 %v7169_v46  ;;  %v162_v5 = vld [vmem:[%s14788_s0 + $0x450] sm:$0xff]  ;;  %v1760_v34 = vmul.f32 %v10181_v9, %v164_v28  ;;  %v7053_v35 = vor.u32 %v8101_v32, %v7050_v15  ;;  %v441_v32 = vld [vmem:[%s14787_s1 + $0x5e8] sm:$0xff] }
 0x1f2   :  { %4035 = vmatmul.bf16.gmra.mxu2 %v7761_v20  ;;  %v1758_v21 = vmul.f32 %v1173_v4, %v162_v5  ;;  %v160_v20 = vld [vmem:[%s14788_s0 + $0x440] sm:$0xff]  ;;  %v7402_v15 = vld [vmem:[%s14789_s2 + $0x404] sm:$0xf0] }
 0x1f3   :  { %4581 = vmatpush.bf16.msra.mxu0 %v1919_v25  ;;  %1422 = vperm.xlu2 %8381, %v440_v11   ;;  %v1918_v44 = vpack.c.bf16 %v1761_v17, %v1760_v34  ;;  %v159_v11 = vld [vmem:[%s14788_s0 + $0x438] sm:$0xff]  ;;  %v1756_v25 = vmul.f32 %v10298_v16, %v160_v20  ;;  %v7228_v16 = vld [vmem:[%s14789_s2 + $0x268] sm:$0xf] }
 0x1f4   :  { %1417 = vperm.xlu1 %8380, %v439_v37   ;;  %1412 = vperm.xlu0 %8379, %v438_v38   ;;  %v4056_v41 = vpop.f32.mrf.mxu3  ;;  %v1917_v17 = vpack.c.bf16 %v1759_v1, %v1758_v21  ;;  %v442_v38 = vld [vmem:[%s14787_s1 + $0x5f0] sm:$0xff]  ;;  %v6936_v34 = vld [vmem:[%s14789_s2 + $0x18] sm:$0xf]  ;;  %v1755_v1 = vmul.f32 %v10300_v59, %v159_v11  ;;  %v156_v59 = vld [vmem:[%s14788_s0 + $0x420] sm:$0xff] }
 0x1f5   :  { %v3996_v46 = vpop.f32.mrf.mxu2  ;;  %v10416_v3 = vadd.f32 %v4056_v41, %v10039_v53  ;;  %v10418_v40 = vpop.permute.xlu2 %1257  ;;  %v161_v53 = vld [vmem:[%s14788_s0 + $0x448] sm:$0xff]  ;;  %v8079_v41 = vld [vmem:[%s14789_s2 + $0x50] sm:$0xf0] }
 0x1f6   :  { %v10424_v9 = vadd.f32 %v3996_v46, %v10142_v58  ;;  %v10426_v42 = vpop.permute.xlu1 %1207  ;;  %v10428_v28 = vpop.permute.xlu0 %1202  ;;  %v443_v58 = vld [vmem:[%s14787_s1 + $0x5f8] sm:$0xff]  ;;  %v1757_v5 = vmul.f32 %v10128_v57, %v161_v53  ;;  %v7229_v53 = vor.u32 %v8153_v48, %v7228_v16  ;;  %v446_v16 = vld [vmem:[%s14787_s1 + $0x610] sm:$0xff]  ;;  %v1752_v48 = vmul.f32 %v10239_v22, %v156_v59 }
 0x1f7   :  { %14825 = vst [vmem:[#allocation8_spill] sm:$0xff] %v10416_v3  ;;  %v10430_v0 = vpop.f32.mrf.mxu0  ;;  %v3907_v4 = vpop.f32.mrf.mxu1  ;;  %4582 = vmatpush.bf16.msra.mxu0 %v1918_v44  ;;  %v7110_v22 = vld [vmem:[%s14789_s2 + $0x1b4] sm:$0xf0] }
 0x1f8   :  { %v10439_v37 = vadd.f32 %v3907_v4, %v10197_v43  ;;  %v8190_v43 = vld [vmem:[%s14789_s2 + $0x3cc] sm:$0xf]  ;;  %v1916_v57 = vpack.c.bf16 %v1757_v5, %v1756_v25 }
 0x1f9   :  { %4287 = vmatmul.bf16.gmra.mxu1 %v7053_v35  ;;  %v158_v35 = vld [vmem:[%s14788_s0 + $0x430] sm:$0xff]  ;;  %v7405_v4 = vor.u32 %v8190_v43, %v7402_v15 }
 0x1fb   :  { %4583 = vmatpush.bf16.msra.mxu0 %v1917_v17  ;;  %1437 = vperm.xlu2 %8381, %v443_v58   ;;  %v157_v58 = vld [vmem:[%s14788_s0 + $0x428] sm:$0xff] }
 0x1fc   :  { %1432 = vperm.xlu1 %8380, %v442_v38   ;;  %1427 = vperm.xlu0 %8379, %v441_v32   ;;  %v4058_v21 = vpop.f32.mrf.mxu3  ;;  %v1754_v38 = vmul.f32 %v10094_v31, %v158_v35  ;;  %v445_v31 = vld [vmem:[%s14787_s1 + $0x608] sm:$0xff] }
 0x1fd   :  { %v3998_v44 = vpop.f32.mrf.mxu2  ;;  %v10475_v46 = vadd.f32 %v4058_v21, %v10092_v2  ;;  %v10477_v20 = vpop.permute.xlu2 %1272  ;;  %v6937_v2 = vor.u32 %v8079_v41, %v6936_v34  ;;  %v154_v34 = vld [vmem:[%s14788_s0 + $0x410] sm:$0xff]  ;;  %v155_v41 = vld [vmem:[%s14788_s0 + $0x418] sm:$0xff] }
 0x1fe   :  { %v10486_v11 = vadd.f32 %v3998_v44, %v10200_v27  ;;  %v10488_v25 = vpop.permute.xlu1 %1222  ;;  %v10490_v17 = vpop.permute.xlu0 %1217  ;;  %v1753_v27 = vmul.f32 %v10237_v52, %v157_v58  ;;  %v1915_v5 = vpack.c.bf16 %v1755_v1, %v1754_v38  ;;  %v8116_v52 = vld [vmem:[%s14789_s2 + $0x17c] sm:$0xf]  ;;  %v1750_v1 = vmul.f32 %v10192_v29, %v154_v34  ;;  %v153_v58 = vld [vmem:[%s14788_s0 + $0x408] sm:$0xff] }
 0x1ff   :  { %14826 = vst [vmem:[#allocation9_spill] sm:$0xff] %v10475_v46  ;;  %v10493_v32 = vpop.f32.mrf.mxu0  ;;  %v3909_v43 = vpop.f32.mrf.mxu1  ;;  %4584 = vmatpush.bf16.msra.mxu0 %v1916_v57  ;;  %v1751_v29 = vmul.f32 %v10041_v63, %v155_v41  ;;  %v448_v63 = vld [vmem:[%s14787_s1 + $0x620] sm:$0xff]  ;;  %v8168_v34 = vld [vmem:[%s14789_s2 + $0x318] sm:$0xf0]  ;;  %v8094_v41 = vld [vmem:[%s14789_s2 + $0xc8] sm:$0xf0] }
 0x200   :  { %v10496_v15 = vadd.f32 %v3909_v43, %v10245_v33  ;;  %v444_v33 = vld [vmem:[%s14787_s1 + $0x600] sm:$0xff]  ;;  %v1914_v21 = vpack.c.bf16 %v1753_v27, %v1752_v48 }
 0x201   :  { %4109 = vmatmul.bf16.gmra.mxu3 %v7405_v4  ;;  %4198 = vmatmul.bf16.gmra.mxu0 %v7229_v53  ;;  %v7113_v53 = vor.u32 %v8116_v52, %v7110_v22  ;;  %v1913_v48 = vpack.c.bf16 %v1751_v29, %v1750_v1  ;;  %v6996_v22 = vld [vmem:[%s14789_s2 + $0x90] sm:$0xf] }
 0x202   :  { %4381 = vmatmul.bf16.vlgmr.msrb.gmra.mxu2 %v6937_v2 }
 0x203   :  { %4585 = vmatpush.bf16.msra.mxu0 %v1915_v5  ;;  %1452 = vperm.xlu2 %8381, %v446_v16   ;;  %v152_v16 = vld [vmem:[%s14788_s0 + $0x400] sm:$0xff]  ;;  %v1749_v5 = vmul.f32 %v10194_v55, %v153_v58 }
 0x204   :  { %1447 = vperm.xlu1 %8380, %v445_v31   ;;  %1442 = vperm.xlu0 %8379, %v444_v33   ;;  %v4070_v35 = vpop.f32.mrf.mxu3  ;;  %v447_v31 = vld [vmem:[%s14787_s1 + $0x618] sm:$0xff]  ;;  %v7462_v33 = vld [vmem:[%s14789_s2 + $0x47c] sm:$0xf0]  ;;  %v1748_v52 = vmul.f32 %v9994_v45, %v152_v16 }
 0x205   :  { %v4001_v57 = vpop.f32.mrf.mxu2  ;;  %v10523_v44 = vadd.f32 %v4070_v35, %v9846_v51  ;;  %v10525_v4 = vpop.permute.xlu2 %1287  ;;  %v7288_v55 = vld [vmem:[%s14789_s2 + $0x2e0] sm:$0xf] }
 0x206   :  { %v10531_v59 = vadd.f32 %v4001_v57, %v10254_v18  ;;  %v10533_v2 = vpop.permute.xlu1 %1237  ;;  %v10535_v38 = vpop.permute.xlu0 %1232  ;;  %v449_v18 = vld [vmem:[%s14787_s1 + $0x628] sm:$0xff]  ;;  %v1912_v1 = vpack.c.bf16 %v1749_v5, %v1748_v52  ;;  %v7289_v58 = vor.u32 %v8168_v34, %v7288_v55 }
 0x207   :  { %v10538_v43 = vpop.f32.mrf.mxu0  ;;  %v3912_v51 = vpop.f32.mrf.mxu1  ;;  %4586 = vmatpush.bf16.msra.mxu0 %v1914_v21 }
 0x208   :  { %14827 = vst [vmem:[#allocation10_spill] sm:$0xff] %v10531_v59  ;;  %v10544_v27 = vadd.f32 %v3912_v51, %v10302_v6  ;;  %v8205_v6 = vld [vmem:[%s14789_s2 + $0x444] sm:$0xf] }
 0x209   :  { %4292 = vmatmul.bf16.gmra.mxu1 %v7113_v53  ;;  %v7465_v45 = vor.u32 %v8205_v6, %v7462_v33  ;;  %v7170_v6 = vld [vmem:[%s14789_s2 + $0x22c] sm:$0xf0] }
 0x20b   :  { %4587 = vmatpush.bf16.msra.mxu0 %v1913_v48  ;;  %1467 = vperm.xlu2 %8381, %v449_v18   ;;  %v6997_v18 = vor.u32 %v8094_v41, %v6996_v22 }
 0x20c   :  { %1462 = vperm.xlu1 %8380, %v448_v63   ;;  %1457 = vperm.xlu0 %8379, %v447_v31   ;;  %v4072_v35 = vpop.f32.mrf.mxu3  ;;  %v450_v31 = vld [vmem:[%s14787_s1 + $0x630] sm:$0xff] }
 0x20d   :  { %v4003_v21 = vpop.f32.mrf.mxu2  ;;  %v10576_v57 = vadd.f32 %v4072_v35, %v9898_v26  ;;  %v10578_v53 = vpop.permute.xlu2 %1302  ;;  %v452_v26 = vld [vmem:[%s14787_s1 + $0x640] sm:$0xff] }
 0x20e   :  { %v10581_v29 = vadd.f32 %v4003_v21, %v10308_v10  ;;  %v10583_v51 = vpop.permute.xlu1 %1252  ;;  %v10585_v16 = vpop.permute.xlu0 %1247  ;;  %v451_v10 = vld [vmem:[%s14787_s1 + $0x638] sm:$0xff] }
 0x20f   :  { %v10587_v48 = vpop.f32.mrf.mxu0  ;;  %v3914_v63 = vpop.f32.mrf.mxu1  ;;  %4588 = vmatpush.bf16.msra.mxu0 %v1912_v1 }
 0x210   :  { %14828 = vst [vmem:[#allocation11_spill] sm:$0xff] %v10581_v29  ;;  %v10590_v5 = vadd.f32 %v3914_v63, %v10335_v13  ;;  %v8131_v13 = vld [vmem:[%s14789_s2 + $0x1f4] sm:$0xf]  ;;  %v8220_v63 = vld [vmem:[%s14789_s2 + $0x4bc] sm:$0xf] }
 0x211   :  { %4114 = vmatmul.bf16.gmra.mxu3 %v7465_v45  ;;  %4203 = vmatmul.bf16.gmra.mxu0 %v7289_v58  ;;  %v7173_v22 = vor.u32 %v8131_v13, %v7170_v6  ;;  %v8109_v13 = vld [vmem:[%s14789_s2 + $0x140] sm:$0xf0]  ;;  %v182_v6 = vld [vmem:[%s14788_s0 + $0x4f0] sm:$0xff] }
 0x212   :  { %4386 = vmatmul.bf16.gmra.mxu2 %v6997_v18  ;;  %v455_v18 = vld [vmem:[%s14787_s1 + $0x658] sm:$0xff] }
 0x213   :  { %1482 = vperm.xlu2 %8381, %v452_v26   ;;  %v7348_v26 = vld [vmem:[%s14789_s2 + $0x358] sm:$0xf] }
 0x214   :  { %1477 = vperm.xlu1 %8380, %v451_v10   ;;  %1472 = vperm.xlu0 %8379, %v450_v31   ;;  %v4075_v33 = vpop.f32.mrf.mxu3  ;;  %v8183_v10 = vld [vmem:[%s14789_s2 + $0x390] sm:$0xf0]  ;;  %v7056_v31 = vld [vmem:[%s14789_s2 + $0x108] sm:$0xf] }
 0x215   :  { %v4006_v55 = vpop.f32.mrf.mxu2  ;;  %v10608_v34 = vadd.f32 %v4075_v33, %v9939_v47  ;;  %v10610_v52 = vpop.permute.xlu2 %1317  ;;  %v454_v47 = vld [vmem:[%s14787_s1 + $0x650] sm:$0xff]  ;;  %v7349_v3 = vor.u32 %v8183_v10, %v7348_v26 }
 0x216   :  { %v10613_v41 = vadd.f32 %v4006_v55, %v10338_v50  ;;  %v1268_v35 = vpop.permute.xlu1 %1267  ;;  %v1263_v1 = vpop.permute.xlu0 %1262  ;;  %v453_v50 = vld [vmem:[%s14787_s1 + $0x648] sm:$0xff]  ;;  %v183_v55 = vld [vmem:[%s14788_s0 + $0x4f8] sm:$0xff]  ;;  %v458_v10 = vld [vmem:[%s14787_s1 + $0x670] sm:$0xff] }
 0x217   :  { %v10615_v21 = vpop.f32.mrf.mxu0  ;;  %v3917_v45 = vpop.f32.mrf.mxu1  ;;  %v1777_v59 = vmul.f32 %v1268_v35, %v181_v24  ;;  %v8146_v24 = vld [vmem:[%s14789_s2 + $0x26c] sm:$0xf] }
 0x218   :  { %14829 = vst [vmem:[#allocation12_spill] sm:$0xff] %v10613_v41  ;;  %v10618_v58 = vadd.f32 %v3917_v45, %v10385_v30  ;;  %v7522_v30 = vld [vmem:[%s14789_s2 + $0x4f4] sm:$0xf0] }
 0x219   :  { %4297 = vmatmul.bf16.gmra.mxu1 %v7173_v22  ;;  %v7525_v46 = vor.u32 %v8220_v63, %v7522_v30 }
 0x21b   :  { %1497 = vperm.xlu2 %8381, %v455_v18  }
 0x21c   :  { %1492 = vperm.xlu1 %8380, %v454_v47   ;;  %1487 = vperm.xlu0 %8379, %v453_v50   ;;  %v4077_v33 = vpop.f32.mrf.mxu3  ;;  %v180_v47 = vld [vmem:[%s14788_s0 + $0x4e0] sm:$0xff] }
 0x21d   :  { %v4008_v22 = vpop.f32.mrf.mxu2  ;;  %v10654_v45 = vadd.f32 %v4077_v33, %v10000_v39  ;;  %v10656_v18 = vpop.permute.xlu2 %1332  ;;  %v7057_v39 = vor.u32 %v8109_v13, %v7056_v31  ;;  %v1778_v33 = vmul.f32 %v10477_v20, %v182_v6  ;;  %v457_v20 = vld [vmem:[%s14787_s1 + $0x668] sm:$0xff] }
 0x21e   :  { %v10665_v50 = vadd.f32 %v4008_v22, %v10391_v14  ;;  %v10667_v49 = vpop.permute.xlu1 %1282  ;;  %v1278_v41 = vpop.permute.xlu0 %1277  ;;  %v1776_v14 = vmul.f32 %v1263_v1, %v180_v47  ;;  %v177_v47 = vld [vmem:[%s14788_s0 + $0x4c8] sm:$0xff] }
 0x21f   :  { %v1779_v29 = vmul.f32 %v1278_v41, %v183_v55  ;;  %v10670_v63 = vpop.f32.mrf.mxu0  ;;  %v3919_v30 = vpop.f32.mrf.mxu1  ;;  %v456_v41 = vld [vmem:[%s14787_s1 + $0x660] sm:$0xff] }
 0x220   :  { %v10673_v26 = vadd.f32 %v3919_v30, %v10430_v0  ;;  %v178_v0 = vld [vmem:[%s14788_s0 + $0x4d0] sm:$0xff]  ;;  %v1926_v1 = vpack.c.bf16 %v1777_v59, %v1776_v14  ;;  %v176_v59 = vld [vmem:[%s14788_s0 + $0x4c0] sm:$0xff]  ;;  %v175_v14 = vld [vmem:[%s14788_s0 + $0x4b8] sm:$0xff] }
 0x221   :  { %v1927_v22 = vpack.c.bf16 %v1779_v29, %v1778_v33  ;;  %4119 = vmatmul.bf16.gmra.mxu3 %v7525_v46  ;;  %4208 = vmatmul.bf16.gmra.mxu0 %v7349_v3  ;;  %v7230_v3 = vld [vmem:[%s14789_s2 + $0x2a4] sm:$0xf0]  ;;  %v179_v46 = vld [vmem:[%s14788_s0 + $0x4d8] sm:$0xff]  ;;  %v1774_v35 = vmul.f32 %v10583_v51, %v178_v0  ;;  %v460_v0 = vld [vmem:[%s14787_s1 + $0x680] sm:$0xff] }
 0x222   :  { %4391 = vmatmul.bf16.gmra.mxu2 %v7057_v39  ;;  %v7233_v55 = vor.u32 %v8146_v24, %v7230_v3  ;;  %v459_v24 = vld [vmem:[%s14787_s1 + $0x678] sm:$0xff]  ;;  %v7582_v3 = vld [vmem:[%s14789_s2 + $0x56c] sm:$0xf0] }
 0x223   :  { %4685 = vmatpush.bf16.msra.mxu1 %v1927_v22  ;;  %1512 = vperm.xlu2 %8381, %v458_v10  }
 0x224   :  { %1507 = vperm.xlu1 %8380, %v457_v20   ;;  %1502 = vperm.xlu0 %8379, %v456_v41   ;;  %v4080_v29 = vpop.f32.mrf.mxu3  ;;  %v461_v20 = vld [vmem:[%s14787_s1 + $0x688] sm:$0xff]  ;;  %v1773_v41 = vmul.f32 %v10585_v16, %v177_v47  ;;  %v7408_v16 = vld [vmem:[%s14789_s2 + $0x3d0] sm:$0xf] }
 0x225   :  { %v4011_v31 = vpop.f32.mrf.mxu2  ;;  %v10698_v13 = vadd.f32 %v4080_v29, %v10050_v36  ;;  %v10700_v6 = vpop.permute.xlu2 %1347  ;;  %v1775_v36 = vmul.f32 %v10418_v40, %v179_v46  ;;  %v8198_v46 = vld [vmem:[%s14789_s2 + $0x408] sm:$0xf0]  ;;  %v1772_v29 = vmul.f32 %v10376_v19, %v176_v59 }
 0x226   :  { %v10706_v39 = vadd.f32 %v4011_v31, %v10439_v37  ;;  %v10708_v33 = vpop.permute.xlu1 %1297  ;;  %v10710_v30 = vpop.permute.xlu0 %1292  ;;  %v174_v37 = vld [vmem:[%s14788_s0 + $0x4b0] sm:$0xff]  ;;  %v1771_v31 = vmul.f32 %v10533_v2, %v175_v14 }
 0x227   :  { %v10716_v51 = vpop.f32.mrf.mxu0  ;;  %v3922_v10 = vpop.f32.mrf.mxu1  ;;  %4686 = vmatpush.bf16.msra.mxu1 %v1926_v1  ;;  %v1925_v40 = vpack.c.bf16 %v1775_v36, %v1774_v35  ;;  %v7116_v35 = vld [vmem:[%s14789_s2 + $0x180] sm:$0xf]  ;;  %v8124_v1 = vld [vmem:[%s14789_s2 + $0x1b8] sm:$0xf0]  ;;  %v1924_v36 = vpack.c.bf16 %v1773_v41, %v1772_v29 }
 0x228   :  { %14830 = vst [vmem:[#allocation13_spill] sm:$0xff] %v10706_v39  ;;  %v10725_v22 = vadd.f32 %v3922_v10, %v10493_v32  ;;  %v8235_v32 = vld [vmem:[%s14789_s2 + $0x534] sm:$0xf]  ;;  %v172_v39 = vld [vmem:[%s14788_s0 + $0x4a0] sm:$0xff] }
 0x229   :  { %4302 = vmatmul.bf16.gmra.mxu1 %v7233_v55  ;;  %v1770_v55 = vmul.f32 %v10535_v38, %v174_v37  ;;  %v7117_v37 = vor.u32 %v8124_v1, %v7116_v35  ;;  %v170_v35 = vld [vmem:[%s14788_s0 + $0x490] sm:$0xff] }
 0x22b   :  { %4687 = vmatpush.bf16.msra.mxu1 %v1925_v40  ;;  %1527 = vperm.xlu2 %8381, %v461_v20   ;;  %v7585_v20 = vor.u32 %v8235_v32, %v7582_v3  ;;  %v7409_v40 = vor.u32 %v8198_v46, %v7408_v16  ;;  %v1768_v3 = vmul.f32 %v10488_v25, %v172_v39  ;;  %v463_v46 = vld [vmem:[%s14787_s1 + $0x698] sm:$0xff]  ;;  %v8161_v25 = vld [vmem:[%s14789_s2 + $0x2e4] sm:$0xf]  ;;  %v7290_v39 = vld [vmem:[%s14789_s2 + $0x31c] sm:$0xf0] }
 0x22c   :  { %1522 = vperm.xlu1 %8380, %v460_v0   ;;  %1517 = vperm.xlu0 %8379, %v459_v24   ;;  %v4082_v47 = vpop.f32.mrf.mxu3  ;;  %v1923_v16 = vpack.c.bf16 %v1771_v31, %v1770_v55 }
 0x22d   :  { %v4013_v10 = vpop.f32.mrf.mxu2  ;;  %v10759_v19 = vadd.f32 %v4082_v47, %v10097_v60  ;;  %v10761_v59 = vpop.permute.xlu2 %1362  ;;  %v173_v60 = vld [vmem:[%s14788_s0 + $0x4a8] sm:$0xff] }
 0x22e   :  { %v10767_v2 = vadd.f32 %v4013_v10, %v10496_v15  ;;  %v10769_v38 = vpop.permute.xlu1 %1312  ;;  %v10771_v14 = vpop.permute.xlu0 %1307  ;;  %v464_v15 = vld [vmem:[%s14787_s1 + $0x6a0] sm:$0xff]  ;;  %v1769_v29 = vmul.f32 %v10330_v54, %v173_v60  ;;  %v169_v54 = vld [vmem:[%s14788_s0 + $0x488] sm:$0xff] }
 0x22f   :  { %v3924_v41 = vpop.f32.mrf.mxu1  ;;  %v4174_v0 = vpop.f32.mrf.mxu0  ;;  %4688 = vmatpush.bf16.msra.mxu1 %v1924_v36 }
 0x230   :  { %v10777_v24 = vadd.f32 %v3924_v41, %v10538_v43  ;;  %v10780_v32 = vadd.f32 %v4174_v0, %v10523_v44  ;;  %v462_v43 = vld [vmem:[%s14787_s1 + $0x690] sm:$0xff]  ;;  %v171_v44 = vld [vmem:[%s14788_s0 + $0x498] sm:$0xff]  ;;  %v1922_v31 = vpack.c.bf16 %v1769_v29, %v1768_v3 }
 0x231   :  { %4124 = vmatmul.bf16.gmra.mxu3 %v7585_v20  ;;  %4213 = vmatmul.bf16.gmra.mxu0 %v7409_v40  ;;  %v1767_v55 = vmul.f32 %v10490_v17, %v171_v44  ;;  %v7293_v20 = vor.u32 %v8161_v25, %v7290_v39  ;;  %v168_v40 = vld [vmem:[%s14788_s0 + $0x480] sm:$0xff]  ;;  %v7176_v25 = vld [vmem:[%s14789_s2 + $0x1f8] sm:$0xf]  ;;  %v8139_v39 = vld [vmem:[%s14789_s2 + $0x230] sm:$0xf0] }
 0x232   :  { %4396 = vmatmul.bf16.gmra.mxu2 %v7117_v37  ;;  %v8213_v44 = vld [vmem:[%s14789_s2 + $0x480] sm:$0xf0] }
 0x233   :  { %4689 = vmatpush.bf16.msra.mxu1 %v1923_v16  ;;  %1542 = vperm.xlu2 %8381, %v464_v15   ;;  %v1765_v16 = vmul.f32 %v10426_v42, %v169_v54  ;;  %v7642_v42 = vld [vmem:[%s14789_s2 + $0x5e4] sm:$0xf0] }
 0x234   :  { %1537 = vperm.xlu1 %8380, %v463_v46   ;;  %1532 = vperm.xlu0 %8379, %v462_v43   ;;  %v4085_v1 = vpop.f32.mrf.mxu3  ;;  %v1764_v46 = vmul.f32 %v10428_v28, %v168_v40  ;;  %v7468_v28 = vld [vmem:[%s14789_s2 + $0x448] sm:$0xf] }
 0x235   :  { %v4016_v47 = vpop.f32.mrf.mxu2  ;;  %v10807_v36 = vadd.f32 %v4085_v1, %v10134_v8  ;;  %v10809_v10 = vpop.permute.xlu2 %1377  ;;  %v1766_v8 = vmul.f32 %v10290_v12, %v170_v35  ;;  %v466_v12 = vld [vmem:[%s14787_s1 + $0x6b0] sm:$0xff] }
 0x236   :  { %v10818_v37 = vadd.f32 %v4016_v47, %v10544_v27  ;;  %v10820_v41 = vpop.permute.xlu1 %1327  ;;  %v10822_v17 = vpop.permute.xlu0 %1322  ;;  %v467_v27 = vld [vmem:[%s14787_s1 + $0x6b8] sm:$0xff]  ;;  %v1920_v35 = vpack.c.bf16 %v1765_v16, %v1764_v46  ;;  %v468_v46 = vld [vmem:[%s14787_s1 + $0x6c0] sm:$0xff] }
 0x237   :  { %v3927_v0 = vpop.f32.mrf.mxu1  ;;  %v4176_v60 = vpop.f32.mrf.mxu0  ;;  %4690 = vmatpush.bf16.msra.mxu1 %v1922_v31  ;;  %v1921_v43 = vpack.c.bf16 %v1767_v55, %v1766_v8 }
 0x238   :  { %v10826_v15 = vadd.f32 %v3927_v0, %v10587_v48  ;;  %v10829_v3 = vadd.f32 %v4176_v60, %v10576_v57  ;;  %v465_v48 = vld [vmem:[%s14787_s1 + $0x6a8] sm:$0xff]  ;;  %v7177_v0 = vor.u32 %v8139_v39, %v7176_v25  ;;  %v196_v39 = vld [vmem:[%s14788_s0 + $0x560] sm:$0xff] }
 0x239   :  { %4307 = vmatmul.bf16.gmra.mxu1 %v7293_v20  ;;  %v8250_v57 = vld [vmem:[%s14789_s2 + $0x5ac] sm:$0xf]  ;;  %v7469_v20 = vor.u32 %v8213_v44, %v7468_v28 }
 0x23a   :  { %v7645_v47 = vor.u32 %v8250_v57, %v7642_v42  ;;  %v198_v57 = vld [vmem:[%s14788_s0 + $0x570] sm:$0xff] }
 0x23b   :  { %4691 = vmatpush.bf16.msra.mxu1 %v1921_v43  ;;  %1557 = vperm.xlu2 %8381, %v467_v27  }
 0x23c   :  { %1552 = vperm.xlu1 %8380, %v466_v12   ;;  %1547 = vperm.xlu0 %8379, %v465_v48   ;;  %v4087_v29 = vpop.f32.mrf.mxu3  ;;  %v199_v48 = vld [vmem:[%s14788_s0 + $0x578] sm:$0xff] }
 0x23d   :  { %v4018_v1 = vpop.f32.mrf.mxu2  ;;  %v10861_v31 = vadd.f32 %v4087_v29, %v10190_v56  ;;  %v10863_v55 = vpop.permute.xlu2 %1392  ;;  %v470_v56 = vld [vmem:[%s14787_s1 + $0x6d0] sm:$0xff] }
 0x23e   :  { %v10866_v54 = vadd.f32 %v4018_v1, %v10590_v5  ;;  %v1343_v40 = vpop.permute.xlu1 %1342  ;;  %v1338_v8 = vpop.permute.xlu0 %1337  ;;  %v469_v5 = vld [vmem:[%s14787_s1 + $0x6c8] sm:$0xff] }
 0x23f   :  { %v3929_v60 = vpop.f32.mrf.mxu1  ;;  %v4179_v27 = vpop.f32.mrf.mxu0  ;;  %4692 = vmatpush.bf16.msra.mxu1 %v1920_v35 }
 0x240   :  { %v10869_v43 = vadd.f32 %v3929_v60, %v10615_v21  ;;  %v10872_v16 = vadd.f32 %v4179_v27, %v10608_v34  ;;  %v8176_v34 = vld [vmem:[%s14789_s2 + $0x35c] sm:$0xf]  ;;  %v7350_v21 = vld [vmem:[%s14789_s2 + $0x394] sm:$0xf0] }
 0x241   :  { %4129 = vmatmul.bf16.gmra.mxu3 %v7645_v47  ;;  %4218 = vmatmul.bf16.gmra.mxu0 %v7469_v20  ;;  %v7353_v25 = vor.u32 %v8176_v34, %v7350_v21  ;;  %v471_v21 = vld [vmem:[%s14787_s1 + $0x6d8] sm:$0xff] }
 0x242   :  { %4401 = vmatmul.bf16.gmra.mxu2 %v7177_v0 }
 0x243   :  { %1572 = vperm.xlu2 %8381, %v470_v56  }
 0x244   :  { %1567 = vperm.xlu1 %8380, %v469_v5   ;;  %1562 = vperm.xlu0 %8379, %v468_v46   ;;  %v4090_v12 = vpop.f32.mrf.mxu3  ;;  %v472_v5 = vld [vmem:[%s14787_s1 + $0x6e0] sm:$0xff]  ;;  %v1792_v46 = vmul.f32 %v1343_v40, %v196_v39  ;;  %v194_v39 = vld [vmem:[%s14788_s0 + $0x550] sm:$0xff] }
 0x245   :  { %v4021_v42 = vpop.f32.mrf.mxu2  ;;  %v10896_v28 = vadd.f32 %v4090_v12, %v10235_v62  ;;  %v10898_v44 = vpop.permute.xlu2 %1407  ;;  %v197_v62 = vld [vmem:[%s14788_s0 + $0x568] sm:$0xff]  ;;  %v195_v12 = vld [vmem:[%s14788_s0 + $0x558] sm:$0xff]  ;;  %v7528_v40 = vld [vmem:[%s14789_s2 + $0x4c0] sm:$0xf] }
 0x246   :  { %v10904_v29 = vadd.f32 %v4021_v42, %v10618_v58  ;;  %v1358_v35 = vpop.permute.xlu1 %1357  ;;  %v1353_v1 = vpop.permute.xlu0 %1352  ;;  %v473_v58 = vld [vmem:[%s14787_s1 + $0x6e8] sm:$0xff]  ;;  %v7236_v42 = vld [vmem:[%s14789_s2 + $0x270] sm:$0xf] }
 0x247   :  { %v1795_v47 = vmul.f32 %v1358_v35, %v199_v48  ;;  %v1794_v20 = vmul.f32 %v1353_v1, %v198_v57  ;;  %v3932_v0 = vpop.f32.mrf.mxu1  ;;  %v4181_v60 = vpop.f32.mrf.mxu0  ;;  %v8228_v48 = vld [vmem:[%s14789_s2 + $0x4f8] sm:$0xf0]  ;;  %v1793_v57 = vmul.f32 %v10700_v6, %v197_v62  ;;  %v1791_v6 = vmul.f32 %v1338_v8, %v195_v12 }
 0x248   :  { %v10910_v27 = vadd.f32 %v3932_v0, %v10670_v63  ;;  %v10913_v56 = vadd.f32 %v4181_v60, %v10654_v45  ;;  %v8265_v45 = vld [vmem:[%s14789_s2 + $0x624] sm:$0xf]  ;;  %v7702_v63 = vld [vmem:[%s14789_s2 + $0x65c] sm:$0xf0]  ;;  %v7529_v62 = vor.u32 %v8228_v48, %v7528_v40 }
 0x249   :  { %v1935_v34 = vpack.c.bf16 %v1795_v47, %v1794_v20  ;;  %4312 = vmatmul.bf16.gmra.mxu1 %v7353_v25  ;;  %v8154_v25 = vld [vmem:[%s14789_s2 + $0x2a8] sm:$0xf0]  ;;  %v7705_v1 = vor.u32 %v8265_v45, %v7702_v63  ;;  %v1934_v47 = vpack.c.bf16 %v1793_v57, %v1792_v46 }
 0x24b   :  { %4789 = vmatpush.bf16.msra.mxu2 %v1935_v34  ;;  %1587 = vperm.xlu2 %8381, %v473_v58   ;;  %v193_v58 = vld [vmem:[%s14788_s0 + $0x548] sm:$0xff] }
 0x24c   :  { %1582 = vperm.xlu1 %8380, %v472_v5   ;;  %1577 = vperm.xlu0 %8379, %v471_v21   ;;  %v4092_v35 = vpop.f32.mrf.mxu3  ;;  %v192_v5 = vld [vmem:[%s14788_s0 + $0x540] sm:$0xff]  ;;  %v1790_v21 = vmul.f32 %v10656_v18, %v194_v39  ;;  %v1789_v48 = vmul.f32 %v10820_v41, %v193_v58  ;;  %v475_v18 = vld [vmem:[%s14787_s1 + $0x6f8] sm:$0xff]  ;;  %v8191_v41 = vld [vmem:[%s14789_s2 + $0x3d4] sm:$0xf] }
 0x24d   :  { %v4023_v20 = vpop.f32.mrf.mxu2  ;;  %v10950_v0 = vadd.f32 %v4092_v35, %v10296_v7  ;;  %v10952_v60 = vpop.permute.xlu2 %1422  ;;  %v7237_v7 = vor.u32 %v8154_v25, %v7236_v42  ;;  %v1788_v57 = vmul.f32 %v10822_v17, %v192_v5  ;;  %v7410_v17 = vld [vmem:[%s14789_s2 + $0x40c] sm:$0xf0]  ;;  %v191_v25 = vld [vmem:[%s14788_s0 + $0x538] sm:$0xff]  ;;  %v189_v58 = vld [vmem:[%s14788_s0 + $0x528] sm:$0xff] }
 0x24e   :  { %v10961_v34 = vadd.f32 %v4023_v20, %v10673_v26  ;;  %v10963_v46 = vpop.permute.xlu1 %1372  ;;  %v10965_v8 = vpop.permute.xlu0 %1367  ;;  %v476_v26 = vld [vmem:[%s14787_s1 + $0x700] sm:$0xff]  ;;  %v1933_v42 = vpack.c.bf16 %v1791_v6, %v1790_v21 }
 0x24f   :  { %v3934_v45 = vpop.f32.mrf.mxu1  ;;  %v4184_v63 = vpop.f32.mrf.mxu0  ;;  %4790 = vmatpush.bf16.msra.mxu2 %v1934_v47 }
 0x250   :  { %v10969_v12 = vadd.f32 %v3934_v45, %v10716_v51  ;;  %v10972_v40 = vadd.f32 %v4184_v63, %v10698_v13  ;;  %v474_v13 = vld [vmem:[%s14787_s1 + $0x6f0] sm:$0xff] }
 0x251   :  { %4134 = vmatmul.bf16.gmra.mxu3 %v7705_v1  ;;  %4223 = vmatmul.bf16.gmra.mxu0 %v7529_v62  ;;  %v190_v51 = vld [vmem:[%s14788_s0 + $0x530] sm:$0xff]  ;;  %v1932_v1 = vpack.c.bf16 %v1789_v48, %v1788_v57  ;;  %v7413_v62 = vor.u32 %v8191_v41, %v7410_v17 }
 0x252   :  { %4406 = vmatmul.bf16.gmra.mxu2 %v7237_v7  ;;  %v1786_v35 = vmul.f32 %v10769_v38, %v190_v51  ;;  %v188_v38 = vld [vmem:[%s14788_s0 + $0x520] sm:$0xff]  ;;  %v7762_v51 = vld [vmem:[%s14789_s2 + $0x6d4] sm:$0xf0]  ;;  %v8243_v41 = vld [vmem:[%s14789_s2 + $0x570] sm:$0xf0] }
 0x253   :  { %4791 = vmatpush.bf16.msra.mxu2 %v1933_v42  ;;  %1602 = vperm.xlu2 %8381, %v476_v26   ;;  %v187_v26 = vld [vmem:[%s14788_s0 + $0x518] sm:$0xff]  ;;  %v1784_v17 = vmul.f32 %v10578_v53, %v188_v38 }
 0x254   :  { %1597 = vperm.xlu1 %8380, %v475_v18   ;;  %1592 = vperm.xlu0 %8379, %v474_v13   ;;  %v4095_v39 = vpop.f32.mrf.mxu3  ;;  %v1785_v18 = vmul.f32 %v10771_v14, %v189_v58  ;;  %v478_v13 = vld [vmem:[%s14787_s1 + $0x710] sm:$0xff]  ;;  %v7588_v14 = vld [vmem:[%s14789_s2 + $0x538] sm:$0xf] }
 0x255   :  { %v4026_v47 = vpop.f32.mrf.mxu2  ;;  %v10999_v6 = vadd.f32 %v4095_v39, %v10333_v23  ;;  %v11001_v20 = vpop.permute.xlu2 %1437  ;;  %v1787_v23 = vmul.f32 %v10610_v52, %v191_v25  ;;  %v479_v52 = vld [vmem:[%s14787_s1 + $0x718] sm:$0xff]  ;;  %v7296_v25 = vld [vmem:[%s14789_s2 + $0x2e8] sm:$0xf]  ;;  %v8169_v39 = vld [vmem:[%s14789_s2 + $0x320] sm:$0xf0] }
 0x256   :  { %v11007_v5 = vadd.f32 %v4026_v47, %v10725_v22  ;;  %v11009_v7 = vpop.permute.xlu1 %1387  ;;  %v11011_v21 = vpop.permute.xlu0 %1382  ;;  %v186_v22 = vld [vmem:[%s14788_s0 + $0x510] sm:$0xff] }
 0x257   :  { %v4186_v45 = vpop.f32.mrf.mxu0  ;;  %v4278_v63 = vpop.f32.mrf.mxu1  ;;  %4792 = vmatpush.bf16.msra.mxu2 %v1932_v1  ;;  %v1931_v42 = vpack.c.bf16 %v1787_v23, %v1786_v35  ;;  %v1783_v35 = vmul.f32 %v10708_v33, %v187_v26  ;;  %v1782_v1 = vmul.f32 %v10710_v30, %v186_v22  ;;  %v7297_v22 = vor.u32 %v8169_v39, %v7296_v25 }
 0x258   :  { %v11024_v48 = vadd.f32 %v4186_v45, %v10759_v19  ;;  %v11027_v57 = vadd.f32 %v4278_v63, %v10780_v32  ;;  %v477_v19 = vld [vmem:[%s14787_s1 + $0x708] sm:$0xff]  ;;  %v8280_v32 = vld [vmem:[%s14789_s2 + $0x69c] sm:$0xf]  ;;  %v7589_v45 = vor.u32 %v8243_v41, %v7588_v14  ;;  %v184_v63 = vld [vmem:[%s14788_s0 + $0x500] sm:$0xff] }
 0x259   :  { %4317 = vmatmul.bf16.gmra.mxu1 %v7413_v62  ;;  %v1930_v62 = vpack.c.bf16 %v1785_v18, %v1784_v17  ;;  %v7765_v23 = vor.u32 %v8280_v32, %v7762_v51  ;;  %v8206_v32 = vld [vmem:[%s14789_s2 + $0x44c] sm:$0xf]  ;;  %v7470_v51 = vld [vmem:[%s14789_s2 + $0x484] sm:$0xf0] }
 0x25a   :  { %v7473_v25 = vor.u32 %v8206_v32, %v7470_v51 }
 0x25b   :  { %4793 = vmatpush.bf16.msra.mxu2 %v1931_v42  ;;  %1617 = vperm.xlu2 %8381, %v479_v52  }
 0x25c   :  { %1612 = vperm.xlu1 %8380, %v478_v13   ;;  %1607 = vperm.xlu0 %8379, %v477_v19   ;;  %v4097_v47 = vpop.f32.mrf.mxu3  ;;  %v1929_v19 = vpack.c.bf16 %v1783_v35, %v1782_v1 }
 0x25d   :  { %v4028_v58 = vpop.f32.mrf.mxu2  ;;  %v11061_v53 = vadd.f32 %v4097_v47, %v10379_v61  ;;  %v11063_v38 = vpop.permute.xlu2 %1452  ;;  %v185_v61 = vld [vmem:[%s14788_s0 + $0x508] sm:$0xff] }
 0x25e   :  { %v11069_v33 = vadd.f32 %v4028_v58, %v10777_v24  ;;  %v11071_v30 = vpop.permute.xlu1 %1402  ;;  %v11073_v26 = vpop.permute.xlu0 %1397  ;;  %v1780_v24 = vmul.f32 %v10667_v49, %v184_v63  ;;  %v215_v63 = vld [vmem:[%s14788_s0 + $0x5f8] sm:$0xff] }
 0x25f   :  { %v4189_v52 = vpop.f32.mrf.mxu0  ;;  %v4280_v42 = vpop.f32.mrf.mxu1  ;;  %4794 = vmatpush.bf16.msra.mxu2 %v1930_v62 }
 0x260   :  { %v11079_v18 = vadd.f32 %v4189_v52, %v10807_v36  ;;  %v11082_v13 = vadd.f32 %v4280_v42, %v10829_v3  ;;  %v1781_v36 = vmul.f32 %v10525_v4, %v185_v61  ;;  %v214_v52 = vld [vmem:[%s14788_s0 + $0x5f0] sm:$0xff] }
 0x261   :  { %4139 = vmatmul.bf16.gmra.mxu3 %v7765_v23  ;;  %4228 = vmatmul.bf16.gmra.mxu0 %v7589_v45  ;;  %v7648_v23 = vld [vmem:[%s14789_s2 + $0x5b0] sm:$0xf]  ;;  %v8184_v45 = vld [vmem:[%s14789_s2 + $0x398] sm:$0xf0] }
 0x262   :  { %4411 = vmatmul.bf16.gmra.mxu2 %v7297_v22  ;;  %v1928_v3 = vpack.c.bf16 %v1781_v36, %v1780_v24 }
 0x263   :  { %4795 = vmatpush.bf16.msra.mxu2 %v1929_v19 }
 0x264   :  { %v4100_v14 = vpop.f32.mrf.mxu3 }
 0x265   :  { %v4031_v41 = vpop.f32.mrf.mxu2  ;;  %v11093_v49 = vadd.f32 %v4100_v14, %v10424_v9  ;;  %v11095_v17 = vpop.permute.xlu2 %1467  ;;  %v8295_v9 = vld [vmem:[%s14789_s2 + $0x714] sm:$0xf] }
 0x266   :  { %v11098_v39 = vadd.f32 %v4031_v41, %v10826_v15  ;;  %v1418_v35 = vpop.permute.xlu1 %1417  ;;  %v1413_v1 = vpop.permute.xlu0 %1412  ;;  %v7822_v15 = vld [vmem:[%s14789_s2 + $0x74c] sm:$0xf0] }
 0x267   :  { %v4191_v47 = vpop.f32.mrf.mxu0  ;;  %v4283_v62 = vpop.f32.mrf.mxu1  ;;  %4796 = vmatpush.bf16.msra.mxu2 %v1928_v3  ;;  %v7825_v19 = vor.u32 %v8295_v9, %v7822_v15  ;;  %v213_v3 = vld [vmem:[%s14788_s0 + $0x5e8] sm:$0xff]  ;;  %v212_v9 = vld [vmem:[%s14788_s0 + $0x5e0] sm:$0xff] }
 0x268   :  { %v11101_v4 = vadd.f32 %v4191_v47, %v10861_v31  ;;  %v11104_v58 = vadd.f32 %v4283_v62, %v10872_v16  ;;  %v8258_v31 = vld [vmem:[%s14789_s2 + $0x5e8] sm:$0xf0]  ;;  %v7356_v16 = vld [vmem:[%s14789_s2 + $0x360] sm:$0xf] }
 0x269   :  { %4322 = vmatmul.bf16.gmra.mxu1 %v7473_v25  ;;  %v7649_v32 = vor.u32 %v8258_v31, %v7648_v23  ;;  %v7357_v41 = vor.u32 %v8184_v45, %v7356_v16  ;;  %v1811_v25 = vmul.f32 %v11001_v20, %v215_v63  ;;  %v8221_v20 = vld [vmem:[%s14789_s2 + $0x4c4] sm:$0xf]  ;;  %v7530_v16 = vld [vmem:[%s14789_s2 + $0x4fc] sm:$0xf0]  ;;  %v1808_v45 = vmul.f32 %v10952_v60, %v212_v9  ;;  %v207_v9 = vld [vmem:[%s14788_s0 + $0x5b8] sm:$0xff] }
 0x26c   :  { %v4102_v22 = vpop.f32.mrf.mxu3 }
 0x26d   :  { %v4033_v42 = vpop.f32.mrf.mxu2  ;;  %v11131_v61 = vadd.f32 %v4102_v22, %v10486_v11  ;;  %v11133_v24 = vpop.permute.xlu2 %1482  ;;  %v7533_v22 = vor.u32 %v8221_v20, %v7530_v16  ;;  %v8310_v20 = vld [vmem:[%s14789_s2 + $0x78c] sm:$0xf] }
 0x26e   :  { %v11136_v51 = vadd.f32 %v4033_v42, %v10869_v43  ;;  %v1433_v36 = vpop.permute.xlu1 %1432  ;;  %v1428_v14 = vpop.permute.xlu0 %1427 }
 0x26f   :  { %v1810_v47 = vmul.f32 %v1433_v36, %v214_v52  ;;  %v4194_v62 = vpop.f32.mrf.mxu0  ;;  %v4285_v11 = vpop.f32.mrf.mxu1  ;;  %v1809_v31 = vmul.f32 %v1428_v14, %v213_v3  ;;  %v14831_v36 = vld [vmem:[#allocation10_spill] sm:$0xff] }
 0x270   :  { %v11146_v15 = vadd.f32 %v4194_v62, %v10896_v28  ;;  %v11149_v43 = vadd.f32 %v4285_v11, %v10913_v56  ;;  %v211_v28 = vld [vmem:[%s14788_s0 + $0x5d8] sm:$0xff]  ;;  %v210_v56 = vld [vmem:[%s14788_s0 + $0x5d0] sm:$0xff]  ;;  %v208_v3 = vld [vmem:[%s14788_s0 + $0x5c0] sm:$0xff] }
 0x271   :  { %v1943_v23 = vpack.c.bf16 %v1811_v25, %v1810_v47  ;;  %4144 = vmatmul.bf16.gmra.mxu3 %v7825_v19  ;;  %4233 = vmatmul.bf16.gmra.mxu0 %v7649_v32  ;;  %v1807_v52 = vmul.f32 %v1418_v35, %v211_v28  ;;  %v1806_v42 = vmul.f32 %v1413_v1, %v210_v56  ;;  %v209_v35 = vld [vmem:[%s14788_s0 + $0x5c8] sm:$0xff]  ;;  %v7416_v28 = vld [vmem:[%s14789_s2 + $0x3d8] sm:$0xf]  ;;  %v8199_v56 = vld [vmem:[%s14789_s2 + $0x410] sm:$0xf0] }
 0x272   :  { %4416 = vmatmul.bf16.gmra.mxu2 %v7357_v41  ;;  %v1942_v19 = vpack.c.bf16 %v1809_v31, %v1808_v45  ;;  %v1805_v16 = vmul.f32 %v10898_v44, %v209_v35  ;;  %v206_v45 = vld [vmem:[%s14788_s0 + $0x5b0] sm:$0xff] }
 0x273   :  { %4893 = vmatpush.bf16.msrb.mxu3 %v1943_v23  ;;  %v1941_v23 = vpack.c.bf16 %v1807_v52, %v1806_v42 }
 0x274   :  { %v4105_v63 = vpop.f32.mrf.mxu3 }
 0x275   :  { %v4036_v32 = vpop.f32.mrf.mxu2  ;;  %v11165_v14 = vadd.f32 %v4105_v63, %v14831_v36  ;;  %v11190_v31 = vpop.permute.xlu2 %1497  ;;  %v1803_v63 = vmul.f32 %v11073_v26, %v207_v9  ;;  %v1802_v9 = vmul.f32 %v10863_v55, %v206_v45  ;;  %v202_v55 = vld [vmem:[%s14788_s0 + $0x590] sm:$0xff] }
 0x276   :  { %v11171_v25 = vadd.f32 %v4036_v32, %v10910_v27  ;;  %v11173_v41 = vpop.permute.xlu1 %1447  ;;  %v11175_v60 = vpop.permute.xlu0 %1442  ;;  %v1804_v27 = vmul.f32 %v11071_v30, %v208_v3  ;;  %v8273_v30 = vld [vmem:[%s14789_s2 + $0x660] sm:$0xf0]  ;;  %v205_v3 = vld [vmem:[%s14788_s0 + $0x5a8] sm:$0xff] }
 0x277   :  { %v4196_v47 = vpop.f32.mrf.mxu0  ;;  %v4288_v62 = vpop.f32.mrf.mxu1  ;;  %4894 = vmatpush.bf16.msrb.mxu3 %v1942_v19  ;;  %v14833_v19 = vld [vmem:[#allocation11_spill] sm:$0xff] }
 0x278   :  { %14832 = vst [vmem:[#allocation10_spill] sm:$0xff] %v11171_v25  ;;  %v11181_v1 = vadd.f32 %v4196_v47, %v10950_v0  ;;  %v11184_v11 = vadd.f32 %v4288_v62, %v10972_v40  ;;  %v7882_v0 = vld [vmem:[%s14789_s2 + $0x7c4] sm:$0xf0]  ;;  %v1940_v52 = vpack.c.bf16 %v1805_v16, %v1804_v27  ;;  %v204_v47 = vld [vmem:[%s14788_s0 + $0x5a0] sm:$0xff]  ;;  %v7417_v27 = vor.u32 %v8199_v56, %v7416_v28 }
 0x279   :  { %4327 = vmatmul.bf16.gmra.mxu1 %v7533_v22  ;;  %v7708_v40 = vld [vmem:[%s14789_s2 + $0x628] sm:$0xf]  ;;  %v7885_v32 = vor.u32 %v8310_v20, %v7882_v0  ;;  %v1939_v16 = vpack.c.bf16 %v1803_v63, %v1802_v9  ;;  %v1798_v56 = vmul.f32 %v10963_v46, %v202_v55  ;;  %v14835_v63 = vld [vmem:[#allocation12_spill] sm:$0xff]  ;;  %v200_v9 = vld [vmem:[%s14788_s0 + $0x580] sm:$0xff] }
 0x27a   :  { %v7709_v36 = vor.u32 %v8273_v30, %v7708_v40  ;;  %v1801_v30 = vmul.f32 %v11009_v7, %v205_v3  ;;  %v203_v7 = vld [vmem:[%s14788_s0 + $0x598] sm:$0xff]  ;;  %v8214_v55 = vld [vmem:[%s14789_s2 + $0x488] sm:$0xf0] }
 0x27b   :  { %4895 = vmatpush.bf16.msrb.mxu3 %v1941_v23 }
 0x27c   :  { %v4107_v22 = vpop.f32.mrf.mxu3 }
 0x27d   :  { %v4038_v42 = vpop.f32.mrf.mxu2  ;;  %v11216_v44 = vadd.f32 %v4107_v22, %v14833_v19  ;;  %v11249_v28 = vpop.permute.xlu2 %1512  ;;  %v201_v19 = vld [vmem:[%s14788_s0 + $0x588] sm:$0xff] }
 0x27e   :  { %v11225_v62 = vadd.f32 %v4038_v42, %v10969_v12  ;;  %v11227_v26 = vpop.permute.xlu1 %1462  ;;  %v11229_v35 = vpop.permute.xlu0 %1457  ;;  %v1800_v12 = vmul.f32 %v11011_v21, %v204_v47  ;;  %v1799_v47 = vmul.f32 %v10809_v10, %v203_v7  ;;  %v8325_v10 = vld [vmem:[%s14789_s2 + $0x804] sm:$0xf] }
 0x27f   :  { %v4199_v23 = vpop.f32.mrf.mxu0  ;;  %v4290_v20 = vpop.f32.mrf.mxu1  ;;  %4896 = vmatpush.bf16.msrb.mxu3 %v1940_v52 }
 0x280   :  { %14834 = vst [vmem:[#allocation11_spill] sm:$0xff] %v11225_v62  ;;  %v11233_v0 = vadd.f32 %v4199_v23, %v10999_v6  ;;  %v11236_v40 = vadd.f32 %v4290_v20, %v11024_v48  ;;  %v8236_v6 = vld [vmem:[%s14789_s2 + $0x53c] sm:$0xf]  ;;  %v7590_v48 = vld [vmem:[%s14789_s2 + $0x574] sm:$0xf0]  ;;  %v1938_v45 = vpack.c.bf16 %v1801_v30, %v1800_v12  ;;  %v1797_v30 = vmul.f32 %v10965_v8, %v201_v19 }
 0x281   :  { %4149 = vmatmul.bf16.gmra.mxu3 %v7885_v32  ;;  %4238 = vmatmul.bf16.gmra.mxu0 %v7709_v36  ;;  %v7593_v42 = vor.u32 %v8236_v6, %v7590_v48  ;;  %v7942_v12 = vld [vmem:[%s14789_s2 + $0x83c] sm:$0xf0]  ;;  %v7476_v8 = vld [vmem:[%s14789_s2 + $0x450] sm:$0xf] }
 0x282   :  { %4421 = vmatmul.bf16.gmra.mxu2 %v7417_v27  ;;  %v7477_v19 = vor.u32 %v8214_v55, %v7476_v8 }
 0x283   :  { %4897 = vmatpush.bf16.msrb.mxu3 %v1939_v16  ;;  %v1796_v16 = vmul.f32 %v10761_v59, %v200_v9  ;;  %v7650_v9 = vld [vmem:[%s14789_s2 + $0x5ec] sm:$0xf0] }
 0x284   :  { %v4110_v21 = vpop.f32.mrf.mxu3 }
 0x285   :  { %v11256_v22 = vadd.f32 %v4110_v21, %v14835_v63  ;;  %v4382_v52 = vpop.f32.mrf.mxu2  ;;  %v1936_v48 = vpack.c.bf16 %v1797_v30, %v1796_v16  ;;  %v11298_v7 = vpop.permute.xlu2 %1527  ;;  %v14838_v30 = vld [vmem:[#allocation13_spill] sm:$0xff] }
 0x286   :  { %v11262_v32 = vadd.f32 %v4382_v52, %v11027_v57  ;;  %v11264_v36 = vpop.permute.xlu1 %1477  ;;  %v11266_v3 = vpop.permute.xlu0 %1472  ;;  %v1937_v57 = vpack.c.bf16 %v1799_v47, %v1798_v56 }
 0x287   :  { %v4201_v46 = vpop.f32.mrf.mxu0  ;;  %v4293_v27 = vpop.f32.mrf.mxu1  ;;  %4898 = vmatpush.bf16.msrb.mxu3 %v1938_v45  ;;  %v7945_v45 = vor.u32 %v8325_v10, %v7942_v12 }
 0x288   :  { %14836 = vst [vmem:[#allocation12_spill] sm:$0xff] %v11262_v32  ;;  %v11273_v23 = vadd.f32 %v4201_v46, %v11061_v53  ;;  %v11276_v20 = vadd.f32 %v4293_v27, %v11079_v18  ;;  %v7768_v53 = vld [vmem:[%s14789_s2 + $0x6a0] sm:$0xf]  ;;  %v8288_v18 = vld [vmem:[%s14789_s2 + $0x6d8] sm:$0xf0] }
 0x289   :  { %4332 = vmatmul.bf16.gmra.mxu1 %v7593_v42  ;;  %v7769_v63 = vor.u32 %v8288_v18, %v7768_v53 }
 0x28b   :  { %4899 = vmatpush.bf16.msrb.mxu3 %v1937_v57 }
 0x28c   :  { %v4112_v6 = vpop.f32.mrf.mxu3 }
 0x28d   :  { %v11301_v21 = vadd.f32 %v4112_v6, %v10665_v50  ;;  %v4384_v56 = vpop.f32.mrf.mxu2 }
 0x28e   :  { %v11304_v59 = vadd.f32 %v4384_v56, %v11082_v13  ;;  %v11306_v52 = vpop.permute.xlu1 %1492  ;;  %v11308_v42 = vpop.permute.xlu0 %1487  ;;  %v8251_v13 = vld [vmem:[%s14789_s2 + $0x5b4] sm:$0xf]  ;;  %v8340_v56 = vld [vmem:[%s14789_s2 + $0x87c] sm:$0xf] }
 0x28f   :  { %v4204_v47 = vpop.f32.mrf.mxu0  ;;  %v4295_v46 = vpop.f32.mrf.mxu1  ;;  %4900 = vmatpush.bf16.msrb.mxu3 %v1936_v48  ;;  %v7653_v12 = vor.u32 %v8251_v13, %v7650_v9 }
 0x290   :  { %14837 = vst [vmem:[#allocation14_spill] sm:$0xff] %v11304_v59  ;;  %v11311_v27 = vadd.f32 %v4204_v47, %v11093_v49  ;;  %v11314_v50 = vadd.f32 %v4295_v46, %v11101_v4  ;;  %v11334_v48 = vpop.permute.xlu2 %1542  ;;  %v231_v46 = vld [vmem:[%s14788_s0 + $0x678] sm:$0xff] }
 0x291   :  { %4154 = vmatmul.bf16.gmra.mxu3 %v7945_v45  ;;  %4243 = vmatmul.bf16.gmra.mxu0 %v7769_v63  ;;  %v7828_v45 = vld [vmem:[%s14789_s2 + $0x718] sm:$0xf]  ;;  %v8229_v63 = vld [vmem:[%s14789_s2 + $0x500] sm:$0xf0] }
 0x292   :  { %4426 = vmatmul.bf16.gmra.mxu2 %v7477_v19  ;;  %v230_v19 = vld [vmem:[%s14788_s0 + $0x670] sm:$0xff] }
 0x294   :  { %v4115_v57 = vpop.f32.mrf.mxu3 }
 0x295   :  { %v11323_v10 = vadd.f32 %v4115_v57, %v14838_v30  ;;  %v4387_v49 = vpop.f32.mrf.mxu2 }
 0x296   :  { %v11326_v4 = vadd.f32 %v4387_v49, %v11104_v58  ;;  %v1508_v53 = vpop.permute.xlu1 %1507  ;;  %v1503_v18 = vpop.permute.xlu0 %1502  ;;  %v8002_v58 = vld [vmem:[%s14789_s2 + $0x8b4] sm:$0xf0]  ;;  %v229_v49 = vld [vmem:[%s14788_s0 + $0x668] sm:$0xff] }
 0x297   :  { %v4206_v16 = vpop.f32.mrf.mxu0  ;;  %v4298_v8 = vpop.f32.mrf.mxu1  ;;  %v8005_v57 = vor.u32 %v8340_v56, %v8002_v58  ;;  %v1825_v32 = vmul.f32 %v1508_v53, %v229_v49 }
 0x298   :  { %14839 = vst [vmem:[#allocation13_spill] sm:$0xff] %v11326_v4  ;;  %v11329_v55 = vadd.f32 %v4206_v16, %v11131_v61  ;;  %v11332_v6 = vadd.f32 %v4298_v8, %v11146_v15  ;;  %v8303_v61 = vld [vmem:[%s14789_s2 + $0x750] sm:$0xf0]  ;;  %v7536_v15 = vld [vmem:[%s14789_s2 + $0x4c8] sm:$0xf] }
 0x299   :  { %4337 = vmatmul.bf16.gmra.mxu1 %v7653_v12  ;;  %v7829_v30 = vor.u32 %v8303_v61, %v7828_v45  ;;  %v228_v12 = vld [vmem:[%s14788_s0 + $0x660] sm:$0xff]  ;;  %v7537_v59 = vor.u32 %v8229_v63, %v7536_v15 }
 0x29a   :  { %v1824_v62 = vmul.f32 %v1503_v18, %v228_v12 }
 0x29c   :  { %v4117_v47 = vpop.f32.mrf.mxu3  ;;  %v1950_v15 = vpack.c.bf16 %v1825_v32, %v1824_v62 }
 0x29d   :  { %v11361_v13 = vadd.f32 %v4117_v47, %v10767_v2  ;;  %v4389_v9 = vpop.f32.mrf.mxu2  ;;  %v1826_v2 = vmul.f32 %v11249_v28, %v230_v19  ;;  %v8266_v28 = vld [vmem:[%s14789_s2 + $0x62c] sm:$0xf] }
 0x29e   :  { %v11370_v16 = vadd.f32 %v4389_v9, %v11149_v43  ;;  %v11372_v8 = vpop.permute.xlu1 %1522  ;;  %v1518_v4 = vpop.permute.xlu0 %1517  ;;  %v226_v43 = vld [vmem:[%s14788_s0 + $0x650] sm:$0xff] }
 0x29f   :  { %v1827_v47 = vmul.f32 %v1518_v4, %v231_v46  ;;  %v4209_v56 = vpop.f32.mrf.mxu0  ;;  %v4300_v58 = vpop.f32.mrf.mxu1  ;;  %v227_v4 = vld [vmem:[%s14788_s0 + $0x658] sm:$0xff]  ;;  %v1822_v18 = vmul.f32 %v11306_v52, %v226_v43  ;;  %v225_v46 = vld [vmem:[%s14788_s0 + $0x648] sm:$0xff] }
 0x2a0   :  { %v11376_v45 = vadd.f32 %v4209_v56, %v11165_v14  ;;  %v11379_v61 = vadd.f32 %v4300_v58, %v11181_v1  ;;  %v7710_v14 = vld [vmem:[%s14789_s2 + $0x664] sm:$0xf0]  ;;  %v11390_v1 = vpop.permute.xlu2 %1557  ;;  %v6938_v56 = vld [vmem:[%s14789_s2 + $0x54] sm:$0xf0]  ;;  %v8244_v43 = vld [vmem:[%s14789_s2 + $0x578] sm:$0xf0] }
 0x2a1   :  { %v1951_v25 = vpack.c.bf16 %v1827_v47, %v1826_v2  ;;  %4159 = vmatmul.bf16.gmra.mxu3 %v8005_v57  ;;  %4248 = vmatmul.bf16.gmra.mxu0 %v7829_v30  ;;  %v7713_v19 = vor.u32 %v8266_v28, %v7710_v14  ;;  %v1823_v30 = vmul.f32 %v11190_v31, %v227_v4  ;;  %v222_v31 = vld [vmem:[%s14788_s0 + $0x630] sm:$0xff]  ;;  %v8072_v47 = vld [vmem:[%s14789_s2 + $0x1c] sm:$0xf] }
 0x2a2   :  { %4431 = vmatmul.bf16.gmra.mxu2 %v7537_v59  ;;  %v1821_v2 = vmul.f32 %v11308_v42, %v225_v46  ;;  %v7596_v42 = vld [vmem:[%s14789_s2 + $0x540] sm:$0xf]  ;;  %v1818_v14 = vmul.f32 %v11266_v3, %v222_v31 }
 0x2a3   :  { %4997 = vmatpush.bf16.msrb.mxu0 %v1951_v25  ;;  %v1949_v12 = vpack.c.bf16 %v1823_v30, %v1822_v18  ;;  %v220_v46 = vld [vmem:[%s14788_s0 + $0x620] sm:$0xff] }
 0x2a4   :  { %v4120_v53 = vpop.f32.mrf.mxu3 }
 0x2a5   :  { %v11397_v59 = vadd.f32 %v4120_v53, %v10818_v37  ;;  %v4392_v63 = vpop.f32.mrf.mxu2  ;;  %v224_v37 = vld [vmem:[%s14788_s0 + $0x640] sm:$0xff] }
 0x2a6   :  { %v11403_v9 = vadd.f32 %v4392_v63, %v11184_v11  ;;  %v11405_v25 = vpop.permute.xlu1 %1537  ;;  %v11407_v57 = vpop.permute.xlu0 %1532  ;;  %v223_v11 = vld [vmem:[%s14788_s0 + $0x638] sm:$0xff]  ;;  %v1820_v58 = vmul.f32 %v11133_v24, %v224_v37 }
 0x2a7   :  { %v4211_v52 = vpop.f32.mrf.mxu0  ;;  %v4303_v62 = vpop.f32.mrf.mxu1  ;;  %4998 = vmatpush.bf16.msrb.mxu0 %v1950_v15  ;;  %v1819_v28 = vmul.f32 %v11264_v36, %v223_v11 }
 0x2a8   :  { %v11414_v32 = vadd.f32 %v4211_v52, %v11216_v44  ;;  %v11417_v49 = vadd.f32 %v4303_v62, %v11233_v0  ;;  %v7888_v44 = vld [vmem:[%s14789_s2 + $0x790] sm:$0xf]  ;;  %v8318_v0 = vld [vmem:[%s14789_s2 + $0x7c8] sm:$0xf0]  ;;  %v1948_v53 = vpack.c.bf16 %v1821_v2, %v1820_v58  ;;  %v11447_v18 = vpop.permute.xlu2 %1572  ;;  %v7597_v52 = vor.u32 %v8244_v43, %v7596_v42  ;;  %v219_v2 = vld [vmem:[%s14788_s0 + $0x618] sm:$0xff] }
 0x2a9   :  { %4342 = vmatmul.bf16.gmra.mxu1 %v7713_v19  ;;  %v7889_v63 = vor.u32 %v8318_v0, %v7888_v44  ;;  %v6941_v19 = vor.u32 %v8072_v47, %v6938_v56  ;;  %v8281_v44 = vld [vmem:[%s14789_s2 + $0x6a4] sm:$0xf]  ;;  %v1815_v56 = vmul.f32 %v11229_v35, %v219_v2 }
 0x2ab   :  { %4999 = vmatpush.bf16.msrb.mxu0 %v1949_v12  ;;  %v1947_v12 = vpack.c.bf16 %v1819_v28, %v1818_v14  ;;  %v217_v28 = vld [vmem:[%s14788_s0 + $0x608] sm:$0xff] }
 0x2ac   :  { %v4122_v4 = vpop.f32.mrf.mxu3 }
 0x2ad   :  { %v11450_v15 = vadd.f32 %v4122_v4, %v10866_v54  ;;  %v4394_v24 = vpop.f32.mrf.mxu2  ;;  %v221_v54 = vld [vmem:[%s14788_s0 + $0x628] sm:$0xff] }
 0x2ae   :  { %v11456_v30 = vadd.f32 %v4394_v24, %v11236_v40  ;;  %v11458_v36 = vpop.permute.xlu1 %1552  ;;  %v11460_v3 = vpop.permute.xlu0 %1547  ;;  %v1816_v40 = vmul.f32 %v11227_v26, %v220_v46  ;;  %v218_v26 = vld [vmem:[%s14788_s0 + $0x610] sm:$0xff] }
 0x2af   :  { %v4214_v62 = vpop.f32.mrf.mxu0  ;;  %v4305_v37 = vpop.f32.mrf.mxu1  ;;  %5000 = vmatpush.bf16.msrb.mxu0 %v1948_v53 }
 0x2b0   :  { %v11466_v11 = vadd.f32 %v4214_v62, %v11256_v22  ;;  %v11469_v31 = vadd.f32 %v4305_v37, %v11273_v23  ;;  %v7770_v22 = vld [vmem:[%s14789_s2 + $0x6dc] sm:$0xf0]  ;;  %v1817_v23 = vmul.f32 %v11095_v17, %v221_v54  ;;  %v8333_v37 = vld [vmem:[%s14789_s2 + $0x840] sm:$0xf0] }
 0x2b1   :  { %4253 = vmatmul.bf16.gmra.mxu0 %v7889_v63  ;;  %4485 = vmatmul.bf16.vlgmr.msra.gmra.mxu3 %v6941_v19  ;;  %v7773_v43 = vor.u32 %v8281_v44, %v7770_v22  ;;  %v216_v17 = vld [vmem:[%s14788_s0 + $0x600] sm:$0xff]  ;;  %v1588_v63 = vpop.permute.xlu2 %1587 }
 0x2b2   :  { %4436 = vmatmul.bf16.gmra.mxu2 %v7597_v52  ;;  %v1946_v47 = vpack.c.bf16 %v1817_v23, %v1816_v40  ;;  %v1813_v52 = vmul.f32 %v11173_v41, %v217_v28  ;;  %v6998_v41 = vld [vmem:[%s14789_s2 + $0xcc] sm:$0xf0] }
 0x2b3   :  { %5001 = vmatpush.bf16.msrb.mxu0 %v1947_v12 }
 0x2b4   :  { %v4125_v0 = vpop.f32.mrf.mxu3 }
 0x2b5   :  { %v11487_v58 = vadd.f32 %v4125_v0, %v10904_v29  ;;  %v4397_v42 = vpop.f32.mrf.mxu2  ;;  %v1814_v29 = vmul.f32 %v11063_v38, %v218_v26  ;;  %v7948_v38 = vld [vmem:[%s14789_s2 + $0x808] sm:$0xf] }
 0x2b6   :  { %v11496_v14 = vadd.f32 %v4397_v42, %v11276_v20  ;;  %v11498_v4 = vpop.permute.xlu1 %1567  ;;  %v11500_v53 = vpop.permute.xlu0 %1562  ;;  %v1812_v20 = vmul.f32 %v11175_v60, %v216_v17  ;;  %v7656_v60 = vld [vmem:[%s14789_s2 + $0x5b8] sm:$0xf]  ;;  %v7949_v44 = vor.u32 %v8333_v37, %v7948_v38 }
 0x2b7   :  { %v4216_v35 = vpop.f32.mrf.mxu0  ;;  %v4308_v24 = vpop.f32.mrf.mxu1  ;;  %5002 = vmatpush.bf16.msrb.mxu0 %v1946_v47  ;;  %v1945_v62 = vpack.c.bf16 %v1815_v56, %v1814_v29  ;;  %v7830_v17 = vld [vmem:[%s14789_s2 + $0x754] sm:$0xf0] }
 0x2b8   :  { %v11504_v19 = vadd.f32 %v4216_v35, %v11301_v21  ;;  %v11507_v46 = vadd.f32 %v4308_v24, %v11311_v27  ;;  %v8087_v21 = vld [vmem:[%s14789_s2 + $0x94] sm:$0xf]  ;;  %v1944_v40 = vpack.c.bf16 %v1813_v52, %v1812_v20  ;;  %v244_v20 = vld [vmem:[%s14788_s0 + $0x6e0] sm:$0xff] }
 0x2b9   :  { %4347 = vmatmul.bf16.gmra.mxu1 %v7773_v43  ;;  %v8259_v27 = vld [vmem:[%s14789_s2 + $0x5f0] sm:$0xf0]  ;;  %v7001_v22 = vor.u32 %v8087_v21, %v6998_v41 }
 0x2ba   :  { %v7657_v47 = vor.u32 %v8259_v27, %v7656_v60 }
 0x2bb   :  { %5003 = vmatpush.bf16.msrb.mxu0 %v1945_v62 }
 0x2bc   :  { %v4127_v54 = vpop.f32.mrf.mxu3 }
 0x2bd   :  { %v11530_v12 = vadd.f32 %v4127_v54, %v10961_v34  ;;  %v4399_v2 = vpop.f32.mrf.mxu2  ;;  %v11541_v34 = vpop.permute.xlu2 %1602 }
 0x2be   :  { %v11533_v23 = vadd.f32 %v4399_v2, %v11314_v50  ;;  %v1583_v26 = vpop.permute.xlu1 %1582  ;;  %v1578_v0 = vpop.permute.xlu0 %1577  ;;  %v8296_v50 = vld [vmem:[%s14789_s2 + $0x71c] sm:$0xf] }
 0x2bf   :  { %v4219_v56 = vpop.f32.mrf.mxu0  ;;  %v4310_v42 = vpop.f32.mrf.mxu1  ;;  %5004 = vmatpush.bf16.msrb.mxu0 %v1944_v40  ;;  %v7833_v52 = vor.u32 %v8296_v50, %v7830_v17  ;;  %v1840_v2 = vmul.f32 %v1583_v26, %v244_v20  ;;  %v242_v50 = vld [vmem:[%s14788_s0 + $0x6d0] sm:$0xff] }
 0x2c0   :  { %v11536_v43 = vadd.f32 %v4219_v56, %v11323_v10  ;;  %v11539_v28 = vadd.f32 %v4310_v42, %v11329_v55  ;;  %v247_v10 = vld [vmem:[%s14788_s0 + $0x6f8] sm:$0xff]  ;;  %v246_v55 = vld [vmem:[%s14788_s0 + $0x6f0] sm:$0xff]  ;;  %v8274_v42 = vld [vmem:[%s14789_s2 + $0x668] sm:$0xf0] }
 0x2c1   :  { %4258 = vmatmul.bf16.gmra.mxu0 %v7949_v44  ;;  %4490 = vmatmul.bf16.gmra.mxu3 %v7001_v22  ;;  %v8348_v22 = vld [vmem:[%s14789_s2 + $0x8b8] sm:$0xf0]  ;;  %v7716_v56 = vld [vmem:[%s14789_s2 + $0x630] sm:$0xf] }
 0x2c2   :  { %4441 = vmatmul.bf16.gmra.mxu2 %v7657_v47  ;;  %v243_v47 = vld [vmem:[%s14788_s0 + $0x6d8] sm:$0xff] }
 0x2c4   :  { %v4130_v29 = vpop.f32.mrf.mxu3 }
 0x2c5   :  { %v11556_v35 = vadd.f32 %v4130_v29, %v11007_v5  ;;  %v4402_v24 = vpop.f32.mrf.mxu2  ;;  %v245_v5 = vld [vmem:[%s14788_s0 + $0x6e8] sm:$0xff]  ;;  %v1618_v17 = vpop.permute.xlu2 %1617  ;;  %v251_v29 = vld [vmem:[%s14788_s0 + $0x718] sm:$0xff] }
 0x2c6   :  { %v11562_v62 = vadd.f32 %v4402_v24, %v11332_v6  ;;  %v1598_v38 = vpop.permute.xlu1 %1597  ;;  %v1593_v37 = vpop.permute.xlu0 %1592  ;;  %v8008_v6 = vld [vmem:[%s14789_s2 + $0x880] sm:$0xf]  ;;  %v1841_v26 = vmul.f32 %v1588_v63, %v245_v5  ;;  %v250_v63 = vld [vmem:[%s14788_s0 + $0x710] sm:$0xff]  ;;  %v241_v24 = vld [vmem:[%s14788_s0 + $0x6c8] sm:$0xff] }
 0x2c7   :  { %v1843_v21 = vmul.f32 %v1598_v38, %v247_v10  ;;  %v1842_v41 = vmul.f32 %v1593_v37, %v246_v55  ;;  %v4221_v60 = vpop.f32.mrf.mxu0  ;;  %v4313_v27 = vpop.f32.mrf.mxu1  ;;  %v8009_v55 = vor.u32 %v8348_v22, %v8008_v6  ;;  %v1839_v38 = vmul.f32 %v1578_v0, %v243_v47 }
 0x2c8   :  { %14840 = vst [vmem:[#allocation15_spill] sm:$0xff] %v11562_v62  ;;  %v11568_v54 = vadd.f32 %v4221_v60, %v11361_v13  ;;  %v11571_v40 = vadd.f32 %v4313_v27, %v11376_v45  ;;  %v8102_v13 = vld [vmem:[%s14789_s2 + $0x10c] sm:$0xf]  ;;  %v7058_v45 = vld [vmem:[%s14789_s2 + $0x144] sm:$0xf0]  ;;  %v1958_v20 = vpack.c.bf16 %v1841_v26, %v1840_v2  ;;  %v7717_v6 = vor.u32 %v8274_v42, %v7716_v56 }
 0x2c9   :  { %v1959_v44 = vpack.c.bf16 %v1843_v21, %v1842_v41  ;;  %4352 = vmatmul.bf16.gmra.mxu1 %v7833_v52  ;;  %v240_v52 = vld [vmem:[%s14788_s0 + $0x6c0] sm:$0xff]  ;;  %v7061_v41 = vor.u32 %v8102_v13, %v7058_v45  ;;  %v1838_v22 = vmul.f32 %v11447_v18, %v242_v50  ;;  %v1847_v62 = vmul.f32 %v1618_v17, %v251_v29  ;;  %v238_v18 = vld [vmem:[%s14788_s0 + $0x6b0] sm:$0xff] }
 0x2ca   :  { %v1836_v13 = vmul.f32 %v11500_v53, %v240_v52  ;;  %v239_v53 = vld [vmem:[%s14788_s0 + $0x6b8] sm:$0xff] }
 0x2cb   :  { %5101 = vmatpush.bf16.msrb.mxu1 %v1959_v44  ;;  %v249_v44 = vld [vmem:[%s14788_s0 + $0x708] sm:$0xff]  ;;  %v1957_v56 = vpack.c.bf16 %v1839_v38, %v1838_v22 }
 0x2cc   :  { %v4132_v10 = vpop.f32.mrf.mxu3 }
 0x2cd   :  { %v11610_v37 = vadd.f32 %v4132_v10, %v11069_v33  ;;  %v4404_v21 = vpop.f32.mrf.mxu2  ;;  %v248_v33 = vld [vmem:[%s14788_s0 + $0x700] sm:$0xff] }
 0x2ce   :  { %v11613_v60 = vadd.f32 %v4404_v21, %v11379_v61  ;;  %v1613_v27 = vpop.permute.xlu1 %1612  ;;  %v1608_v5 = vpop.permute.xlu0 %1607  ;;  %v1837_v61 = vmul.f32 %v11498_v4, %v241_v24  ;;  %v8311_v4 = vld [vmem:[%s14789_s2 + $0x794] sm:$0xf] }
 0x2cf   :  { %v1846_v2 = vmul.f32 %v1613_v27, %v250_v63  ;;  %v4224_v0 = vpop.f32.mrf.mxu0  ;;  %v4315_v47 = vpop.f32.mrf.mxu1  ;;  %5102 = vmatpush.bf16.msrb.mxu1 %v1958_v20  ;;  %v1845_v50 = vmul.f32 %v1608_v5, %v249_v44  ;;  %v1835_v20 = vmul.f32 %v11390_v1, %v239_v53  ;;  %v234_v1 = vld [vmem:[%s14788_s0 + $0x690] sm:$0xff]  ;;  %v6944_v44 = vld [vmem:[%s14789_s2 + $0x20] sm:$0xf] }
 0x2d0   :  { %v11625_v45 = vadd.f32 %v4224_v0, %v11397_v59  ;;  %v11628_v26 = vadd.f32 %v4315_v47, %v11414_v32  ;;  %v7890_v59 = vld [vmem:[%s14789_s2 + $0x7cc] sm:$0xf0]  ;;  %v1844_v32 = vmul.f32 %v11541_v34, %v248_v33  ;;  %v1956_v29 = vpack.c.bf16 %v1837_v61, %v1836_v13  ;;  %v237_v34 = vld [vmem:[%s14788_s0 + $0x6a8] sm:$0xff] }
 0x2d1   :  { %v1961_v42 = vpack.c.bf16 %v1847_v62, %v1846_v2  ;;  %4263 = vmatmul.bf16.gmra.mxu0 %v8009_v55  ;;  %4495 = vmatmul.bf16.gmra.mxu3 %v7061_v41  ;;  %v1834_v62 = vmul.f32 %v11458_v36, %v238_v18  ;;  %v7893_v24 = vor.u32 %v8311_v4, %v7890_v59  ;;  %v8289_v2 = vld [vmem:[%s14789_s2 + $0x6e0] sm:$0xf0] }
 0x2d2   :  { %4446 = vmatmul.bf16.gmra.mxu2 %v7717_v6  ;;  %v1960_v10 = vpack.c.bf16 %v1845_v50, %v1844_v32  ;;  %v1833_v5 = vmul.f32 %v11460_v3, %v237_v34  ;;  %v8080_v6 = vld [vmem:[%s14789_s2 + $0x58] sm:$0xf0]  ;;  %v7776_v3 = vld [vmem:[%s14789_s2 + $0x6a8] sm:$0xf]  ;;  %v1830_v47 = vmul.f32 %v11407_v57, %v234_v1 }
 0x2d3   :  { %5103 = vmatpush.bf16.msrb.mxu1 %v1957_v56  ;;  %5211 = vmatpush.bf16.msrb.mxu2 %v1961_v42  ;;  %v1955_v27 = vpack.c.bf16 %v1835_v20, %v1834_v62  ;;  %v6945_v56 = vor.u32 %v8080_v6, %v6944_v44  ;;  %v232_v42 = vld [vmem:[%s14788_s0 + $0x680] sm:$0xff]  ;;  %v7777_v4 = vor.u32 %v8289_v2, %v7776_v3  ;;  %v233_v57 = vld [vmem:[%s14788_s0 + $0x688] sm:$0xff]  ;;  %v8304_v1 = vld [vmem:[%s14789_s2 + $0x758] sm:$0xf0] }
 0x2d4   :  { %v4135_v17 = vpop.f32.mrf.mxu3  ;;  %v1828_v53 = vmul.f32 %v11372_v8, %v232_v42 }
 0x2d5   :  { %v11645_v63 = vadd.f32 %v4135_v17, %v11098_v39  ;;  %v4407_v55 = vpop.f32.mrf.mxu2  ;;  %v236_v39 = vld [vmem:[%s14788_s0 + $0x6a0] sm:$0xff]  ;;  %v7950_v17 = vld [vmem:[%s14789_s2 + $0x844] sm:$0xf0] }
 0x2d6   :  { %v11651_v52 = vadd.f32 %v4407_v55, %v11417_v49  ;;  %v235_v49 = vld [vmem:[%s14788_s0 + $0x698] sm:$0xff]  ;;  %v1832_v22 = vmul.f32 %v11334_v48, %v236_v39 }
 0x2d7   :  { %v4226_v38 = vpop.f32.mrf.mxu0  ;;  %v4318_v21 = vpop.f32.mrf.mxu1  ;;  %5104 = vmatpush.bf16.msrb.mxu1 %v1956_v29  ;;  %5212 = vmatpush.bf16.msrb.mxu2 %v1960_v10  ;;  %v1831_v0 = vmul.f32 %v11405_v25, %v235_v49  ;;  %v14841_v10 = vld [vmem:[#allocation10_spill] sm:$0xff]  ;;  %v7178_v49 = vld [vmem:[%s14789_s2 + $0x234] sm:$0xf0] }
 0x2d8   :  { %v11658_v36 = vadd.f32 %v4226_v38, %v11450_v15  ;;  %v11661_v41 = vadd.f32 %v4318_v21, %v11466_v11  ;;  %v8117_v15 = vld [vmem:[%s14789_s2 + $0x184] sm:$0xf]  ;;  %v7118_v11 = vld [vmem:[%s14789_s2 + $0x1bc] sm:$0xf0]  ;;  %v1954_v61 = vpack.c.bf16 %v1833_v5, %v1832_v22  ;;  %v14842_v5 = vld [vmem:[#allocation11_spill] sm:$0xff] }
 0x2d9   :  { %4357 = vmatmul.bf16.gmra.mxu1 %v7893_v24  ;;  %v7121_v48 = vor.u32 %v8117_v15, %v7118_v11  ;;  %v1953_v62 = vpack.c.bf16 %v1831_v0, %v1830_v47 }
 0x2db   :  { %5105 = vmatpush.bf16.msrb.mxu1 %v1955_v27 }
 0x2dc   :  { %v4137_v33 = vpop.f32.mrf.mxu3 }
 0x2dd   :  { %v11692_v13 = vadd.f32 %v4137_v33, %v11136_v51  ;;  %v4409_v18 = vpop.f32.mrf.mxu2 }
 0x2de   :  { %v11698_v50 = vadd.f32 %v4409_v18, %v11469_v31  ;;  %v8326_v31 = vld [vmem:[%s14789_s2 + $0x80c] sm:$0xf] }
 0x2df   :  { %v4229_v59 = vpop.f32.mrf.mxu0  ;;  %v4320_v25 = vpop.f32.mrf.mxu1  ;;  %5106 = vmatpush.bf16.msrb.mxu1 %v1954_v61  ;;  %v7953_v24 = vor.u32 %v8326_v31, %v7950_v17  ;;  %v8341_v61 = vld [vmem:[%s14789_s2 + $0x884] sm:$0xf]  ;;  %v8319_v31 = vld [vmem:[%s14789_s2 + $0x7d0] sm:$0xf0] }
 0x2e0   :  { %v11704_v51 = vadd.f32 %v4229_v59, %v11487_v58  ;;  %v11707_v32 = vadd.f32 %v4320_v25, %v11504_v19  ;;  %v1829_v58 = vmul.f32 %v11298_v7, %v233_v57  ;;  %v8132_v7 = vld [vmem:[%s14789_s2 + $0x1fc] sm:$0xf] }
 0x2e1   :  { %4500 = vmatmul.bf16.gmra.mxu3 %v7121_v48  ;;  %4589 = vmatmul.bf16.vlgmr.msra.gmra.mxu0 %v6945_v56  ;;  %v7181_v44 = vor.u32 %v8132_v7, %v7178_v49  ;;  %v14843_v48 = vld [vmem:[#allocation2_spill] sm:$0xff] }
 0x2e2   :  { %4451 = vmatmul.bf16.gmra.mxu2 %v7777_v4  ;;  %v1952_v19 = vpack.c.bf16 %v1829_v58, %v1828_v53  ;;  %v8147_v53 = vld [vmem:[%s14789_s2 + $0x274] sm:$0xf]  ;;  %v14844_v58 = vld [vmem:[#allocation3_spill] sm:$0xff] }
 0x2e3   :  { %5107 = vmatpush.bf16.msrb.mxu1 %v1953_v62  ;;  %v7238_v62 = vld [vmem:[%s14789_s2 + $0x2ac] sm:$0xf0] }
 0x2e4   :  { %v4140_v29 = vpop.f32.mrf.mxu3 }
 0x2e5   :  { %v11718_v55 = vadd.f32 %v4140_v29, %v14841_v10  ;;  %v4412_v8 = vpop.f32.mrf.mxu2  ;;  %v7241_v10 = vor.u32 %v8147_v53, %v7238_v62 }
 0x2e6   :  { %v11721_v34 = vadd.f32 %v4412_v8, %v11507_v46  ;;  %v7004_v46 = vld [vmem:[%s14789_s2 + $0x98] sm:$0xf] }
 0x2e7   :  { %v4231_v20 = vpop.f32.mrf.mxu0  ;;  %v4323_v38 = vpop.f32.mrf.mxu1  ;;  %5108 = vmatpush.bf16.msrb.mxu1 %v1952_v19 }
 0x2e8   :  { %v11724_v21 = vadd.f32 %v4231_v20, %v11530_v12  ;;  %v11727_v39 = vadd.f32 %v4323_v38, %v11536_v43  ;;  %v8095_v12 = vld [vmem:[%s14789_s2 + $0xd0] sm:$0xf0]  ;;  %v7836_v43 = vld [vmem:[%s14789_s2 + $0x720] sm:$0xf] }
 0x2e9   :  { %4362 = vmatmul.bf16.gmra.mxu1 %v7953_v24  ;;  %v7005_v6 = vor.u32 %v8095_v12, %v7004_v46  ;;  %v7837_v3 = vor.u32 %v8304_v1, %v7836_v43  ;;  %v8073_v12 = vld [vmem:[%s14789_s2 + $0x24] sm:$0xf]  ;;  %v14845_v1 = vld [vmem:[#allocation4_spill] sm:$0xff] }
 0x2ec   :  { %v4142_v27 = vpop.f32.mrf.mxu3 }
 0x2ed   :  { %v11748_v15 = vadd.f32 %v4142_v27, %v14842_v5  ;;  %v4414_v11 = vpop.f32.mrf.mxu2 }
 0x2ee   :  { %v11751_v22 = vadd.f32 %v4414_v11, %v11539_v28  ;;  %v8010_v28 = vld [vmem:[%s14789_s2 + $0x8bc] sm:$0xf0] }
 0x2ef   :  { %v4234_v2 = vpop.f32.mrf.mxu0  ;;  %v4325_v0 = vpop.f32.mrf.mxu1  ;;  %v8013_v42 = vor.u32 %v8341_v61, %v8010_v28  ;;  %v8334_v61 = vld [vmem:[%s14789_s2 + $0x848] sm:$0xf0] }
 0x2f0   :  { %v11754_v47 = vadd.f32 %v4234_v2, %v11556_v35  ;;  %v11757_v33 = vadd.f32 %v4325_v0, %v11568_v54  ;;  %v8162_v2 = vld [vmem:[%s14789_s2 + $0x2ec] sm:$0xf]  ;;  %v7298_v0 = vld [vmem:[%s14789_s2 + $0x324] sm:$0xf0] }
 0x2f1   :  { %4505 = vmatmul.bf16.gmra.mxu3 %v7181_v44  ;;  %4594 = vmatmul.bf16.gmra.mxu0 %v7005_v6 }
 0x2f2   :  { %4456 = vmatmul.bf16.gmra.mxu2 %v7837_v3 }
 0x2f4   :  { %v4145_v18 = vpop.f32.mrf.mxu3 }
 0x2f5   :  { %v11766_v56 = vadd.f32 %v4145_v18, %v14843_v48  ;;  %v4417_v35 = vpop.f32.mrf.mxu2  ;;  %v14846_v18 = vld [vmem:[#allocation5_spill] sm:$0xff] }
 0x2f6   :  { %v11769_v54 = vadd.f32 %v4417_v35, %v11571_v40  ;;  %v7064_v40 = vld [vmem:[%s14789_s2 + $0x110] sm:$0xf] }
 0x2f7   :  { %v4236_v4 = vpop.f32.mrf.mxu0  ;;  %v4328_v59 = vpop.f32.mrf.mxu1 }
 0x2f8   :  { %v11772_v25 = vadd.f32 %v4236_v4, %v11610_v37  ;;  %v11775_v57 = vadd.f32 %v4328_v59, %v11625_v45  ;;  %v8110_v37 = vld [vmem:[%s14789_s2 + $0x148] sm:$0xf0]  ;;  %v7896_v45 = vld [vmem:[%s14789_s2 + $0x798] sm:$0xf] }
 0x2f9   :  { %4367 = vmatmul.bf16.gmra.mxu1 %v8013_v42  ;;  %v7065_v8 = vor.u32 %v8110_v37, %v7064_v40  ;;  %v7897_v20 = vor.u32 %v8319_v31, %v7896_v45  ;;  %v7301_v42 = vor.u32 %v8162_v2, %v7298_v0  ;;  %v8088_v31 = vld [vmem:[%s14789_s2 + $0x9c] sm:$0xf] }
 0x2fc   :  { %v4147_v17 = vpop.f32.mrf.mxu3 }
 0x2fd   :  { %v11796_v29 = vadd.f32 %v4147_v17, %v14844_v58  ;;  %v4419_v19 = vpop.f32.mrf.mxu2  ;;  %v14847_v58 = vld [vmem:[#allocation6_spill] sm:$0xff] }
 0x2fe   :  { %v11799_v24 = vadd.f32 %v4419_v19, %v11628_v26  ;;  %v6946_v26 = vld [vmem:[%s14789_s2 + $0x5c] sm:$0xf0] }
 0x2ff   :  { %v4239_v38 = vpop.f32.mrf.mxu0  ;;  %v4330_v7 = vpop.f32.mrf.mxu1  ;;  %v6949_v5 = vor.u32 %v8073_v12, %v6946_v26  ;;  %v8177_v12 = vld [vmem:[%s14789_s2 + $0x364] sm:$0xf]  ;;  %v7358_v26 = vld [vmem:[%s14789_s2 + $0x39c] sm:$0xf0] }
 0x300   :  { %v11802_v49 = vadd.f32 %v4239_v38, %v11645_v63  ;;  %v11805_v46 = vadd.f32 %v4330_v7, %v11658_v36 }
 0x301   :  { %4510 = vmatmul.bf16.gmra.mxu3 %v7241_v10  ;;  %4599 = vmatmul.bf16.gmra.mxu0 %v7065_v8 }
 0x302   :  { %4461 = vmatmul.bf16.gmra.mxu2 %v7897_v20 }
 0x304   :  { %v4150_v43 = vpop.f32.mrf.mxu3 }
 0x305   :  { %v11814_v27 = vadd.f32 %v4150_v43, %v14845_v1  ;;  %v4422_v63 = vpop.f32.mrf.mxu2  ;;  %v8349_v43 = vld [vmem:[%s14789_s2 + $0x8c0] sm:$0xf0] }
 0x306   :  { %v11817_v36 = vadd.f32 %v4422_v63, %v11661_v41  ;;  %v7124_v41 = vld [vmem:[%s14789_s2 + $0x188] sm:$0xf] }
 0x307   :  { %v4241_v11 = vpop.f32.mrf.mxu0  ;;  %v4333_v44 = vpop.f32.mrf.mxu1  ;;  %v14848_v63 = vld [vmem:[#allocation7_spill] sm:$0xff] }
 0x308   :  { %v11820_v6 = vadd.f32 %v4241_v11, %v11692_v13  ;;  %v11823_v3 = vadd.f32 %v4333_v44, %v11704_v51  ;;  %v8125_v13 = vld [vmem:[%s14789_s2 + $0x1c0] sm:$0xf0]  ;;  %v7956_v51 = vld [vmem:[%s14789_s2 + $0x810] sm:$0xf]  ;;  %v7361_v44 = vor.u32 %v8177_v12, %v7358_v26 }
 0x309   :  { %4693 = vmatmul.bf16.vlgmr.msra.gmra.mxu1 %v6949_v5  ;;  %v7125_v4 = vor.u32 %v8125_v13, %v7124_v41  ;;  %v7957_v53 = vor.u32 %v8334_v61, %v7956_v51 }
 0x30c   :  { %v4152_v28 = vpop.f32.mrf.mxu3 }
 0x30d   :  { %v11844_v48 = vadd.f32 %v4152_v28, %v14846_v18  ;;  %v4424_v35 = vpop.f32.mrf.mxu2  ;;  %v8103_v18 = vld [vmem:[%s14789_s2 + $0x114] sm:$0xf] }
 0x30e   :  { %v11847_v59 = vadd.f32 %v4424_v35, %v11707_v32  ;;  %v7006_v32 = vld [vmem:[%s14789_s2 + $0xd4] sm:$0xf0] }
 0x30f   :  { %v4244_v62 = vpop.f32.mrf.mxu0  ;;  %v4335_v40 = vpop.f32.mrf.mxu1  ;;  %v7009_v10 = vor.u32 %v8088_v31, %v7006_v32 }
 0x310   :  { %v11850_v37 = vadd.f32 %v4244_v62, %v11718_v55  ;;  %v11853_v45 = vadd.f32 %v4335_v40, %v11724_v21 }
 0x311   :  { %4515 = vmatmul.bf16.gmra.mxu3 %v7301_v42  ;;  %4604 = vmatmul.bf16.gmra.mxu0 %v7125_v4  ;;  %v14849_v42 = vld [vmem:[#allocation8_spill] sm:$0xff] }
 0x312   :  { %4466 = vmatmul.bf16.gmra.mxu2 %v7957_v53 }
 0x314   :  { %v4155_v17 = vpop.f32.mrf.mxu3 }
 0x315   :  { %v11862_v19 = vadd.f32 %v4155_v17, %v14847_v58  ;;  %v4427_v55 = vpop.f32.mrf.mxu2  ;;  %v8192_v17 = vld [vmem:[%s14789_s2 + $0x3dc] sm:$0xf]  ;;  %v7418_v58 = vld [vmem:[%s14789_s2 + $0x414] sm:$0xf0] }
 0x316   :  { %v11865_v21 = vadd.f32 %v4427_v55, %v11727_v39  ;;  %v7184_v39 = vld [vmem:[%s14789_s2 + $0x200] sm:$0xf]  ;;  %v8081_v55 = vld [vmem:[%s14789_s2 + $0x60] sm:$0xf0]  ;;  %v7421_v26 = vor.u32 %v8192_v17, %v7418_v58 }
 0x317   :  { %v4246_v8 = vpop.f32.mrf.mxu0  ;;  %v4338_v20 = vpop.f32.mrf.mxu1  ;;  %v14852_v58 = vld [vmem:[#allocation14_spill] sm:$0xff] }
 0x318   :  { %v11868_v38 = vadd.f32 %v4246_v8, %v11748_v15  ;;  %v11871_v7 = vadd.f32 %v4338_v20, %v11754_v47  ;;  %v8140_v15 = vld [vmem:[%s14789_s2 + $0x238] sm:$0xf0]  ;;  %v8016_v47 = vld [vmem:[%s14789_s2 + $0x888] sm:$0xf] }
 0x319   :  { %4698 = vmatmul.bf16.gmra.mxu1 %v7009_v10  ;;  %v7185_v2 = vor.u32 %v8140_v15, %v7184_v39  ;;  %v8017_v41 = vor.u32 %v8349_v43, %v8016_v47  ;;  %v14850_v8 = vld [vmem:[#allocation9_spill] sm:$0xff] }
 0x31c   :  { %v4157_v1 = vpop.f32.mrf.mxu3 }
 0x31d   :  { %v11892_v5 = vadd.f32 %v4157_v1, %v14848_v63  ;;  %v4429_v11 = vpop.f32.mrf.mxu2 }
 0x31e   :  { %v11895_v0 = vadd.f32 %v4429_v11, %v11757_v33  ;;  %v7066_v33 = vld [vmem:[%s14789_s2 + $0x14c] sm:$0xf0] }
 0x31f   :  { %v4249_v13 = vpop.f32.mrf.mxu0  ;;  %v4340_v51 = vpop.f32.mrf.mxu1  ;;  %v7069_v53 = vor.u32 %v8103_v18, %v7066_v33 }
 0x320   :  { %v11898_v61 = vadd.f32 %v4249_v13, %v11766_v56  ;;  %v11901_v28 = vadd.f32 %v4340_v51, %v11772_v25  ;;  %v14851_v13 = vld [vmem:[#allocation12_spill] sm:$0xff] }
 0x321   :  { %4520 = vmatmul.bf16.gmra.mxu3 %v7361_v44  ;;  %4609 = vmatmul.bf16.gmra.mxu0 %v7185_v2  ;;  %v8118_v44 = vld [vmem:[%s14789_s2 + $0x18c] sm:$0xf] }
 0x322   :  { %4471 = vmatmul.bf16.gmra.mxu2 %v8017_v41 }
 0x324   :  { %v4160_v35 = vpop.f32.mrf.mxu3 }
 0x325   :  { %v11910_v4 = vadd.f32 %v4160_v35, %v14849_v42  ;;  %v4432_v56 = vpop.f32.mrf.mxu2 }
 0x326   :  { %v11913_v25 = vadd.f32 %v4432_v56, %v11775_v57  ;;  %v7244_v57 = vld [vmem:[%s14789_s2 + $0x278] sm:$0xf]  ;;  %v8207_v56 = vld [vmem:[%s14789_s2 + $0x454] sm:$0xf] }
 0x327   :  { %v4251_v62 = vpop.f32.mrf.mxu0  ;;  %v4343_v40 = vpop.f32.mrf.mxu1 }
 0x328   :  { %v11916_v31 = vadd.f32 %v4251_v62, %v11796_v29  ;;  %v11919_v32 = vadd.f32 %v4343_v40, %v11802_v49  ;;  %v8155_v29 = vld [vmem:[%s14789_s2 + $0x2b0] sm:$0xf0]  ;;  %v6952_v49 = vld [vmem:[%s14789_s2 + $0x28] sm:$0xf]  ;;  %v8096_v62 = vld [vmem:[%s14789_s2 + $0xd8] sm:$0xf0] }
 0x329   :  { %4703 = vmatmul.bf16.gmra.mxu1 %v7069_v53  ;;  %v7245_v39 = vor.u32 %v8155_v29, %v7244_v57  ;;  %v6953_v47 = vor.u32 %v8081_v55, %v6952_v49  ;;  %v7478_v53 = vld [vmem:[%s14789_s2 + $0x48c] sm:$0xf0] }
 0x32a   :  { %v7481_v29 = vor.u32 %v8207_v56, %v7478_v53  ;;  %v8111_v56 = vld [vmem:[%s14789_s2 + $0x150] sm:$0xf0] }
 0x32c   :  { %v4162_v10 = vpop.f32.mrf.mxu3 }
 0x32d   :  { %v11940_v20 = vadd.f32 %v4162_v10, %v14850_v8  ;;  %v4434_v12 = vpop.f32.mrf.mxu2 }
 0x32e   :  { %v11943_v15 = vadd.f32 %v4434_v12, %v11805_v46  ;;  %v7126_v46 = vld [vmem:[%s14789_s2 + $0x1c4] sm:$0xf0] }
 0x32f   :  { %v4254_v43 = vpop.f32.mrf.mxu0  ;;  %v4345_v1 = vpop.f32.mrf.mxu1 }
 0x330   :  { %v11946_v63 = vadd.f32 %v4254_v43, %v11814_v27  ;;  %v11949_v11 = vadd.f32 %v4345_v1, %v11820_v6  ;;  %v7129_v27 = vor.u32 %v8118_v44, %v7126_v46  ;;  %v14853_v44 = vld [vmem:[#allocation13_spill] sm:$0xff] }
 0x331   :  { %4525 = vmatmul.bf16.gmra.mxu3 %v7421_v26  ;;  %4614 = vmatmul.bf16.gmra.mxu0 %v7245_v39 }
 0x332   :  { %4797 = vmatmul.bf16.vlgmr.msra.gmra.mxu2 %v6953_v47  ;;  %v8133_v47 = vld [vmem:[%s14789_s2 + $0x204] sm:$0xf] }
 0x334   :  { %v4486_v2 = vpop.f32.mrf.mxu3 }
 0x335   :  { %v4437_v41 = vpop.f32.mrf.mxu2  ;;  %v11958_v51 = vadd.f32 %v4486_v2, %v14851_v13 }
 0x336   :  { %v11961_v6 = vadd.f32 %v4437_v41, %v11823_v3  ;;  %v7304_v3 = vld [vmem:[%s14789_s2 + $0x2f0] sm:$0xf] }
 0x337   :  { %v4256_v18 = vpop.f32.mrf.mxu0  ;;  %v4348_v33 = vpop.f32.mrf.mxu1 }
 0x338   :  { %v11964_v35 = vadd.f32 %v4256_v18, %v11844_v48  ;;  %v11967_v42 = vadd.f32 %v4348_v33, %v11850_v37  ;;  %v8170_v48 = vld [vmem:[%s14789_s2 + $0x328] sm:$0xf0]  ;;  %v7012_v37 = vld [vmem:[%s14789_s2 + $0xa0] sm:$0xf]  ;;  %v7538_v33 = vld [vmem:[%s14789_s2 + $0x504] sm:$0xf0] }
 0x339   :  { %4708 = vmatmul.bf16.gmra.mxu1 %v7129_v27  ;;  %v7305_v49 = vor.u32 %v8170_v48, %v7304_v3  ;;  %v7013_v10 = vor.u32 %v8096_v62, %v7012_v37  ;;  %v8222_v18 = vld [vmem:[%s14789_s2 + $0x4cc] sm:$0xf] }
 0x33a   :  { %v7541_v37 = vor.u32 %v8222_v18, %v7538_v33 }
 0x33c   :  { %v4488_v40 = vpop.f32.mrf.mxu3 }
 0x33d   :  { %v4439_v17 = vpop.f32.mrf.mxu2  ;;  %v11988_v57 = vadd.f32 %v4488_v40, %v14852_v58 }
 0x33e   :  { %v11991_v55 = vadd.f32 %v4439_v17, %v11853_v45  ;;  %v7186_v45 = vld [vmem:[%s14789_s2 + $0x23c] sm:$0xf0] }
 0x33f   :  { %v4259_v8 = vpop.f32.mrf.mxu0  ;;  %v4350_v12 = vpop.f32.mrf.mxu1 }
 0x340   :  { %v11994_v26 = vadd.f32 %v4259_v8, %v11862_v19  ;;  %v11997_v39 = vadd.f32 %v4350_v12, %v11868_v38  ;;  %v7189_v19 = vor.u32 %v8133_v47, %v7186_v45 }
 0x341   :  { %4530 = vmatmul.bf16.gmra.mxu3 %v7481_v29  ;;  %4619 = vmatmul.bf16.gmra.mxu0 %v7305_v49 }
 0x342   :  { %4802 = vmatmul.bf16.gmra.mxu2 %v7013_v10 }
 0x344   :  { %v4491_v43 = vpop.f32.mrf.mxu3 }
 0x345   :  { %v4442_v1 = vpop.f32.mrf.mxu2  ;;  %v12006_v46 = vadd.f32 %v4491_v43, %v14853_v44 }
 0x346   :  { %v12009_v38 = vadd.f32 %v4442_v1, %v11871_v7  ;;  %v7364_v7 = vld [vmem:[%s14789_s2 + $0x368] sm:$0xf] }
 0x347   :  { %v4261_v2 = vpop.f32.mrf.mxu0  ;;  %v4353_v41 = vpop.f32.mrf.mxu1 }
 0x348   :  { %v12012_v13 = vadd.f32 %v4261_v2, %v11892_v5  ;;  %v12015_v27 = vadd.f32 %v4353_v41, %v11898_v61  ;;  %v8185_v5 = vld [vmem:[%s14789_s2 + $0x3a0] sm:$0xf0]  ;;  %v7072_v61 = vld [vmem:[%s14789_s2 + $0x118] sm:$0xf]  ;;  %v8126_v2 = vld [vmem:[%s14789_s2 + $0x1c8] sm:$0xf0] }
 0x349   :  { %4713 = vmatmul.bf16.gmra.mxu1 %v7189_v19  ;;  %v7365_v62 = vor.u32 %v8185_v5, %v7364_v7  ;;  %v7073_v17 = vor.u32 %v8111_v56, %v7072_v61  ;;  %v8237_v19 = vld [vmem:[%s14789_s2 + $0x544] sm:$0xf] }
 0x34c   :  { %v4493_v53 = vpop.f32.mrf.mxu3 }
 0x34d   :  { %v4444_v3 = vpop.f32.mrf.mxu2  ;;  %v12036_v48 = vadd.f32 %v4493_v53, %v11370_v16  ;;  %v8148_v16 = vld [vmem:[%s14789_s2 + $0x27c] sm:$0xf] }
 0x34e   :  { %v12039_v40 = vadd.f32 %v4444_v3, %v11901_v28  ;;  %v7246_v28 = vld [vmem:[%s14789_s2 + $0x2b4] sm:$0xf0] }
 0x34f   :  { %v4264_v58 = vpop.f32.mrf.mxu0  ;;  %v4355_v29 = vpop.f32.mrf.mxu1 }
 0x350   :  { %v12042_v49 = vadd.f32 %v4264_v58, %v11910_v4  ;;  %v12045_v10 = vadd.f32 %v4355_v29, %v11916_v31  ;;  %v7249_v4 = vor.u32 %v8148_v16, %v7246_v28 }
 0x351   :  { %4535 = vmatmul.bf16.gmra.mxu3 %v7541_v37  ;;  %4624 = vmatmul.bf16.gmra.mxu0 %v7365_v62 }
 0x352   :  { %4807 = vmatmul.bf16.gmra.mxu2 %v7073_v17 }
 0x354   :  { %v4496_v8 = vpop.f32.mrf.mxu3 }
 0x355   :  { %v4447_v12 = vpop.f32.mrf.mxu2  ;;  %v12054_v47 = vadd.f32 %v4496_v8, %v11403_v9  ;;  %v7598_v9 = vld [vmem:[%s14789_s2 + $0x57c] sm:$0xf0] }
 0x356   :  { %v12057_v31 = vadd.f32 %v4447_v12, %v11919_v32  ;;  %v7424_v32 = vld [vmem:[%s14789_s2 + $0x3e0] sm:$0xf]  ;;  %v7601_v7 = vor.u32 %v8237_v19, %v7598_v9 }
 0x357   :  { %v4266_v45 = vpop.f32.mrf.mxu0  ;;  %v4358_v43 = vpop.f32.mrf.mxu1 }
 0x358   :  { %v12060_v1 = vadd.f32 %v4266_v45, %v11940_v20  ;;  %v12063_v44 = vadd.f32 %v4358_v43, %v11946_v63  ;;  %v8200_v20 = vld [vmem:[%s14789_s2 + $0x418] sm:$0xf0]  ;;  %v7132_v63 = vld [vmem:[%s14789_s2 + $0x190] sm:$0xf]  ;;  %v8141_v45 = vld [vmem:[%s14789_s2 + $0x240] sm:$0xf0] }
 0x359   :  { %4718 = vmatmul.bf16.gmra.mxu1 %v7249_v4  ;;  %v7425_v5 = vor.u32 %v8200_v20, %v7424_v32  ;;  %v7133_v56 = vor.u32 %v8126_v2, %v7132_v63  ;;  %v8252_v4 = vld [vmem:[%s14789_s2 + $0x5bc] sm:$0xf] }
 0x35c   :  { %v4498_v41 = vpop.f32.mrf.mxu3 }
 0x35d   :  { %v4449_v18 = vpop.f32.mrf.mxu2  ;;  %v12084_v33 = vadd.f32 %v4498_v41, %v11456_v30  ;;  %v8163_v30 = vld [vmem:[%s14789_s2 + $0x2f4] sm:$0xf] }
 0x35e   :  { %v12087_v61 = vadd.f32 %v4449_v18, %v11949_v11  ;;  %v7306_v11 = vld [vmem:[%s14789_s2 + $0x32c] sm:$0xf0] }
 0x35f   :  { %v4360_v53 = vpop.f32.mrf.mxu1  ;;  %v4590_v3 = vpop.f32.mrf.mxu0 }
 0x360   :  { %v12090_v37 = vadd.f32 %v4360_v53, %v11964_v35  ;;  %v12093_v62 = vadd.f32 %v4590_v3, %v11958_v51  ;;  %v7309_v35 = vor.u32 %v8163_v30, %v7306_v11  ;;  %v14854_v3 = vld [vmem:[#allocation15_spill] sm:$0xff] }
 0x361   :  { %4540 = vmatmul.bf16.gmra.mxu3 %v7601_v7  ;;  %4629 = vmatmul.bf16.gmra.mxu0 %v7425_v5 }
 0x362   :  { %4812 = vmatmul.bf16.gmra.mxu2 %v7133_v56 }
 0x364   :  { %v4501_v17 = vpop.f32.mrf.mxu3 }
 0x365   :  { %v4452_v58 = vpop.f32.mrf.mxu2  ;;  %v12102_v29 = vadd.f32 %v4501_v17, %v11496_v14  ;;  %v7658_v14 = vld [vmem:[%s14789_s2 + $0x5f4] sm:$0xf0] }
 0x366   :  { %v12105_v51 = vadd.f32 %v4452_v58, %v11967_v42  ;;  %v7484_v42 = vld [vmem:[%s14789_s2 + $0x458] sm:$0xf]  ;;  %v7661_v32 = vor.u32 %v8252_v4, %v7658_v14  ;;  %v8156_v4 = vld [vmem:[%s14789_s2 + $0x2b8] sm:$0xf0] }
 0x367   :  { %v4363_v16 = vpop.f32.mrf.mxu1  ;;  %v4592_v28 = vpop.f32.mrf.mxu0 }
 0x368   :  { %v12108_v8 = vadd.f32 %v4363_v16, %v11994_v26  ;;  %v12111_v12 = vadd.f32 %v4592_v28, %v11988_v57  ;;  %v8215_v26 = vld [vmem:[%s14789_s2 + $0x490] sm:$0xf0]  ;;  %v7192_v57 = vld [vmem:[%s14789_s2 + $0x208] sm:$0xf]  ;;  %v7718_v28 = vld [vmem:[%s14789_s2 + $0x66c] sm:$0xf0] }
 0x369   :  { %4723 = vmatmul.bf16.gmra.mxu1 %v7309_v35  ;;  %v7485_v20 = vor.u32 %v8215_v26, %v7484_v42  ;;  %v7193_v2 = vor.u32 %v8141_v45, %v7192_v57  ;;  %v8267_v16 = vld [vmem:[%s14789_s2 + $0x634] sm:$0xf] }
 0x36a   :  { %v7721_v57 = vor.u32 %v8267_v16, %v7718_v28 }
 0x36c   :  { %v4503_v43 = vpop.f32.mrf.mxu3 }
 0x36d   :  { %v4454_v19 = vpop.f32.mrf.mxu2  ;;  %v12132_v9 = vadd.f32 %v4503_v43, %v11533_v23  ;;  %v8178_v23 = vld [vmem:[%s14789_s2 + $0x36c] sm:$0xf] }
 0x36e   :  { %v12135_v63 = vadd.f32 %v4454_v19, %v11997_v39  ;;  %v7366_v39 = vld [vmem:[%s14789_s2 + $0x3a4] sm:$0xf0] }
 0x36f   :  { %v4365_v41 = vpop.f32.mrf.mxu1  ;;  %v4595_v18 = vpop.f32.mrf.mxu0 }
 0x370   :  { %v12138_v7 = vadd.f32 %v4365_v41, %v12012_v13  ;;  %v12141_v5 = vadd.f32 %v4595_v18, %v12006_v46  ;;  %v7369_v13 = vor.u32 %v8178_v23, %v7366_v39 }
 0x371   :  { %4545 = vmatmul.bf16.gmra.mxu3 %v7661_v32  ;;  %4634 = vmatmul.bf16.gmra.mxu0 %v7485_v20 }
 0x372   :  { %4817 = vmatmul.bf16.gmra.mxu2 %v7193_v2 }
 0x374   :  { %v4506_v56 = vpop.f32.mrf.mxu3 }
 0x375   :  { %v4457_v53 = vpop.f32.mrf.mxu2  ;;  %v12150_v30 = vadd.f32 %v4506_v56, %v14854_v3 }
 0x376   :  { %v12153_v46 = vadd.f32 %v4457_v53, %v12015_v27  ;;  %v7544_v27 = vld [vmem:[%s14789_s2 + $0x4d0] sm:$0xf] }
 0x377   :  { %v4368_v11 = vpop.f32.mrf.mxu1  ;;  %v4597_v17 = vpop.f32.mrf.mxu0 }
 0x378   :  { %v12156_v58 = vadd.f32 %v4368_v11, %v12042_v49  ;;  %v12159_v35 = vadd.f32 %v4597_v17, %v12036_v48  ;;  %v8230_v49 = vld [vmem:[%s14789_s2 + $0x508] sm:$0xf0]  ;;  %v7252_v48 = vld [vmem:[%s14789_s2 + $0x280] sm:$0xf]  ;;  %v8171_v17 = vld [vmem:[%s14789_s2 + $0x330] sm:$0xf0] }
 0x379   :  { %4728 = vmatmul.bf16.gmra.mxu1 %v7369_v13  ;;  %v7545_v45 = vor.u32 %v8230_v49, %v7544_v27  ;;  %v7253_v19 = vor.u32 %v8156_v4, %v7252_v48  ;;  %v8282_v11 = vld [vmem:[%s14789_s2 + $0x6ac] sm:$0xf] }
 0x37c   :  { %v4508_v14 = vpop.f32.mrf.mxu3 }
 0x37d   :  { %v4459_v42 = vpop.f32.mrf.mxu2  ;;  %v12180_v26 = vadd.f32 %v4508_v14, %v11613_v60  ;;  %v8193_v60 = vld [vmem:[%s14789_s2 + $0x3e4] sm:$0xf] }
 0x37e   :  { %v12183_v43 = vadd.f32 %v4459_v42, %v12045_v10  ;;  %v7426_v10 = vld [vmem:[%s14789_s2 + $0x41c] sm:$0xf0] }
 0x37f   :  { %v4370_v32 = vpop.f32.mrf.mxu1  ;;  %v4600_v20 = vpop.f32.mrf.mxu0 }
 0x380   :  { %v12186_v2 = vadd.f32 %v4370_v32, %v12060_v1  ;;  %v12189_v41 = vadd.f32 %v4600_v20, %v12054_v47  ;;  %v7429_v1 = vor.u32 %v8193_v60, %v7426_v10 }
 0x381   :  { %4550 = vmatmul.bf16.gmra.mxu3 %v7721_v57  ;;  %4639 = vmatmul.bf16.gmra.mxu0 %v7545_v45 }
 0x382   :  { %4822 = vmatmul.bf16.gmra.mxu2 %v7253_v19 }
 0x384   :  { %v4511_v18 = vpop.f32.mrf.mxu3 }
 0x385   :  { %v4462_v23 = vpop.f32.mrf.mxu2  ;;  %v12198_v39 = vadd.f32 %v4511_v18, %v11651_v52  ;;  %v7778_v52 = vld [vmem:[%s14789_s2 + $0x6e4] sm:$0xf0] }
 0x386   :  { %v12201_v47 = vadd.f32 %v4462_v23, %v12063_v44  ;;  %v7604_v44 = vld [vmem:[%s14789_s2 + $0x548] sm:$0xf]  ;;  %v7781_v49 = vor.u32 %v8282_v11, %v7778_v52 }
 0x387   :  { %v4602_v56 = vpop.f32.mrf.mxu0  ;;  %v4694_v53 = vpop.f32.mrf.mxu1 }
 0x388   :  { %v12204_v3 = vadd.f32 %v4602_v56, %v12084_v33  ;;  %v12207_v13 = vadd.f32 %v4694_v53, %v12093_v62  ;;  %v8245_v33 = vld [vmem:[%s14789_s2 + $0x580] sm:$0xf0]  ;;  %v7312_v62 = vld [vmem:[%s14789_s2 + $0x2f8] sm:$0xf]  ;;  %v8186_v53 = vld [vmem:[%s14789_s2 + $0x3a8] sm:$0xf0] }
 0x389   :  { %4733 = vmatmul.bf16.gmra.mxu1 %v7429_v1  ;;  %v7605_v48 = vor.u32 %v8245_v33, %v7604_v44  ;;  %v7313_v14 = vor.u32 %v8171_v17, %v7312_v62  ;;  %v8297_v56 = vld [vmem:[%s14789_s2 + $0x724] sm:$0xf] }
 0x38c   :  { %v4513_v16 = vpop.f32.mrf.mxu3 }
 0x38d   :  { %v4464_v28 = vpop.f32.mrf.mxu2  ;;  %v12228_v27 = vadd.f32 %v4513_v16, %v11698_v50  ;;  %v8208_v50 = vld [vmem:[%s14789_s2 + $0x45c] sm:$0xf] }
 0x38e   :  { %v12231_v4 = vadd.f32 %v4464_v28, %v12090_v37  ;;  %v7486_v37 = vld [vmem:[%s14789_s2 + $0x494] sm:$0xf0] }
 0x38f   :  { %v4605_v42 = vpop.f32.mrf.mxu0  ;;  %v4696_v57 = vpop.f32.mrf.mxu1 }
 0x390   :  { %v12234_v45 = vadd.f32 %v4605_v42, %v12102_v29  ;;  %v12237_v19 = vadd.f32 %v4696_v57, %v12111_v12  ;;  %v7489_v29 = vor.u32 %v8208_v50, %v7486_v37 }
 0x391   :  { %4555 = vmatmul.bf16.gmra.mxu3 %v7781_v49  ;;  %4644 = vmatmul.bf16.gmra.mxu0 %v7605_v48 }
 0x392   :  { %4827 = vmatmul.bf16.gmra.mxu2 %v7313_v14 }
 0x394   :  { %v4516_v32 = vpop.f32.mrf.mxu3 }
 0x395   :  { %v4467_v20 = vpop.f32.mrf.mxu2  ;;  %v12246_v60 = vadd.f32 %v4516_v32, %v11721_v34  ;;  %v7838_v34 = vld [vmem:[%s14789_s2 + $0x75c] sm:$0xf0] }
 0x396   :  { %v12249_v12 = vadd.f32 %v4467_v20, %v12108_v8  ;;  %v7664_v8 = vld [vmem:[%s14789_s2 + $0x5c0] sm:$0xf]  ;;  %v7841_v33 = vor.u32 %v8297_v56, %v7838_v34 }
 0x397   :  { %v4607_v10 = vpop.f32.mrf.mxu0  ;;  %v4699_v18 = vpop.f32.mrf.mxu1 }
 0x398   :  { %v12252_v23 = vadd.f32 %v4607_v10, %v12132_v9  ;;  %v12255_v1 = vadd.f32 %v4699_v18, %v12141_v5  ;;  %v8260_v9 = vld [vmem:[%s14789_s2 + $0x5f8] sm:$0xf0]  ;;  %v7372_v5 = vld [vmem:[%s14789_s2 + $0x370] sm:$0xf]  ;;  %v8201_v18 = vld [vmem:[%s14789_s2 + $0x420] sm:$0xf0] }
 0x399   :  { %4738 = vmatmul.bf16.gmra.mxu1 %v7489_v29  ;;  %v7665_v62 = vor.u32 %v8260_v9, %v7664_v8  ;;  %v7373_v16 = vor.u32 %v8186_v53, %v7372_v5  ;;  %v8312_v10 = vld [vmem:[%s14789_s2 + $0x79c] sm:$0xf] }
 0x39c   :  { %v4518_v11 = vpop.f32.mrf.mxu3 }
 0x39d   :  { %v4469_v52 = vpop.f32.mrf.mxu2  ;;  %v12276_v44 = vadd.f32 %v4518_v11, %v11751_v22  ;;  %v8223_v22 = vld [vmem:[%s14789_s2 + $0x4d4] sm:$0xf] }
 0x39e   :  { %v12279_v17 = vadd.f32 %v4469_v52, %v12138_v7  ;;  %v7546_v7 = vld [vmem:[%s14789_s2 + $0x50c] sm:$0xf0] }
 0x39f   :  { %v4610_v28 = vpop.f32.mrf.mxu0  ;;  %v4701_v49 = vpop.f32.mrf.mxu1 }
 0x3a0   :  { %v12282_v48 = vadd.f32 %v4610_v28, %v12150_v30  ;;  %v12285_v14 = vadd.f32 %v4701_v49, %v12159_v35  ;;  %v7549_v30 = vor.u32 %v8223_v22, %v7546_v7 }
 0x3a1   :  { %4560 = vmatmul.bf16.gmra.mxu3 %v7841_v33  ;;  %4649 = vmatmul.bf16.gmra.mxu0 %v7665_v62 }
 0x3a2   :  { %4832 = vmatmul.bf16.gmra.mxu2 %v7373_v16 }
 0x3a4   :  { %v4521_v42 = vpop.f32.mrf.mxu3 }
 0x3a5   :  { %v4472_v57 = vpop.f32.mrf.mxu2  ;;  %v12294_v50 = vadd.f32 %v4521_v42, %v11769_v54  ;;  %v7898_v54 = vld [vmem:[%s14789_s2 + $0x7d4] sm:$0xf0] }
 0x3a6   :  { %v12297_v35 = vadd.f32 %v4472_v57, %v12156_v58  ;;  %v7724_v58 = vld [vmem:[%s14789_s2 + $0x638] sm:$0xf]  ;;  %v7901_v9 = vor.u32 %v8312_v10, %v7898_v54 }
 0x3a7   :  { %v4612_v37 = vpop.f32.mrf.mxu0  ;;  %v4704_v32 = vpop.f32.mrf.mxu1 }
 0x3a8   :  { %v12300_v20 = vadd.f32 %v4612_v37, %v12180_v26  ;;  %v12303_v29 = vadd.f32 %v4704_v32, %v12189_v41  ;;  %v8275_v26 = vld [vmem:[%s14789_s2 + $0x670] sm:$0xf0]  ;;  %v7432_v41 = vld [vmem:[%s14789_s2 + $0x3e8] sm:$0xf]  ;;  %v8216_v32 = vld [vmem:[%s14789_s2 + $0x498] sm:$0xf0] }
 0x3a9   :  { %4743 = vmatmul.bf16.gmra.mxu1 %v7549_v30  ;;  %v7725_v5 = vor.u32 %v8275_v26, %v7724_v58  ;;  %v7433_v11 = vor.u32 %v8201_v18, %v7432_v41  ;;  %v8327_v37 = vld [vmem:[%s14789_s2 + $0x814] sm:$0xf] }
 0x3ac   :  { %v4523_v56 = vpop.f32.mrf.mxu3 }
 0x3ad   :  { %v4474_v34 = vpop.f32.mrf.mxu2  ;;  %v12324_v8 = vadd.f32 %v4523_v56, %v11799_v24  ;;  %v8238_v24 = vld [vmem:[%s14789_s2 + $0x54c] sm:$0xf] }
 0x3ae   :  { %v12327_v53 = vadd.f32 %v4474_v34, %v12186_v2  ;;  %v7606_v2 = vld [vmem:[%s14789_s2 + $0x584] sm:$0xf0] }
 0x3af   :  { %v4615_v52 = vpop.f32.mrf.mxu0  ;;  %v4706_v33 = vpop.f32.mrf.mxu1  ;;  %v7609_v22 = vor.u32 %v8238_v24, %v7606_v2 }
 0x3b0   :  { %v12330_v62 = vadd.f32 %v4615_v52, %v12198_v39  ;;  %v12333_v16 = vadd.f32 %v4706_v33, %v12204_v3 }
 0x3b1   :  { %4565 = vmatmul.bf16.gmra.mxu3 %v7901_v9  ;;  %4654 = vmatmul.bf16.gmra.mxu0 %v7725_v5 }
 0x3b2   :  { %4837 = vmatmul.bf16.gmra.mxu2 %v7433_v11 }
 0x3b4   :  { %v4526_v28 = vpop.f32.mrf.mxu3 }
 0x3b5   :  { %v12342_v49 = vadd.f32 %v4526_v28, %v11817_v36  ;;  %v4798_v39 = vpop.f32.mrf.mxu2  ;;  %v7958_v36 = vld [vmem:[%s14789_s2 + $0x84c] sm:$0xf0] }
 0x3b6   :  { %v12345_v3 = vadd.f32 %v4798_v39, %v12207_v13  ;;  %v7784_v13 = vld [vmem:[%s14789_s2 + $0x6b0] sm:$0xf]  ;;  %v7961_v26 = vor.u32 %v8327_v37, %v7958_v36 }
 0x3b7   :  { %v4617_v7 = vpop.f32.mrf.mxu0  ;;  %v4709_v42 = vpop.f32.mrf.mxu1 }
 0x3b8   :  { %v12348_v57 = vadd.f32 %v4617_v7, %v12228_v27  ;;  %v12351_v30 = vadd.f32 %v4709_v42, %v12234_v45  ;;  %v8290_v27 = vld [vmem:[%s14789_s2 + $0x6e8] sm:$0xf0]  ;;  %v7492_v45 = vld [vmem:[%s14789_s2 + $0x460] sm:$0xf]  ;;  %v8231_v42 = vld [vmem:[%s14789_s2 + $0x510] sm:$0xf0] }
 0x3b9   :  { %4748 = vmatmul.bf16.gmra.mxu1 %v7609_v22  ;;  %v7785_v41 = vor.u32 %v8290_v27, %v7784_v13  ;;  %v7493_v56 = vor.u32 %v8216_v32, %v7492_v45  ;;  %v8342_v7 = vld [vmem:[%s14789_s2 + $0x88c] sm:$0xf] }
 0x3bc   :  { %v4528_v10 = vpop.f32.mrf.mxu3 }
 0x3bd   :  { %v12372_v54 = vadd.f32 %v4528_v10, %v11847_v59  ;;  %v4800_v58 = vpop.f32.mrf.mxu2  ;;  %v8253_v59 = vld [vmem:[%s14789_s2 + $0x5c4] sm:$0xf] }
 0x3be   :  { %v12375_v18 = vadd.f32 %v4800_v58, %v12237_v19  ;;  %v7666_v19 = vld [vmem:[%s14789_s2 + $0x5fc] sm:$0xf0] }
 0x3bf   :  { %v4620_v34 = vpop.f32.mrf.mxu0  ;;  %v4711_v9 = vpop.f32.mrf.mxu1  ;;  %v7669_v24 = vor.u32 %v8253_v59, %v7666_v19 }
 0x3c0   :  { %v12378_v5 = vadd.f32 %v4620_v34, %v12246_v60  ;;  %v12381_v11 = vadd.f32 %v4711_v9, %v12252_v23 }
 0x3c1   :  { %4570 = vmatmul.bf16.gmra.mxu3 %v7961_v26  ;;  %4659 = vmatmul.bf16.gmra.mxu0 %v7785_v41 }
 0x3c2   :  { %4842 = vmatmul.bf16.gmra.mxu2 %v7493_v56 }
 0x3c4   :  { %v4531_v52 = vpop.f32.mrf.mxu3 }
 0x3c5   :  { %v12390_v33 = vadd.f32 %v4531_v52, %v11865_v21  ;;  %v4803_v60 = vpop.f32.mrf.mxu2  ;;  %v8018_v21 = vld [vmem:[%s14789_s2 + $0x8c4] sm:$0xf0] }
 0x3c6   :  { %v12393_v23 = vadd.f32 %v4803_v60, %v12255_v1  ;;  %v7844_v1 = vld [vmem:[%s14789_s2 + $0x728] sm:$0xf]  ;;  %v8021_v27 = vor.u32 %v8342_v7, %v8018_v21 }
 0x3c7   :  { %v4622_v2 = vpop.f32.mrf.mxu0  ;;  %v4714_v28 = vpop.f32.mrf.mxu1 }
 0x3c8   :  { %v12396_v39 = vadd.f32 %v4622_v2, %v12276_v44  ;;  %v12399_v22 = vadd.f32 %v4714_v28, %v12282_v48  ;;  %v8305_v44 = vld [vmem:[%s14789_s2 + $0x760] sm:$0xf0]  ;;  %v7552_v48 = vld [vmem:[%s14789_s2 + $0x4d8] sm:$0xf]  ;;  %v7904_v2 = vld [vmem:[%s14789_s2 + $0x7a0] sm:$0xf] }
 0x3c9   :  { %4753 = vmatmul.bf16.gmra.mxu1 %v7669_v24  ;;  %v7845_v45 = vor.u32 %v8305_v44, %v7844_v1  ;;  %v7553_v10 = vor.u32 %v8231_v42, %v7552_v48  ;;  %v8246_v28 = vld [vmem:[%s14789_s2 + $0x588] sm:$0xf0] }
 0x3cc   :  { %v4533_v37 = vpop.f32.mrf.mxu3 }
 0x3cd   :  { %v12420_v36 = vadd.f32 %v4533_v37, %v11895_v0  ;;  %v4805_v13 = vpop.f32.mrf.mxu2  ;;  %v8268_v0 = vld [vmem:[%s14789_s2 + $0x63c] sm:$0xf] }
 0x3ce   :  { %v12423_v32 = vadd.f32 %v4805_v13, %v12285_v14  ;;  %v7726_v14 = vld [vmem:[%s14789_s2 + $0x674] sm:$0xf0] }
 0x3cf   :  { %v4625_v58 = vpop.f32.mrf.mxu0  ;;  %v4716_v26 = vpop.f32.mrf.mxu1  ;;  %v7729_v59 = vor.u32 %v8268_v0, %v7726_v14 }
 0x3d0   :  { %v12426_v41 = vadd.f32 %v4625_v58, %v12294_v50  ;;  %v12429_v56 = vadd.f32 %v4716_v26, %v12300_v20 }
 0x3d1   :  { %4575 = vmatmul.bf16.gmra.mxu3 %v8021_v27  ;;  %4664 = vmatmul.bf16.gmra.mxu0 %v7845_v45 }
 0x3d2   :  { %4847 = vmatmul.bf16.gmra.mxu2 %v7553_v10 }
 0x3d4   :  { %v4536_v34 = vpop.f32.mrf.mxu3 }
 0x3d5   :  { %v12438_v9 = vadd.f32 %v4536_v34, %v11913_v25  ;;  %v4808_v50 = vpop.f32.mrf.mxu2  ;;  %v8320_v25 = vld [vmem:[%s14789_s2 + $0x7d8] sm:$0xf0] }
 0x3d6   :  { %v12441_v20 = vadd.f32 %v4808_v50, %v12303_v29  ;;  %v8074_v29 = vld [vmem:[%s14789_s2 + $0x2c] sm:$0xf]  ;;  %v7905_v44 = vor.u32 %v8320_v25, %v7904_v2 }
 0x3d7   :  { %v4627_v19 = vpop.f32.mrf.mxu0  ;;  %v4719_v52 = vpop.f32.mrf.mxu1 }
 0x3d8   :  { %v12444_v60 = vadd.f32 %v4627_v19, %v12324_v8  ;;  %v12447_v24 = vadd.f32 %v4719_v52, %v12330_v62  ;;  %v6954_v8 = vld [vmem:[%s14789_s2 + $0x64] sm:$0xf0]  ;;  %v7612_v62 = vld [vmem:[%s14789_s2 + $0x550] sm:$0xf]  ;;  %v7964_v19 = vld [vmem:[%s14789_s2 + $0x818] sm:$0xf] }
 0x3d9   :  { %4758 = vmatmul.bf16.gmra.mxu1 %v7729_v59  ;;  %v6957_v48 = vor.u32 %v8074_v29, %v6954_v8  ;;  %v7613_v37 = vor.u32 %v8246_v28, %v7612_v62  ;;  %v8261_v52 = vld [vmem:[%s14789_s2 + $0x600] sm:$0xf0] }
 0x3dc   :  { %v4538_v7 = vpop.f32.mrf.mxu3 }
 0x3dd   :  { %v12468_v21 = vadd.f32 %v4538_v7, %v11943_v15  ;;  %v4810_v1 = vpop.f32.mrf.mxu2  ;;  %v8283_v15 = vld [vmem:[%s14789_s2 + $0x6b4] sm:$0xf] }
 0x3de   :  { %v12471_v42 = vadd.f32 %v4810_v1, %v12333_v16  ;;  %v7786_v16 = vld [vmem:[%s14789_s2 + $0x6ec] sm:$0xf0] }
 0x3df   :  { %v4630_v13 = vpop.f32.mrf.mxu0  ;;  %v4721_v27 = vpop.f32.mrf.mxu1  ;;  %v7789_v0 = vor.u32 %v8283_v15, %v7786_v16 }
 0x3e0   :  { %v12474_v45 = vadd.f32 %v4630_v13, %v12342_v49  ;;  %v12477_v10 = vadd.f32 %v4721_v27, %v12348_v57 }
 0x3e1   :  { %4669 = vmatmul.bf16.gmra.mxu0 %v7905_v44  ;;  %4901 = vmatmul.bf16.vlgmr.msrb.gmra.mxu3 %v6957_v48 }
 0x3e2   :  { %4852 = vmatmul.bf16.gmra.mxu2 %v7613_v37 }
 0x3e4   :  { %v4541_v58 = vpop.f32.mrf.mxu3 }
 0x3e5   :  { %v12486_v26 = vadd.f32 %v4541_v58, %v11961_v6  ;;  %v4813_v49 = vpop.f32.mrf.mxu2  ;;  %v8335_v6 = vld [vmem:[%s14789_s2 + $0x850] sm:$0xf0] }
 0x3e6   :  { %v12489_v57 = vadd.f32 %v4813_v49, %v12351_v30  ;;  %v8089_v30 = vld [vmem:[%s14789_s2 + $0xa4] sm:$0xf]  ;;  %v7965_v8 = vor.u32 %v8335_v6, %v7964_v19 }
 0x3e7   :  { %v4632_v14 = vpop.f32.mrf.mxu0  ;;  %v4724_v34 = vpop.f32.mrf.mxu1 }
 0x3e8   :  { %v12492_v50 = vadd.f32 %v4632_v14, %v12372_v54  ;;  %v12495_v59 = vadd.f32 %v4724_v34, %v12378_v5  ;;  %v7014_v54 = vld [vmem:[%s14789_s2 + $0xdc] sm:$0xf0]  ;;  %v7672_v5 = vld [vmem:[%s14789_s2 + $0x5c8] sm:$0xf]  ;;  %v8024_v14 = vld [vmem:[%s14789_s2 + $0x890] sm:$0xf] }
 0x3e9   :  { %4763 = vmatmul.bf16.gmra.mxu1 %v7789_v0  ;;  %v7017_v62 = vor.u32 %v8089_v30, %v7014_v54  ;;  %v7673_v7 = vor.u32 %v8261_v52, %v7672_v5  ;;  %v8276_v34 = vld [vmem:[%s14789_s2 + $0x678] sm:$0xf0] }
 0x3ec   :  { %v4543_v2 = vpop.f32.mrf.mxu3 }
 0x3ed   :  { %v12516_v25 = vadd.f32 %v4543_v2, %v11991_v55  ;;  %v4815_v29 = vpop.f32.mrf.mxu2  ;;  %v8298_v55 = vld [vmem:[%s14789_s2 + $0x72c] sm:$0xf] }
 0x3ee   :  { %v12519_v28 = vadd.f32 %v4815_v29, %v12381_v11  ;;  %v7846_v11 = vld [vmem:[%s14789_s2 + $0x764] sm:$0xf0] }
 0x3ef   :  { %v4635_v1 = vpop.f32.mrf.mxu0  ;;  %v4726_v44 = vpop.f32.mrf.mxu1  ;;  %v7849_v15 = vor.u32 %v8298_v55, %v7846_v11 }
 0x3f0   :  { %v12522_v48 = vadd.f32 %v4635_v1, %v12390_v33  ;;  %v12525_v37 = vadd.f32 %v4726_v44, %v12396_v39 }
 0x3f1   :  { %4674 = vmatmul.bf16.gmra.mxu0 %v7965_v8  ;;  %4906 = vmatmul.bf16.gmra.mxu3 %v7017_v62 }
 0x3f2   :  { %4857 = vmatmul.bf16.gmra.mxu2 %v7673_v7 }
 0x3f4   :  { %v4546_v13 = vpop.f32.mrf.mxu3 }
 0x3f5   :  { %v12534_v27 = vadd.f32 %v4546_v13, %v12009_v38  ;;  %v4818_v33 = vpop.f32.mrf.mxu2  ;;  %v8350_v38 = vld [vmem:[%s14789_s2 + $0x8c8] sm:$0xf0] }
 0x3f6   :  { %v12537_v39 = vadd.f32 %v4818_v33, %v12399_v22  ;;  %v8104_v22 = vld [vmem:[%s14789_s2 + $0x11c] sm:$0xf]  ;;  %v8025_v54 = vor.u32 %v8350_v38, %v8024_v14 }
 0x3f7   :  { %v4637_v16 = vpop.f32.mrf.mxu0  ;;  %v4729_v58 = vpop.f32.mrf.mxu1 }
 0x3f8   :  { %v12540_v49 = vadd.f32 %v4637_v16, %v12420_v36  ;;  %v12543_v0 = vadd.f32 %v4729_v58, %v12426_v41  ;;  %v7074_v36 = vld [vmem:[%s14789_s2 + $0x154] sm:$0xf0]  ;;  %v7732_v41 = vld [vmem:[%s14789_s2 + $0x640] sm:$0xf]  ;;  %v8119_v16 = vld [vmem:[%s14789_s2 + $0x194] sm:$0xf] }
 0x3f9   :  { %4768 = vmatmul.bf16.gmra.mxu1 %v7849_v15  ;;  %v7077_v5 = vor.u32 %v8104_v22, %v7074_v36  ;;  %v7733_v2 = vor.u32 %v8276_v34, %v7732_v41  ;;  %v8291_v58 = vld [vmem:[%s14789_s2 + $0x6f0] sm:$0xf0] }
 0x3fc   :  { %v4548_v19 = vpop.f32.mrf.mxu3 }
 0x3fd   :  { %v12564_v6 = vadd.f32 %v4548_v19, %v12039_v40  ;;  %v4820_v30 = vpop.f32.mrf.mxu2  ;;  %v8313_v40 = vld [vmem:[%s14789_s2 + $0x7a4] sm:$0xf] }
 0x3fe   :  { %v12567_v52 = vadd.f32 %v4820_v30, %v12429_v56  ;;  %v7906_v56 = vld [vmem:[%s14789_s2 + $0x7dc] sm:$0xf0] }
 0x3ff   :  { %v4640_v29 = vpop.f32.mrf.mxu0  ;;  %v4731_v8 = vpop.f32.mrf.mxu1  ;;  %v7909_v55 = vor.u32 %v8313_v40, %v7906_v56 }
 0x400   :  { %v12570_v62 = vadd.f32 %v4640_v29, %v12438_v9  ;;  %v12573_v7 = vadd.f32 %v4731_v8, %v12444_v60 }
 0x401   :  { %4679 = vmatmul.bf16.gmra.mxu0 %v8025_v54  ;;  %4911 = vmatmul.bf16.gmra.mxu3 %v7077_v5 }
 0x402   :  { %4862 = vmatmul.bf16.gmra.mxu2 %v7733_v2 }
 0x404   :  { %v4551_v1 = vpop.f32.mrf.mxu3 }
 0x405   :  { %v12582_v44 = vadd.f32 %v4551_v1, %v12057_v31  ;;  %v4823_v9 = vpop.f32.mrf.mxu2  ;;  %v7134_v31 = vld [vmem:[%s14789_s2 + $0x1cc] sm:$0xf0] }
 0x406   :  { %v12585_v60 = vadd.f32 %v4823_v9, %v12447_v24  ;;  %v6960_v24 = vld [vmem:[%s14789_s2 + $0x30] sm:$0xf]  ;;  %v7137_v36 = vor.u32 %v8119_v16, %v7134_v31 }
 0x407   :  { %v4642_v11 = vpop.f32.mrf.mxu0  ;;  %v4734_v13 = vpop.f32.mrf.mxu1 }
 0x408   :  { %v12588_v33 = vadd.f32 %v4642_v11, %v12468_v21  ;;  %v12591_v15 = vadd.f32 %v4734_v13, %v12474_v45  ;;  %v8082_v21 = vld [vmem:[%s14789_s2 + $0x68] sm:$0xf0]  ;;  %v7792_v45 = vld [vmem:[%s14789_s2 + $0x6b8] sm:$0xf] }
 0x409   :  { %4773 = vmatmul.bf16.gmra.mxu1 %v7909_v55  ;;  %v6961_v41 = vor.u32 %v8082_v21, %v6960_v24  ;;  %v7793_v19 = vor.u32 %v8291_v58, %v7792_v45  ;;  %v8134_v11 = vld [vmem:[%s14789_s2 + $0x20c] sm:$0xf] }
 0x40a   :  { %v8306_v13 = vld [vmem:[%s14789_s2 + $0x768] sm:$0xf0] }
 0x40c   :  { %v4553_v14 = vpop.f32.mrf.mxu3 }
 0x40d   :  { %v12612_v38 = vadd.f32 %v4553_v14, %v12087_v61  ;;  %v4825_v22 = vpop.f32.mrf.mxu2  ;;  %v8328_v61 = vld [vmem:[%s14789_s2 + $0x81c] sm:$0xf] }
 0x40e   :  { %v12615_v34 = vadd.f32 %v4825_v22, %v12477_v10  ;;  %v7966_v10 = vld [vmem:[%s14789_s2 + $0x854] sm:$0xf0] }
 0x40f   :  { %v4645_v30 = vpop.f32.mrf.mxu0  ;;  %v4736_v54 = vpop.f32.mrf.mxu1  ;;  %v7969_v40 = vor.u32 %v8328_v61, %v7966_v10 }
 0x410   :  { %v12618_v5 = vadd.f32 %v4645_v30, %v12486_v26  ;;  %v12621_v2 = vadd.f32 %v4736_v54, %v12492_v50 }
 0x411   :  { %4916 = vmatmul.bf16.gmra.mxu3 %v7137_v36  ;;  %5005 = vmatmul.bf16.vlgmr.msrb.gmra.mxu0 %v6961_v41 }
 0x412   :  { %4867 = vmatmul.bf16.gmra.mxu2 %v7793_v19 }
 0x414   :  { %v4556_v29 = vpop.f32.mrf.mxu3 }
 0x415   :  { %v12630_v8 = vadd.f32 %v4556_v29, %v12105_v51  ;;  %v4828_v26 = vpop.f32.mrf.mxu2  ;;  %v7194_v51 = vld [vmem:[%s14789_s2 + $0x244] sm:$0xf0] }
 0x416   :  { %v12633_v50 = vadd.f32 %v4828_v26, %v12495_v59  ;;  %v7020_v59 = vld [vmem:[%s14789_s2 + $0xa8] sm:$0xf]  ;;  %v7197_v21 = vor.u32 %v8134_v11, %v7194_v51 }
 0x417   :  { %v4647_v56 = vpop.f32.mrf.mxu0  ;;  %v4739_v1 = vpop.f32.mrf.mxu1 }
 0x418   :  { %v12636_v9 = vadd.f32 %v4647_v56, %v12516_v25  ;;  %v12639_v55 = vadd.f32 %v4739_v1, %v12522_v48  ;;  %v8097_v25 = vld [vmem:[%s14789_s2 + $0xe0] sm:$0xf0]  ;;  %v7852_v48 = vld [vmem:[%s14789_s2 + $0x730] sm:$0xf] }
 0x419   :  { %4778 = vmatmul.bf16.gmra.mxu1 %v7969_v40  ;;  %v7021_v45 = vor.u32 %v8097_v25, %v7020_v59  ;;  %v7853_v14 = vor.u32 %v8306_v13, %v7852_v48  ;;  %v8149_v56 = vld [vmem:[%s14789_s2 + $0x284] sm:$0xf] }
 0x41a   :  { %v8321_v1 = vld [vmem:[%s14789_s2 + $0x7e0] sm:$0xf0] }
 0x41c   :  { %v4558_v16 = vpop.f32.mrf.mxu3 }
 0x41d   :  { %v12660_v31 = vadd.f32 %v4558_v16, %v12135_v63  ;;  %v4830_v24 = vpop.f32.mrf.mxu2  ;;  %v8343_v63 = vld [vmem:[%s14789_s2 + $0x894] sm:$0xf] }
 0x41e   :  { %v12663_v58 = vadd.f32 %v4830_v24, %v12525_v37  ;;  %v8026_v37 = vld [vmem:[%s14789_s2 + $0x8cc] sm:$0xf0] }
 0x41f   :  { %v4650_v22 = vpop.f32.mrf.mxu0  ;;  %v4741_v36 = vpop.f32.mrf.mxu1  ;;  %v8029_v61 = vor.u32 %v8343_v63, %v8026_v37 }
 0x420   :  { %v12666_v41 = vadd.f32 %v4650_v22, %v12534_v27  ;;  %v12669_v19 = vadd.f32 %v4741_v36, %v12540_v49 }
 0x421   :  { %4921 = vmatmul.bf16.gmra.mxu3 %v7197_v21  ;;  %5010 = vmatmul.bf16.gmra.mxu0 %v7021_v45 }
 0x422   :  { %4872 = vmatmul.bf16.gmra.mxu2 %v7853_v14 }
 0x424   :  { %v4561_v30 = vpop.f32.mrf.mxu3 }
 0x425   :  { %v12678_v54 = vadd.f32 %v4561_v30, %v12153_v46  ;;  %v4833_v27 = vpop.f32.mrf.mxu2  ;;  %v7254_v46 = vld [vmem:[%s14789_s2 + $0x2bc] sm:$0xf0] }
 0x426   :  { %v12681_v49 = vadd.f32 %v4833_v27, %v12543_v0  ;;  %v7080_v0 = vld [vmem:[%s14789_s2 + $0x120] sm:$0xf]  ;;  %v7257_v25 = vor.u32 %v8149_v56, %v7254_v46 }
 0x427   :  { %v4652_v10 = vpop.f32.mrf.mxu0  ;;  %v4744_v29 = vpop.f32.mrf.mxu1 }
 0x428   :  { %v12684_v26 = vadd.f32 %v4652_v10, %v12564_v6  ;;  %v12687_v40 = vadd.f32 %v4744_v29, %v12570_v62  ;;  %v8112_v6 = vld [vmem:[%s14789_s2 + $0x158] sm:$0xf0]  ;;  %v7912_v62 = vld [vmem:[%s14789_s2 + $0x7a8] sm:$0xf] }
 0x429   :  { %4783 = vmatmul.bf16.gmra.mxu1 %v8029_v61  ;;  %v7081_v48 = vor.u32 %v8112_v6, %v7080_v0  ;;  %v7913_v16 = vor.u32 %v8321_v1, %v7912_v62  ;;  %v8164_v10 = vld [vmem:[%s14789_s2 + $0x2fc] sm:$0xf] }
 0x42a   :  { %v8336_v29 = vld [vmem:[%s14789_s2 + $0x858] sm:$0xf0] }
 0x42c   :  { %v4563_v11 = vpop.f32.mrf.mxu3 }
 0x42d   :  { %v12708_v51 = vadd.f32 %v4563_v11, %v12183_v43  ;;  %v4835_v59 = vpop.f32.mrf.mxu2  ;;  %v8075_v43 = vld [vmem:[%s14789_s2 + $0x34] sm:$0xf] }
 0x42e   :  { %v12711_v13 = vadd.f32 %v4835_v59, %v12573_v7  ;;  %v6962_v7 = vld [vmem:[%s14789_s2 + $0x6c] sm:$0xf0] }
 0x42f   :  { %v4655_v24 = vpop.f32.mrf.mxu0  ;;  %v4746_v21 = vpop.f32.mrf.mxu1  ;;  %v6965_v63 = vor.u32 %v8075_v43, %v6962_v7 }
 0x430   :  { %v12714_v45 = vadd.f32 %v4655_v24, %v12582_v44  ;;  %v12717_v14 = vadd.f32 %v4746_v21, %v12588_v33 }
 0x431   :  { %4926 = vmatmul.bf16.gmra.mxu3 %v7257_v25  ;;  %5015 = vmatmul.bf16.gmra.mxu0 %v7081_v48 }
 0x432   :  { %4877 = vmatmul.bf16.gmra.mxu2 %v7913_v16 }
 0x434   :  { %v4566_v22 = vpop.f32.mrf.mxu3 }
 0x435   :  { %v12726_v36 = vadd.f32 %v4566_v22, %v12201_v47  ;;  %v4838_v44 = vpop.f32.mrf.mxu2  ;;  %v7314_v47 = vld [vmem:[%s14789_s2 + $0x334] sm:$0xf0] }
 0x436   :  { %v12729_v33 = vadd.f32 %v4838_v44, %v12591_v15  ;;  %v7140_v15 = vld [vmem:[%s14789_s2 + $0x198] sm:$0xf]  ;;  %v7317_v6 = vor.u32 %v8164_v10, %v7314_v47 }
 0x437   :  { %v4657_v37 = vpop.f32.mrf.mxu0  ;;  %v4749_v30 = vpop.f32.mrf.mxu1 }
 0x438   :  { %v12732_v27 = vadd.f32 %v4657_v37, %v12612_v38  ;;  %v12735_v61 = vadd.f32 %v4749_v30, %v12618_v5  ;;  %v8127_v38 = vld [vmem:[%s14789_s2 + $0x1d0] sm:$0xf0]  ;;  %v7972_v5 = vld [vmem:[%s14789_s2 + $0x820] sm:$0xf] }
 0x439   :  { %5109 = vmatmul.bf16.vlgmr.msrb.gmra.mxu1 %v6965_v63  ;;  %v7141_v62 = vor.u32 %v8127_v38, %v7140_v15  ;;  %v7973_v11 = vor.u32 %v8336_v29, %v7972_v5  ;;  %v8179_v37 = vld [vmem:[%s14789_s2 + $0x374] sm:$0xf] }
 0x43a   :  { %v8351_v30 = vld [vmem:[%s14789_s2 + $0x8d0] sm:$0xf0] }
 0x43c   :  { %v4568_v56 = vpop.f32.mrf.mxu3 }
 0x43d   :  { %v12756_v46 = vadd.f32 %v4568_v56, %v12231_v4  ;;  %v4840_v0 = vpop.f32.mrf.mxu2  ;;  %v8090_v4 = vld [vmem:[%s14789_s2 + $0xac] sm:$0xf] }
 0x43e   :  { %v12759_v1 = vadd.f32 %v4840_v0, %v12621_v2  ;;  %v7022_v2 = vld [vmem:[%s14789_s2 + $0xe4] sm:$0xf0] }
 0x43f   :  { %v4660_v59 = vpop.f32.mrf.mxu0  ;;  %v4751_v25 = vpop.f32.mrf.mxu1  ;;  %v7025_v43 = vor.u32 %v8090_v4, %v7022_v2 }
 0x440   :  { %v12762_v48 = vadd.f32 %v4660_v59, %v12630_v8  ;;  %v12765_v16 = vadd.f32 %v4751_v25, %v12636_v9 }
 0x441   :  { %4931 = vmatmul.bf16.gmra.mxu3 %v7317_v6  ;;  %5020 = vmatmul.bf16.gmra.mxu0 %v7141_v62 }
 0x442   :  { %4882 = vmatmul.bf16.gmra.mxu2 %v7973_v11 }
 0x444   :  { %v4571_v24 = vpop.f32.mrf.mxu3 }
 0x445   :  { %v12774_v21 = vadd.f32 %v4571_v24, %v12249_v12  ;;  %v4843_v8 = vpop.f32.mrf.mxu2  ;;  %v7374_v12 = vld [vmem:[%s14789_s2 + $0x3ac] sm:$0xf0] }
 0x446   :  { %v12777_v9 = vadd.f32 %v4843_v8, %v12639_v55  ;;  %v7200_v55 = vld [vmem:[%s14789_s2 + $0x210] sm:$0xf]  ;;  %v7377_v38 = vor.u32 %v8179_v37, %v7374_v12 }
 0x447   :  { %v4662_v7 = vpop.f32.mrf.mxu0  ;;  %v4754_v22 = vpop.f32.mrf.mxu1 }
 0x448   :  { %v12780_v44 = vadd.f32 %v4662_v7, %v12660_v31  ;;  %v12783_v63 = vadd.f32 %v4754_v22, %v12666_v41  ;;  %v8142_v31 = vld [vmem:[%s14789_s2 + $0x248] sm:$0xf0]  ;;  %v8032_v41 = vld [vmem:[%s14789_s2 + $0x898] sm:$0xf]  ;;  %v8083_v22 = vld [vmem:[%s14789_s2 + $0x70] sm:$0xf0] }
 0x449   :  { %5114 = vmatmul.bf16.gmra.mxu1 %v7025_v43  ;;  %v7201_v5 = vor.u32 %v8142_v31, %v7200_v55  ;;  %v8033_v56 = vor.u32 %v8351_v30, %v8032_v41  ;;  %v8194_v7 = vld [vmem:[%s14789_s2 + $0x3ec] sm:$0xf] }
 0x44c   :  { %v4573_v10 = vpop.f32.mrf.mxu3 }
 0x44d   :  { %v12804_v47 = vadd.f32 %v4573_v10, %v12279_v17  ;;  %v4845_v15 = vpop.f32.mrf.mxu2  ;;  %v8105_v17 = vld [vmem:[%s14789_s2 + $0x124] sm:$0xf] }
 0x44e   :  { %v12807_v29 = vadd.f32 %v4845_v15, %v12669_v19  ;;  %v7082_v19 = vld [vmem:[%s14789_s2 + $0x15c] sm:$0xf0] }
 0x44f   :  { %v4665_v0 = vpop.f32.mrf.mxu0  ;;  %v4756_v6 = vpop.f32.mrf.mxu1  ;;  %v7085_v4 = vor.u32 %v8105_v17, %v7082_v19 }
 0x450   :  { %v12810_v62 = vadd.f32 %v4665_v0, %v12678_v54  ;;  %v12813_v11 = vadd.f32 %v4756_v6, %v12684_v26 }
 0x451   :  { %4936 = vmatmul.bf16.gmra.mxu3 %v7377_v38  ;;  %5025 = vmatmul.bf16.gmra.mxu0 %v7201_v5 }
 0x452   :  { %4887 = vmatmul.bf16.gmra.mxu2 %v8033_v56 }
 0x454   :  { %v4576_v59 = vpop.f32.mrf.mxu3 }
 0x455   :  { %v12822_v25 = vadd.f32 %v4576_v59, %v12297_v35  ;;  %v4848_v54 = vpop.f32.mrf.mxu2  ;;  %v7434_v35 = vld [vmem:[%s14789_s2 + $0x424] sm:$0xf0] }
 0x456   :  { %v12825_v26 = vadd.f32 %v4848_v54, %v12687_v40  ;;  %v7260_v40 = vld [vmem:[%s14789_s2 + $0x288] sm:$0xf]  ;;  %v7437_v31 = vor.u32 %v8194_v7, %v7434_v35 }
 0x457   :  { %v4667_v2 = vpop.f32.mrf.mxu0  ;;  %v4759_v24 = vpop.f32.mrf.mxu1 }
 0x458   :  { %v12828_v8 = vadd.f32 %v4667_v2, %v12708_v51  ;;  %v12831_v43 = vadd.f32 %v4759_v24, %v12714_v45  ;;  %v8157_v51 = vld [vmem:[%s14789_s2 + $0x2c0] sm:$0xf0]  ;;  %v6968_v45 = vld [vmem:[%s14789_s2 + $0x38] sm:$0xf]  ;;  %v8098_v24 = vld [vmem:[%s14789_s2 + $0xe8] sm:$0xf0] }
 0x459   :  { %5119 = vmatmul.bf16.gmra.mxu1 %v7085_v4  ;;  %v7261_v41 = vor.u32 %v8157_v51, %v7260_v40  ;;  %v6969_v10 = vor.u32 %v8083_v22, %v6968_v45  ;;  %v8209_v2 = vld [vmem:[%s14789_s2 + $0x464] sm:$0xf] }
 0x45c   :  { %v4578_v37 = vpop.f32.mrf.mxu3 }
 0x45d   :  { %v12852_v12 = vadd.f32 %v4578_v37, %v12327_v53  ;;  %v4850_v55 = vpop.f32.mrf.mxu2  ;;  %v8120_v53 = vld [vmem:[%s14789_s2 + $0x19c] sm:$0xf] }
 0x45e   :  { %v12855_v30 = vadd.f32 %v4850_v55, %v12717_v14  ;;  %v7142_v14 = vld [vmem:[%s14789_s2 + $0x1d4] sm:$0xf0] }
 0x45f   :  { %v4670_v15 = vpop.f32.mrf.mxu0  ;;  %v4761_v38 = vpop.f32.mrf.mxu1  ;;  %v7145_v17 = vor.u32 %v8120_v53, %v7142_v14 }
 0x460   :  { %v12858_v5 = vadd.f32 %v4670_v15, %v12726_v36  ;;  %v12861_v56 = vadd.f32 %v4761_v38, %v12732_v27 }
 0x461   :  { %4941 = vmatmul.bf16.gmra.mxu3 %v7437_v31  ;;  %5030 = vmatmul.bf16.gmra.mxu0 %v7261_v41 }
 0x462   :  { %8050 = vmatmul.msk.bf16.vlgmr.msrb.gmra.mxu2 %vm3691_vm0, %v6969_v10 }
 0x464   :  { %v4902_v0 = vpop.f32.mrf.mxu3 }
 0x465   :  { %v4853_v6 = vpop.f32.mrf.mxu2  ;;  %v12871_v36 = vadd.f32 %v4902_v0, %v12345_v3  ;;  %v7494_v3 = vld [vmem:[%s14789_s2 + $0x49c] sm:$0xf0] }
 0x466   :  { %v12874_v27 = vadd.f32 %v4853_v6, %v12735_v61  ;;  %v7320_v61 = vld [vmem:[%s14789_s2 + $0x300] sm:$0xf]  ;;  %v7497_v51 = vor.u32 %v8209_v2, %v7494_v3 }
 0x467   :  { %v4672_v19 = vpop.f32.mrf.mxu0  ;;  %v4764_v59 = vpop.f32.mrf.mxu1 }
 0x468   :  { %v12877_v54 = vadd.f32 %v4672_v19, %v12756_v46  ;;  %v12880_v4 = vadd.f32 %v4764_v59, %v12762_v48  ;;  %v8172_v46 = vld [vmem:[%s14789_s2 + $0x338] sm:$0xf0]  ;;  %v7028_v48 = vld [vmem:[%s14789_s2 + $0xb0] sm:$0xf]  ;;  %v8113_v59 = vld [vmem:[%s14789_s2 + $0x160] sm:$0xf0] }
 0x469   :  { %5124 = vmatmul.bf16.gmra.mxu1 %v7145_v17  ;;  %v7321_v45 = vor.u32 %v8172_v46, %v7320_v61  ;;  %v7029_v37 = vor.u32 %v8098_v24, %v7028_v48  ;;  %v8224_v19 = vld [vmem:[%s14789_s2 + $0x4dc] sm:$0xf] }
 0x46c   :  { %v4904_v7 = vpop.f32.mrf.mxu3 }
 0x46d   :  { %v4855_v35 = vpop.f32.mrf.mxu2  ;;  %v12901_v40 = vadd.f32 %v4904_v7, %v12375_v18  ;;  %v8135_v18 = vld [vmem:[%s14789_s2 + $0x214] sm:$0xf] }
 0x46e   :  { %v12904_v22 = vadd.f32 %v4855_v35, %v12765_v16  ;;  %v7202_v16 = vld [vmem:[%s14789_s2 + $0x24c] sm:$0xf0] }
 0x46f   :  { %v4675_v55 = vpop.f32.mrf.mxu0  ;;  %v4766_v31 = vpop.f32.mrf.mxu1  ;;  %v7205_v53 = vor.u32 %v8135_v18, %v7202_v16 }
 0x470   :  { %v12907_v41 = vadd.f32 %v4675_v55, %v12774_v21  ;;  %v12910_v10 = vadd.f32 %v4766_v31, %v12780_v44 }
 0x471   :  { %4946 = vmatmul.bf16.gmra.mxu3 %v7497_v51  ;;  %5035 = vmatmul.bf16.gmra.mxu0 %v7321_v45 }
 0x472   :  { %8051 = vmatmul.msk.bf16.gmra.mxu2 %vm3691_vm0, %v7029_v37 }
 0x474   :  { %v4907_v15 = vpop.f32.mrf.mxu3 }
 0x475   :  { %v4858_v38 = vpop.f32.mrf.mxu2  ;;  %v12920_v21 = vadd.f32 %v4907_v15, %v12393_v23  ;;  %v7554_v23 = vld [vmem:[%s14789_s2 + $0x514] sm:$0xf0] }
 0x476   :  { %v12923_v44 = vadd.f32 %v4858_v38, %v12783_v63  ;;  %v7380_v63 = vld [vmem:[%s14789_s2 + $0x378] sm:$0xf]  ;;  %v7557_v46 = vor.u32 %v8224_v19, %v7554_v23 }
 0x477   :  { %v4677_v14 = vpop.f32.mrf.mxu0  ;;  %v4769_v0 = vpop.f32.mrf.mxu1 }
 0x478   :  { %v12926_v6 = vadd.f32 %v4677_v14, %v12804_v47  ;;  %v12929_v17 = vadd.f32 %v4769_v0, %v12810_v62  ;;  %v8187_v47 = vld [vmem:[%s14789_s2 + $0x3b0] sm:$0xf0]  ;;  %v7088_v62 = vld [vmem:[%s14789_s2 + $0x128] sm:$0xf]  ;;  %v8128_v0 = vld [vmem:[%s14789_s2 + $0x1d8] sm:$0xf0] }
 0x479   :  { %5129 = vmatmul.bf16.gmra.mxu1 %v7205_v53  ;;  %v7381_v48 = vor.u32 %v8187_v47, %v7380_v63  ;;  %v7089_v7 = vor.u32 %v8113_v59, %v7088_v62  ;;  %v8239_v14 = vld [vmem:[%s14789_s2 + $0x554] sm:$0xf] }
 0x47c   :  { %v4909_v2 = vpop.f32.mrf.mxu3 }
 0x47d   :  { %v4860_v3 = vpop.f32.mrf.mxu2  ;;  %v12950_v61 = vadd.f32 %v4909_v2, %v12423_v32  ;;  %v8150_v32 = vld [vmem:[%s14789_s2 + $0x28c] sm:$0xf] }
 0x47e   :  { %v12953_v24 = vadd.f32 %v4860_v3, %v12813_v11  ;;  %v7262_v11 = vld [vmem:[%s14789_s2 + $0x2c4] sm:$0xf0] }
 0x47f   :  { %v4680_v35 = vpop.f32.mrf.mxu0  ;;  %v4771_v51 = vpop.f32.mrf.mxu1  ;;  %v7265_v18 = vor.u32 %v8150_v32, %v7262_v11 }
 0x480   :  { %v12956_v45 = vadd.f32 %v4680_v35, %v12822_v25  ;;  %v12959_v37 = vadd.f32 %v4771_v51, %v12828_v8 }
 0x481   :  { %4951 = vmatmul.bf16.gmra.mxu3 %v7557_v46  ;;  %5040 = vmatmul.bf16.gmra.mxu0 %v7381_v48  ;;  %v8165_v48 = vld [vmem:[%s14789_s2 + $0x304] sm:$0xf] }
 0x482   :  { %8052 = vmatmul.msk.bf16.gmra.mxu2 %vm3691_vm0, %v7089_v7 }
 0x484   :  { %v4912_v55 = vpop.f32.mrf.mxu3 }
 0x485   :  { %v4863_v31 = vpop.f32.mrf.mxu2  ;;  %v12969_v25 = vadd.f32 %v4912_v55, %v12441_v20  ;;  %v7614_v20 = vld [vmem:[%s14789_s2 + $0x58c] sm:$0xf0]  ;;  %v8254_v55 = vld [vmem:[%s14789_s2 + $0x5cc] sm:$0xf] }
 0x486   :  { %v12972_v8 = vadd.f32 %v4863_v31, %v12831_v43  ;;  %v7440_v43 = vld [vmem:[%s14789_s2 + $0x3f0] sm:$0xf]  ;;  %v7617_v47 = vor.u32 %v8239_v14, %v7614_v20  ;;  %v7674_v31 = vld [vmem:[%s14789_s2 + $0x604] sm:$0xf0] }
 0x487   :  { %v4682_v16 = vpop.f32.mrf.mxu0  ;;  %v4774_v15 = vpop.f32.mrf.mxu1  ;;  %v7677_v20 = vor.u32 %v8254_v55, %v7674_v31 }
 0x488   :  { %v12975_v38 = vadd.f32 %v4682_v16, %v12852_v12  ;;  %v12978_v53 = vadd.f32 %v4774_v15, %v12858_v5  ;;  %v8202_v12 = vld [vmem:[%s14789_s2 + $0x428] sm:$0xf0]  ;;  %v7148_v5 = vld [vmem:[%s14789_s2 + $0x1a0] sm:$0xf] }
 0x489   :  { %5134 = vmatmul.bf16.gmra.mxu1 %v7265_v18  ;;  %v7441_v62 = vor.u32 %v8202_v12, %v7440_v43  ;;  %v7149_v2 = vor.u32 %v8128_v0, %v7148_v5  ;;  %v8143_v18 = vld [vmem:[%s14789_s2 + $0x250] sm:$0xf0] }
 0x48c   :  { %v4914_v19 = vpop.f32.mrf.mxu3 }
 0x48d   :  { %v4865_v23 = vpop.f32.mrf.mxu2  ;;  %v12999_v63 = vadd.f32 %v4914_v19, %v12471_v42  ;;  %v7322_v42 = vld [vmem:[%s14789_s2 + $0x33c] sm:$0xf0] }
 0x48e   :  { %v13002_v59 = vadd.f32 %v4865_v23, %v12861_v56  ;;  %v7325_v51 = vor.u32 %v8165_v48, %v7322_v42  ;;  %v8180_v23 = vld [vmem:[%s14789_s2 + $0x37c] sm:$0xf]  ;;  %v8269_v42 = vld [vmem:[%s14789_s2 + $0x644] sm:$0xf] }
 0x48f   :  { %v4776_v3 = vpop.f32.mrf.mxu1 }
 0x490   :  { %v13005_v46 = vadd.f32 %v4776_v3, %v12877_v54 }
 0x491   :  { %4956 = vmatmul.bf16.gmra.mxu3 %v7617_v47  ;;  %5045 = vmatmul.bf16.gmra.mxu0 %v7441_v62 }
 0x492   :  { %8053 = vmatmul.msk.bf16.gmra.mxu2 %vm3691_vm0, %v7149_v2 }
 0x494   :  { %v4917_v7 = vpop.f32.mrf.mxu3 }
 0x495   :  { %v4868_v56 = vpop.f32.mrf.mxu2  ;;  %v13015_v35 = vadd.f32 %v4917_v7, %v12489_v57  ;;  %v7500_v57 = vld [vmem:[%s14789_s2 + $0x468] sm:$0xf]  ;;  %v7734_v7 = vld [vmem:[%s14789_s2 + $0x67c] sm:$0xf0] }
 0x496   :  { %v13018_v54 = vadd.f32 %v4868_v56, %v12880_v4  ;;  %v8217_v4 = vld [vmem:[%s14789_s2 + $0x4a0] sm:$0xf0]  ;;  %v8158_v56 = vld [vmem:[%s14789_s2 + $0x2c8] sm:$0xf0]  ;;  %v7737_v31 = vor.u32 %v8269_v42, %v7734_v7 }
 0x497   :  { %v4779_v32 = vpop.f32.mrf.mxu1  ;;  %v7501_v43 = vor.u32 %v8217_v4, %v7500_v57 }
 0x498   :  { %v13021_v11 = vadd.f32 %v4779_v32, %v12907_v41  ;;  %v7208_v41 = vld [vmem:[%s14789_s2 + $0x218] sm:$0xf] }
 0x499   :  { %5139 = vmatmul.bf16.gmra.mxu1 %v7325_v51  ;;  %v7209_v5 = vor.u32 %v8143_v18, %v7208_v41  ;;  %v13090_v18 = vpop.f32.mrf.mxu0 }
 0x49c   :  { %v4919_v16 = vpop.f32.mrf.mxu3 }
 0x49d   :  { %v4870_v15 = vpop.f32.mrf.mxu2  ;;  %v13042_v14 = vadd.f32 %v4919_v16, %v12519_v28  ;;  %v7382_v28 = vld [vmem:[%s14789_s2 + $0x3b4] sm:$0xf0] }
 0x49e   :  { %v13045_v12 = vadd.f32 %v4870_v15, %v12910_v10  ;;  %v7385_v2 = vor.u32 %v8180_v23, %v7382_v28  ;;  %v8284_v28 = vld [vmem:[%s14789_s2 + $0x6bc] sm:$0xf] }
 0x49f   :  { %v4781_v0 = vpop.f32.mrf.mxu1 }
 0x4a0   :  { %v13048_v19 = vadd.f32 %v4781_v0, %v12926_v6 }
 0x4a1   :  { %4961 = vmatmul.bf16.gmra.mxu3 %v7677_v20  ;;  %5050 = vmatmul.bf16.gmra.mxu0 %v7501_v43  ;;  %v13108_v23 = vpop.f32.mrf.mxu0 }
 0x4a2   :  { %8054 = vmatmul.msk.bf16.gmra.mxu2 %vm3691_vm0, %v7209_v5 }
 0x4a4   :  { %v4922_v47 = vpop.f32.mrf.mxu3 }
 0x4a5   :  { %v4873_v10 = vpop.f32.mrf.mxu2  ;;  %v13058_v62 = vadd.f32 %v4922_v47, %v12537_v39  ;;  %v7560_v39 = vld [vmem:[%s14789_s2 + $0x4e0] sm:$0xf]  ;;  %v7794_v47 = vld [vmem:[%s14789_s2 + $0x6f4] sm:$0xf0] }
 0x4a6   :  { %v13061_v6 = vadd.f32 %v4873_v10, %v12929_v17  ;;  %v8232_v17 = vld [vmem:[%s14789_s2 + $0x518] sm:$0xf0] }
 0x4a7   :  { %v4784_v3 = vpop.f32.mrf.mxu1  ;;  %v7561_v57 = vor.u32 %v8232_v17, %v7560_v39  ;;  %v7797_v17 = vor.u32 %v8284_v28, %v7794_v47  ;;  %v8188_v28 = vld [vmem:[%s14789_s2 + $0x3b8] sm:$0xf0] }
 0x4a8   :  { %v13064_v48 = vadd.f32 %v4784_v3, %v12956_v45  ;;  %v7268_v45 = vld [vmem:[%s14789_s2 + $0x290] sm:$0xf]  ;;  %v8173_v3 = vld [vmem:[%s14789_s2 + $0x340] sm:$0xf0] }
 0x4a9   :  { %5144 = vmatmul.bf16.gmra.mxu1 %v7385_v2  ;;  %v7269_v41 = vor.u32 %v8158_v56, %v7268_v45  ;;  %v7328_v2 = vld [vmem:[%s14789_s2 + $0x308] sm:$0xf] }
 0x4ac   :  { %v4924_v51 = vpop.f32.mrf.mxu3 }
 0x4ad   :  { %v4875_v32 = vpop.f32.mrf.mxu2  ;;  %v13085_v55 = vadd.f32 %v4924_v51, %v12567_v52  ;;  %v8195_v52 = vld [vmem:[%s14789_s2 + $0x3f4] sm:$0xf]  ;;  %v7329_v51 = vor.u32 %v8173_v3, %v7328_v2 }
 0x4ae   :  { %v13088_v4 = vadd.f32 %v4875_v32, %v12959_v37  ;;  %v7442_v37 = vld [vmem:[%s14789_s2 + $0x42c] sm:$0xf0]  ;;  %v8210_v32 = vld [vmem:[%s14789_s2 + $0x46c] sm:$0xf] }
 0x4af   :  { %v4786_v16 = vpop.f32.mrf.mxu1  ;;  %v7445_v0 = vor.u32 %v8195_v52, %v7442_v37 }
 0x4b0   :  { %14855 = vst [vmem:[#allocation10_spill] sm:$0xff] %v13088_v4  ;;  %v13093_v15 = vadd.f32 %v4786_v16, %v12975_v38 }
 0x4b1   :  { %4966 = vmatmul.bf16.gmra.mxu3 %v7737_v31  ;;  %5055 = vmatmul.bf16.gmra.mxu0 %v7561_v57  ;;  %v7502_v31 = vld [vmem:[%s14789_s2 + $0x4a4] sm:$0xf0] }
 0x4b2   :  { %8055 = vmatmul.msk.bf16.gmra.mxu2 %vm3691_vm0, %v7269_v41  ;;  %v7505_v52 = vor.u32 %v8210_v32, %v7502_v31 }
 0x4b4   :  { %v4927_v20 = vpop.f32.mrf.mxu3 }
 0x4b5   :  { %v4878_v43 = vpop.f32.mrf.mxu2  ;;  %v13103_v5 = vadd.f32 %v4927_v20, %v12585_v60  ;;  %v7620_v60 = vld [vmem:[%s14789_s2 + $0x558] sm:$0xf]  ;;  %v8299_v20 = vld [vmem:[%s14789_s2 + $0x734] sm:$0xf] }
 0x4b6   :  { %v13106_v38 = vadd.f32 %v4878_v43, %v12978_v53  ;;  %v8247_v53 = vld [vmem:[%s14789_s2 + $0x590] sm:$0xf0]  ;;  %v7854_v43 = vld [vmem:[%s14789_s2 + $0x76c] sm:$0xf0] }
 0x4b7   :  { %v13122_v10 = vpop.f32.mrf.mxu1  ;;  %v7621_v45 = vor.u32 %v8247_v53, %v7620_v60  ;;  %v7857_v3 = vor.u32 %v8299_v20, %v7854_v43  ;;  %v7914_v20 = vld [vmem:[%s14789_s2 + $0x7e4] sm:$0xf0] }
 0x4b8   :  { %14856 = vst [vmem:[#allocation11_spill] sm:$0xff] %v13106_v38  ;;  %v7740_v43 = vld [vmem:[%s14789_s2 + $0x648] sm:$0xf] }
 0x4b9   :  { %5149 = vmatmul.bf16.gmra.mxu1 %v7445_v0  ;;  %v7680_v0 = vld [vmem:[%s14789_s2 + $0x5d0] sm:$0xf] }
 0x4bc   :  { %v4929_v42 = vpop.f32.mrf.mxu3 }
 0x4bd   :  { %v4880_v7 = vpop.f32.mrf.mxu2  ;;  %v13131_v39 = vadd.f32 %v4929_v42, %v12615_v34  ;;  %v13143_v34 = vpop.f32.mrf.mxu0 }
 0x4be   :  { %v13134_v56 = vadd.f32 %v4880_v7, %v13005_v46 }
 0x4bf   :  { %v13145_v41 = vpop.f32.mrf.mxu1 }
 0x4c0   :  { %14857 = vst [vmem:[#allocation2_spill] sm:$0xff] %v13134_v56 }
 0x4c1   :  { %4971 = vmatmul.bf16.gmra.mxu3 %v7797_v17  ;;  %5060 = vmatmul.bf16.gmra.mxu0 %v7621_v45 }
 0x4c2   :  { %8056 = vmatmul.msk.bf16.gmra.mxu2 %vm3691_vm0, %v7329_v51  ;;  %v8225_v51 = vld [vmem:[%s14789_s2 + $0x4e4] sm:$0xf] }
 0x4c4   :  { %v4932_v57 = vpop.f32.mrf.mxu3 }
 0x4c5   :  { %v4883_v46 = vpop.f32.mrf.mxu2  ;;  %v13148_v16 = vadd.f32 %v4932_v57, %v12633_v50  ;;  %v8262_v50 = vld [vmem:[%s14789_s2 + $0x608] sm:$0xf0]  ;;  %v13171_v60 = vpop.f32.mrf.mxu0 }
 0x4c6   :  { %v13151_v37 = vadd.f32 %v4883_v46, %v13021_v11  ;;  %v7388_v11 = vld [vmem:[%s14789_s2 + $0x380] sm:$0xf]  ;;  %v7681_v42 = vor.u32 %v8262_v50, %v7680_v0  ;;  %v7448_v0 = vld [vmem:[%s14789_s2 + $0x3f8] sm:$0xf]  ;;  %v8203_v50 = vld [vmem:[%s14789_s2 + $0x430] sm:$0xf0] }
 0x4c7   :  { %v7389_v17 = vor.u32 %v8188_v28, %v7388_v11  ;;  %v13179_v45 = vpop.f32.mrf.mxu1 }
 0x4c8   :  { %14858 = vst [vmem:[#allocation3_spill] sm:$0xff] %v13151_v37 }
 0x4c9   :  { %5154 = vmatmul.bf16.gmra.mxu1 %v7505_v52  ;;  %v8314_v52 = vld [vmem:[%s14789_s2 + $0x7ac] sm:$0xf] }
 0x4ca   :  { %v7917_v28 = vor.u32 %v8314_v52, %v7914_v20 }
 0x4cc   :  { %v4934_v47 = vpop.f32.mrf.mxu3 }
 0x4cd   :  { %v4885_v53 = vpop.f32.mrf.mxu2  ;;  %v13174_v2 = vadd.f32 %v4934_v47, %v12663_v58  ;;  %v7562_v58 = vld [vmem:[%s14789_s2 + $0x51c] sm:$0xf0]  ;;  %v13191_v57 = vpop.f32.mrf.mxu0 }
 0x4ce   :  { %v13177_v7 = vadd.f32 %v4885_v53, %v13048_v19  ;;  %v7565_v31 = vor.u32 %v8225_v51, %v7562_v58  ;;  %v8240_v51 = vld [vmem:[%s14789_s2 + $0x55c] sm:$0xf]  ;;  %v7622_v58 = vld [vmem:[%s14789_s2 + $0x594] sm:$0xf0] }
 0x4cf   :  { %v13193_v46 = vpop.f32.mrf.mxu1  ;;  %v7625_v52 = vor.u32 %v8240_v51, %v7622_v58 }
 0x4d0   :  { %14859 = vst [vmem:[#allocation4_spill] sm:$0xff] %v13177_v7 }
 0x4d1   :  { %4976 = vmatmul.bf16.gmra.mxu3 %v7857_v3  ;;  %5065 = vmatmul.bf16.gmra.mxu0 %v7681_v42  ;;  %v7449_v3 = vor.u32 %v8203_v50, %v7448_v0  ;;  %v7800_v50 = vld [vmem:[%s14789_s2 + $0x6c0] sm:$0xf] }
 0x4d2   :  { %8057 = vmatmul.msk.bf16.gmra.mxu2 %vm3691_vm0, %v7389_v17  ;;  %v5007_v17 = vadd.f32 %v13090_v18, %v12871_v36 }
 0x4d5   :  { %v4888_v32 = vpop.f32.mrf.mxu2  ;;  %v13216_v42 = vpop.f32.mrf.mxu0 }
 0x4d6   :  { %v13189_v19 = vadd.f32 %v4888_v32, %v13064_v48  ;;  %v8277_v48 = vld [vmem:[%s14789_s2 + $0x680] sm:$0xf0]  ;;  %v5111_v32 = vadd.f32 %v13122_v10, %v5007_v17  ;;  %v7974_v10 = vld [vmem:[%s14789_s2 + $0x85c] sm:$0xf0] }
 0x4d7   :  { %v7741_v47 = vor.u32 %v8277_v48, %v7740_v43  ;;  %v8329_v43 = vld [vmem:[%s14789_s2 + $0x824] sm:$0xf]  ;;  %v5009_v48 = vadd.f32 %v13108_v23, %v12901_v40  ;;  %v8218_v40 = vld [vmem:[%s14789_s2 + $0x4a8] sm:$0xf0] }
 0x4d8   :  { %14860 = vst [vmem:[#allocation5_spill] sm:$0xff] %v13189_v19  ;;  %v7977_v51 = vor.u32 %v8329_v43, %v7974_v10  ;;  %v8255_v43 = vld [vmem:[%s14789_s2 + $0x5d4] sm:$0xf]  ;;  %v7682_v10 = vld [vmem:[%s14789_s2 + $0x60c] sm:$0xf0] }
 0x4d9   :  { %5159 = vmatmul.bf16.gmra.mxu1 %v7565_v31  ;;  %v5113_v23 = vadd.f32 %v13145_v41, %v5009_v48 }
 0x4dd   :  { %v4890_v11 = vpop.f32.mrf.mxu2 }
 0x4de   :  { %v13214_v53 = vadd.f32 %v4890_v11, %v13093_v15  ;;  %v13227_v15 = vpop.f32.mrf.mxu1  ;;  %v8292_v11 = vld [vmem:[%s14789_s2 + $0x6f8] sm:$0xf0] }
 0x4df   :  { %v7801_v58 = vor.u32 %v8292_v11, %v7800_v50 }
 0x4e0   :  { %14861 = vst [vmem:[#allocation6_spill] sm:$0xff] %v13214_v53 }
 0x4e1   :  { %4981 = vmatmul.bf16.gmra.mxu3 %v7917_v28  ;;  %5070 = vmatmul.bf16.gmra.mxu0 %v7741_v47  ;;  %v13251_v28 = vpop.f32.mrf.mxu0  ;;  %v7508_v47 = vld [vmem:[%s14789_s2 + $0x470] sm:$0xf] }
 0x4e2   :  { %8058 = vmatmul.msk.bf16.gmra.mxu2 %vm3691_vm0, %v7449_v3 }
 0x4e5   :  { %v5214_v31 = vpop.f32.mrf.mxu2 }
 0x4e6   :  { %v13230_v20 = vadd.f32 %v5214_v31, %v5111_v32  ;;  %v13260_v3 = vpop.f32.mrf.mxu1  ;;  %v7509_v31 = vor.u32 %v8218_v40, %v7508_v47  ;;  %v8344_v40 = vld [vmem:[%s14789_s2 + $0x89c] sm:$0xf] }
 0x4e8   :  { %v5310_v36 = vsel %vm5309_vm1, %v13230_v20, 0.0  ;;  %v5462_v18 = vmul.f32 %v13230_v20, %v13230_v20 }
 0x4e9   :  { %5311 = vadd.xlane.f32.xlu0 %v5310_v36  ;;  %5164 = vmatmul.bf16.gmra.mxu1 %v7625_v52  ;;  %v5012_v36 = vadd.f32 %v13143_v34, %v12920_v21  ;;  %v13279_v21 = vpop.f32.mrf.mxu0 }
 0x4ea   :  { %v5500_v0 = vsel %vm5309_vm1, %v5462_v18, 0.0 }
 0x4eb   :  { %5501 = vadd.xlane.f32.xlu1 %v5500_v0  ;;  %v5116_v48 = vadd.f32 %v13179_v45, %v5012_v36  ;;  %v7685_v0 = vor.u32 %v8255_v43, %v7682_v10  ;;  %v8034_v45 = vld [vmem:[%s14789_s2 + $0x8d4] sm:$0xf0] }
 0x4ed   :  { %v5216_v17 = vpop.f32.mrf.mxu2 }
 0x4ee   :  { %v13262_v32 = vadd.f32 %v5216_v17, %v5113_v23  ;;  %v13283_v11 = vpop.f32.mrf.mxu1  ;;  %v5014_v23 = vadd.f32 %v13171_v60, %v12950_v61  ;;  %v8233_v61 = vld [vmem:[%s14789_s2 + $0x520] sm:$0xf0] }
 0x4f0   :  { %v5463_v52 = vmul.f32 %v13262_v32, %v13262_v32  ;;  %v5313_v18 = vsel %vm5309_vm1, %v13262_v32, 0.0  ;;  %v5118_v60 = vadd.f32 %v13193_v46, %v5014_v23  ;;  %v7742_v23 = vld [vmem:[%s14789_s2 + $0x684] sm:$0xf0] }
 0x4f1   :  { %4986 = vmatmul.bf16.gmra.mxu3 %v7977_v51  ;;  %5075 = vmatmul.bf16.gmra.mxu0 %v7801_v58  ;;  %v7860_v58 = vld [vmem:[%s14789_s2 + $0x738] sm:$0xf] }
 0x4f2   :  { %8059 = vmatmul.msk.bf16.gmra.mxu2 %vm3691_vm0, %v7509_v31  ;;  %v5503_v41 = vsel %vm5309_vm1, %v5463_v52, 0.0  ;;  %v8307_v31 = vld [vmem:[%s14789_s2 + $0x770] sm:$0xf0]  ;;  %v7568_v52 = vld [vmem:[%s14789_s2 + $0x4e8] sm:$0xf] }
 0x4f3   :  { %5504 = vadd.xlane.f32.xlu2 %v5503_v41  ;;  %5314 = vadd.xlane.f32.xlu1 %v5313_v18  ;;  %v8037_v41 = vor.u32 %v8344_v40, %v8034_v45  ;;  %v7861_v18 = vor.u32 %v8307_v31, %v7860_v58  ;;  %v7569_v10 = vor.u32 %v8233_v61, %v7568_v52  ;;  %v8270_v45 = vld [vmem:[%s14789_s2 + $0x64c] sm:$0xf] }
 0x4f4   :  { %v5019_v61 = vadd.f32 %v13216_v42, %v12999_v63  ;;  %v8248_v63 = vld [vmem:[%s14789_s2 + $0x598] sm:$0xf0] }
 0x4f5   :  { %v5219_v34 = vpop.f32.mrf.mxu2 }
 0x4f6   :  { %v13281_v50 = vadd.f32 %v5219_v34, %v5116_v48  ;;  %v13313_v48 = vpop.f32.mrf.mxu0  ;;  %v5123_v42 = vadd.f32 %v13260_v3, %v5019_v61 }
 0x4f8   :  { %v5464_v47 = vmul.f32 %v13281_v50, %v13281_v50  ;;  %v5316_v17 = vsel %vm5309_vm1, %v13281_v50, 0.0 }
 0x4f9   :  { %5169 = vmatmul.bf16.gmra.mxu1 %v7685_v0  ;;  %v5127_v0 = vpop.f32.mrf.mxu1 }
 0x4fa   :  { %v5506_v51 = vsel %vm5309_vm1, %v5464_v47, 0.0  ;;  %v5017_v47 = vadd.f32 %v13191_v57, %v12969_v25  ;;  %v7745_v57 = vor.u32 %v8270_v45, %v7742_v23  ;;  %v5022_v23 = vadd.f32 %v13251_v28, %v13015_v35 }
 0x4fb   :  { %5317 = vadd.xlane.f32.xlu2 %v5316_v17  ;;  %5507 = vadd.xlane.f32.xlu0 %v5506_v51 }
 0x4fc   :  { %v5121_v17 = vadd.f32 %v13227_v15, %v5017_v47  ;;  %v7920_v15 = vld [vmem:[%s14789_s2 + $0x7b0] sm:$0xf] }
 0x4fd   :  { %v5221_v36 = vpop.f32.mrf.mxu2 }
 0x4fe   :  { %v13311_v43 = vadd.f32 %v5221_v36, %v5118_v60  ;;  %v13336_v52 = vpop.f32.mrf.mxu0  ;;  %v8322_v36 = vld [vmem:[%s14789_s2 + $0x7e8] sm:$0xf0] }
 0x500   :  { %v5465_v34 = vmul.f32 %v13311_v43, %v13311_v43  ;;  %v5319_v46 = vsel %vm5309_vm1, %v13311_v43, 0.0 }
 0x501   :  { %4991 = vmatmul.bf16.gmra.mxu3 %v8037_v41  ;;  %5080 = vmatmul.bf16.gmra.mxu0 %v7861_v18  ;;  %v5130_v41 = vpop.f32.mrf.mxu1  ;;  %v7628_v18 = vld [vmem:[%s14789_s2 + $0x560] sm:$0xf] }
 0x502   :  { %8060 = vmatmul.msk.bf16.gmra.mxu2 %vm3691_vm0, %v7569_v10  ;;  %v5509_v40 = vsel %vm5309_vm1, %v5465_v34, 0.0  ;;  %v7921_v34 = vor.u32 %v8322_v36, %v7920_v15  ;;  %v5024_v36 = vadd.f32 %v13279_v21, %v13042_v14 }
 0x503   :  { %5320 = vadd.xlane.f32.xlu2 %v5319_v46  ;;  %5510 = vadd.xlane.f32.xlu1 %v5509_v40  ;;  %v7629_v46 = vor.u32 %v8248_v63, %v7628_v18  ;;  %v8337_v63 = vld [vmem:[%s14789_s2 + $0x860] sm:$0xf0] }
 0x504   :  { %v5128_v14 = vadd.f32 %v5127_v0, %v5024_v36 }
 0x505   :  { %v5224_v25 = vpop.f32.mrf.mxu2 }
 0x506   :  { %v13330_v51 = vadd.f32 %v5224_v25, %v5121_v17  ;;  %v8285_v17 = vld [vmem:[%s14789_s2 + $0x6c4] sm:$0xf]  ;;  %v7802_v25 = vld [vmem:[%s14789_s2 + $0x6fc] sm:$0xf0] }
 0x508   :  { %v5322_v58 = vsel %vm5309_vm1, %v13330_v51, 0.0  ;;  %v5466_v31 = vmul.f32 %v13330_v51, %v13330_v51 }
 0x509   :  { %5323 = vadd.xlane.f32.xlu0 %v5322_v58  ;;  %5174 = vmatmul.bf16.gmra.mxu1 %v7745_v57  ;;  %v5031_v57 = vpop.f32.mrf.mxu0  ;;  %v5126_v58 = vadd.f32 %v13283_v11, %v5022_v23  ;;  %v7980_v11 = vld [vmem:[%s14789_s2 + $0x828] sm:$0xf] }
 0x50a   :  { %v5512_v60 = vsel %vm5309_vm1, %v5466_v31, 0.0  ;;  %v5132_v31 = vpop.f32.mrf.mxu1 }
 0x50b   :  { %5513 = vadd.xlane.f32.xlu2 %v5512_v60  ;;  %v7805_v60 = vor.u32 %v8285_v17, %v7802_v25  ;;  %v5027_v25 = vadd.f32 %v13313_v48, %v13058_v62 }
 0x50d   :  { %v5226_v10 = vpop.f32.mrf.mxu2 }
 0x50e   :  { %v13354_v47 = vadd.f32 %v5226_v10, %v5123_v42  ;;  %v7688_v42 = vld [vmem:[%s14789_s2 + $0x5d8] sm:$0xf]  ;;  %v8263_v10 = vld [vmem:[%s14789_s2 + $0x610] sm:$0xf0] }
 0x510   :  { %v5325_v40 = vsel %vm5309_vm1, %v13354_v47, 0.0  ;;  %v5467_v45 = vmul.f32 %v13354_v47, %v13354_v47 }
 0x511   :  { %5326 = vadd.xlane.f32.xlu1 %v5325_v40  ;;  %5085 = vmatmul.bf16.gmra.mxu0 %v7921_v34  ;;  %v5033_v21 = vpop.f32.mrf.mxu0 }
 0x512   :  { %8061 = vmatmul.msk.bf16.gmra.mxu2 %vm3691_vm0, %v7629_v46  ;;  %v5515_v3 = vsel %vm5309_vm1, %v5467_v45, 0.0  ;;  %v7981_v46 = vor.u32 %v8337_v63, %v7980_v11  ;;  %v7689_v45 = vor.u32 %v8263_v10, %v7688_v42  ;;  %v5135_v23 = vpop.f32.mrf.mxu1  ;;  %v5029_v63 = vadd.f32 %v13336_v52, %v13085_v55  ;;  %v8352_v10 = vld [vmem:[%s14789_s2 + $0x8d8] sm:$0xf0] }
 0x513   :  { %5516 = vadd.xlane.f32.xlu0 %v5515_v3 }
 0x514   :  { %v5133_v55 = vadd.f32 %v5132_v31, %v5029_v63 }
 0x515   :  { %v5229_v61 = vpop.f32.mrf.mxu2 }
 0x516   :  { %v13371_v35 = vadd.f32 %v5229_v61, %v5126_v58  ;;  %v8300_v58 = vld [vmem:[%s14789_s2 + $0x73c] sm:$0xf]  ;;  %v7862_v61 = vld [vmem:[%s14789_s2 + $0x774] sm:$0xf0] }
 0x518   :  { %v5328_v28 = vsel %vm5309_vm1, %v13371_v35, 0.0  ;;  %v5468_v15 = vmul.f32 %v13371_v35, %v13371_v35 }
 0x519   :  { %5329 = vadd.xlane.f32.xlu2 %v5328_v28  ;;  %5179 = vmatmul.bf16.gmra.mxu1 %v7805_v60  ;;  %v5131_v60 = vadd.f32 %v5130_v41, %v5027_v25  ;;  %v8040_v41 = vld [vmem:[%s14789_s2 + $0x8a0] sm:$0xf] }
 0x51a   :  { %v5518_v18 = vsel %vm5309_vm1, %v5468_v15, 0.0  ;;  %v7865_v15 = vor.u32 %v8300_v58, %v7862_v61  ;;  %v5137_v11 = vpop.f32.mrf.mxu1  ;;  %v5032_v58 = vadd.f32 %v5031_v57, %v13103_v5  ;;  %v8315_v61 = vld [vmem:[%s14789_s2 + $0x7b4] sm:$0xf] }
 0x51b   :  { %5519 = vadd.xlane.f32.xlu1 %v5518_v18  ;;  %v5036_v18 = vpop.f32.mrf.mxu0 }
 0x51d   :  { %v5231_v34 = vpop.f32.mrf.mxu2 }
 0x51e   :  { %v13392_v40 = vadd.f32 %v5231_v34, %v5128_v14  ;;  %v7748_v14 = vld [vmem:[%s14789_s2 + $0x650] sm:$0xf]  ;;  %v8278_v34 = vld [vmem:[%s14789_s2 + $0x688] sm:$0xf0] }
 0x520   :  { %v5331_v3 = vsel %vm5309_vm1, %v13392_v40, 0.0  ;;  %v5469_v17 = vmul.f32 %v13392_v40, %v13392_v40 }
 0x521   :  { %5332 = vadd.xlane.f32.xlu0 %v5331_v3  ;;  %5090 = vmatmul.bf16.gmra.mxu0 %v7981_v46  ;;  %v8041_v46 = vor.u32 %v8352_v10, %v8040_v41  ;;  %v7749_v3 = vor.u32 %v8278_v34, %v7748_v14  ;;  %v8293_v10 = vld [vmem:[%s14789_s2 + $0x700] sm:$0xf0] }
 0x522   :  { %8062 = vmatmul.msk.bf16.gmra.mxu2 %vm3691_vm0, %v7689_v45  ;;  %v5521_v0 = vsel %vm5309_vm1, %v5469_v17, 0.0 }
 0x523   :  { %5522 = vadd.xlane.f32.xlu2 %v5521_v0  ;;  %v5038_v0 = vpop.f32.mrf.mxu0 }
 0x525   :  { %v5234_v28 = vpop.f32.mrf.mxu2 }
 0x526   :  { %v13408_v36 = vadd.f32 %v5234_v28, %v5131_v60  ;;  %v7922_v60 = vld [vmem:[%s14789_s2 + $0x7ec] sm:$0xf0]  ;;  %v5140_v28 = vpop.f32.mrf.mxu1 }
 0x528   :  { %14862 = vst [vmem:[#allocation7_spill] sm:$0xff] %v13408_v36  ;;  %v5334_v62 = vsel %vm5309_vm1, %v13408_v36, 0.0  ;;  %v5470_v48 = vmul.f32 %v13408_v36, %v13408_v36 }
 0x529   :  { %5335 = vadd.xlane.f32.xlu1 %v5334_v62  ;;  %5184 = vmatmul.bf16.gmra.mxu1 %v7865_v15  ;;  %v5136_v15 = vadd.f32 %v5135_v23, %v5032_v58  ;;  %v7808_v23 = vld [vmem:[%s14789_s2 + $0x6c8] sm:$0xf] }
 0x52a   :  { %v5524_v42 = vsel %vm5309_vm1, %v5470_v48, 0.0  ;;  %v7925_v48 = vor.u32 %v8315_v61, %v7922_v60  ;;  %v7982_v58 = vld [vmem:[%s14789_s2 + $0x864] sm:$0xf0] }
 0x52b   :  { %5525 = vadd.xlane.f32.xlu0 %v5524_v42  ;;  %v5034_v42 = vadd.f32 %v5033_v21, %v13131_v39  ;;  %v5041_v61 = vpop.f32.mrf.mxu0 }
 0x52d   :  { %v5236_v52 = vpop.f32.mrf.mxu2  ;;  %v5138_v14 = vadd.f32 %v5137_v11, %v5034_v42  ;;  %v8330_v11 = vld [vmem:[%s14789_s2 + $0x82c] sm:$0xf]  ;;  %v8308_v42 = vld [vmem:[%s14789_s2 + $0x778] sm:$0xf0] }
 0x52e   :  { %v13429_v45 = vadd.f32 %v5236_v52, %v5133_v55  ;;  %v5142_v34 = vpop.f32.mrf.mxu1 }
 0x530   :  { %14863 = vst [vmem:[#allocation8_spill] sm:$0xff] %v13429_v45  ;;  %v5337_v17 = vsel %vm5309_vm1, %v13429_v45, 0.0  ;;  %v5471_v25 = vmul.f32 %v13429_v45, %v13429_v45 }
 0x531   :  { %5338 = vadd.xlane.f32.xlu2 %v5337_v17  ;;  %5095 = vmatmul.bf16.gmra.mxu0 %v8041_v46  ;;  %v7809_v46 = vor.u32 %v8293_v10, %v7808_v23  ;;  %v5037_v17 = vadd.f32 %v5036_v18, %v13148_v16 }
 0x532   :  { %8063 = vmatmul.msk.bf16.gmra.mxu2 %vm3691_vm0, %v7749_v3  ;;  %v5527_v31 = vsel %vm5309_vm1, %v5471_v25, 0.0  ;;  %v4937_v3 = vpop.f32.mrf.mxu3 }
 0x533   :  { %5528 = vadd.xlane.f32.xlu1 %v5527_v31  ;;  %v5141_v31 = vadd.f32 %v5140_v28, %v5037_v17  ;;  %v7868_v28 = vld [vmem:[%s14789_s2 + $0x740] sm:$0xf] }
 0x535   :  { %v5239_v62 = vpop.f32.mrf.mxu2 }
 0x536   :  { %v13444_v63 = vadd.f32 %v5239_v62, %v5136_v15  ;;  %v7985_v15 = vor.u32 %v8330_v11, %v7982_v58  ;;  %v5145_v16 = vpop.f32.mrf.mxu1 }
 0x538   :  { %14864 = vst [vmem:[#allocation9_spill] sm:$0xff] %v13444_v63  ;;  %v5340_v5 = vsel %vm5309_vm1, %v13444_v63, 0.0  ;;  %v5472_v57 = vmul.f32 %v13444_v63, %v13444_v63 }
 0x539   :  { %5341 = vadd.xlane.f32.xlu0 %v5340_v5  ;;  %5189 = vmatmul.bf16.gmra.mxu1 %v7925_v48  ;;  %v5039_v5 = vadd.f32 %v5038_v0, %v13174_v2  ;;  %v4938_v2 = vadd.f32 %v4937_v3, %v12681_v49  ;;  %v8042_v49 = vld [vmem:[%s14789_s2 + $0x8dc] sm:$0xf0] }
 0x53a   :  { %v5530_v41 = vsel %vm5309_vm1, %v5472_v57, 0.0 }
 0x53b   :  { %5531 = vadd.xlane.f32.xlu2 %v5530_v41  ;;  %v4939_v41 = vpop.f32.mrf.mxu3  ;;  %v5143_v23 = vadd.f32 %v5142_v34, %v5039_v5  ;;  %v5042_v17 = vadd.f32 %v5041_v61, %v4938_v2 }
 0x53c   :  { %v4940_v61 = vadd.f32 %v4939_v41, %v12711_v13  ;;  %v8323_v13 = vld [vmem:[%s14789_s2 + $0x7f0] sm:$0xf0] }
 0x53d   :  { %v5241_v55 = vpop.f32.mrf.mxu2  ;;  %v5146_v3 = vadd.f32 %v5145_v16, %v5042_v17 }
 0x53e   :  { %v13458_v52 = vadd.f32 %v5241_v55, %v5138_v14  ;;  %v7869_v55 = vor.u32 %v8308_v42, %v7868_v28  ;;  %v7928_v28 = vld [vmem:[%s14789_s2 + $0x7b8] sm:$0xf] }
 0x53f   :  { %v7929_v2 = vor.u32 %v8323_v13, %v7928_v28 }
 0x540   :  { %14865 = vst [vmem:[#allocation12_spill] sm:$0xff] %v13458_v52  ;;  %v5343_v39 = vsel %vm5309_vm1, %v13458_v52, 0.0  ;;  %v5473_v21 = vmul.f32 %v13458_v52, %v13458_v52  ;;  %v6155_v52 = vld [vmem:[%s14790_s3 + $0x48] sm:$0xff] }
 0x541   :  { %5344 = vadd.xlane.f32.xlu1 %v5343_v39 }
 0x542   :  { %8064 = vmatmul.msk.bf16.gmra.mxu2 %vm3691_vm0, %v7809_v46  ;;  %v5533_v25 = vsel %vm5309_vm1, %v5473_v21, 0.0  ;;  %v5043_v46 = vpop.f32.mrf.mxu0  ;;  %v5147_v21 = vpop.f32.mrf.mxu1 }
 0x543   :  { %5534 = vadd.xlane.f32.xlu0 %v5533_v25  ;;  %v8345_v25 = vld [vmem:[%s14789_s2 + $0x8a4] sm:$0xf]  ;;  %v5044_v5 = vadd.f32 %v5043_v46, %v4940_v61 }
 0x544   :  { %v8045_v58 = vor.u32 %v8345_v25, %v8042_v49 }
 0x545   :  { %v5244_v60 = vpop.f32.mrf.mxu2  ;;  %v5148_v42 = vadd.f32 %v5147_v21, %v5044_v5 }
 0x546   :  { %v13473_v62 = vadd.f32 %v5244_v60, %v5141_v31  ;;  %v4942_v31 = vpop.f32.mrf.mxu3 }
 0x547   :  { %v4943_v17 = vadd.f32 %v4942_v31, %v12729_v33 }
 0x548   :  { %14866 = vst [vmem:[#allocation14_spill] sm:$0xff] %v13473_v62  ;;  %v5346_v18 = vsel %vm5309_vm1, %v13473_v62, 0.0  ;;  %v5474_v48 = vmul.f32 %v13473_v62, %v13473_v62 }
 0x549   :  { %5347 = vadd.xlane.f32.xlu2 %v5346_v18  ;;  %5194 = vmatmul.bf16.gmra.mxu1 %v7985_v15 }
 0x54a   :  { %v5536_v57 = vsel %vm5309_vm1, %v5474_v48, 0.0  ;;  %v5046_v48 = vpop.f32.mrf.mxu0  ;;  %v5150_v16 = vpop.f32.mrf.mxu1 }
 0x54b   :  { %5537 = vadd.xlane.f32.xlu1 %v5536_v57 }
 0x54d   :  { %v5246_v10 = vpop.f32.mrf.mxu2 }
 0x54e   :  { %v13487_v14 = vadd.f32 %v5246_v10, %v5143_v23 }
 0x550   :  { %14867 = vst [vmem:[#allocation13_spill] sm:$0xff] %v13487_v14  ;;  %v5349_v0 = vsel %vm5309_vm1, %v13487_v14, 0.0  ;;  %v5475_v39 = vmul.f32 %v13487_v14, %v13487_v14 }
 0x551   :  { %5350 = vadd.xlane.f32.xlu0 %v5349_v0 }
 0x552   :  { %8065 = vmatmul.msk.bf16.gmra.mxu2 %vm3691_vm0, %v7869_v55  ;;  %v5539_v34 = vsel %vm5309_vm1, %v5475_v39, 0.0  ;;  %v5152_v33 = vpop.f32.mrf.mxu1 }
 0x553   :  { %5540 = vadd.xlane.f32.xlu2 %v5539_v34  ;;  %v4944_v34 = vpop.f32.mrf.mxu3 }
 0x555   :  { %v5249_v11 = vpop.f32.mrf.mxu2 }
 0x556   :  { %v13502_v60 = vadd.f32 %v5249_v11, %v5146_v3  ;;  %v5047_v3 = vadd.f32 %v5046_v48, %v4943_v17  ;;  %v4945_v48 = vadd.f32 %v4944_v34, %v12759_v1  ;;  %v7988_v1 = vld [vmem:[%s14789_s2 + $0x830] sm:$0xf] }
 0x558   :  { %14868 = vst [vmem:[#allocation15_spill] sm:$0xff] %v13502_v60  ;;  %v5352_v15 = vsel %vm5309_vm1, %v13502_v60, 0.0  ;;  %v5476_v18 = vmul.f32 %v13502_v60, %v13502_v60 }
 0x559   :  { %5353 = vadd.xlane.f32.xlu1 %v5352_v15  ;;  %5199 = vmatmul.bf16.gmra.mxu1 %v8045_v58  ;;  %v5048_v58 = vpop.f32.mrf.mxu0  ;;  %v5151_v15 = vadd.f32 %v5150_v16, %v5047_v3 }
 0x55a   :  { %v5542_v57 = vsel %vm5309_vm1, %v5476_v18, 0.0 }
 0x55b   :  { %5543 = vadd.xlane.f32.xlu0 %v5542_v57 }
 0x55c   :  { %v5312_v41 = vpop.xlane.xlu0 %5311 }
 0x55d   :  { %v13516_v23 = vmul.f32 0.020408163, %v5312_v41  ;;  %v5251_v10 = vpop.f32.mrf.mxu2 }
 0x55e   :  { %v13518_v55 = vadd.f32 %v5251_v10, %v5148_v42  ;;  %v5502_v46 = vpop.xlane.xlu1 %5501  ;;  %v4947_v10 = vpop.f32.mrf.mxu3 }
 0x55f   :  { %v5652_v0 = vmul.f32 %v13516_v23, %v13516_v23  ;;  %v5614_v39 = vmul.f32 0.020408163, %v5502_v46  ;;  %v5049_v46 = vadd.f32 %v5048_v58, %v4945_v48  ;;  %v5155_v58 = vpop.f32.mrf.mxu1 }
 0x560   :  { %14869 = vst [vmem:[#allocation16_spill] sm:$0xff] %v13518_v55  ;;  %v5355_v25 = vsel %vm5309_vm1, %v13518_v55, 0.0  ;;  %v5477_v21 = vmul.f32 %v13518_v55, %v13518_v55 }
 0x561   :  { %v5690_v49 = vsub.f32 %v5614_v39, %v5652_v0  ;;  %5356 = vadd.xlane.f32.xlu2 %v5355_v25  ;;  %v8338_v39 = vld [vmem:[%s14789_s2 + $0x868] sm:$0xf0]  ;;  %v5153_v34 = vadd.f32 %v5152_v33, %v5049_v46  ;;  %v5051_v25 = vpop.f32.mrf.mxu0 }
 0x562   :  { %8066 = vmatmul.msk.bf16.gmra.mxu2 %vm3691_vm0, %v7929_v2  ;;  %v5545_v11 = vsel %vm5309_vm1, %v5477_v21, 0.0 }
 0x563   :  { %v13529_v61 = vadd.f32 1e-05, %v5690_v49  ;;  %5546 = vadd.xlane.f32.xlu1 %v5545_v11  ;;  %v7989_v11 = vor.u32 %v8338_v39, %v7988_v1 }
 0x565   :  { %v5254_v31 = vpop.f32.mrf.mxu2  ;;  %8382 = vrsqrt.f32 %v13529_v61  ;;  %vm5772_vm3 = vweird.f32 %v13529_v61 }
 0x566   :  { %v13532_v18 = vadd.f32 %v5254_v31, %v5151_v15  ;;  %v5505_v5 = vpop.xlane.xlu2 %5504  ;;  %v5315_v57 = vpop.xlane.xlu1 %5314 }
 0x567   :  { %v13534_v28 = vmul.f32 0.020408163, %v5315_v57  ;;  %v5615_v41 = vmul.f32 0.020408163, %v5505_v5  ;;  %v4948_v5 = vadd.f32 %v4947_v10, %v12777_v9 }
 0x568   :  { %14870 = vst [vmem:[#allocation17_spill] sm:$0xff] %v13532_v18  ;;  %v5358_v13 = vsel %vm5309_vm1, %v13532_v18, 0.0  ;;  %v5478_v42 = vmul.f32 %v13532_v18, %v13532_v18 }
 0x569   :  { %v5653_v16 = vmul.f32 %v13534_v28, %v13534_v28  ;;  %5359 = vadd.xlane.f32.xlu0 %v5358_v13  ;;  %v5052_v48 = vadd.f32 %v5051_v25, %v4948_v5  ;;  %v5053_v1 = vpop.f32.mrf.mxu0 }
 0x56a   :  { %v5548_v2 = vsel %vm5309_vm1, %v5478_v42, 0.0 }
 0x56b   :  { %v5691_v0 = vsub.f32 %v5615_v41, %v5653_v16  ;;  %5549 = vadd.xlane.f32.xlu2 %v5548_v2  ;;  %v13550_v17 = vpop.eup %8382  ;;  %v4949_v16 = vpop.f32.mrf.mxu3  ;;  %v5156_v9 = vadd.f32 %v5155_v58, %v5052_v48 }
 0x56c   :  { %v5767_v15 = vmul.f32 %v13550_v17, %v13529_v61  ;;  %v4950_v25 = vadd.f32 %v4949_v16, %v12807_v29  ;;  %v8048_v29 = vld [vmem:[%s14789_s2 + $0x8a8] sm:$0xf]  ;;  %vm5773_vm2 = vweird.f32 %v13550_v17 }
 0x56d   :  { %v5256_v21 = vpop.f32.mrf.mxu2  ;;  %v13552_v49 = vadd.f32 1e-05, %v5691_v0  ;;  %vm5774_vm4 = vmor %vm5772_vm3, %vm5773_vm2 }
 0x56e   :  { %v13554_v3 = vadd.f32 %v5256_v21, %v5153_v34  ;;  %v5318_v31 = vpop.xlane.xlu2 %5317  ;;  %v5768_v42 = vmul.f32 %v13550_v17, %v5767_v15  ;;  %v5508_v10 = vpop.xlane.xlu0 %5507 }
 0x56f   :  { %8384 = vrsqrt.f32 %v13552_v49  ;;  %v13564_v13 = vmul.f32 0.020408163, %v5318_v31  ;;  %v5616_v21 = vmul.f32 0.020408163, %v5508_v10  ;;  %v5157_v15 = vpop.f32.mrf.mxu1  ;;  %v5054_v31 = vadd.f32 %v5053_v1, %v4950_v25 }
 0x570   :  { %14871 = vst [vmem:[#allocation18_spill] sm:$0xff] %v13554_v3  ;;  %v5361_v57 = vsel %vm5309_vm1, %v13554_v3, 0.0  ;;  %v5479_v33 = vmul.f32 %v13554_v3, %v13554_v3  ;;  %v5769_v39 = vmul.f32 0.5, %v5768_v42  ;;  %vm5782_vm6 = vweird.f32 %v13552_v49 }
 0x571   :  { %5362 = vadd.xlane.f32.xlu1 %v5361_v57  ;;  %v5654_v2 = vmul.f32 %v13564_v13, %v13564_v13  ;;  %v5158_v16 = vadd.f32 %v5157_v15, %v5054_v31 }
 0x572   :  { %8067 = vmatmul.msk.bf16.gmra.mxu2 %vm3691_vm0, %v7989_v11  ;;  %v5551_v41 = vsel %vm5309_vm1, %v5479_v33, 0.0  ;;  %v5770_v33 = vsub.f32 1.5, %v5769_v39 }
 0x573   :  { %5552 = vadd.xlane.f32.xlu0 %v5551_v41  ;;  %v5692_v5 = vsub.f32 %v5616_v21, %v5654_v2  ;;  %v8353_v41 = vld [vmem:[%s14789_s2 + $0x8e0] sm:$0xf0] }
 0x574   :  { %v8049_v39 = vor.u32 %v8353_v41, %v8048_v29  ;;  %v5771_v21 = vmul.f32 %v13550_v17, %v5770_v33 }
 0x575   :  { %v5259_v46 = vpop.f32.mrf.mxu2  ;;  %v13573_v34 = vpop.eup %8384 }
 0x576   :  { %v13571_v0 = vadd.f32 %v5259_v46, %v5156_v9  ;;  %v13580_v57 = vpop.xlane.xlu2 %5320  ;;  %v5777_v48 = vmul.f32 %v13573_v34, %v13552_v49  ;;  %v13591_v9 = vpop.xlane.xlu1 %5510  ;;  %v13593_v46 = vadd.f32 1e-05, %v5692_v5  ;;  %v5775_v31 = vsel %vm5774_vm4, %v13550_v17, %v5771_v21  ;;  %v6146_v5 = vld [vmem:[%s14790_s3] sm:$0xff] }
 0x577   :  { %v6184_v29 = vmul.f32 %v6146_v5, %v5775_v31  ;;  %vm5783_vm5 = vweird.f32 %v13573_v34 }
 0x578   :  { %14872 = vst [vmem:[#allocation19_spill] sm:$0xff] %v13571_v0  ;;  %v5364_v11 = vsel %vm5309_vm1, %v13571_v0, 0.0  ;;  %v5480_v58 = vmul.f32 %v13571_v0, %v13571_v0  ;;  %v5778_v25 = vmul.f32 %v13573_v34, %v5777_v48  ;;  %8386 = vrsqrt.f32 %v13593_v46  ;;  %vm5784_vm7 = vmor %vm5782_vm6, %vm5783_vm5 }
 0x579   :  { %5365 = vadd.xlane.f32.xlu2 %v5364_v11  ;;  %vm5792_vm11 = vweird.f32 %v13593_v46 }
 0x57a   :  { %v5554_v42 = vsel %vm5309_vm1, %v5480_v58, 0.0  ;;  %v5779_v15 = vmul.f32 0.5, %v5778_v25  ;;  %v6260_v25 = vmul.f32 %v6184_v29, %v13516_v23 }
 0x57b   :  { %5555 = vadd.xlane.f32.xlu1 %v5554_v42 }
 0x57c   :  { %v13595_v2 = vpop.xlane.xlu0 %5323  ;;  %v5780_v41 = vsub.f32 1.5, %v5779_v15  ;;  %v6222_v15 = vld [vmem:[%s14791_s4] sm:$0xff] }
 0x57d   :  { %v5261_v10 = vpop.f32.mrf.mxu2 }
 0x57e   :  { %v13597_v1 = vadd.f32 %v5261_v10, %v5158_v16  ;;  %v13612_v33 = vpop.xlane.xlu2 %5513  ;;  %v5781_v21 = vmul.f32 %v13573_v34, %v5780_v41 }
 0x580   :  { %14873 = vst [vmem:[#allocation20_spill] sm:$0xff] %v13597_v1  ;;  %v5481_v11 = vmul.f32 %v13597_v1, %v13597_v1 }
 0x582   :  { %8068 = vmatmul.msk.bf16.gmra.mxu2 %vm3691_vm0, %v8049_v39  ;;  %v5557_v58 = vsel %vm5309_vm1, %v5481_v11, 0.0  ;;  %v13618_v39 = vpop.eup %8386 }
 0x583   :  { %5558 = vadd.xlane.f32.xlu2 %v5557_v58  ;;  %v5787_v11 = vmul.f32 %v13618_v39, %v13593_v46  ;;  %vm5793_vm9 = vweird.f32 %v13618_v39  ;;  %v6148_v46 = vld [vmem:[%s14790_s3 + $0x10] sm:$0xff] }
 0x584   :  { %v5327_v61 = vpop.xlane.xlu1 %5326  ;;  %vm5794_vm13 = vmor %vm5792_vm11, %vm5793_vm9 }
 0x585   :  { %v13614_v48 = vmul.f32 0.020408163, %v5327_v61  ;;  %v6298_v61 = vsub.f32 %v6222_v15, %v6260_v25  ;;  %v5788_v41 = vmul.f32 %v13618_v39, %v5787_v11 }
 0x586   :  { %v5517_v42 = vpop.xlane.xlu0 %5516 }
 0x587   :  { %v5657_v16 = vmul.f32 %v13614_v48, %v13614_v48  ;;  %v5619_v10 = vmul.f32 0.020408163, %v5517_v42  ;;  %6338 = vperm.xlu0 %8379, %v6184_v29   ;;  %v6147_v42 = vld [vmem:[%s14790_s3 + $0x8] sm:$0xff]  ;;  %v5785_v29 = vsel %vm5784_vm7, %v13573_v34, %v5781_v21  ;;  %v5789_v3 = vmul.f32 0.5, %v5788_v41 }
 0x589   :  { %v5695_v17 = vsub.f32 %v5619_v10, %v5657_v16 }
 0x58b   :  { %v5733_v58 = vadd.f32 1e-05, %v5695_v17  ;;  %v6185_v17 = vmul.f32 %v6147_v42, %v5785_v29 }
 0x58c   :  { %v5330_v31 = vpop.xlane.xlu2 %5329 }
 0x58d   :  { %8388 = vrsqrt.f32 %v5733_v58  ;;  %v13629_v5 = vmul.f32 0.020408163, %v5330_v31  ;;  %v6261_v34 = vmul.f32 %v6185_v17, %v13534_v28  ;;  %vm5822_vm10 = vweird.f32 %v5733_v58 }
 0x58e   :  { %v5520_v23 = vpop.xlane.xlu1 %5519 }
 0x58f   :  { %v5658_v16 = vmul.f32 %v13629_v5, %v13629_v5  ;;  %v5620_v10 = vmul.f32 0.020408163, %v5520_v23  ;;  %6566 = vperm.xlu0 %8379, %v6298_v61   ;;  %v6223_v23 = vld [vmem:[%s14791_s4 + $0x8] sm:$0xff]  ;;  %v5790_v61 = vsub.f32 1.5, %v5789_v3 }
 0x591   :  { %v5696_v49 = vsub.f32 %v5620_v10, %v5658_v16  ;;  %v6299_v10 = vsub.f32 %v6223_v23, %v6261_v34 }
 0x593   :  { %v8389_v31 = vpop.eup %8388  ;;  %v5734_v0 = vadd.f32 1e-05, %v5696_v49 }
 0x594   :  { %v5817_v18 = vmul.f32 %v8389_v31, %v5733_v58  ;;  %v5333_v25 = vpop.xlane.xlu0 %5332  ;;  %6343 = vperm.xlu1 %8380, %v6185_v17   ;;  %vm5823_vm8 = vweird.f32 %v8389_v31 }
 0x595   :  { %8390 = vrsqrt.f32 %v5734_v0  ;;  %v13638_v15 = vmul.f32 0.020408163, %v5333_v25  ;;  %vm5824_vm12 = vmor %vm5822_vm10, %vm5823_vm8  ;;  %vm5832_vm15 = vweird.f32 %v5734_v0 }
 0x596   :  { %v5818_v21 = vmul.f32 %v8389_v31, %v5817_v18  ;;  %v5523_v11 = vpop.xlane.xlu2 %5522  ;;  %v5791_v18 = vmul.f32 %v13618_v39, %v5790_v61 }
 0x597   :  { %v5659_v42 = vmul.f32 %v13638_v15, %v13638_v15  ;;  %v5621_v29 = vmul.f32 0.020408163, %v5523_v11  ;;  %v6151_v11 = vld [vmem:[%s14790_s3 + $0x28] sm:$0xff] }
 0x598   :  { %v5819_v41 = vmul.f32 0.5, %v5818_v21 }
 0x599   :  { %v5697_v16 = vsub.f32 %v5621_v29, %v5659_v42  ;;  %v5795_v29 = vsel %vm5794_vm13, %v13618_v39, %v5791_v18  ;;  %v13675_v39 = vmul.f32 0.020408163, %v13580_v57 }
 0x59a   :  { %v5820_v49 = vsub.f32 1.5, %v5819_v41 }
 0x59b   :  { %v8391_v25 = vpop.eup %8390  ;;  %v5735_v28 = vadd.f32 1e-05, %v5697_v16  ;;  %6571 = vperm.xlu2 %8381, %v6299_v10   ;;  %v5655_v57 = vmul.f32 %v13675_v39, %v13675_v39 }
 0x59c   :  { %v5821_v17 = vmul.f32 %v8389_v31, %v5820_v49  ;;  %v5827_v60 = vmul.f32 %v8391_v25, %v5734_v0  ;;  %v5336_v3 = vpop.xlane.xlu1 %5335  ;;  %vm5833_vm14 = vweird.f32 %v8391_v25  ;;  %v13672_v49 = vmul.f32 %v6148_v46, %v5795_v29 }
 0x59d   :  { %8392 = vrsqrt.f32 %v5735_v28  ;;  %v13652_v34 = vmul.f32 0.020408163, %v5336_v3  ;;  %vm5834_vm0 = vmor %vm5832_vm15, %vm5833_vm14  ;;  %vm5842_vm3 = vweird.f32 %v5735_v28 }
 0x59e   :  { %v5828_v21 = vmul.f32 %v8391_v25, %v5827_v60  ;;  %v5526_v23 = vpop.xlane.xlu0 %5525  ;;  %v5825_v42 = vsel %vm5824_vm12, %v8389_v31, %v5821_v17  ;;  %v5617_v60 = vmul.f32 0.020408163, %v13591_v9 }
 0x59f   :  { %v13656_v58 = vmul.f32 %v13652_v34, %v13652_v34  ;;  %v13658_v61 = vmul.f32 0.020408163, %v5526_v23  ;;  %v13664_v41 = vmul.f32 %v6151_v11, %v5825_v42 }
 0x5a0   :  { %v5829_v16 = vmul.f32 0.5, %v5828_v21  ;;  %v6152_v21 = vld [vmem:[%s14790_s3 + $0x30] sm:$0xff] }
 0x5a1   :  { %v13670_v31 = vmul.f32 %v13664_v41, %v13614_v48 }
 0x5a2   :  { %v5830_v10 = vsub.f32 1.5, %v5829_v16 }
 0x5a3   :  { %v8393_v17 = vpop.eup %8392  ;;  %6348 = vperm.xlu2 %8381, %v13672_v49  }
 0x5a4   :  { %v5831_v18 = vmul.f32 %v8391_v25, %v5830_v10  ;;  %v5837_v3 = vmul.f32 %v8393_v17, %v5735_v28  ;;  %v5339_v11 = vpop.xlane.xlu2 %5338  ;;  %vm5843_vm2 = vweird.f32 %v8393_v17  ;;  %v5056_v28 = vpop.f32.mrf.mxu0 }
 0x5a5   :  { %v13681_v48 = vmul.f32 0.020408163, %v5339_v11  ;;  %vm5844_vm4 = vmor %vm5842_vm3, %vm5843_vm2 }
 0x5a6   :  { %v5838_v23 = vmul.f32 %v8393_v17, %v5837_v3  ;;  %v5529_v42 = vpop.xlane.xlu1 %5528  ;;  %v5835_v29 = vsel %vm5834_vm0, %v8391_v25, %v5831_v18  ;;  %v5693_v25 = vsub.f32 %v5617_v60, %v5655_v57 }
 0x5a7   :  { %v5661_v0 = vmul.f32 %v13681_v48, %v13681_v48  ;;  %v5623_v46 = vmul.f32 0.020408163, %v5529_v42  ;;  %v13687_v16 = vmul.f32 %v6152_v21, %v5835_v29  ;;  %v6153_v21 = vld [vmem:[%s14790_s3 + $0x38] sm:$0xff]  ;;  %v4952_v29 = vpop.f32.mrf.mxu3 }
 0x5a8   :  { %v5839_v10 = vmul.f32 0.5, %v5838_v23 }
 0x5a9   :  { %v5699_v53 = vsub.f32 %v5623_v46, %v5661_v0  ;;  %v13692_v11 = vmul.f32 %v13687_v16, %v13629_v5  ;;  %v13699_v5 = vadd.f32 1e-05, %v5693_v25 }
 0x5aa   :  { %v5840_v3 = vsub.f32 1.5, %v5839_v10  ;;  %v5160_v10 = vpop.f32.mrf.mxu1 }
 0x5ab   :  { %v5737_v18 = vadd.f32 1e-05, %v5699_v53  ;;  %vm5802_vm12 = vweird.f32 %v13699_v5 }
 0x5ac   :  { %v5841_v55 = vmul.f32 %v8393_v17, %v5840_v3  ;;  %v5342_v7 = vpop.xlane.xlu0 %5341  ;;  %v5058_v37 = vpop.f32.mrf.mxu0 }
 0x5ad   :  { %8394 = vrsqrt.f32 %v5737_v18  ;;  %v13697_v23 = vmul.f32 0.020408163, %v5342_v7  ;;  %v13710_v7 = vmul.f32 0.020408163, %v13595_v2  ;;  %vm5862_vm6 = vweird.f32 %v5737_v18 }
 0x5ae   :  { %v5845_v9 = vsel %vm5844_vm4, %v8393_v17, %v5841_v55  ;;  %v5532_v42 = vpop.xlane.xlu2 %5531  ;;  %v4953_v17 = vadd.f32 %v4952_v29, %v12825_v26  ;;  %8396 = vrsqrt.f32 %v13699_v5 }
 0x5af   :  { %v5662_v60 = vmul.f32 %v13697_v23, %v13697_v23  ;;  %v5624_v53 = vmul.f32 0.020408163, %v5532_v42  ;;  %v13703_v57 = vmul.f32 %v6153_v21, %v5845_v9  ;;  %v5264_v42 = vpop.f32.mrf.mxu2  ;;  %v5656_v2 = vmul.f32 %v13710_v7, %v13710_v7  ;;  %v4954_v19 = vpop.f32.mrf.mxu3 }
 0x5b0   :  { %v5057_v9 = vadd.f32 %v5056_v28, %v4953_v17 }
 0x5b1   :  { %v5700_v0 = vsub.f32 %v5624_v53, %v5662_v60  ;;  %v13707_v46 = vmul.f32 %v13703_v57, %v13638_v15  ;;  %v5618_v15 = vmul.f32 0.020408163, %v13612_v33  ;;  %v5367_v33 = vsel %vm5309_vm1, %v13597_v1, 0.0 }
 0x5b2   :  { %v5161_v29 = vadd.f32 %v5160_v10, %v5057_v9  ;;  %v5162_v62 = vpop.f32.mrf.mxu1 }
 0x5b3   :  { %v8395_v55 = vpop.eup %8394  ;;  %v13714_v3 = vadd.f32 1e-05, %v5700_v0 }
 0x5b4   :  { %v5857_v25 = vmul.f32 %v8395_v55, %v5737_v18  ;;  %v5345_v21 = vpop.xlane.xlu1 %5344  ;;  %v13728_v17 = vpop.eup %8396  ;;  %vm5863_vm5 = vweird.f32 %v8395_v55 }
 0x5b5   :  { %8398 = vrsqrt.f32 %v13714_v3  ;;  %v13717_v60 = vmul.f32 0.020408163, %v5345_v21  ;;  %v13730_v21 = vadd.f32 %v5264_v42, %v5161_v29  ;;  %vm5864_vm7 = vmor %vm5862_vm6, %vm5863_vm5  ;;  %vm5872_vm9 = vweird.f32 %v13714_v3 }
 0x5b6   :  { %v5858_v53 = vmul.f32 %v8395_v55, %v5857_v25  ;;  %v5535_v26 = vpop.xlane.xlu0 %5534  ;;  %v5694_v25 = vsub.f32 %v5618_v15, %v5656_v2  ;;  %vm5803_vm11 = vweird.f32 %v13728_v17 }
 0x5b7   :  { %14874 = vst [vmem:[#allocation21_spill] sm:$0xff] %v13717_v60  ;;  %v13724_v0 = vmul.f32 %v13717_v60, %v13717_v60  ;;  %v13726_v14 = vmul.f32 0.020408163, %v5535_v26  ;;  %v5482_v15 = vmul.f32 %v13730_v21, %v13730_v21  ;;  %v5370_v18 = vsel %vm5309_vm1, %v13730_v21, 0.0  ;;  %v5266_v38 = vpop.f32.mrf.mxu2  ;;  %vm5804_vm13 = vmor %vm5802_vm12, %vm5803_vm11 }
 0x5b8   :  { %v5859_v28 = vmul.f32 0.5, %v5858_v53  ;;  %14875 = vst [vmem:[#allocation22_spill] sm:$0xff] %v13730_v21  ;;  %v5797_v53 = vmul.f32 %v13728_v17, %v13699_v5  ;;  %v6149_v5 = vld [vmem:[%s14790_s3 + $0x18] sm:$0xff] }
 0x5b9   :  { %5368 = vadd.xlane.f32.xlu0 %v5367_v33 }
 0x5ba   :  { %v5860_v10 = vsub.f32 1.5, %v5859_v28  ;;  %v13746_v28 = vadd.f32 1e-05, %v5694_v25  ;;  %v5560_v25 = vsel %vm5309_vm1, %v5482_v15, 0.0  ;;  %v5165_v15 = vpop.f32.mrf.mxu1 }
 0x5bb   :  { %v8399_v9 = vpop.eup %8398 }
 0x5bc   :  { %v5861_v26 = vmul.f32 %v8395_v55, %v5860_v10  ;;  %v5867_v42 = vmul.f32 %v8399_v9, %v13714_v3  ;;  %v5348_v29 = vpop.xlane.xlu2 %5347  ;;  %8400 = vrsqrt.f32 %v13746_v28  ;;  %vm5873_vm8 = vweird.f32 %v8399_v9 }
 0x5bd   :  { %v13742_v2 = vmul.f32 0.020408163, %v5348_v29  ;;  %v5798_v29 = vmul.f32 %v13728_v17, %v5797_v53  ;;  %vm5874_vm10 = vmor %vm5872_vm9, %vm5873_vm8  ;;  %vm5812_vm6 = vweird.f32 %v13746_v28 }
 0x5be   :  { %v5868_v33 = vmul.f32 %v8399_v9, %v5867_v42  ;;  %v5538_v10 = vpop.xlane.xlu1 %5537  ;;  %v5865_v1 = vsel %vm5864_vm7, %v8395_v55, %v5861_v26  ;;  %5371 = vadd.xlane.f32.xlu1 %v5370_v18  ;;  %v4955_v55 = vadd.f32 %v4954_v19, %v12855_v30  ;;  %v4957_v18 = vpop.f32.mrf.mxu3 }
 0x5bf   :  { %v5664_v63 = vmul.f32 %v13742_v2, %v13742_v2  ;;  %v5626_v56 = vmul.f32 0.020408163, %v5538_v10  ;;  %v13752_v60 = vmul.f32 %v6155_v52, %v5865_v1  ;;  %v5799_v53 = vmul.f32 0.5, %v5798_v29 }
 0x5c0   :  { %v5869_v36 = vmul.f32 0.5, %v5868_v33  ;;  %v5059_v1 = vadd.f32 %v5058_v37, %v4955_v55  ;;  %v4958_v19 = vadd.f32 %v4957_v18, %v12874_v27 }
 0x5c1   :  { %v5702_v4 = vsub.f32 %v5626_v56, %v5664_v63  ;;  %v13758_v42 = vmul.f32 %v13752_v60, %v13681_v48  ;;  %5561 = vadd.xlane.f32.xlu0 %v5560_v25  ;;  %v6156_v63 = vld [vmem:[%s14790_s3 + $0x50] sm:$0xff]  ;;  %v5061_v48 = vpop.f32.mrf.mxu0 }
 0x5c2   :  { %v5870_v26 = vsub.f32 1.5, %v5869_v36  ;;  %v13776_v25 = vpop.eup %8400  ;;  %v5062_v55 = vadd.f32 %v5061_v48, %v4958_v19 }
 0x5c3   :  { %v13762_v52 = vadd.f32 1e-05, %v5702_v4  ;;  %v5163_v4 = vadd.f32 %v5162_v62, %v5059_v1  ;;  %v5807_v18 = vmul.f32 %v13776_v25, %v13746_v28  ;;  %vm5813_vm3 = vweird.f32 %v13776_v25  ;;  %v6150_v28 = vld [vmem:[%s14790_s3 + $0x20] sm:$0xff] }
 0x5c4   :  { %v5871_v33 = vmul.f32 %v8399_v9, %v5870_v26  ;;  %v5351_v56 = vpop.xlane.xlu0 %5350  ;;  %v5800_v26 = vsub.f32 1.5, %v5799_v53  ;;  %v5166_v62 = vadd.f32 %v5165_v15, %v5062_v55  ;;  %vm5814_vm7 = vmor %vm5812_vm6, %vm5813_vm3 }
 0x5c5   :  { %8402 = vrsqrt.f32 %v13762_v52  ;;  %v13769_v30 = vmul.f32 0.020408163, %v5351_v56  ;;  %v13778_v21 = vadd.f32 %v5266_v38, %v5163_v4  ;;  %v5269_v56 = vpop.f32.mrf.mxu2  ;;  %vm5892_vm15 = vweird.f32 %v13762_v52 }
 0x5c6   :  { %v5875_v36 = vsel %vm5874_vm10, %v8399_v9, %v5871_v33  ;;  %v5541_v37 = vpop.xlane.xlu2 %5540  ;;  %v5801_v33 = vmul.f32 %v13728_v17, %v5800_v26 }
 0x5c7   :  { %v5665_v3 = vmul.f32 %v13769_v30, %v13769_v30  ;;  %v5627_v10 = vmul.f32 0.020408163, %v5541_v37  ;;  %v13774_v29 = vmul.f32 %v6156_v63, %v5875_v36  ;;  %14876 = vst [vmem:[#allocation23_spill] sm:$0xff] %v13778_v21  ;;  %v13788_v63 = vadd.f32 %v5269_v56, %v5166_v62 }
 0x5c8   :  { %v5373_v48 = vsel %vm5309_vm1, %v13778_v21, 0.0  ;;  %v6262_v56 = vmul.f32 %v13672_v49, %v13564_v13 }
 0x5c9   :  { %v5703_v45 = vsub.f32 %v5627_v10, %v5665_v3  ;;  %v13782_v27 = vmul.f32 %v13774_v29, %v13697_v23  ;;  %14877 = vst [vmem:[#allocation24_spill] sm:$0xff] %v13788_v63  ;;  %v5484_v3 = vmul.f32 %v13788_v63, %v13788_v63  ;;  %v5805_v10 = vsel %vm5804_vm13, %v13728_v17, %v5801_v33 }
 0x5cb   :  { %v8403_v9 = vpop.eup %8402  ;;  %v5741_v1 = vadd.f32 1e-05, %v5703_v45  ;;  %v5808_v45 = vmul.f32 %v13776_v25, %v5807_v18 }
 0x5cc   :  { %v5887_v38 = vmul.f32 %v8403_v9, %v13762_v52  ;;  %v5354_v53 = vpop.xlane.xlu1 %5353  ;;  %5374 = vadd.xlane.f32.xlu2 %v5373_v48  ;;  %vm5893_vm14 = vweird.f32 %v8403_v9 }
 0x5cd   :  { %8404 = vrsqrt.f32 %v5741_v1  ;;  %v13793_v23 = vmul.f32 0.020408163, %v5354_v53  ;;  %v5809_v18 = vmul.f32 0.5, %v5808_v45  ;;  %v6224_v53 = vld [vmem:[%s14791_s4 + $0x10] sm:$0xff]  ;;  %vm5894_vm0 = vmor %vm5892_vm15, %vm5893_vm14  ;;  %vm5902_vm4 = vweird.f32 %v5741_v1 }
 0x5ce   :  { %v5888_v19 = vmul.f32 %v8403_v9, %v5887_v38  ;;  %v5544_v4 = vpop.xlane.xlu0 %5543  ;;  %v6187_v38 = vmul.f32 %v6149_v5, %v5805_v10 }
 0x5cf   :  { %14878 = vst [vmem:[#allocation25_spill] sm:$0xff] %v13793_v23  ;;  %v13799_v36 = vmul.f32 %v13793_v23, %v13793_v23  ;;  %v13801_v37 = vmul.f32 0.020408163, %v5544_v4  ;;  %v6158_v4 = vld [vmem:[%s14790_s3 + $0x60] sm:$0xff] }
 0x5d0   :  { %v5889_v15 = vmul.f32 0.5, %v5888_v19  ;;  %v5566_v19 = vsel %vm5309_vm1, %v5484_v3, 0.0  ;;  %v5810_v3 = vsub.f32 1.5, %v5809_v18  ;;  %v6263_v23 = vmul.f32 %v6187_v38, %v13675_v39 }
 0x5d1   :  { %14879 = vst [vmem:[#allocation26_spill] sm:$0xff] %v13799_v36 }
 0x5d2   :  { %v5890_v26 = vsub.f32 1.5, %v5889_v15  ;;  %v6300_v15 = vsub.f32 %v6224_v53, %v6262_v56  ;;  %v5811_v18 = vmul.f32 %v13776_v25, %v5810_v3 }
 0x5d3   :  { %v8405_v62 = vpop.eup %8404 }
 0x5d4   :  { %v5891_v17 = vmul.f32 %v8403_v9, %v5890_v26  ;;  %v5897_v33 = vmul.f32 %v8405_v62, %v5741_v1  ;;  %v5357_v48 = vpop.xlane.xlu2 %5356  ;;  %5567 = vadd.xlane.f32.xlu2 %v5566_v19  ;;  %vm5903_vm2 = vweird.f32 %v8405_v62 }
 0x5d5   :  { %v13821_v13 = vmul.f32 0.020408163, %v5357_v48  ;;  %6353 = vperm.xlu0 %8379, %v6187_v38   ;;  %v6159_v38 = vld [vmem:[%s14790_s3 + $0x68] sm:$0xff]  ;;  %vm5904_vm5 = vmor %vm5902_vm4, %vm5903_vm2 }
 0x5d6   :  { %v5898_v49 = vmul.f32 %v8405_v62, %v5897_v33  ;;  %v5547_v45 = vpop.xlane.xlu1 %5546  ;;  %v5895_v10 = vsel %vm5894_vm0, %v8403_v9, %v5891_v17  ;;  %v6225_v33 = vld [vmem:[%s14791_s4 + $0x18] sm:$0xff] }
 0x5d7   :  { %v5667_v52 = vmul.f32 %v13821_v13, %v13821_v13  ;;  %v5629_v5 = vmul.f32 0.020408163, %v5547_v45  ;;  %v13825_v26 = vmul.f32 %v6158_v4, %v5895_v10  ;;  %6576 = vperm.xlu1 %8380, %v6300_v15   ;;  %v6301_v39 = vsub.f32 %v6225_v33, %v6263_v23 }
 0x5d8   :  { %v5899_v55 = vmul.f32 0.5, %v5898_v49  ;;  %v5815_v4 = vsel %vm5814_vm7, %v13776_v25, %v5811_v18 }
 0x5d9   :  { %v5705_v36 = vsub.f32 %v5629_v5, %v5667_v52  ;;  %v13833_v56 = vmul.f32 %v13825_v26, %v13742_v2  ;;  %v13863_v15 = vmul.f32 %v6150_v28, %v5815_v4 }
 0x5da   :  { %v5900_v9 = vsub.f32 1.5, %v5899_v55 }
 0x5db   :  { %v5743_v53 = vadd.f32 1e-05, %v5705_v36 }
 0x5dc   :  { %v5901_v17 = vmul.f32 %v8405_v62, %v5900_v9  ;;  %v5360_v48 = vpop.xlane.xlu0 %5359  ;;  %v6264_v9 = vmul.f32 %v13863_v15, %v13710_v7  ;;  %v6161_v7 = vld [vmem:[%s14790_s3 + $0x78] sm:$0xff] }
 0x5dd   :  { %8406 = vrsqrt.f32 %v5743_v53  ;;  %v13840_v19 = vmul.f32 0.020408163, %v5360_v48  ;;  %6581 = vperm.xlu0 %8379, %v6301_v39   ;;  %vm5922_vm9 = vweird.f32 %v5743_v53  ;;  %v4959_v39 = vpop.f32.mrf.mxu3 }
 0x5de   :  { %v5905_v2 = vsel %vm5904_vm5, %v8405_v62, %v5901_v17  ;;  %v5550_v55 = vpop.xlane.xlu2 %5549 }
 0x5df   :  { %14880 = vst [vmem:[#allocation27_spill] sm:$0xff] %v13840_v19  ;;  %v13847_v1 = vmul.f32 %v13840_v19, %v13840_v19  ;;  %v13849_v23 = vmul.f32 0.020408163, %v5550_v55  ;;  %v13851_v36 = vmul.f32 %v6159_v38, %v5905_v2 }
 0x5e1   :  { %v13861_v49 = vmul.f32 %v13851_v36, %v13769_v30  ;;  %v6226_v30 = vld [vmem:[%s14791_s4 + $0x20] sm:$0xff] }
 0x5e2   :  { %v6302_v38 = vsub.f32 %v6226_v30, %v6264_v9 }
 0x5e3   :  { %v8407_v45 = vpop.eup %8406 }
 0x5e4   :  { %v5917_v10 = vmul.f32 %v8407_v45, %v5743_v53  ;;  %v5363_v52 = vpop.xlane.xlu1 %5362  ;;  %vm5923_vm8 = vweird.f32 %v8407_v45 }
 0x5e5   :  { %v13865_v5 = vmul.f32 0.020408163, %v5363_v52  ;;  %vm5924_vm10 = vmor %vm5922_vm9, %vm5923_vm8 }
 0x5e6   :  { %v5918_v3 = vmul.f32 %v8407_v45, %v5917_v10  ;;  %v5553_v33 = vpop.xlane.xlu0 %5552 }
 0x5e7   :  { %14881 = vst [vmem:[#allocation28_spill] sm:$0xff] %v13865_v5  ;;  %v13869_v25 = vmul.f32 %v13865_v5, %v13865_v5  ;;  %v13873_v17 = vmul.f32 0.020408163, %v5553_v33 }
 0x5e8   :  { %v5919_v18 = vmul.f32 0.5, %v5918_v3 }
 0x5e9   :  { %14882 = vst [vmem:[#allocation29_spill] sm:$0xff] %v13869_v25 }
 0x5ea   :  { %v5920_v48 = vsub.f32 1.5, %v5919_v18 }
 0x5ec   :  { %v5921_v2 = vmul.f32 %v8407_v45, %v5920_v48  ;;  %v5366_v55 = vpop.xlane.xlu2 %5365  ;;  %6586 = vperm.xlu2 %8381, %v6302_v38  }
 0x5ed   :  { %v5442_v4 = vmul.f32 0.020408163, %v5366_v55  ;;  %v5483_v55 = vmul.f32 %v13778_v21, %v13778_v21  ;;  %v5271_v21 = vpop.f32.mrf.mxu2 }
 0x5ee   :  { %v5556_v10 = vpop.xlane.xlu1 %5555  ;;  %v5925_v52 = vsel %vm5924_vm10, %v8407_v45, %v5921_v2  ;;  %v5063_v45 = vpop.f32.mrf.mxu0 }
 0x5ef   :  { %v5670_v28 = vmul.f32 %v5442_v4, %v5442_v4  ;;  %v5632_v3 = vmul.f32 0.020408163, %v5556_v10  ;;  %v13883_v33 = vmul.f32 %v6161_v7, %v5925_v52  ;;  %v5167_v10 = vpop.f32.mrf.mxu1 }
 0x5f1   :  { %v5708_v18 = vsub.f32 %v5632_v3, %v5670_v28  ;;  %v13887_v9 = vmul.f32 %v13883_v33, %v13821_v13  ;;  %v5563_v28 = vsel %vm5309_vm1, %v5483_v55, 0.0  ;;  %v6792_v13 = vld [vmem:[%s14792_s5] sm:$0xff] }
 0x5f3   :  { %v5746_v30 = vadd.f32 1e-05, %v5708_v18 }
 0x5f5   :  { %8408 = vrsqrt.f32 %v5746_v30  ;;  %vm5952_vm12 = vweird.f32 %v5746_v30  ;;  %v5274_v25 = vpop.f32.mrf.mxu2 }
 0x5f6   :  { %v5559_v5 = vpop.xlane.xlu2 %5558 }
 0x5f9   :  { %v6339_v53 = vpop.permute.xlu0 %6338 }
 0x5fa   :  { %v6526_v7 = vmul.f32 %v6339_v53, %v13230_v20  ;;  %v6164_v20 = vld [vmem:[%s14790_s3 + $0x90] sm:$0xff]  ;;  %v5376_v53 = vsel %vm5309_vm1, %v13788_v63, 0.0  ;;  %v5170_v63 = vpop.f32.mrf.mxu1 }
 0x5fb   :  { %v8409_v48 = vpop.eup %8408 }
 0x5fc   :  { %v5947_v38 = vmul.f32 %v8409_v48, %v5746_v30  ;;  %vm5953_vm11 = vweird.f32 %v8409_v48 }
 0x5fd   :  { %vm5954_vm13 = vmor %vm5952_vm12, %vm5953_vm11 }
 0x5fe   :  { %v5948_v62 = vmul.f32 %v8409_v48, %v5947_v38 }
 0x600   :  { %v5949_v2 = vmul.f32 0.5, %v5948_v62 }
 0x601   :  { %5564 = vadd.xlane.f32.xlu1 %v5563_v28  ;;  %v6567_v52 = vpop.permute.xlu0 %6566  ;;  %v6572_v28 = vpop.permute.xlu2 %6571 }
 0x602   :  { %v5950_v3 = vsub.f32 1.5, %v5949_v2  ;;  %v6754_v18 = vadd.f32 %v6567_v52, %v6526_v7  ;;  %v4962_v2 = vpop.f32.mrf.mxu3  ;;  %v5066_v52 = vpop.f32.mrf.mxu0 }
 0x604   :  { %v5951_v19 = vmul.f32 %v8409_v48, %v5950_v3  ;;  %v6830_v38 = vadd.f32 %v6792_v13, %v6754_v18  ;;  %v6793_v13 = vld [vmem:[%s14792_s5 + $0x8] sm:$0xff] }
 0x606   :  { %6868 = vst.msk [vmem:[%s14793_s6] sm:$0xff] %vm5309_vm1, %v6830_v38  ;;  %v6344_v62 = vpop.permute.xlu1 %6343  ;;  %v5955_v55 = vsel %vm5954_vm13, %v8409_v48, %v5951_v19  ;;  %v4963_v38 = vadd.f32 %v4962_v2, %v12923_v44 }
 0x607   :  { %v6527_v7 = vmul.f32 %v6344_v62, %v13262_v32  ;;  %5377 = vadd.xlane.f32.xlu0 %v5376_v53  ;;  %v13906_v30 = vmul.f32 %v6164_v20, %v5955_v55  ;;  %v13928_v53 = vmul.f32 0.020408163, %v5559_v5 }
 0x608   :  { %v5067_v48 = vadd.f32 %v5066_v52, %v4963_v38 }
 0x609   :  { %v6755_v3 = vadd.f32 %v6572_v28, %v6527_v7  ;;  %v13912_v18 = vmul.f32 %v13906_v30, %v5442_v4 }
 0x60a   :  { %v5171_v32 = vadd.f32 %v5170_v63, %v5067_v48 }
 0x60b   :  { %v6831_v19 = vadd.f32 %v6793_v13, %v6755_v3 }
 0x60c   :  { %v13919_v20 = vadd.f32 %v5274_v25, %v5171_v32 }
 0x60d   :  { %6869 = vst.msk [vmem:[%s14793_s6 + $0x8] sm:$0xff] %vm5309_vm1, %v6831_v19 }
 0x60e   :  { %v5382_v62 = vsel %vm5309_vm1, %v13919_v20, 0.0 }
 0x615   :  { %5383 = vadd.xlane.f32.xlu2 %v5382_v62  ;;  %v4964_v62 = vpop.f32.mrf.mxu3 }
 0x61a   :  { %6358 = vperm.xlu1 %8380, %v13863_v15  }
 0x61b   :  { %6363 = vperm.xlu0 %8379, %v13664_v41   ;;  %v4960_v41 = vadd.f32 %v4959_v39, %v12904_v22  ;;  %v6349_v39 = vpop.permute.xlu2 %6348 }
 0x61d   :  { %v5064_v52 = vadd.f32 %v5063_v45, %v4960_v41  ;;  %v5068_v45 = vpop.f32.mrf.mxu0 }
 0x62c   :  { %v5369_v44 = vpop.xlane.xlu0 %5368 }
 0x62d   :  { %v13925_v4 = vmul.f32 0.020408163, %v5369_v44  ;;  %6368 = vperm.xlu2 %8381, %v13687_v16   ;;  %v5168_v16 = vadd.f32 %v5167_v10, %v5064_v52 }
 0x62f   :  { %v13932_v63 = vmul.f32 %v13925_v4, %v13925_v4  ;;  %v13937_v5 = vadd.f32 %v5271_v21, %v5168_v16  ;;  %v4965_v21 = vadd.f32 %v4964_v62, %v12953_v24  ;;  %v5276_v16 = vpop.f32.mrf.mxu2  ;;  %v6166_v24 = vld [vmem:[%s14790_s3 + $0xa0] sm:$0xff] }
 0x631   :  { %v5372_v55 = vpop.xlane.xlu1 %5371  ;;  %14883 = vst [vmem:[#allocation30_spill] sm:$0xff] %v13937_v5  ;;  %v5485_v38 = vmul.f32 %v13937_v5, %v13937_v5  ;;  %v5379_v32 = vsel %vm5309_vm1, %v13937_v5, 0.0  ;;  %v5069_v41 = vadd.f32 %v5068_v45, %v4965_v21 }
 0x632   :  { %v5444_v2 = vmul.f32 0.020408163, %v5372_v55 }
 0x633   :  { %v5569_v22 = vsel %vm5309_vm1, %v5485_v38, 0.0 }
 0x634   :  { %v5672_v7 = vmul.f32 %v5444_v2, %v5444_v2  ;;  %v5562_v15 = vpop.xlane.xlu0 %5561 }
 0x635   :  { %v5634_v28 = vmul.f32 0.020408163, %v5562_v15  ;;  %v6528_v15 = vmul.f32 %v6349_v39, %v13281_v50 }
 0x637   :  { %v5710_v13 = vsub.f32 %v5634_v28, %v5672_v7  ;;  %v5172_v7 = vpop.f32.mrf.mxu1 }
 0x639   :  { %v5748_v3 = vadd.f32 1e-05, %v5710_v13  ;;  %v6794_v13 = vld [vmem:[%s14792_s5 + $0x10] sm:$0xff] }
 0x63b   :  { %8410 = vrsqrt.f32 %v5748_v3  ;;  %vm5972_vm15 = vweird.f32 %v5748_v3 }
 0x641   :  { %v8411_v19 = vpop.eup %8410 }
 0x642   :  { %v5967_v48 = vmul.f32 %v8411_v19, %v5748_v3  ;;  %vm5973_vm14 = vweird.f32 %v8411_v19  ;;  %v6795_v3 = vld [vmem:[%s14792_s5 + $0x18] sm:$0xff] }
 0x643   :  { %vm5974_vm0 = vmor %vm5972_vm15, %vm5973_vm14 }
 0x644   :  { %v5968_v44 = vmul.f32 %v8411_v19, %v5967_v48  ;;  %5380 = vadd.xlane.f32.xlu1 %v5379_v32  ;;  %v5173_v32 = vadd.f32 %v5172_v7, %v5069_v41  ;;  %v6229_v41 = vld [vmem:[%s14791_s4 + $0x38] sm:$0xff] }
 0x645   :  { %5570 = vadd.xlane.f32.xlu0 %v5569_v22 }
 0x646   :  { %v5969_v10 = vmul.f32 0.5, %v5968_v44  ;;  %v13952_v44 = vadd.f32 %v5276_v16, %v5173_v32  ;;  %v14885_v16 = vsub.f32 %v13658_v61, %v13656_v58  ;;  %v4967_v61 = vpop.f32.mrf.mxu3 }
 0x647   :  { %v6354_v55 = vpop.permute.xlu0 %6353 }
 0x648   :  { %v5970_v28 = vsub.f32 1.5, %v5969_v10  ;;  %14884 = vst [vmem:[#allocation31_spill] sm:$0xff] %v13952_v44  ;;  %v6529_v39 = vmul.f32 %v6354_v55, %v13311_v43  ;;  %v5487_v21 = vmul.f32 %v13952_v44, %v13952_v44  ;;  %v6228_v43 = vld [vmem:[%s14791_s4 + $0x30] sm:$0xff] }
 0x649   :  { %v6577_v52 = vpop.permute.xlu1 %6576 }
 0x64a   :  { %v5971_v38 = vmul.f32 %v8411_v19, %v5970_v28  ;;  %v6756_v48 = vadd.f32 %v6577_v52, %v6528_v15  ;;  %v5575_v55 = vsel %vm5309_vm1, %v5487_v21, 0.0  ;;  %v6227_v15 = vld [vmem:[%s14791_s4 + $0x28] sm:$0xff]  ;;  %v5375_v52 = vpop.xlane.xlu2 %5374 }
 0x64b   :  { %v6303_v28 = vsub.f32 %v6227_v15, %v13670_v31  ;;  %v5385_v15 = vsel %vm5309_vm1, %v13952_v44, 0.0 }
 0x64c   :  { %v6832_v62 = vadd.f32 %v6794_v13, %v6756_v48  ;;  %v5975_v50 = vsel %vm5974_vm0, %v8411_v19, %v5971_v38  ;;  %v6305_v13 = vsub.f32 %v6229_v41, %v13707_v46  ;;  %v5445_v38 = vmul.f32 0.020408163, %v5375_v52  ;;  %v5175_v41 = vpop.f32.mrf.mxu1  ;;  %v5279_v52 = vpop.f32.mrf.mxu2 }
 0x64d   :  { %v13954_v22 = vmul.f32 %v6166_v24, %v5975_v50 }
 0x64e   :  { %6870 = vst.msk [vmem:[%s14793_s6 + $0x10] sm:$0xff] %vm5309_vm1, %v6832_v62  ;;  %v5673_v24 = vmul.f32 %v5445_v38, %v5445_v38 }
 0x64f   :  { %v6582_v45 = vpop.permute.xlu0 %6581  ;;  %v13965_v10 = vmul.f32 %v13954_v22, %v5444_v2  ;;  %v6304_v2 = vsub.f32 %v6228_v43, %v13692_v11  ;;  %v5736_v11 = vadd.f32 1e-05, %v14885_v16  ;;  %v5071_v43 = vpop.f32.mrf.mxu0 }
 0x650   :  { %v6757_v19 = vadd.f32 %v6582_v45, %v6529_v39 }
 0x651   :  { %8412 = vrsqrt.f32 %v5736_v11  ;;  %vm5852_vm6 = vweird.f32 %v5736_v11 }
 0x652   :  { %v6833_v7 = vadd.f32 %v6795_v3, %v6757_v19  ;;  %v5568_v50 = vpop.xlane.xlu2 %5567 }
 0x653   :  { %v13991_v46 = vmul.f32 0.020408163, %v5568_v50 }
 0x654   :  { %6871 = vst.msk [vmem:[%s14793_s6 + $0x18] sm:$0xff] %vm5309_vm1, %v6833_v7 }
 0x656   :  { %5576 = vadd.xlane.f32.xlu2 %v5575_v55 }
 0x657   :  { %v8413_v3 = vpop.eup %8412  ;;  %v5073_v21 = vpop.f32.mrf.mxu0 }
 0x658   :  { %v5847_v58 = vmul.f32 %v8413_v3, %v5736_v11  ;;  %vm5853_vm5 = vweird.f32 %v8413_v3 }
 0x659   :  { %6596 = vperm.xlu0 %8379, %v6304_v2   ;;  %vm5854_vm7 = vmor %vm5852_vm6, %vm5853_vm5 }
 0x65a   :  { %v5848_v55 = vmul.f32 %v8413_v3, %v5847_v58  ;;  %v6167_v58 = vld [vmem:[%s14790_s3 + $0xa8] sm:$0xff] }
 0x65c   :  { %v5849_v16 = vmul.f32 0.5, %v5848_v55 }
 0x65d   :  { %6591 = vperm.xlu1 %8380, %v6303_v28   ;;  %v5486_v28 = vmul.f32 %v13919_v20, %v13919_v20 }
 0x65e   :  { %v5850_v50 = vsub.f32 1.5, %v5849_v16  ;;  %v6587_v16 = vpop.permute.xlu2 %6586 }
 0x660   :  { %v5851_v25 = vmul.f32 %v8413_v3, %v5850_v50 }
 0x66e   :  { %6601 = vperm.xlu2 %8381, %v6305_v13  }
 0x674   :  { %v5565_v48 = vpop.xlane.xlu1 %5564 }
 0x675   :  { %v5635_v32 = vmul.f32 0.020408163, %v5565_v48 }
 0x677   :  { %v5711_v62 = vsub.f32 %v5635_v32, %v5673_v24  ;;  %v5572_v24 = vsel %vm5309_vm1, %v5486_v28, 0.0 }
 0x679   :  { %v5749_v31 = vadd.f32 1e-05, %v5711_v62  ;;  %v4969_v62 = vpop.f32.mrf.mxu3 }
 0x67a   :  { %v5378_v39 = vpop.xlane.xlu0 %5377 }
 0x67b   :  { %8414 = vrsqrt.f32 %v5749_v31  ;;  %v13989_v45 = vmul.f32 0.020408163, %v5378_v39  ;;  %vm5982_vm3 = vweird.f32 %v5749_v31 }
 0x67d   :  { %v13995_v19 = vmul.f32 %v13989_v45, %v13989_v45 }
 0x681   :  { %v8415_v7 = vpop.eup %8414 }
 0x682   :  { %v5977_v2 = vmul.f32 %v8415_v7, %v5749_v31  ;;  %vm5983_vm2 = vweird.f32 %v8415_v7  ;;  %v6796_v31 = vld [vmem:[%s14792_s5 + $0x20] sm:$0xff] }
 0x683   :  { %5386 = vadd.xlane.f32.xlu0 %v5385_v15  ;;  %vm5984_vm4 = vmor %vm5982_vm3, %vm5983_vm2 }
 0x684   :  { %v5978_v13 = vmul.f32 %v8415_v7, %v5977_v2  ;;  %v4970_v2 = vadd.f32 %v4969_v62, %v13002_v59  ;;  %v5855_v62 = vsel %vm5854_vm7, %v8413_v3, %v5851_v25 }
 0x686   :  { %v5979_v48 = vmul.f32 0.5, %v5978_v13  ;;  %v5177_v13 = vpop.f32.mrf.mxu1 }
 0x687   :  { %5573 = vadd.xlane.f32.xlu1 %v5572_v24 }
 0x688   :  { %v5980_v32 = vsub.f32 1.5, %v5979_v48  ;;  %v5074_v48 = vadd.f32 %v5073_v21, %v4970_v2  ;;  %v6154_v21 = vld [vmem:[%s14790_s3 + $0x40] sm:$0xff] }
 0x689   :  { %v14026_v50 = vmul.f32 %v6154_v21, %v5855_v62 }
 0x68a   :  { %v5981_v39 = vmul.f32 %v8415_v7, %v5980_v32  ;;  %v5281_v32 = vpop.f32.mrf.mxu2  ;;  %v5178_v59 = vadd.f32 %v5177_v13, %v5074_v48 }
 0x68c   :  { %v6359_v15 = vpop.permute.xlu1 %6358  ;;  %v5985_v55 = vsel %vm5984_vm4, %v8415_v7, %v5981_v39 }
 0x68d   :  { %v6530_v28 = vmul.f32 %v6359_v15, %v13330_v51  ;;  %v14009_v24 = vmul.f32 %v6167_v58, %v5985_v55  ;;  %v14017_v51 = vadd.f32 %v5281_v32, %v5178_v59  ;;  %v6364_v25 = vpop.permute.xlu0 %6363 }
 0x68f   :  { %v6758_v44 = vadd.f32 %v6587_v16, %v6530_v28  ;;  %v14015_v5 = vmul.f32 %v14009_v24, %v5445_v38  ;;  %v5391_v38 = vsel %vm5309_vm1, %v14017_v51, 0.0  ;;  %v5384_v16 = vpop.xlane.xlu2 %5383 }
 0x691   :  { %v6834_v7 = vadd.f32 %v6796_v31, %v6758_v44  ;;  %v4968_v44 = vadd.f32 %v4967_v61, %v12972_v8  ;;  %v4972_v61 = vpop.f32.mrf.mxu3 }
 0x692   :  { %v4973_v31 = vadd.f32 %v4972_v61, %v13018_v54  ;;  %v6531_v54 = vmul.f32 %v6364_v25, %v13354_v47  ;;  %v6169_v61 = vld [vmem:[%s14790_s3 + $0xb8] sm:$0xff]  ;;  %v6231_v25 = vld [vmem:[%s14791_s4 + $0x48] sm:$0xff] }
 0x693   :  { %6872 = vst.msk [vmem:[%s14793_s6 + $0x20] sm:$0xff] %vm5309_vm1, %v6834_v7  ;;  %v5072_v11 = vadd.f32 %v5071_v43, %v4968_v44  ;;  %v5180_v7 = vpop.f32.mrf.mxu1  ;;  %v6798_v44 = vld [vmem:[%s14792_s5 + $0x30] sm:$0xff] }
 0x695   :  { %v5176_v3 = vadd.f32 %v5175_v41, %v5072_v11 }
 0x697   :  { %5392 = vadd.xlane.f32.xlu2 %v5391_v38  ;;  %6378 = vperm.xlu0 %8379, %v14026_v50   ;;  %v14034_v58 = vadd.f32 %v5279_v52, %v5176_v3  ;;  %v6369_v43 = vpop.permute.xlu2 %6368  ;;  %v5076_v52 = vpop.f32.mrf.mxu0 }
 0x698   :  { %v6532_v62 = vmul.f32 %v6369_v43, %v13371_v35  ;;  %v5077_v21 = vadd.f32 %v5076_v52, %v4973_v31  ;;  %v5284_v3 = vpop.f32.mrf.mxu2  ;;  %v6797_v35 = vld [vmem:[%s14792_s5 + $0x28] sm:$0xff]  ;;  %v6307_v52 = vsub.f32 %v6231_v25, %v13758_v42  ;;  %v6230_v42 = vld [vmem:[%s14791_s4 + $0x40] sm:$0xff] }
 0x699   :  { %v5488_v48 = vmul.f32 %v14034_v58, %v14034_v58  ;;  %v5388_v59 = vsel %vm5309_vm1, %v14034_v58, 0.0 }
 0x69b   :  { %v5182_v25 = vpop.f32.mrf.mxu1 }
 0x6a0   :  { %6373 = vperm.xlu1 %8380, %v13703_v57  }
 0x6af   :  { %6383 = vperm.xlu2 %8381, %v13752_v60   ;;  %v5578_v60 = vsel %vm5309_vm1, %v5488_v48, 0.0 }
 0x6b7   :  { %v5381_v39 = vpop.xlane.xlu1 %5380 }
 0x6b8   :  { %v5447_v2 = vmul.f32 0.020408163, %v5381_v39  ;;  %v5571_v15 = vpop.xlane.xlu0 %5570 }
 0x6b9   :  { %v5637_v55 = vmul.f32 0.020408163, %v5571_v15  ;;  %v5181_v15 = vadd.f32 %v5180_v7, %v5077_v21 }
 0x6ba   :  { %v5675_v13 = vmul.f32 %v5447_v2, %v5447_v2 }
 0x6bc   :  { %v5713_v28 = vsub.f32 %v5637_v55, %v5675_v13 }
 0x6be   :  { %v5751_v57 = vadd.f32 1e-05, %v5713_v28  ;;  %v14047_v28 = vadd.f32 %v5284_v3, %v5181_v15 }
 0x6c0   :  { %8416 = vrsqrt.f32 %v5751_v57  ;;  %vm6002_vm9 = vweird.f32 %v5751_v57  ;;  %v5490_v31 = vmul.f32 %v14047_v28, %v14047_v28 }
 0x6c1   :  { %5579 = vadd.xlane.f32.xlu0 %v5578_v60 }
 0x6c6   :  { %v8417_v8 = vpop.eup %8416 }
 0x6c7   :  { %v5997_v41 = vmul.f32 %v8417_v8, %v5751_v57  ;;  %vm6003_vm8 = vweird.f32 %v8417_v8 }
 0x6c8   :  { %vm6004_vm10 = vmor %vm6002_vm9, %vm6003_vm8 }
 0x6c9   :  { %v5998_v32 = vmul.f32 %v8417_v8, %v5997_v41 }
 0x6ca   :  { %5389 = vadd.xlane.f32.xlu1 %v5388_v59  ;;  %v5584_v59 = vsel %vm5309_vm1, %v5490_v31, 0.0 }
 0x6cb   :  { %v5999_v38 = vmul.f32 0.5, %v5998_v32  ;;  %v6597_v11 = vpop.permute.xlu0 %6596 }
 0x6cc   :  { %v6760_v39 = vadd.f32 %v6597_v11, %v6532_v62  ;;  %v6232_v62 = vld [vmem:[%s14791_s4 + $0x50] sm:$0xff]  ;;  %v5448_v11 = vmul.f32 0.020408163, %v5384_v16  ;;  %v5394_v16 = vsel %vm5309_vm1, %v14047_v28, 0.0 }
 0x6cd   :  { %v6000_v55 = vsub.f32 1.5, %v5999_v38  ;;  %v6308_v38 = vsub.f32 %v6232_v62, %v13782_v27 }
 0x6ce   :  { %v6836_v13 = vadd.f32 %v6798_v44, %v6760_v39  ;;  %v5577_v44 = vpop.xlane.xlu2 %5576 }
 0x6cf   :  { %v6001_v48 = vmul.f32 %v8417_v8, %v6000_v55  ;;  %v6592_v60 = vpop.permute.xlu1 %6591  ;;  %v14089_v39 = vmul.f32 0.020408163, %v5577_v44 }
 0x6d0   :  { %6874 = vst.msk [vmem:[%s14793_s6 + $0x30] sm:$0xff] %vm5309_vm1, %v6836_v13  ;;  %v6759_v47 = vadd.f32 %v6592_v60, %v6531_v54  ;;  %v4974_v60 = vpop.f32.mrf.mxu3 }
 0x6d1   :  { %v6005_v57 = vsel %vm6004_vm10, %v8417_v8, %v6001_v48  ;;  %v6268_v8 = vmul.f32 %v14026_v50, %v13652_v34 }
 0x6d2   :  { %v6835_v43 = vadd.f32 %v6797_v35, %v6759_v47  ;;  %v14062_v41 = vmul.f32 %v6169_v61, %v6005_v57  ;;  %v5078_v47 = vpop.f32.mrf.mxu0 }
 0x6d3   :  { %v6306_v7 = vsub.f32 %v6230_v42, %v6268_v8 }
 0x6d4   :  { %6873 = vst.msk [vmem:[%s14793_s6 + $0x28] sm:$0xff] %vm5309_vm1, %v6835_v43  ;;  %v14072_v32 = vmul.f32 %v14062_v41, %v5447_v2  ;;  %v14886_v2 = vsub.f32 %v13726_v14, %v13724_v0  ;;  %v5676_v14 = vmul.f32 %v5448_v11, %v5448_v11 }
 0x6d5   :  { %6611 = vperm.xlu0 %8379, %v6307_v52   ;;  %v5286_v52 = vpop.f32.mrf.mxu2 }
 0x6d6   :  { %v5739_v21 = vadd.f32 1e-05, %v14886_v2 }
 0x6d8   :  { %5585 = vadd.xlane.f32.xlu2 %v5584_v59  ;;  %8418 = vrsqrt.f32 %v5739_v21  ;;  %v5489_v59 = vmul.f32 %v14017_v51, %v14017_v51  ;;  %vm5882_vm12 = vweird.f32 %v5739_v21 }
 0x6da   :  { %v5581_v2 = vsel %vm5309_vm1, %v5489_v59, 0.0 }
 0x6de   :  { %v8419_v50 = vpop.eup %8418 }
 0x6df   :  { %v5877_v55 = vmul.f32 %v8419_v50, %v5739_v21  ;;  %vm5883_vm11 = vweird.f32 %v8419_v50  ;;  %v6170_v21 = vld [vmem:[%s14790_s3 + $0xc0] sm:$0xff] }
 0x6e0   :  { %vm5884_vm13 = vmor %vm5882_vm12, %vm5883_vm11 }
 0x6e1   :  { %v5878_v48 = vmul.f32 %v8419_v50, %v5877_v55 }
 0x6e3   :  { %6606 = vperm.xlu1 %8380, %v6306_v7   ;;  %v5879_v61 = vmul.f32 0.5, %v5878_v48  ;;  %v4977_v7 = vpop.f32.mrf.mxu3  ;;  %v5289_v48 = vpop.f32.mrf.mxu2 }
 0x6e4   :  { %v4978_v44 = vadd.f32 %v4977_v7, %v13061_v6 }
 0x6e5   :  { %v5880_v57 = vsub.f32 1.5, %v5879_v61 }
 0x6e7   :  { %v5881_v8 = vmul.f32 %v8419_v50, %v5880_v57 }
 0x6e9   :  { %v5885_v55 = vsel %vm5884_vm13, %v8419_v50, %v5881_v8  ;;  %v6799_v8 = vld [vmem:[%s14792_s5 + $0x38] sm:$0xff] }
 0x6f0   :  { %6616 = vperm.xlu2 %8381, %v6308_v38   ;;  %v5081_v38 = vpop.f32.mrf.mxu0 }
 0x6f6   :  { %v5387_v34 = vpop.xlane.xlu0 %5386 }
 0x6f7   :  { %v14087_v3 = vmul.f32 0.020408163, %v5387_v34 }
 0x6f9   :  { %v14093_v15 = vmul.f32 %v14087_v3, %v14087_v3 }
 0x6fa   :  { %v5574_v54 = vpop.xlane.xlu1 %5573 }
 0x6fb   :  { %v5638_v27 = vmul.f32 0.020408163, %v5574_v54  ;;  %v6157_v54 = vld [vmem:[%s14790_s3 + $0x58] sm:$0xff] }
 0x6fd   :  { %v5714_v13 = vsub.f32 %v5638_v27, %v5676_v14  ;;  %v5185_v14 = vpop.f32.mrf.mxu1  ;;  %v5082_v27 = vadd.f32 %v5081_v38, %v4978_v44 }
 0x6ff   :  { %v5752_v35 = vadd.f32 1e-05, %v5714_v13  ;;  %5395 = vadd.xlane.f32.xlu0 %v5394_v16  ;;  %v14109_v16 = vmul.f32 %v6157_v54, %v5885_v55  ;;  %v5186_v6 = vadd.f32 %v5185_v14, %v5082_v27 }
 0x701   :  { %8420 = vrsqrt.f32 %v5752_v35  ;;  %vm6012_vm15 = vweird.f32 %v5752_v35  ;;  %v14115_v59 = vadd.f32 %v5289_v48, %v5186_v6  ;;  %v4979_v6 = vpop.f32.mrf.mxu3 }
 0x707   :  { %v8421_v43 = vpop.eup %8420 }
 0x708   :  { %v6007_v31 = vmul.f32 %v8421_v43, %v5752_v35  ;;  %vm6013_vm14 = vweird.f32 %v8421_v43  ;;  %v6602_v35 = vpop.permute.xlu2 %6601 }
 0x709   :  { %vm6014_vm0 = vmor %vm6012_vm15, %vm6013_vm14  ;;  %v6379_v44 = vpop.permute.xlu0 %6378 }
 0x70a   :  { %v6008_v42 = vmul.f32 %v8421_v43, %v6007_v31 }
 0x70c   :  { %v6009_v62 = vmul.f32 0.5, %v6008_v42 }
 0x70d   :  { %5582 = vadd.xlane.f32.xlu1 %v5581_v2 }
 0x70e   :  { %v6010_v34 = vsub.f32 1.5, %v6009_v62 }
 0x710   :  { %v6011_v13 = vmul.f32 %v8421_v43, %v6010_v34  ;;  %v14136_v55 = vpop.xlane.xlu2 %5392 }
 0x712   :  { %v6374_v61 = vpop.permute.xlu1 %6373  ;;  %v6015_v57 = vsel %vm6014_vm0, %v8421_v43, %v6011_v13  ;;  %v5400_v43 = vsel %vm5309_vm1, %v14115_v59, 0.0 }
 0x713   :  { %v6533_v50 = vmul.f32 %v6374_v61, %v13392_v40  ;;  %6393 = vperm.xlu0 %8379, %v14109_v16   ;;  %v14113_v31 = vmul.f32 %v6170_v21, %v6015_v57  ;;  %v4975_v40 = vadd.f32 %v4974_v60, %v13045_v12  ;;  %v6801_v21 = vld [vmem:[%s14792_s5 + $0x48] sm:$0xff]  ;;  %v5083_v57 = vpop.f32.mrf.mxu0 }
 0x715   :  { %v6761_v42 = vadd.f32 %v6602_v35, %v6533_v50  ;;  %v14121_v7 = vmul.f32 %v14113_v31, %v5448_v11  ;;  %v5079_v2 = vadd.f32 %v5078_v47, %v4975_v40  ;;  %v14888_v35 = vld [vmem:[#allocation10_spill] sm:$0xff] }
 0x717   :  { %v6837_v62 = vadd.f32 %v6799_v8, %v6761_v42  ;;  %v5183_v38 = vadd.f32 %v5182_v25, %v5079_v2  ;;  %v14887_v25 = vld [vmem:[#allocation8_spill] sm:$0xff]  ;;  %v4980_v8 = vadd.f32 %v4979_v6, %v14888_v35 }
 0x718   :  { %v6384_v47 = vpop.permute.xlu2 %6383 }
 0x719   :  { %6875 = vst.msk [vmem:[%s14793_s6 + $0x38] sm:$0xff] %vm5309_vm1, %v6837_v62  ;;  %5401 = vadd.xlane.f32.xlu2 %v5400_v43  ;;  %v14132_v11 = vadd.f32 %v5286_v52, %v5183_v38  ;;  %v6535_v52 = vmul.f32 %v6384_v47, %v14887_v25  ;;  %v5187_v62 = vpop.f32.mrf.mxu1  ;;  %v6234_v43 = vld [vmem:[%s14791_s4 + $0x60] sm:$0xff]  ;;  %v5084_v40 = vadd.f32 %v5083_v57, %v4980_v8  ;;  %v5291_v38 = vpop.f32.mrf.mxu2  ;;  %v14889_v47 = vld [vmem:[#allocation7_spill] sm:$0xff] }
 0x71a   :  { %v6534_v25 = vmul.f32 %v6379_v44, %v14889_v47 }
 0x71b   :  { %v5491_v34 = vmul.f32 %v14132_v11, %v14132_v11 }
 0x71d   :  { %v5587_v54 = vsel %vm5309_vm1, %v5491_v34, 0.0  ;;  %v5188_v34 = vadd.f32 %v5187_v62, %v5084_v40  ;;  %v14891_v40 = vld [vmem:[#allocation26_spill] sm:$0xff] }
 0x726   :  { %6388 = vperm.xlu1 %8380, %v13774_v29  }
 0x731   :  { %6398 = vperm.xlu2 %8381, %v13825_v26  }
 0x734   :  { %v5580_v14 = vpop.xlane.xlu0 %5579 }
 0x735   :  { %v5640_v13 = vmul.f32 0.020408163, %v5580_v14  ;;  %v5397_v14 = vsel %vm5309_vm1, %v14132_v11, 0.0 }
 0x73d   :  { %v5390_v27 = vpop.xlane.xlu1 %5389  ;;  %5588 = vadd.xlane.f32.xlu0 %v5587_v54 }
 0x73e   :  { %v5450_v29 = vmul.f32 0.020408163, %v5390_v27  ;;  %v6310_v27 = vsub.f32 %v6234_v43, %v13833_v56 }
 0x740   :  { %v5678_v12 = vmul.f32 %v5450_v29, %v5450_v29 }
 0x742   :  { %v5716_v60 = vsub.f32 %v5640_v13, %v5678_v12  ;;  %v14154_v13 = vadd.f32 %v5291_v38, %v5188_v34 }
 0x744   :  { %v5754_v26 = vadd.f32 1e-05, %v5716_v60  ;;  %v5493_v6 = vmul.f32 %v14154_v13, %v14154_v13 }
 0x746   :  { %8422 = vrsqrt.f32 %v5754_v26  ;;  %vm6032_vm3 = vweird.f32 %v5754_v26  ;;  %v5593_v35 = vsel %vm5309_vm1, %v5493_v6, 0.0 }
 0x747   :  { %v6612_v48 = vpop.permute.xlu0 %6611 }
 0x748   :  { %v6763_v61 = vadd.f32 %v6612_v48, %v6535_v52  ;;  %v6172_v52 = vld [vmem:[%s14790_s3 + $0xd0] sm:$0xff]  ;;  %v6800_v48 = vld [vmem:[%s14792_s5 + $0x40] sm:$0xff] }
 0x74a   :  { %v6839_v50 = vadd.f32 %v6801_v21, %v6763_v61 }
 0x74c   :  { %v8423_v42 = vpop.eup %8422  ;;  %6877 = vst.msk [vmem:[%s14793_s6 + $0x48] sm:$0xff] %vm5309_vm1, %v6839_v50 }
 0x74d   :  { %v6027_v2 = vmul.f32 %v8423_v42, %v5754_v26  ;;  %vm6033_vm2 = vweird.f32 %v8423_v42  ;;  %v14890_v26 = vld [vmem:[#allocation21_spill] sm:$0xff] }
 0x74e   :  { %vm6034_vm4 = vmor %vm6032_vm3, %vm6033_vm2  ;;  %v6271_v62 = vmul.f32 %v14109_v16, %v14890_v26 }
 0x74f   :  { %v6028_v54 = vmul.f32 %v8423_v42, %v6027_v2  ;;  %v14892_v2 = vsub.f32 %v13801_v37, %v14891_v40 }
 0x750   :  { %5398 = vadd.xlane.f32.xlu1 %v5397_v14 }
 0x751   :  { %v6029_v12 = vmul.f32 0.5, %v6028_v54  ;;  %6626 = vperm.xlu0 %8379, %v6310_v27   ;;  %v5742_v38 = vadd.f32 1e-05, %v14892_v2  ;;  %v5586_v54 = vpop.xlane.xlu2 %5585 }
 0x753   :  { %v6030_v60 = vsub.f32 1.5, %v6029_v12  ;;  %8424 = vrsqrt.f32 %v5742_v38  ;;  %v14189_v12 = vmul.f32 0.020408163, %v5586_v54  ;;  %vm5912_vm6 = vweird.f32 %v5742_v38 }
 0x755   :  { %v6031_v21 = vmul.f32 %v8423_v42, %v6030_v60  ;;  %v6607_v56 = vpop.permute.xlu1 %6606 }
 0x756   :  { %v6762_v61 = vadd.f32 %v6607_v56, %v6534_v25 }
 0x757   :  { %v6035_v57 = vsel %vm6034_vm4, %v8423_v42, %v6031_v21  ;;  %v6233_v42 = vld [vmem:[%s14791_s4 + $0x58] sm:$0xff] }
 0x758   :  { %v14165_v50 = vmul.f32 %v6172_v52, %v6035_v57  ;;  %v6838_v44 = vadd.f32 %v6800_v48, %v6762_v61  ;;  %v6309_v43 = vsub.f32 %v6233_v42, %v6271_v62  ;;  %v5451_v52 = vmul.f32 0.020408163, %v14136_v55  ;;  %v4982_v57 = vpop.f32.mrf.mxu3  ;;  %v5190_v42 = vpop.f32.mrf.mxu1  ;;  %v6160_v55 = vld [vmem:[%s14790_s3 + $0x70] sm:$0xff] }
 0x759   :  { %v8425_v14 = vpop.eup %8424 }
 0x75a   :  { %v14169_v8 = vmul.f32 %v14165_v50, %v5450_v29  ;;  %6876 = vst.msk [vmem:[%s14793_s6 + $0x40] sm:$0xff] %vm5309_vm1, %v6838_v44  ;;  %5594 = vadd.xlane.f32.xlu2 %v5593_v35  ;;  %v6235_v29 = vld [vmem:[%s14791_s4 + $0x68] sm:$0xff]  ;;  %v5907_v60 = vmul.f32 %v8425_v14, %v5742_v38  ;;  %v5679_v56 = vmul.f32 %v5451_v52, %v5451_v52  ;;  %v5086_v35 = vpop.f32.mrf.mxu0  ;;  %vm5913_vm5 = vweird.f32 %v8425_v14 }
 0x75b   :  { %v6311_v34 = vsub.f32 %v6235_v29, %v13861_v49  ;;  %v5403_v49 = vsel %vm5309_vm1, %v14154_v13, 0.0  ;;  %vm5914_vm7 = vmor %vm5912_vm6, %vm5913_vm5 }
 0x75c   :  { %v5908_v25 = vmul.f32 %v8425_v14, %v5907_v60 }
 0x75e   :  { %v5909_v21 = vmul.f32 0.5, %v5908_v25  ;;  %v14893_v25 = vld [vmem:[#allocation2_spill] sm:$0xff] }
 0x760   :  { %v5910_v61 = vsub.f32 1.5, %v5909_v21  ;;  %v4984_v29 = vpop.f32.mrf.mxu3  ;;  %v5192_v21 = vpop.f32.mrf.mxu1 }
 0x761   :  { %v4985_v38 = vadd.f32 %v4984_v29, %v14893_v25 }
 0x762   :  { %v5911_v62 = vmul.f32 %v8425_v14, %v5910_v61  ;;  %v5088_v60 = vpop.f32.mrf.mxu0 }
 0x764   :  { %v5915_v40 = vsel %vm5914_vm7, %v8425_v14, %v5911_v62  ;;  %v5089_v14 = vadd.f32 %v5088_v60, %v4985_v38  ;;  %v14894_v60 = vld [vmem:[#allocation9_spill] sm:$0xff] }
 0x766   :  { %v5193_v61 = vadd.f32 %v5192_v21, %v5089_v14 }
 0x769   :  { %6621 = vperm.xlu1 %8380, %v6309_v43   ;;  %v5294_v43 = vpop.f32.mrf.mxu2 }
 0x772   :  { %6631 = vperm.xlu2 %8381, %v6311_v34   ;;  %v5396_v16 = vpop.xlane.xlu0 %5395  ;;  %v14203_v34 = vmul.f32 %v6160_v55, %v5915_v40  ;;  %v6173_v55 = vld [vmem:[%s14790_s3 + $0xd8] sm:$0xff] }
 0x773   :  { %v14187_v27 = vmul.f32 0.020408163, %v5396_v16  ;;  %v5492_v16 = vmul.f32 %v14115_v59, %v14115_v59 }
 0x775   :  { %v14193_v37 = vmul.f32 %v14187_v27, %v14187_v27 }
 0x77b   :  { %5404 = vadd.xlane.f32.xlu0 %v5403_v49 }
 0x780   :  { %v5583_v48 = vpop.xlane.xlu1 %5582 }
 0x781   :  { %v5641_v6 = vmul.f32 0.020408163, %v5583_v48 }
 0x783   :  { %v5717_v44 = vsub.f32 %v5641_v6, %v5679_v56  ;;  %v5590_v56 = vsel %vm5309_vm1, %v5492_v16, 0.0  ;;  %v5296_v6 = vpop.f32.mrf.mxu2  ;;  %v6617_v16 = vpop.permute.xlu2 %6616 }
 0x784   :  { %v14210_v62 = vadd.f32 %v5296_v6, %v5193_v61 }
 0x785   :  { %v5755_v26 = vadd.f32 1e-05, %v5717_v44 }
 0x786   :  { %v5409_v21 = vsel %vm5309_vm1, %v14210_v62, 0.0 }
 0x787   :  { %8426 = vrsqrt.f32 %v5755_v26  ;;  %vm6042_vm9 = vweird.f32 %v5755_v26 }
 0x78d   :  { %v8427_v2 = vpop.eup %8426 }
 0x78e   :  { %v6037_v54 = vmul.f32 %v8427_v2, %v5755_v26  ;;  %vm6043_vm8 = vweird.f32 %v8427_v2 }
 0x78f   :  { %6408 = vperm.xlu0 %8379, %v14203_v34   ;;  %vm6044_vm10 = vmor %vm6042_vm9, %vm6043_vm8 }
 0x790   :  { %v6038_v49 = vmul.f32 %v8427_v2, %v6037_v54 }
 0x792   :  { %v6039_v48 = vmul.f32 0.5, %v6038_v49  ;;  %v6802_v49 = vld [vmem:[%s14792_s5 + $0x50] sm:$0xff] }
 0x793   :  { %5591 = vadd.xlane.f32.xlu1 %v5590_v56 }
 0x794   :  { %v6040_v44 = vsub.f32 1.5, %v6039_v48 }
 0x796   :  { %v6041_v40 = vmul.f32 %v8427_v2, %v6040_v44 }
 0x798   :  { %v6389_v29 = vpop.permute.xlu1 %6388  ;;  %v6045_v54 = vsel %vm6044_vm10, %v8427_v2, %v6041_v40  ;;  %v14895_v2 = vld [vmem:[#allocation11_spill] sm:$0xff]  ;;  %v6394_v40 = vpop.permute.xlu0 %6393 }
 0x799   :  { %v6536_v25 = vmul.f32 %v6389_v29, %v14894_v60  ;;  %v14216_v38 = vmul.f32 %v6173_v55, %v6045_v54  ;;  %v4983_v56 = vadd.f32 %v4982_v57, %v14895_v2  ;;  %v14237_v55 = vpop.xlane.xlu2 %5401  ;;  %v14897_v57 = vld [vmem:[#allocation14_spill] sm:$0xff] }
 0x79b   :  { %v6764_v26 = vadd.f32 %v6617_v16, %v6536_v25  ;;  %5410 = vadd.xlane.f32.xlu2 %v5409_v21  ;;  %v14224_v14 = vmul.f32 %v14216_v38, %v5451_v52  ;;  %v5087_v6 = vadd.f32 %v5086_v35, %v4983_v56  ;;  %v14898_v16 = vsub.f32 %v13849_v23, %v13847_v1  ;;  %v6237_v56 = vld [vmem:[%s14791_s4 + $0x78] sm:$0xff]  ;;  %v5091_v1 = vpop.f32.mrf.mxu0  ;;  %v14899_v23 = vld [vmem:[#allocation3_spill] sm:$0xff] }
 0x79d   :  { %v6840_v48 = vadd.f32 %v6802_v49, %v6764_v26  ;;  %v5191_v61 = vadd.f32 %v5190_v42, %v5087_v6  ;;  %v5744_v49 = vadd.f32 1e-05, %v14898_v16  ;;  %v4987_v6 = vpop.f32.mrf.mxu3 }
 0x79f   :  { %6878 = vst.msk [vmem:[%s14793_s6 + $0x50] sm:$0xff] %vm5309_vm1, %v6840_v48  ;;  %v14232_v44 = vadd.f32 %v5294_v43, %v5191_v61  ;;  %8428 = vrsqrt.f32 %v5744_v49  ;;  %vm5932_vm15 = vweird.f32 %v5744_v49 }
 0x7a1   :  { %14896 = vst [vmem:[#allocation8_spill] sm:$0xff] %v14232_v44  ;;  %v5494_v52 = vmul.f32 %v14232_v44, %v14232_v44  ;;  %v6399_v60 = vpop.permute.xlu2 %6398 }
 0x7a2   :  { %v6538_v35 = vmul.f32 %v6399_v60, %v14897_v57 }
 0x7a3   :  { %v5596_v29 = vsel %vm5309_vm1, %v5494_v52, 0.0  ;;  %v6313_v52 = vsub.f32 %v6237_v56, %v13887_v9 }
 0x7a5   :  { %v8429_v57 = vpop.eup %8428 }
 0x7a6   :  { %vm5933_vm14 = vweird.f32 %v8429_v57 }
 0x7a7   :  { %vm5934_vm0 = vmor %vm5932_vm15, %vm5933_vm14 }
 0x7ac   :  { %6403 = vperm.xlu1 %8380, %v13851_v36   ;;  %v6804_v36 = vld [vmem:[%s14792_s5 + $0x60] sm:$0xff] }
 0x7b0   :  { %v5589_v54 = vpop.xlane.xlu0 %5588 }
 0x7b1   :  { %v5643_v21 = vmul.f32 0.020408163, %v5589_v54  ;;  %v5195_v54 = vpop.f32.mrf.mxu1 }
 0x7b3   :  { %6413 = vperm.xlu2 %8381, %v13883_v33  }
 0x7b9   :  { %5597 = vadd.xlane.f32.xlu0 %v5596_v29  ;;  %v4988_v29 = vadd.f32 %v4987_v6, %v14899_v23  ;;  %v14901_v6 = vld [vmem:[#allocation12_spill] sm:$0xff]  ;;  %v6175_v23 = vld [vmem:[%s14790_s3 + $0xe8] sm:$0xff] }
 0x7bb   :  { %v5092_v60 = vadd.f32 %v5091_v1, %v4988_v29 }
 0x7c3   :  { %v6627_v42 = vpop.permute.xlu0 %6626  ;;  %v5399_v43 = vpop.xlane.xlu1 %5398 }
 0x7c4   :  { %v6766_v25 = vadd.f32 %v6627_v42, %v6538_v35  ;;  %v5453_v33 = vmul.f32 0.020408163, %v5399_v43  ;;  %v5299_v35 = vpop.f32.mrf.mxu2  ;;  %v5927_v43 = vmul.f32 %v8429_v57, %v5744_v49 }
 0x7c6   :  { %v6842_v26 = vadd.f32 %v6804_v36, %v6766_v25  ;;  %v5681_v48 = vmul.f32 %v5453_v33, %v5453_v33  ;;  %v5196_v36 = vadd.f32 %v5195_v54, %v5092_v60  ;;  %v5928_v9 = vmul.f32 %v8429_v57, %v5927_v43  ;;  %v6803_v54 = vld [vmem:[%s14792_s5 + $0x58] sm:$0xff] }
 0x7c8   :  { %6880 = vst.msk [vmem:[%s14793_s6 + $0x60] sm:$0xff] %vm5309_vm1, %v6842_v26  ;;  %v5719_v2 = vsub.f32 %v5643_v21, %v5681_v48  ;;  %v14256_v25 = vadd.f32 %v5299_v35, %v5196_v36  ;;  %v5406_v26 = vsel %vm5309_vm1, %v14232_v44, 0.0  ;;  %v5929_v1 = vmul.f32 0.5, %v5928_v9  ;;  %v14902_v9 = vld [vmem:[#allocation29_spill] sm:$0xff] }
 0x7ca   :  { %v5757_v61 = vadd.f32 1e-05, %v5719_v2  ;;  %14900 = vst [vmem:[#allocation10_spill] sm:$0xff] %v14256_v25  ;;  %v5496_v2 = vmul.f32 %v14256_v25, %v14256_v25 }
 0x7cc   :  { %8430 = vrsqrt.f32 %v5757_v61  ;;  %vm6062_vm12 = vweird.f32 %v5757_v61  ;;  %v5602_v35 = vsel %vm5309_vm1, %v5496_v2, 0.0 }
 0x7cd   :  { %6641 = vperm.xlu0 %8379, %v6313_v52   ;;  %v6537_v52 = vmul.f32 %v6394_v40, %v14901_v6 }
 0x7d2   :  { %v8431_v42 = vpop.eup %8430 }
 0x7d3   :  { %v6057_v16 = vmul.f32 %v8431_v42, %v5757_v61  ;;  %vm6063_vm11 = vweird.f32 %v8431_v42 }
 0x7d4   :  { %vm6064_vm13 = vmor %vm6062_vm12, %vm6063_vm11 }
 0x7d5   :  { %v6058_v21 = vmul.f32 %v8431_v42, %v6057_v16 }
 0x7d6   :  { %5407 = vadd.xlane.f32.xlu1 %v5406_v26 }
 0x7d7   :  { %v6059_v48 = vmul.f32 0.5, %v6058_v21  ;;  %v5930_v21 = vsub.f32 1.5, %v5929_v1 }
 0x7d9   :  { %v6060_v56 = vsub.f32 1.5, %v6059_v48  ;;  %v5931_v61 = vmul.f32 %v8429_v57, %v5930_v21  ;;  %v14903_v48 = vsub.f32 %v13873_v17, %v14902_v9  ;;  %v5412_v9 = vsel %vm5309_vm1, %v14256_v25, 0.0 }
 0x7db   :  { %v6061_v29 = vmul.f32 %v8431_v42, %v6060_v56  ;;  %v6622_v60 = vpop.permute.xlu1 %6621  ;;  %v5745_v2 = vadd.f32 1e-05, %v14903_v48  ;;  %v6162_v56 = vld [vmem:[%s14790_s3 + $0x80] sm:$0xff] }
 0x7dc   :  { %v6765_v36 = vadd.f32 %v6622_v60, %v6537_v52  ;;  %5603 = vadd.xlane.f32.xlu2 %v5602_v35  ;;  %v6236_v52 = vld [vmem:[%s14791_s4 + $0x70] sm:$0xff] }
 0x7dd   :  { %v6065_v43 = vsel %vm6064_vm13, %v8431_v42, %v6061_v29  ;;  %v5935_v42 = vsel %vm5934_vm0, %v8429_v57, %v5931_v61  ;;  %8432 = vrsqrt.f32 %v5745_v2  ;;  %v14905_v29 = vld [vmem:[#allocation27_spill] sm:$0xff]  ;;  %vm5942_vm3 = vweird.f32 %v5745_v2 }
 0x7de   :  { %v14270_v16 = vmul.f32 %v6175_v23, %v6065_v43  ;;  %v6841_v40 = vadd.f32 %v6803_v54, %v6765_v36  ;;  %v14290_v1 = vmul.f32 %v6162_v56, %v5935_v42  ;;  %v5595_v23 = vpop.xlane.xlu2 %5594 }
 0x7df   :  { %v14299_v35 = vmul.f32 0.020408163, %v5595_v23  ;;  %v6163_v23 = vld [vmem:[%s14790_s3 + $0x88] sm:$0xff] }
 0x7e0   :  { %v14273_v26 = vmul.f32 %v14270_v16, %v5453_v33  ;;  %6879 = vst.msk [vmem:[%s14793_s6 + $0x58] sm:$0xff] %vm5309_vm1, %v6841_v40  ;;  %v14904_v33 = vld [vmem:[#allocation25_spill] sm:$0xff]  ;;  %v6276_v57 = vmul.f32 %v14290_v1, %v14905_v29 }
 0x7e1   :  { %v6274_v6 = vmul.f32 %v14203_v34, %v14904_v33  ;;  %v6238_v34 = vld [vmem:[%s14791_s4 + $0x80] sm:$0xff]  ;;  %v5454_v33 = vmul.f32 0.020408163, %v14237_v55 }
 0x7e2   :  { %v6314_v40 = vsub.f32 %v6238_v34, %v6276_v57  ;;  %v5197_v34 = vpop.f32.mrf.mxu1 }
 0x7e3   :  { %v6312_v49 = vsub.f32 %v6236_v52, %v6274_v6  ;;  %v8433_v54 = vpop.eup %8432  ;;  %v4989_v6 = vpop.f32.mrf.mxu3  ;;  %v5682_v29 = vmul.f32 %v5454_v33, %v5454_v33 }
 0x7e4   :  { %v5937_v43 = vmul.f32 %v8433_v54, %v5745_v2  ;;  %vm5943_vm2 = vweird.f32 %v8433_v54 }
 0x7e5   :  { %vm5944_vm4 = vmor %vm5942_vm3, %vm5943_vm2 }
 0x7e6   :  { %v5938_v61 = vmul.f32 %v8433_v54, %v5937_v43 }
 0x7e8   :  { %v5939_v48 = vmul.f32 0.5, %v5938_v61  ;;  %v5301_v61 = vpop.f32.mrf.mxu2 }
 0x7ea   :  { %v5940_v42 = vsub.f32 1.5, %v5939_v48  ;;  %v14906_v48 = vld [vmem:[#allocation5_spill] sm:$0xff] }
 0x7eb   :  { %v4992_v55 = vpop.f32.mrf.mxu3 }
 0x7ec   :  { %v5941_v56 = vmul.f32 %v8433_v54, %v5940_v42 }
 0x7ee   :  { %v5405_v17 = vpop.xlane.xlu0 %5404 }
 0x7ef   :  { %v14294_v60 = vmul.f32 0.020408163, %v5405_v17  ;;  %6636 = vperm.xlu1 %8380, %v6312_v49   ;;  %v5945_v49 = vsel %vm5944_vm4, %v8433_v54, %v5941_v56  ;;  %v5093_v17 = vpop.f32.mrf.mxu0  ;;  %v4993_v54 = vadd.f32 %v4992_v55, %v14906_v48  ;;  %v5200_v56 = vpop.f32.mrf.mxu1 }
 0x7f0   :  { %v5304_v0 = vpop.f32.mrf.mxu2 }
 0x7f1   :  { %v14303_v36 = vmul.f32 %v14294_v60, %v14294_v60 }
 0x7f4   :  { %6646 = vperm.xlu2 %8381, %v6314_v40   ;;  %v14313_v40 = vmul.f32 %v6163_v23, %v5945_v49 }
 0x7f7   :  { %5413 = vadd.xlane.f32.xlu0 %v5412_v9  ;;  %v5096_v2 = vpop.f32.mrf.mxu0 }
 0x7f8   :  { %v5097_v21 = vadd.f32 %v5096_v2, %v4993_v54  ;;  %v6176_v2 = vld [vmem:[%s14790_s3 + $0xf0] sm:$0xff] }
 0x806   :  { %v5592_v52 = vpop.xlane.xlu1 %5591 }
 0x807   :  { %v5644_v57 = vmul.f32 0.020408163, %v5592_v52  ;;  %v5495_v52 = vmul.f32 %v14210_v62, %v14210_v62 }
 0x809   :  { %v5720_v43 = vsub.f32 %v5644_v57, %v5682_v29  ;;  %v5201_v29 = vadd.f32 %v5200_v56, %v5097_v21  ;;  %v14907_v21 = vld [vmem:[#allocation13_spill] sm:$0xff]  ;;  %v6632_v56 = vpop.permute.xlu2 %6631 }
 0x80b   :  { %v5758_v9 = vadd.f32 1e-05, %v5720_v43  ;;  %6423 = vperm.xlu0 %8379, %v14313_v40   ;;  %v14319_v23 = vadd.f32 %v5304_v0, %v5201_v29  ;;  %v5599_v43 = vsel %vm5309_vm1, %v5495_v52, 0.0 }
 0x80d   :  { %8434 = vrsqrt.f32 %v5758_v9  ;;  %vm6072_vm6 = vweird.f32 %v5758_v9  ;;  %v5418_v55 = vsel %vm5309_vm1, %v14319_v23, 0.0 }
 0x813   :  { %v8435_v42 = vpop.eup %8434 }
 0x814   :  { %v6067_v47 = vmul.f32 %v8435_v42, %v5758_v9  ;;  %vm6073_vm5 = vweird.f32 %v8435_v42 }
 0x815   :  { %vm6074_vm7 = vmor %vm6072_vm6, %vm6073_vm5 }
 0x816   :  { %v6068_v49 = vmul.f32 %v8435_v42, %v6067_v47 }
 0x818   :  { %v6069_v57 = vmul.f32 0.5, %v6068_v49 }
 0x819   :  { %5600 = vadd.xlane.f32.xlu1 %v5599_v43 }
 0x81a   :  { %v6070_v25 = vsub.f32 1.5, %v6069_v57 }
 0x81c   :  { %v6071_v44 = vmul.f32 %v8435_v42, %v6070_v25  ;;  %v6805_v25 = vld [vmem:[%s14792_s5 + $0x68] sm:$0xff] }
 0x81d   :  { %5419 = vadd.xlane.f32.xlu2 %v5418_v55  ;;  %v6409_v55 = vpop.permute.xlu0 %6408 }
 0x81e   :  { %v6404_v47 = vpop.permute.xlu1 %6403  ;;  %v6075_v0 = vsel %vm6074_vm7, %v8435_v42, %v6071_v44  ;;  %v14908_v44 = vld [vmem:[#allocation4_spill] sm:$0xff] }
 0x81f   :  { %v6539_v48 = vmul.f32 %v6404_v47, %v14907_v21  ;;  %v14328_v54 = vmul.f32 %v6176_v2, %v6075_v0  ;;  %v4990_v42 = vadd.f32 %v4989_v6, %v14908_v44  ;;  %v14345_v47 = vpop.xlane.xlu2 %5410  ;;  %v14909_v6 = vld [vmem:[#allocation16_spill] sm:$0xff] }
 0x821   :  { %v6767_v9 = vadd.f32 %v6632_v56, %v6539_v48  ;;  %v14334_v52 = vmul.f32 %v14328_v54, %v5454_v33  ;;  %v5094_v49 = vadd.f32 %v5093_v17, %v4990_v42  ;;  %v4994_v42 = vpop.f32.mrf.mxu3 }
 0x823   :  { %v6843_v29 = vadd.f32 %v6805_v25, %v6767_v9  ;;  %v5198_v57 = vadd.f32 %v5197_v34, %v5094_v49  ;;  %v6807_v34 = vld [vmem:[%s14792_s5 + $0x78] sm:$0xff]  ;;  %v14910_v25 = vsub.f32 %v13928_v53, %v13932_v63 }
 0x825   :  { %6881 = vst.msk [vmem:[%s14793_s6 + $0x68] sm:$0xff] %vm5309_vm1, %v6843_v29  ;;  %v14341_v43 = vadd.f32 %v5301_v61, %v5198_v57  ;;  %v5747_v9 = vadd.f32 1e-05, %v14910_v25 }
 0x827   :  { %v5497_v2 = vmul.f32 %v14341_v43, %v14341_v43  ;;  %v6414_v21 = vpop.permute.xlu2 %6413  ;;  %8436 = vrsqrt.f32 %v5747_v9  ;;  %vm5962_vm12 = vweird.f32 %v5747_v9 }
 0x828   :  { %v6541_v17 = vmul.f32 %v6414_v21, %v14909_v6  ;;  %v14911_v21 = vld [vmem:[#allocation6_spill] sm:$0xff] }
 0x829   :  { %v5605_v33 = vsel %vm5309_vm1, %v5497_v2, 0.0  ;;  %v5098_v2 = vpop.f32.mrf.mxu0  ;;  %v4995_v6 = vadd.f32 %v4994_v42, %v14911_v21 }
 0x82c   :  { %v5598_v0 = vpop.xlane.xlu0 %5597 }
 0x82d   :  { %v5646_v49 = vmul.f32 0.020408163, %v5598_v0 }
 0x832   :  { %6418 = vperm.xlu1 %8380, %v14290_v1  }
 0x835   :  { %6428 = vperm.xlu2 %8381, %v13906_v30   ;;  %5606 = vadd.xlane.f32.xlu0 %v5605_v33  ;;  %v6240_v30 = vld [vmem:[%s14791_s4 + $0x90] sm:$0xff] }
 0x836   :  { %v6316_v1 = vsub.f32 %v6240_v30, %v13912_v18  ;;  %v5306_v18 = vpop.f32.mrf.mxu2 }
 0x83f   :  { %v6642_v61 = vpop.permute.xlu0 %6641 }
 0x840   :  { %v6769_v48 = vadd.f32 %v6642_v61, %v6541_v17  ;;  %v5202_v17 = vpop.f32.mrf.mxu1  ;;  %v5099_v61 = vadd.f32 %v5098_v2, %v4995_v6 }
 0x842   :  { %v6845_v56 = vadd.f32 %v6807_v34, %v6769_v48  ;;  %v8437_v48 = vpop.eup %8436 }
 0x843   :  { %v5957_v63 = vmul.f32 %v8437_v48, %v5747_v9  ;;  %vm5963_vm11 = vweird.f32 %v8437_v48 }
 0x844   :  { %6883 = vst.msk [vmem:[%s14793_s6 + $0x78] sm:$0xff] %vm5309_vm1, %v6845_v56  ;;  %v5203_v56 = vadd.f32 %v5202_v17, %v5099_v61  ;;  %v6178_v61 = vld [vmem:[%s14790_s3 + $0x100] sm:$0xff]  ;;  %vm5964_vm13 = vmor %vm5962_vm12, %vm5963_vm11 }
 0x845   :  { %v5958_v25 = vmul.f32 %v8437_v48, %v5957_v63 }
 0x846   :  { %v14366_v53 = vadd.f32 %v5306_v18, %v5203_v56  ;;  %v6806_v56 = vld [vmem:[%s14792_s5 + $0x70] sm:$0xff] }
 0x847   :  { %v5959_v2 = vmul.f32 0.5, %v5958_v25 }
 0x848   :  { %v5499_v42 = vmul.f32 %v14366_v53, %v14366_v53 }
 0x849   :  { %6656 = vperm.xlu0 %8379, %v6316_v1   ;;  %v5408_v29 = vpop.xlane.xlu1 %5407  ;;  %v14912_v1 = vsub.f32 %v13991_v46, %v13995_v19  ;;  %v14913_v46 = vld [vmem:[#allocation15_spill] sm:$0xff]  ;;  %v5960_v17 = vsub.f32 1.5, %v5959_v2 }
 0x84a   :  { %v5456_v44 = vmul.f32 0.020408163, %v5408_v29  ;;  %v5611_v21 = vsel %vm5309_vm1, %v5499_v42, 0.0  ;;  %v6540_v19 = vmul.f32 %v6409_v55, %v14913_v46 }
 0x84b   :  { %v5750_v0 = vadd.f32 1e-05, %v14912_v1  ;;  %v5961_v55 = vmul.f32 %v8437_v48, %v5960_v17 }
 0x84c   :  { %v5684_v57 = vmul.f32 %v5456_v44, %v5456_v44 }
 0x84d   :  { %vm5992_vm15 = vweird.f32 %v5750_v0 }
 0x84e   :  { %v5722_v33 = vsub.f32 %v5646_v49, %v5684_v57  ;;  %v5415_v57 = vsel %vm5309_vm1, %v14341_v43, 0.0 }
 0x850   :  { %v5760_v34 = vadd.f32 1e-05, %v5722_v33 }
 0x852   :  { %8438 = vrsqrt.f32 %v5760_v34  ;;  %vm6092_vm9 = vweird.f32 %v5760_v34 }
 0x853   :  { %8440 = vrsqrt.f32 %v5750_v0 }
 0x858   :  { %v8439_v30 = vpop.eup %8438 }
 0x859   :  { %v6087_v29 = vmul.f32 %v8439_v30, %v5760_v34  ;;  %vm6093_vm8 = vweird.f32 %v8439_v30  ;;  %v8441_v1 = vpop.eup %8440  ;;  %v14914_v34 = vsub.f32 %v14089_v39, %v14093_v15  ;;  %v6239_v39 = vld [vmem:[%s14791_s4 + $0x88] sm:$0xff]  ;;  %v6241_v15 = vld [vmem:[%s14791_s4 + $0x98] sm:$0xff] }
 0x85a   :  { %vm6094_vm10 = vmor %vm6092_vm9, %vm6093_vm8  ;;  %vm5993_vm14 = vweird.f32 %v8441_v1 }
 0x85b   :  { %v6088_v49 = vmul.f32 %v8439_v30, %v6087_v29  ;;  %vm5994_vm0 = vmor %vm5992_vm15, %vm5993_vm14 }
 0x85c   :  { %5416 = vadd.xlane.f32.xlu1 %v5415_v57  ;;  %v5987_v57 = vmul.f32 %v8441_v1, %v5750_v0 }
 0x85d   :  { %v6089_v33 = vmul.f32 0.5, %v6088_v49 }
 0x85e   :  { %5612 = vadd.xlane.f32.xlu2 %v5611_v21  ;;  %v5965_v21 = vsel %vm5964_vm13, %v8437_v48, %v5961_v55 }
 0x85f   :  { %v6090_v6 = vsub.f32 1.5, %v6089_v33  ;;  %v6165_v33 = vld [vmem:[%s14790_s3 + $0x98] sm:$0xff] }
 0x860   :  { %v14398_v46 = vmul.f32 %v6165_v33, %v5965_v21 }
 0x861   :  { %v6091_v18 = vmul.f32 %v8439_v30, %v6090_v6  ;;  %v6637_v63 = vpop.permute.xlu1 %6636  ;;  %v5988_v6 = vmul.f32 %v8441_v1, %v5987_v57 }
 0x862   :  { %v6768_v25 = vadd.f32 %v6637_v63, %v6540_v19  ;;  %v14915_v19 = vld [vmem:[#allocation28_spill] sm:$0xff]  ;;  %v6279_v9 = vmul.f32 %v14398_v46, %v13925_v4  ;;  %v14916_v4 = vsub.f32 %v14189_v12, %v14193_v37 }
 0x863   :  { %v6095_v29 = vsel %vm6094_vm10, %v8439_v30, %v6091_v18  ;;  %v5753_v30 = vadd.f32 1e-05, %v14914_v34  ;;  %v6277_v17 = vmul.f32 %v14313_v40, %v14915_v19  ;;  %v5421_v18 = vsel %vm5309_vm1, %v14366_v53, 0.0  ;;  %v6244_v12 = vld [vmem:[%s14791_s4 + $0xb0] sm:$0xff] }
 0x864   :  { %v14383_v42 = vmul.f32 %v6178_v61, %v6095_v29  ;;  %v6844_v49 = vadd.f32 %v6806_v56, %v6768_v25  ;;  %v6317_v63 = vsub.f32 %v6241_v15, %v6279_v9  ;;  %v5756_v29 = vadd.f32 1e-05, %v14916_v4  ;;  %v6243_v15 = vld [vmem:[%s14791_s4 + $0xa8] sm:$0xff] }
 0x865   :  { %8442 = vrsqrt.f32 %v5753_v30  ;;  %v6315_v56 = vsub.f32 %v6239_v39, %v6277_v17  ;;  %vm6022_vm3 = vweird.f32 %v5753_v30  ;;  %v6171_v17 = vld [vmem:[%s14790_s3 + $0xc8] sm:$0xff] }
 0x866   :  { %v14386_v2 = vmul.f32 %v14383_v42, %v5456_v44  ;;  %6882 = vst.msk [vmem:[%s14793_s6 + $0x70] sm:$0xff] %vm5309_vm1, %v6844_v49  ;;  %v5989_v44 = vmul.f32 0.5, %v5988_v6  ;;  %v6168_v49 = vld [vmem:[%s14790_s3 + $0xb0] sm:$0xff]  ;;  %8444 = vrsqrt.f32 %v5756_v29  ;;  %vm6052_vm6 = vweird.f32 %v5756_v29 }
 0x868   :  { %v5990_v48 = vsub.f32 1.5, %v5989_v44 }
 0x86a   :  { %v5991_v40 = vmul.f32 %v8441_v1, %v5990_v48  ;;  %v6319_v48 = vsub.f32 %v6243_v15, %v14015_v5 }
 0x86b   :  { %v8443_v61 = vpop.eup %8442 }
 0x86c   :  { %v6017_v25 = vmul.f32 %v8443_v61, %v5753_v30  ;;  %v5995_v55 = vsel %vm5994_vm0, %v8441_v1, %v5991_v40  ;;  %v8445_v21 = vpop.eup %8444  ;;  %vm6023_vm2 = vweird.f32 %v8443_v61 }
 0x86d   :  { %v14418_v34 = vmul.f32 %v6168_v49, %v5995_v55  ;;  %v6047_v1 = vmul.f32 %v8445_v21, %v5756_v29  ;;  %vm6024_vm4 = vmor %vm6022_vm3, %vm6023_vm2  ;;  %vm6053_vm5 = vweird.f32 %v8445_v21  ;;  %v5498_v29 = vmul.f32 %v14319_v23, %v14319_v23 }
 0x86e   :  { %v6018_v57 = vmul.f32 %v8443_v61, %v6017_v25  ;;  %v6247_v25 = vld [vmem:[%s14791_s4 + $0xc8] sm:$0xff]  ;;  %vm6054_vm7 = vmor %vm6052_vm6, %vm6053_vm5 }
 0x86f   :  { %v6282_v0 = vmul.f32 %v14418_v34, %v13989_v45  ;;  %v5414_v45 = vpop.xlane.xlu0 %5413  ;;  %v6048_v39 = vmul.f32 %v8445_v21, %v6047_v1  ;;  %v6246_v1 = vld [vmem:[%s14791_s4 + $0xc0] sm:$0xff] }
 0x870   :  { %v6019_v33 = vmul.f32 0.5, %v6018_v57  ;;  %v14438_v30 = vmul.f32 0.020408163, %v5414_v45  ;;  %v6322_v45 = vsub.f32 %v6246_v1, %v14121_v7 }
 0x871   :  { %v6320_v6 = vsub.f32 %v6244_v12, %v6282_v0 }
 0x872   :  { %v6020_v37 = vsub.f32 1.5, %v6019_v33 }
 0x873   :  { %5422 = vadd.xlane.f32.xlu0 %v5421_v18  ;;  %v14445_v18 = vmul.f32 0.020408163, %v14345_v47 }
 0x874   :  { %v6021_v44 = vmul.f32 %v8443_v61, %v6020_v37  ;;  %v6174_v37 = vld [vmem:[%s14790_s3 + $0xe0] sm:$0xff] }
 0x875   :  { %6651 = vperm.xlu1 %8380, %v6315_v56   ;;  %v5604_v56 = vpop.xlane.xlu2 %5603  ;;  %v5685_v47 = vmul.f32 %v14445_v18, %v14445_v18 }
 0x876   :  { %6661 = vperm.xlu2 %8381, %v6317_v63   ;;  %v6025_v9 = vsel %vm6024_vm4, %v8443_v61, %v6021_v44  ;;  %v5686_v61 = vmul.f32 %v14438_v30, %v14438_v30  ;;  %v5648_v5 = vmul.f32 0.020408163, %v5604_v56 }
 0x878   :  { %v5724_v55 = vsub.f32 %v5648_v5, %v5686_v61 }
 0x87d   :  { %v6647_v56 = vpop.permute.xlu2 %6646 }
 0x87e   :  { %6443 = vperm.xlu2 %8381, %v14009_v24   ;;  %v14917_v24 = vsub.f32 %v14299_v35, %v14303_v36  ;;  %v6049_v35 = vmul.f32 0.5, %v6048_v39  ;;  %v6250_v39 = vld [vmem:[%s14791_s4 + $0xe0] sm:$0xff] }
 0x880   :  { %v14430_v19 = vadd.f32 1e-05, %v14917_v24  ;;  %v6050_v4 = vsub.f32 1.5, %v6049_v35 }
 0x882   :  { %8446 = vrsqrt.f32 %v14430_v19  ;;  %v6051_v33 = vmul.f32 %v8445_v21, %v6050_v4  ;;  %vm6082_vm9 = vweird.f32 %v14430_v19  ;;  %v6177_v4 = vld [vmem:[%s14790_s3 + $0xf8] sm:$0xff] }
 0x886   :  { %6676 = vperm.xlu2 %8381, %v6320_v6   ;;  %v6055_v6 = vsel %vm6054_vm7, %v8445_v21, %v6051_v33  ;;  %v5608_v21 = vsel %vm5309_vm1, %v5498_v29, 0.0  ;;  %v14497_v33 = vpop.permute.xlu0 %6423 }
 0x887   :  { %6438 = vperm.xlu0 %8379, %v13954_v22   ;;  %v14440_v22 = vmul.f32 %v6171_v17, %v6025_v9  ;;  %v14472_v24 = vmul.f32 %v6174_v37, %v6055_v6 }
 0x888   :  { %v8447_v49 = vpop.eup %8446 }
 0x889   :  { %v6285_v63 = vmul.f32 %v14440_v22, %v14087_v3  ;;  %v6077_v0 = vmul.f32 %v8447_v49, %v14430_v19  ;;  %v14458_v3 = vadd.f32 1e-05, %v5724_v55  ;;  %v6288_v17 = vmul.f32 %v14472_v24, %v14187_v27  ;;  %v6808_v27 = vld [vmem:[%s14792_s5 + $0x80] sm:$0xff] }
 0x88a   :  { %vm6083_vm8 = vweird.f32 %v8447_v49 }
 0x88b   :  { %v6078_v44 = vmul.f32 %v8447_v49, %v6077_v0  ;;  %8448 = vrsqrt.f32 %v14458_v3  ;;  %vm6084_vm10 = vmor %vm6082_vm9, %vm6083_vm8  ;;  %vm6112_vm13 = vweird.f32 %v14458_v3 }
 0x88c   :  { %v5601_v36 = vpop.xlane.xlu1 %5600 }
 0x88d   :  { %v5647_v40 = vmul.f32 0.020408163, %v5601_v36  ;;  %v6326_v36 = vsub.f32 %v6250_v39, %v6288_v17 }
 0x88e   :  { %6458 = vperm.xlu2 %8381, %v14113_v31   ;;  %v6323_v31 = vsub.f32 %v6247_v25, %v6285_v63  ;;  %v14918_v63 = vld [vmem:[#allocation17_spill] sm:$0xff] }
 0x88f   :  { %6671 = vperm.xlu0 %8379, %v6319_v48   ;;  %v5723_v57 = vsub.f32 %v5647_v40, %v5685_v47 }
 0x890   :  { %v14505_v37 = vpop.xlane.xlu2 %5419 }
 0x891   :  { %v14461_v12 = vadd.f32 1e-05, %v5723_v57  ;;  %v8449_v9 = vpop.eup %8448  ;;  %v6249_v57 = vld [vmem:[%s14791_s4 + $0xd8] sm:$0xff] }
 0x892   :  { %vm6113_vm11 = vweird.f32 %v8449_v9 }
 0x893   :  { %8450 = vrsqrt.f32 %v14461_v12  ;;  %vm6114_vm14 = vmor %vm6112_vm13, %vm6113_vm11  ;;  %vm6102_vm15 = vweird.f32 %v14461_v12 }
 0x896   :  { %6691 = vperm.xlu2 %8381, %v6323_v31  }
 0x897   :  { %6453 = vperm.xlu0 %8379, %v14062_v41   ;;  %v6079_v41 = vmul.f32 0.5, %v6078_v44  ;;  %v6253_v44 = vld [vmem:[%s14791_s4 + $0xf8] sm:$0xff] }
 0x899   :  { %v6080_v15 = vsub.f32 1.5, %v6079_v41  ;;  %v8451_v35 = vpop.eup %8450 }
 0x89a   :  { %v6097_v61 = vmul.f32 %v8451_v35, %v14461_v12  ;;  %vm6103_vm12 = vweird.f32 %v8451_v35  ;;  %v6252_v12 = vld [vmem:[%s14791_s4 + $0xf0] sm:$0xff] }
 0x89b   :  { %v6081_v7 = vmul.f32 %v8447_v49, %v6080_v15  ;;  %vm6104_vm0 = vmor %vm6102_vm15, %vm6103_vm12  ;;  %v14919_v15 = vld [vmem:[#allocation19_spill] sm:$0xff] }
 0x89c   :  { %v6098_v55 = vmul.f32 %v8451_v35, %v6097_v61 }
 0x89d   :  { %v6085_v5 = vsel %vm6084_vm10, %v8447_v49, %v6081_v7  ;;  %v6325_v49 = vsub.f32 %v6249_v57, %v14224_v14  ;;  %v6429_v14 = vpop.permute.xlu2 %6428  ;;  %v6248_v57 = vld [vmem:[%s14791_s4 + $0xd0] sm:$0xff] }
 0x89e   :  { %6473 = vperm.xlu2 %8381, %v14216_v38   ;;  %v6107_v38 = vmul.f32 %v8449_v9, %v14458_v3  ;;  %v6099_v0 = vmul.f32 0.5, %v6098_v55  ;;  %v6179_v3 = vld [vmem:[%s14790_s3 + $0x108] sm:$0xff] }
 0x89f   :  { %6686 = vperm.xlu0 %8379, %v6322_v45   ;;  %5609 = vadd.xlane.f32.xlu1 %v5608_v21 }
 0x8a0   :  { %v6108_v47 = vmul.f32 %v8449_v9, %v6107_v38  ;;  %v6100_v29 = vsub.f32 1.5, %v6099_v0 }
 0x8a2   :  { %v6109_v19 = vmul.f32 0.5, %v6108_v47  ;;  %v6101_v17 = vmul.f32 %v8451_v35, %v6100_v29  ;;  %v14920_v29 = vld [vmem:[#allocation18_spill] sm:$0xff] }
 0x8a4   :  { %v6419_v48 = vpop.permute.xlu1 %6418  ;;  %v6110_v1 = vsub.f32 1.5, %v6109_v19  ;;  %v6105_v39 = vsel %vm6104_vm0, %v8451_v35, %v6101_v17  ;;  %v6324_v19 = vsub.f32 %v6248_v57, %v14169_v8  ;;  %v6809_v8 = vld [vmem:[%s14792_s5 + $0x88] sm:$0xff] }
 0x8a5   :  { %v6542_v40 = vmul.f32 %v6419_v48, %v14918_v63  ;;  %v6217_v7 = vmul.f32 %v6179_v3, %v6105_v39 }
 0x8a6   :  { %6706 = vperm.xlu2 %8381, %v6326_v36   ;;  %v6111_v21 = vmul.f32 %v8449_v9, %v6110_v1  ;;  %v6544_v36 = vmul.f32 %v6429_v14, %v14919_v15 }
 0x8a7   :  { %v6770_v25 = vadd.f32 %v6647_v56, %v6542_v40  ;;  %6468 = vperm.xlu0 %8379, %v14165_v50   ;;  %v14503_v50 = vmul.f32 %v6177_v4, %v6085_v5  ;;  %v6328_v56 = vsub.f32 %v6252_v12, %v14334_v52  ;;  %v6256_v40 = vld [vmem:[%s14791_s4 + $0x110] sm:$0xff]  ;;  %v6255_v52 = vld [vmem:[%s14791_s4 + $0x108] sm:$0xff] }
 0x8a8   :  { %v5607_v41 = vpop.xlane.xlu0 %5606 }
 0x8a9   :  { %v6846_v31 = vadd.f32 %v6808_v27, %v6770_v25  ;;  %v6291_v6 = vmul.f32 %v14503_v50, %v14294_v60  ;;  %v6180_v60 = vld [vmem:[%s14790_s3 + $0x110] sm:$0xff] }
 0x8ab   :  { %6884 = vst.msk [vmem:[%s14793_s6 + $0x80] sm:$0xff] %vm5309_vm1, %v6846_v31  ;;  %v6329_v45 = vsub.f32 %v6253_v44, %v6291_v6 }
 0x8ae   :  { %6488 = vperm.xlu2 %8381, %v14328_v54   ;;  %v6115_v54 = vsel %vm6114_vm14, %v8449_v9, %v6111_v21  ;;  %v6242_v9 = vld [vmem:[%s14791_s4 + $0xa0] sm:$0xff] }
 0x8af   :  { %6701 = vperm.xlu0 %8379, %v6325_v49   ;;  %v14534_v35 = vmul.f32 %v6180_v60, %v6115_v54  ;;  %v6318_v61 = vsub.f32 %v6242_v9, %v13965_v10  ;;  %v6293_v10 = vmul.f32 %v6217_v7, %v14445_v18 }
 0x8b1   :  { %v6294_v63 = vmul.f32 %v14534_v35, %v14438_v30  ;;  %v6245_v30 = vld [vmem:[%s14791_s4 + $0xb8] sm:$0xff]  ;;  %v6331_v25 = vsub.f32 %v6255_v52, %v6293_v10  ;;  %v6813_v52 = vld [vmem:[%s14792_s5 + $0xa8] sm:$0xff] }
 0x8b2   :  { %v6321_v4 = vsub.f32 %v6245_v30, %v14072_v32 }
 0x8b3   :  { %v6332_v27 = vsub.f32 %v6256_v40, %v6294_v63 }
 0x8b6   :  { %6721 = vperm.xlu2 %8381, %v6329_v45   ;;  %v6181_v45 = vld [vmem:[%s14790_s3 + $0x118] sm:$0xff] }
 0x8b7   :  { %6483 = vperm.xlu0 %8379, %v14270_v16   ;;  %v6810_v16 = vld [vmem:[%s14792_s5 + $0x90] sm:$0xff] }
 0x8b8   :  { %6433 = vperm.xlu1 %8380, %v14398_v46  }
 0x8bb   :  { %v6657_v46 = vpop.permute.xlu0 %6656 }
 0x8bc   :  { %v6772_v48 = vadd.f32 %v6657_v46, %v6544_v36  ;;  %v6251_v36 = vld [vmem:[%s14791_s4 + $0xe8] sm:$0xff] }
 0x8bd   :  { %v6327_v46 = vsub.f32 %v6251_v36, %v14273_v26 }
 0x8be   :  { %v6848_v38 = vadd.f32 %v6810_v16, %v6772_v48  ;;  %6503 = vperm.xlu2 %8381, %v6217_v7  }
 0x8bf   :  { %6716 = vperm.xlu0 %8379, %v6328_v56  }
 0x8c0   :  { %6886 = vst.msk [vmem:[%s14793_s6 + $0x90] sm:$0xff] %vm5309_vm1, %v6848_v38  ;;  %6666 = vperm.xlu1 %8380, %v6318_v61   ;;  %v6254_v38 = vld [vmem:[%s14791_s4 + $0x100] sm:$0xff] }
 0x8c1   :  { %v6330_v63 = vsub.f32 %v6254_v38, %v14386_v2  ;;  %v14922_v38 = vld [vmem:[#allocation20_spill] sm:$0xff] }
 0x8c6   :  { %6736 = vperm.xlu2 %8381, %v6332_v27   ;;  %v14921_v27 = vld [vmem:[#allocation23_spill] sm:$0xff] }
 0x8c7   :  { %6498 = vperm.xlu0 %8379, %v14383_v42   ;;  %v5649_v42 = vmul.f32 0.020408163, %v5607_v41  ;;  %v6543_v41 = vmul.f32 %v14497_v33, %v14920_v29 }
 0x8c8   :  { %6448 = vperm.xlu1 %8380, %v14418_v34  }
 0x8cf   :  { %6731 = vperm.xlu0 %8379, %v6331_v25   ;;  %v5417_v5 = vpop.xlane.xlu1 %5416 }
 0x8d0   :  { %v14557_v47 = vmul.f32 0.020408163, %v5417_v5  ;;  %6681 = vperm.xlu1 %8380, %v6321_v4  }
 0x8d1   :  { %v5613_v31 = vpop.xlane.xlu2 %5612 }
 0x8d2   :  { %v5687_v34 = vmul.f32 %v14557_v47, %v14557_v47  ;;  %v5651_v33 = vmul.f32 0.020408163, %v5613_v31  ;;  %v5460_v31 = vmul.f32 0.020408163, %v14505_v37 }
 0x8d4   :  { %v5725_v18 = vsub.f32 %v5649_v42, %v5687_v34  ;;  %v6183_v42 = vld [vmem:[%s14790_s3 + $0x128] sm:$0xff] }
 0x8d6   :  { %v5763_v55 = vadd.f32 1e-05, %v5725_v18 }
 0x8d8   :  { %8452 = vrsqrt.f32 %v5763_v55  ;;  %6463 = vperm.xlu1 %8380, %v14440_v22   ;;  %vm6122_vm3 = vweird.f32 %v5763_v55 }
 0x8d9   :  { %v14566_v44 = vpop.permute.xlu2 %6661 }
 0x8de   :  { %v8453_v32 = vpop.eup %8452 }
 0x8df   :  { %v6117_v0 = vmul.f32 %v8453_v32, %v5763_v55  ;;  %vm6123_vm2 = vweird.f32 %v8453_v32 }
 0x8e0   :  { %6696 = vperm.xlu1 %8380, %v6324_v19   ;;  %vm6124_vm4 = vmor %vm6122_vm3, %vm6123_vm2 }
 0x8e1   :  { %v6118_v49 = vmul.f32 %v8453_v32, %v6117_v0  ;;  %v6444_v16 = vpop.permute.xlu2 %6443 }
 0x8e2   :  { %v6547_v26 = vmul.f32 %v6444_v16, %v14921_v27  ;;  %v6258_v27 = vld [vmem:[%s14791_s4 + $0x120] sm:$0xff] }
 0x8e3   :  { %v6119_v6 = vmul.f32 0.5, %v6118_v49 }
 0x8e5   :  { %v6120_v1 = vsub.f32 1.5, %v6119_v6  ;;  %v5688_v6 = vmul.f32 %v5460_v31, %v5460_v31 }
 0x8e6   :  { %v5423_v22 = vpop.xlane.xlu0 %5422 }
 0x8e7   :  { %v6121_v21 = vmul.f32 %v8453_v32, %v6120_v1  ;;  %v14573_v17 = vmul.f32 0.020408163, %v5423_v22  ;;  %v6652_v14 = vpop.permute.xlu1 %6651  ;;  %v6257_v1 = vld [vmem:[%s14791_s4 + $0x118] sm:$0xff] }
 0x8e8   :  { %v6771_v60 = vadd.f32 %v6652_v14, %v6543_v41  ;;  %6478 = vperm.xlu1 %8380, %v14472_v24  }
 0x8e9   :  { %v6125_v54 = vsel %vm6124_vm4, %v8453_v32, %v6121_v21  ;;  %v5689_v39 = vmul.f32 %v14573_v17, %v14573_v17  ;;  %v14589_v7 = vpop.permute.xlu2 %6676 }
 0x8ea   :  { %v6219_v3 = vmul.f32 %v6181_v45, %v6125_v54  ;;  %v6847_v15 = vadd.f32 %v6809_v8, %v6771_v60  ;;  %v6819_v54 = vld [vmem:[%s14792_s5 + $0xd8] sm:$0xff] }
 0x8eb   :  { %v5727_v12 = vsub.f32 %v5651_v33, %v5689_v39 }
 0x8ec   :  { %6885 = vst.msk [vmem:[%s14793_s6 + $0x88] sm:$0xff] %vm5309_vm1, %v6847_v15  ;;  %6513 = vperm.xlu0 %8379, %v6219_v3   ;;  %v6295_v19 = vmul.f32 %v6219_v3, %v14557_v47 }
 0x8ed   :  { %v5765_v24 = vadd.f32 1e-05, %v5727_v12 }
 0x8ef   :  { %8454 = vrsqrt.f32 %v5765_v24  ;;  %vm6142_vm6 = vweird.f32 %v5765_v24 }
 0x8f0   :  { %6711 = vperm.xlu1 %8380, %v6327_v46  }
 0x8f1   :  { %v6459_v10 = vpop.permute.xlu2 %6458 }
 0x8f2   :  { %v6550_v57 = vmul.f32 %v6459_v10, %v13919_v20  ;;  %v6333_v20 = vsub.f32 %v6257_v1, %v6295_v19  ;;  %v6814_v1 = vld [vmem:[%s14792_s5 + $0xb0] sm:$0xff] }
 0x8f5   :  { %v8455_v9 = vpop.eup %8454 }
 0x8f6   :  { %v6137_v48 = vmul.f32 %v8455_v9, %v5765_v24  ;;  %vm6143_vm5 = vweird.f32 %v8455_v9 }
 0x8f7   :  { %vm6144_vm7 = vmor %vm6142_vm6, %vm6143_vm5 }
 0x8f8   :  { %6493 = vperm.xlu1 %8380, %v14503_v50   ;;  %v6138_v61 = vmul.f32 %v8455_v9, %v6137_v48 }
 0x8f9   :  { %v14592_v56 = vpop.permute.xlu0 %6438  ;;  %v14612_v18 = vpop.permute.xlu2 %6691 }
 0x8fa   :  { %v6139_v40 = vmul.f32 0.5, %v6138_v61 }
 0x8fc   :  { %v6140_v25 = vsub.f32 1.5, %v6139_v40  ;;  %v6811_v40 = vld [vmem:[%s14792_s5 + $0x98] sm:$0xff] }
 0x8fe   :  { %v6141_v5 = vmul.f32 %v8455_v9, %v6140_v25  ;;  %v6259_v25 = vld [vmem:[%s14791_s4 + $0x128] sm:$0xff] }
 0x900   :  { %6726 = vperm.xlu1 %8380, %v6330_v63   ;;  %v6145_v34 = vsel %vm6144_vm7, %v8455_v9, %v6141_v5  ;;  %v14923_v5 = vld [vmem:[#allocation22_spill] sm:$0xff] }
 0x901   :  { %v6672_v30 = vpop.permute.xlu0 %6671  ;;  %v6221_v55 = vmul.f32 %v6183_v42, %v6145_v34  ;;  %v6474_v37 = vpop.permute.xlu2 %6473  ;;  %v6546_v42 = vmul.f32 %v14592_v56, %v14923_v5 }
 0x902   :  { %v6775_v50 = vadd.f32 %v6672_v30, %v6547_v26  ;;  %v6553_v14 = vmul.f32 %v6474_v37, %v14017_v51  ;;  %v6182_v51 = vld [vmem:[%s14790_s3 + $0x120] sm:$0xff] }
 0x904   :  { %v6851_v4 = vadd.f32 %v6813_v52, %v6775_v50  ;;  %v6297_v52 = vmul.f32 %v6221_v55, %v14573_v17 }
 0x906   :  { %6889 = vst.msk [vmem:[%s14793_s6 + $0xa8] sm:$0xff] %vm5309_vm1, %v6851_v4 }
 0x908   :  { %6508 = vperm.xlu1 %8380, %v14534_v35   ;;  %v6816_v35 = vld [vmem:[%s14792_s5 + $0xc0] sm:$0xff] }
 0x909   :  { %v14607_v2 = vpop.permute.xlu0 %6453  ;;  %v14629_v8 = vpop.permute.xlu2 %6706 }
 0x910   :  { %6523 = vperm.xlu1 %8380, %v6221_v55   ;;  %v6812_v55 = vld [vmem:[%s14792_s5 + $0xa0] sm:$0xff] }
 0x911   :  { %v6687_v32 = vpop.permute.xlu0 %6686  ;;  %v6489_v24 = vpop.permute.xlu2 %6488 }
 0x912   :  { %v6778_v0 = vadd.f32 %v6687_v32, %v6550_v57  ;;  %v5610_v49 = vpop.xlane.xlu1 %5609  ;;  %v6556_v4 = vmul.f32 %v6489_v24, %v14115_v59  ;;  %v6818_v24 = vld [vmem:[%s14792_s5 + $0xd0] sm:$0xff] }
 0x913   :  { %v5650_v29 = vmul.f32 0.020408163, %v5610_v49  ;;  %v14924_v49 = vld [vmem:[#allocation24_spill] sm:$0xff] }
 0x914   :  { %v6854_v41 = vadd.f32 %v6816_v35, %v6778_v0 }
 0x915   :  { %v5726_v22 = vsub.f32 %v5650_v29, %v5688_v6 }
 0x916   :  { %6892 = vst.msk [vmem:[%s14793_s6 + $0xc0] sm:$0xff] %vm5309_vm1, %v6854_v41 }
 0x917   :  { %v5764_v45 = vadd.f32 1e-05, %v5726_v22 }
 0x918   :  { %6741 = vperm.xlu1 %8380, %v6333_v20   ;;  %v14925_v20 = vld [vmem:[#allocation30_spill] sm:$0xff] }
 0x919   :  { %8456 = vrsqrt.f32 %v5764_v45  ;;  %v14627_v47 = vpop.permute.xlu0 %6468  ;;  %vm6132_vm9 = vweird.f32 %v5764_v45  ;;  %v6722_v57 = vpop.permute.xlu2 %6721 }
 0x91f   :  { %v8457_v21 = vpop.eup %8456 }
 0x920   :  { %v6127_v60 = vmul.f32 %v8457_v21, %v5764_v45  ;;  %vm6133_vm8 = vweird.f32 %v8457_v21  ;;  %v6549_v45 = vmul.f32 %v14607_v2, %v14925_v20 }
 0x921   :  { %v6702_v33 = vpop.permute.xlu0 %6701  ;;  %vm6134_vm10 = vmor %vm6132_vm9, %vm6133_vm8  ;;  %v6504_v29 = vpop.permute.xlu2 %6503 }
 0x922   :  { %v6128_v39 = vmul.f32 %v8457_v21, %v6127_v60  ;;  %v6781_v3 = vadd.f32 %v6702_v33, %v6553_v14  ;;  %v6559_v22 = vmul.f32 %v6504_v29, %v14210_v62 }
 0x924   :  { %v6129_v15 = vmul.f32 0.5, %v6128_v39  ;;  %v6857_v36 = vadd.f32 %v6819_v54, %v6781_v3  ;;  %v14926_v3 = vld [vmem:[#allocation31_spill] sm:$0xff] }
 0x926   :  { %v6130_v12 = vsub.f32 1.5, %v6129_v15  ;;  %6895 = vst.msk [vmem:[%s14793_s6 + $0xd8] sm:$0xff] %vm5309_vm1, %v6857_v36  ;;  %v6817_v36 = vld [vmem:[%s14792_s5 + $0xc8] sm:$0xff] }
 0x928   :  { %v6131_v16 = vmul.f32 %v8457_v21, %v6130_v12 }
 0x929   :  { %v14642_v46 = vpop.permute.xlu0 %6483 }
 0x92a   :  { %v6434_v9 = vpop.permute.xlu1 %6433  ;;  %v6135_v48 = vsel %vm6134_vm10, %v8457_v21, %v6131_v16  ;;  %v6825_v21 = vld [vmem:[%s14792_s5 + $0x108] sm:$0xff] }
 0x92b   :  { %v6545_v61 = vmul.f32 %v6434_v9, %v14922_v38  ;;  %v6220_v63 = vmul.f32 %v6182_v51, %v6135_v48  ;;  %v6552_v51 = vmul.f32 %v14627_v47, %v14034_v58  ;;  %v6820_v47 = vld [vmem:[%s14792_s5 + $0xe0] sm:$0xff] }
 0x92d   :  { %v6773_v26 = vadd.f32 %v14566_v44, %v6545_v61  ;;  %6518 = vperm.xlu2 %8381, %v6220_v63   ;;  %v6296_v10 = vmul.f32 %v6220_v63, %v5460_v31  ;;  %v6822_v44 = vld [vmem:[%s14792_s5 + $0xf0] sm:$0xff]  ;;  %v6335_v31 = vsub.f32 %v6259_v25, %v6297_v52 }
 0x92f   :  { %v6849_v30 = vadd.f32 %v6811_v40, %v6773_v26  ;;  %v6334_v50 = vsub.f32 %v6258_v27, %v6296_v10  ;;  %v6555_v40 = vmul.f32 %v14642_v46, %v14132_v11  ;;  %v6821_v27 = vld [vmem:[%s14792_s5 + $0xe8] sm:$0xff]  ;;  %v6823_v46 = vld [vmem:[%s14792_s5 + $0xf8] sm:$0xff] }
 0x931   :  { %6887 = vst.msk [vmem:[%s14793_s6 + $0x98] sm:$0xff] %vm5309_vm1, %v6849_v30  ;;  %v6717_v17 = vpop.permute.xlu0 %6716  ;;  %6746 = vperm.xlu0 %8379, %v6334_v50   ;;  %v14927_v50 = vld [vmem:[#allocation8_spill] sm:$0xff] }
 0x932   :  { %v6784_v34 = vadd.f32 %v6717_v17, %v6556_v4  ;;  %v6667_v59 = vpop.permute.xlu1 %6666  ;;  %v6824_v4 = vld [vmem:[%s14792_s5 + $0x100] sm:$0xff] }
 0x933   :  { %v6774_v56 = vadd.f32 %v6667_v59, %v6546_v42  ;;  %v14928_v17 = vld [vmem:[#allocation10_spill] sm:$0xff]  ;;  %v6826_v59 = vld [vmem:[%s14792_s5 + $0x110] sm:$0xff] }
 0x934   :  { %v6860_v35 = vadd.f32 %v6822_v44, %v6784_v34 }
 0x935   :  { %v6850_v32 = vadd.f32 %v6812_v55, %v6774_v56  ;;  %6751 = vperm.xlu2 %8381, %v6335_v31   ;;  %v6737_v55 = vpop.permute.xlu2 %6736 }
 0x936   :  { %6898 = vst.msk [vmem:[%s14793_s6 + $0xf0] sm:$0xff] %vm5309_vm1, %v6860_v35 }
 0x937   :  { %6888 = vst.msk [vmem:[%s14793_s6 + $0xa0] sm:$0xff] %vm5309_vm1, %v6850_v32 }
 0x939   :  { %v6499_v19 = vpop.permute.xlu0 %6498 }
 0x93a   :  { %v6449_v0 = vpop.permute.xlu1 %6448  ;;  %v6558_v25 = vmul.f32 %v6499_v19, %v14927_v50 }
 0x93b   :  { %v6548_v6 = vmul.f32 %v6449_v0, %v14924_v49  ;;  %v6827_v0 = vld [vmem:[%s14792_s5 + $0x118] sm:$0xff] }
 0x93d   :  { %v6776_v41 = vadd.f32 %v14589_v7, %v6548_v6  ;;  %v6815_v7 = vld [vmem:[%s14792_s5 + $0xb8] sm:$0xff] }
 0x93f   :  { %v6852_v37 = vadd.f32 %v6814_v1, %v6776_v41  ;;  %v6829_v41 = vld [vmem:[%s14792_s5 + $0x128] sm:$0xff] }
 0x941   :  { %6890 = vst.msk [vmem:[%s14793_s6 + $0xb0] sm:$0xff] %vm5309_vm1, %v6852_v37  ;;  %v6732_v14 = vpop.permute.xlu0 %6731 }
 0x942   :  { %v6787_v60 = vadd.f32 %v6732_v14, %v6559_v22  ;;  %v6682_v54 = vpop.permute.xlu1 %6681 }
 0x943   :  { %v6777_v62 = vadd.f32 %v6682_v54, %v6549_v45 }
 0x944   :  { %v6863_v33 = vadd.f32 %v6825_v21, %v6787_v60 }
 0x945   :  { %v6853_v39 = vadd.f32 %v6815_v7, %v6777_v62 }
 0x946   :  { %6901 = vst.msk [vmem:[%s14793_s6 + $0x108] sm:$0xff] %vm5309_vm1, %v6863_v33 }
 0x947   :  { %6891 = vst.msk [vmem:[%s14793_s6 + $0xb8] sm:$0xff] %vm5309_vm1, %v6853_v39 }
 0x94a   :  { %v6464_v2 = vpop.permute.xlu1 %6463 }
 0x94b   :  { %v6551_v15 = vmul.f32 %v6464_v2, %v14926_v3 }
 0x94d   :  { %v6779_v12 = vadd.f32 %v14612_v18, %v6551_v15 }
 0x94f   :  { %v6855_v16 = vadd.f32 %v6817_v36, %v6779_v12 }
 0x951   :  { %6893 = vst.msk [vmem:[%s14793_s6 + $0xc8] sm:$0xff] %vm5309_vm1, %v6855_v16 }
 0x952   :  { %v6697_v9 = vpop.permute.xlu1 %6696 }
 0x953   :  { %v6780_v48 = vadd.f32 %v6697_v9, %v6552_v51 }
 0x955   :  { %v6856_v38 = vadd.f32 %v6818_v24, %v6780_v48 }
 0x957   :  { %6894 = vst.msk [vmem:[%s14793_s6 + $0xd0] sm:$0xff] %vm5309_vm1, %v6856_v38 }
 0x95a   :  { %v6479_v18 = vpop.permute.xlu1 %6478 }
 0x95b   :  { %v6554_v58 = vmul.f32 %v6479_v18, %v14047_v28 }
 0x95d   :  { %v6782_v61 = vadd.f32 %v14629_v8, %v6554_v58 }
 0x95e   :  { %v6514_v35 = vpop.permute.xlu0 %6513 }
 0x95f   :  { %v6858_v63 = vadd.f32 %v6820_v47, %v6782_v61  ;;  %v6561_v19 = vmul.f32 %v6514_v35, %v14341_v43 }
 0x961   :  { %6896 = vst.msk [vmem:[%s14793_s6 + $0xe0] sm:$0xff] %vm5309_vm1, %v6858_v63 }
 0x962   :  { %v6712_v28 = vpop.permute.xlu1 %6711 }
 0x963   :  { %v6783_v26 = vadd.f32 %v6712_v28, %v6555_v40 }
 0x965   :  { %v6859_v10 = vadd.f32 %v6821_v27, %v6783_v26 }
 0x967   :  { %6897 = vst.msk [vmem:[%s14793_s6 + $0xe8] sm:$0xff] %vm5309_vm1, %v6859_v10 }
 0x96a   :  { %v6494_v8 = vpop.permute.xlu1 %6493 }
 0x96b   :  { %v6557_v11 = vmul.f32 %v6494_v8, %v14154_v13 }
 0x96d   :  { %v6785_v52 = vadd.f32 %v6722_v57, %v6557_v11 }
 0x96f   :  { %v6861_v30 = vadd.f32 %v6823_v46, %v6785_v52 }
 0x971   :  { %6899 = vst.msk [vmem:[%s14793_s6 + $0xf8] sm:$0xff] %vm5309_vm1, %v6861_v30 }
 0x972   :  { %v6727_v5 = vpop.permute.xlu1 %6726 }
 0x973   :  { %v6786_v42 = vadd.f32 %v6727_v5, %v6558_v25 }
 0x975   :  { %v6862_v13 = vadd.f32 %v6824_v4, %v6786_v42 }
 0x977   :  { %6900 = vst.msk [vmem:[%s14793_s6 + $0x100] sm:$0xff] %vm5309_vm1, %v6862_v13 }
 0x97a   :  { %v6509_v44 = vpop.permute.xlu1 %6508 }
 0x97b   :  { %v6560_v34 = vmul.f32 %v6509_v44, %v14928_v17 }
 0x97d   :  { %v6788_v31 = vadd.f32 %v6737_v55, %v6560_v34 }
 0x97f   :  { %v6864_v57 = vadd.f32 %v6826_v59, %v6788_v31 }
 0x981   :  { %6902 = vst.msk [vmem:[%s14793_s6 + $0x110] sm:$0xff] %vm5309_vm1, %v6864_v57 }
 0x982   :  { %v6524_v56 = vpop.permute.xlu1 %6523 }
 0x983   :  { %v6563_v29 = vmul.f32 %v6524_v56, %v14366_v53  ;;  %v6828_v53 = vld [vmem:[%s14792_s5 + $0x120] sm:$0xff] }
 0x987   :  { %v6519_v32 = vpop.permute.xlu2 %6518 }
 0x988   :  { %v6562_v20 = vmul.f32 %v6519_v32, %v14319_v23 }
 0x98a   :  { %v6742_v49 = vpop.permute.xlu1 %6741 }
 0x98b   :  { %v6789_v6 = vadd.f32 %v6742_v49, %v6561_v19 }
 0x98d   :  { %v6865_v1 = vadd.f32 %v6827_v0, %v6789_v6 }
 0x98f   :  { %6903 = vst.msk [vmem:[%s14793_s6 + $0x118] sm:$0xff] %vm5309_vm1, %v6865_v1  ;;  %v6752_v37 = vpop.permute.xlu2 %6751 }
 0x990   :  { %v6791_v43 = vadd.f32 %v6752_v37, %v6563_v29 }
 0x992   :  { %v6867_v22 = vadd.f32 %v6829_v41, %v6791_v43 }
 0x994   :  { %6905 = vst.msk [vmem:[%s14793_s6 + $0x128] sm:$0xff] %vm5309_vm1, %v6867_v22 }
 0x9a3   :  { %v6747_v45 = vpop.permute.xlu0 %6746 }
 0x9a4   :  { %v6790_v21 = vadd.f32 %v6747_v45, %v6562_v20 }
 0x9a6   :  { %v6866_v14 = vadd.f32 %v6828_v53, %v6790_v21 }
 0x9a8   :  { %6904 = vst.msk [vmem:[%s14793_s6 + $0x120] sm:$0xff] %vm5309_vm1, %v6866_v14 }

</bundles_post_ra>
